<compile_context>
chip_gen: v7x
topology: tpu7x:2x2x1
jax: 0.10.0
libtpu: 0.0.40
codegen_flags: <defaults>
</compile_context>

<pallas_src>
import jax
import jax.numpy as jnp
from jax.experimental import pallas as pl
from jax.experimental.pallas import tpu as pltpu


# ---------------------------------------------------------------------------
# Model configuration (mirrors the PyTorch __init__; synthetic, deterministic)
# ---------------------------------------------------------------------------
Z_SIZE = 32          # config['z_size']
USE_BIAS = True      # config['model']['D']['use_bias']
RELU_SLOPE = 0.0     # config['model']['D']['relu_slope'] -- unused: forward uses nn.ReLU
CONDITIONAL = False  # conditional=False path of forward()

HIDDEN = (64, 128, 512, 1024)
OUT_FEATURES = 2048 * 3   # 6144
TN = 3072                 # output tile width: 2 tiles -> one per TensorCore on v7x
NUM_TILES = OUT_FEATURES // TN


def _init_params(key):
    """Deterministic Kaiming-uniform-ish init, matching nn.Linear shapes."""
    dims = (Z_SIZE,) + HIDDEN + (OUT_FEATURES,)
    params = []
    for i in range(len(dims) - 1):
        fan_in, fan_out = dims[i], dims[i + 1]
        key, kw, kb = jax.random.split(key, 3)
        bound = 1.0 / (fan_in ** 0.5)
        # Stored as (in, out): transpose of PyTorch's (out, in) weight.
        w = jax.random.uniform(kw, (fan_in, fan_out), jnp.float32, -bound, bound)
        b = jax.random.uniform(kb, (1, fan_out), jnp.float32, -bound, bound)
        if not USE_BIAS:
            b = jnp.zeros((1, fan_out), jnp.float32)
        params.append((w, b))
    return params


def prepare_decoder_params(params):
    """One-time parameter prep (hoisted out of the forward pass).

    Casts the big last-layer weight to bf16 and pre-blocks it into
    (NUM_TILES, 1024, TN) so each grid step's weight fetch is one contiguous DMA.
    """
    (w1, b1), (w2, b2), (w3, b3), (w4, b4), (w5, b5) = params
    w5_blk = (w5.astype(jnp.bfloat16)
                .reshape(HIDDEN[3], NUM_TILES, TN)
                .transpose(1, 0, 2))                      # (NUM_TILES, 1024, TN), bf16
    prepared = {
        "w1": w1, "b1": b1, "w2": w2, "b2": b2,
        "w3": w3, "b3": b3, "w4": w4, "b4": b4,
        "w5_blk": w5_blk, "b5": b5,
    }
    # Materialize now so the cast/reshape never runs inside the forward pass.
    return jax.tree_util.tree_map(jnp.asarray, prepared)


# ---------------------------------------------------------------------------
# Fused Pallas kernel: whole decoder, tiled over the 6144-wide output dim
# ---------------------------------------------------------------------------
def _decoder_kernel(z_ref,
                    w1_ref, b1_ref, w2_ref, b2_ref, w3_ref, b3_ref,
                    w4_ref, b4_ref,
                    w5_ref, b5_ref,
                    out_ref):
    # Front MLP z -> 64 -> 128 -> 512 -> 1024 (ReLU after each layer), all f32.
    # Recomputed per output tile: FLOPs are negligible and this keeps the grid
    # axis free of carried state, so it can shard across TensorCores.
    h = jnp.dot(z_ref[...], w1_ref[...], preferred_element_type=jnp.float32)
    h = jnp.maximum(h + b1_ref[...], 0.0)
    h = jnp.dot(h, w2_ref[...], preferred_element_type=jnp.float32)
    h = jnp.maximum(h + b2_ref[...], 0.0)
    h = jnp.dot(h, w3_ref[...], preferred_element_type=jnp.float32)
    h = jnp.maximum(h + b3_ref[...], 0.0)
    h = jnp.dot(h, w4_ref[...], preferred_element_type=jnp.float32)
    h = jnp.maximum(h + b4_ref[...], 0.0)

    # Output layer (no activation): bf16 x bf16 matmul with f32 accumulation,
    # f32 bias and f32 output; one lane-dense (B, TN) slab per grid step.
    hb = h.astype(jnp.bfloat16)
    out_ref[...] = (jnp.dot(hb, w5_ref[...], preferred_element_type=jnp.float32)
                    + b5_ref[...])


def decoder_forward(z, p):
    """Pallas equivalent of Decoder.forward(input) with conditional=False.

    z: (B, Z_SIZE) float32 (PyTorch's input.squeeze())
    p: output of prepare_decoder_params()
    returns: (B, 3, 2048) float32
    """
    B = z.shape[0]
    full = lambda j: (0, 0)   # whole-array blocks (constant index -> DMA'd once)

    front_flops = 2 * B * (Z_SIZE * HIDDEN[0] + HIDDEN[0] * HIDDEN[1]
                           + HIDDEN[1] * HIDDEN[2] + HIDDEN[2] * HIDDEN[3])
    cost = pl.CostEstimate(
        flops=front_flops * NUM_TILES + 2 * B * HIDDEN[3] * OUT_FEATURES,
        transcendentals=0,
        bytes_accessed=int(
            p["w5_blk"].size * 2                     # bf16 weight stream (dominant)
            + sum(p[k].size * 4 for k in ("w1", "w2", "w3", "w4",
                                          "b1", "b2", "b3", "b4", "b5"))
            + z.size * 4
            + B * OUT_FEATURES * 4))                 # output

    flat = pl.pallas_call(
        _decoder_kernel,
        out_shape=jax.ShapeDtypeStruct((B, OUT_FEATURES), jnp.float32),
        grid_spec=pltpu.PrefetchScalarGridSpec(
            num_scalar_prefetch=0,
            grid=(NUM_TILES,),
            in_specs=[
                pl.BlockSpec((B, Z_SIZE), full),                  # z
                pl.BlockSpec((Z_SIZE, HIDDEN[0]), full),          # w1
                pl.BlockSpec((1, HIDDEN[0]), full),               # b1
                pl.BlockSpec((HIDDEN[0], HIDDEN[1]), full),       # w2
                pl.BlockSpec((1, HIDDEN[1]), full),               # b2
                pl.BlockSpec((HIDDEN[1], HIDDEN[2]), full),       # w3
                pl.BlockSpec((1, HIDDEN[2]), full),               # b3
                pl.BlockSpec((HIDDEN[2], HIDDEN[3]), full),       # w4
                pl.BlockSpec((1, HIDDEN[3]), full),               # b4
                pl.BlockSpec((None, HIDDEN[3], TN),
                             lambda j: (j, 0, 0)),                # w5 tile (contiguous)
                pl.BlockSpec((1, TN), lambda j: (0, j)),          # b5 tile
            ],
            out_specs=pl.BlockSpec((B, TN), lambda j: (0, j)),
        ),
        compiler_params=pltpu.CompilerParams(
            dimension_semantics=("parallel",),      # state-free axis -> 2 TCs on v7x
            vmem_limit_bytes=28 * 1024 * 1024),     # double-buffered 6 MiB w5 tiles fit v5e too
        cost_estimate=cost,
    )(z, p["w1"], p["b1"], p["w2"], p["b2"], p["w3"], p["b3"],
      p["w4"], p["b4"], p["w5_blk"], p["b5"])

    # output.view(-1, 3, 2048)
    return flat.reshape(-1, 3, 2048)


# ---------------------------------------------------------------------------
# References
# ---------------------------------------------------------------------------
def decoder_reference(z, params):
    """Plain-JAX reference matching the kernel's bf16 weight-streaming of the last layer."""
    h = z
    for w, b in params[:-1]:
        h = jnp.maximum(h @ w + b, 0.0)
    w5, b5 = params[-1]
    hb = h.astype(jnp.bfloat16).astype(jnp.float32)
    w5b = w5.astype(jnp.bfloat16).astype(jnp.float32)
    return (hb @ w5b + b5).reshape(-1, 3, 2048)


def decoder_reference_f32(z, params):
    """Pure-f32 reference of the original PyTorch math (loose-tolerance sanity check)."""
    h = z
    for i, (w, b) in enumerate(params):
        h = h @ w + b
        if i < len(params) - 1:
            h = jnp.maximum(h, 0.0)
    return h.reshape(-1, 3, 2048)


if __name__ == "__main__":
    key = jax.random.PRNGKey(0)
    kp, kz = jax.random.split(key)
    raw_params = _init_params(kp)

    # One-time weight prep (bf16 cast + pre-blocking) -- hoisted out of forward.
    dec_params = prepare_decoder_params(raw_params)

    B = 8
    # PyTorch forward does input.squeeze(); we feed the already-squeezed (B, z) latent.
    z = jax.random.normal(kz, (B, Z_SIZE), dtype=jnp.float32)

    fwd = jax.jit(decoder_forward)
    out = jax.block_until_ready(fwd(z, dec_params))
    assert out.shape == (B, 3, 2048), out.shape

    ref = decoder_reference(z, raw_params)
    err = float(jnp.max(jnp.abs(out - ref)))
    assert jnp.allclose(out, ref, atol=1e-3, rtol=1e-3), err

    # Loose sanity check against the exact f32 module math (bf16 weight
    # streaming intentionally changes numerics at the bf16 level).
    ref32 = decoder_reference_f32(z, raw_params)
    err32 = float(jnp.max(jnp.abs(out - ref32)))
    assert jnp.allclose(out, ref32, atol=5e-2, rtol=5e-2), err32

    print("KERNEL_OK")
</pallas_src>

<mosaic_0001>
module attributes {stable_mosaic.version = 11 : i64} {
  func.func @_decoder_kernel(%arg0: i32, %arg1: memref<8x32xf32, #tpu.memory_space<vmem>>, %arg2: memref<32x64xf32, #tpu.memory_space<vmem>>, %arg3: memref<1x64xf32, #tpu.memory_space<vmem>>, %arg4: memref<64x128xf32, #tpu.memory_space<vmem>>, %arg5: memref<1x128xf32, #tpu.memory_space<vmem>>, %arg6: memref<128x512xf32, #tpu.memory_space<vmem>>, %arg7: memref<1x512xf32, #tpu.memory_space<vmem>>, %arg8: memref<512x1024xf32, #tpu.memory_space<vmem>>, %arg9: memref<1x1024xf32, #tpu.memory_space<vmem>>, %arg10: memref<1x1024x3072xbf16, #tpu.memory_space<vmem>>, %arg11: memref<1x3072xf32, #tpu.memory_space<vmem>>, %arg12: memref<8x3072xf32, #tpu.memory_space<vmem>>) attributes {dimension_semantics = [#tpu.dimension_semantics<parallel>], iteration_bounds = array<i64: 2>, scalar_prefetch = 0 : i64, scratch_operands = 0 : i64, tpu.core_type = #tpu.core_type<tc>, window_params = [{pipeline_mode = #tpu.pipeline_mode<synchronous>, transform_indices = @transform_0, window_bounds = array<i64: 8, 32>}, {pipeline_mode = #tpu.pipeline_mode<synchronous>, transform_indices = @transform_1, window_bounds = array<i64: 32, 64>}, {pipeline_mode = #tpu.pipeline_mode<synchronous>, transform_indices = @transform_2, window_bounds = array<i64: 1, 64>}, {pipeline_mode = #tpu.pipeline_mode<synchronous>, transform_indices = @transform_3, window_bounds = array<i64: 64, 128>}, {pipeline_mode = #tpu.pipeline_mode<synchronous>, transform_indices = @transform_4, window_bounds = array<i64: 1, 128>}, {pipeline_mode = #tpu.pipeline_mode<synchronous>, transform_indices = @transform_5, window_bounds = array<i64: 128, 512>}, {pipeline_mode = #tpu.pipeline_mode<synchronous>, transform_indices = @transform_6, window_bounds = array<i64: 1, 512>}, {pipeline_mode = #tpu.pipeline_mode<synchronous>, transform_indices = @transform_7, window_bounds = array<i64: 512, 1024>}, {pipeline_mode = #tpu.pipeline_mode<synchronous>, transform_indices = @transform_8, window_bounds = array<i64: 1, 1024>}, {transform_indices = @transform_9, window_bounds = array<i64: 1, 1024, 3072>}, {transform_indices = @transform_10, window_bounds = array<i64: 1, 3072>}, {transform_indices = @transform_11, window_bounds = array<i64: 8, 3072>}]} {
    %c0 = arith.constant 0 : index
    %c0_0 = arith.constant 0 : index
    %0 = vector.load %arg1[%c0, %c0_0] : memref<8x32xf32, #tpu.memory_space<vmem>>, vector<8x32xf32>
    %c0_1 = arith.constant 0 : index
    %c0_2 = arith.constant 0 : index
    %1 = vector.load %arg2[%c0_1, %c0_2] : memref<32x64xf32, #tpu.memory_space<vmem>>, vector<32x64xf32>
    %cst = arith.constant dense<0.000000e+00> : vector<8x64xf32>
    %2 = tpu.matmul %0, %1, %cst {dimension_numbers = #tpu.dot_dimension_numbers<[1], [0], [0], [1], [0, 0, 1, 1], [], []>} : vector<8x32xf32>, vector<32x64xf32>, vector<8x64xf32> -> vector<8x64xf32>
    %c0_3 = arith.constant 0 : index
    %c0_4 = arith.constant 0 : index
    %3 = vector.load %arg3[%c0_3, %c0_4] : memref<1x64xf32, #tpu.memory_space<vmem>>, vector<1x64xf32>
    %4 = vector.broadcast %3 : vector<1x64xf32> to vector<8x64xf32>
    %5 = arith.addf %2, %4 : vector<8x64xf32>
    %cst_5 = arith.constant 0.000000e+00 : f32
    %6 = vector.broadcast %cst_5 : f32 to vector<8x64xf32>
    %7 = arith.maximumf %5, %6 : vector<8x64xf32>
    %c0_6 = arith.constant 0 : index
    %c0_7 = arith.constant 0 : index
    %8 = vector.load %arg4[%c0_6, %c0_7] : memref<64x128xf32, #tpu.memory_space<vmem>>, vector<64x128xf32>
    %cst_8 = arith.constant dense<0.000000e+00> : vector<8x128xf32>
    %9 = tpu.matmul %7, %8, %cst_8 {dimension_numbers = #tpu.dot_dimension_numbers<[1], [0], [0], [1], [0, 0, 1, 1], [], []>} : vector<8x64xf32>, vector<64x128xf32>, vector<8x128xf32> -> vector<8x128xf32>
    %c0_9 = arith.constant 0 : index
    %c0_10 = arith.constant 0 : index
    %10 = vector.load %arg5[%c0_9, %c0_10] : memref<1x128xf32, #tpu.memory_space<vmem>>, vector<1x128xf32>
    %11 = vector.broadcast %10 : vector<1x128xf32> to vector<8x128xf32>
    %12 = arith.addf %9, %11 : vector<8x128xf32>
    %cst_11 = arith.constant 0.000000e+00 : f32
    %13 = vector.broadcast %cst_11 : f32 to vector<8x128xf32>
    %14 = arith.maximumf %12, %13 : vector<8x128xf32>
    %c0_12 = arith.constant 0 : index
    %c0_13 = arith.constant 0 : index
    %15 = vector.load %arg6[%c0_12, %c0_13] : memref<128x512xf32, #tpu.memory_space<vmem>>, vector<128x512xf32>
    %cst_14 = arith.constant dense<0.000000e+00> : vector<8x512xf32>
    %16 = tpu.matmul %14, %15, %cst_14 {dimension_numbers = #tpu.dot_dimension_numbers<[1], [0], [0], [1], [0, 0, 1, 1], [], []>} : vector<8x128xf32>, vector<128x512xf32>, vector<8x512xf32> -> vector<8x512xf32>
    %c0_15 = arith.constant 0 : index
    %c0_16 = arith.constant 0 : index
    %17 = vector.load %arg7[%c0_15, %c0_16] : memref<1x512xf32, #tpu.memory_space<vmem>>, vector<1x512xf32>
    %18 = vector.broadcast %17 : vector<1x512xf32> to vector<8x512xf32>
    %19 = arith.addf %16, %18 : vector<8x512xf32>
    %cst_17 = arith.constant 0.000000e+00 : f32
    %20 = vector.broadcast %cst_17 : f32 to vector<8x512xf32>
    %21 = arith.maximumf %19, %20 : vector<8x512xf32>
    %c0_18 = arith.constant 0 : index
    %c0_19 = arith.constant 0 : index
    %22 = vector.load %arg8[%c0_18, %c0_19] : memref<512x1024xf32, #tpu.memory_space<vmem>>, vector<512x1024xf32>
    %cst_20 = arith.constant dense<0.000000e+00> : vector<8x1024xf32>
    %23 = tpu.matmul %21, %22, %cst_20 {dimension_numbers = #tpu.dot_dimension_numbers<[1], [0], [0], [1], [0, 0, 1, 1], [], []>} : vector<8x512xf32>, vector<512x1024xf32>, vector<8x1024xf32> -> vector<8x1024xf32>
    %c0_21 = arith.constant 0 : index
    %c0_22 = arith.constant 0 : index
    %24 = vector.load %arg9[%c0_21, %c0_22] : memref<1x1024xf32, #tpu.memory_space<vmem>>, vector<1x1024xf32>
    %25 = vector.broadcast %24 : vector<1x1024xf32> to vector<8x1024xf32>
    %26 = arith.addf %23, %25 : vector<8x1024xf32>
    %cst_23 = arith.constant 0.000000e+00 : f32
    %27 = vector.broadcast %cst_23 : f32 to vector<8x1024xf32>
    %28 = arith.maximumf %26, %27 : vector<8x1024xf32>
    %29 = arith.truncf %28 : vector<8x1024xf32> to vector<8x1024xbf16>
    %c0_24 = arith.constant 0 : index
    %c0_25 = arith.constant 0 : index
    %c0_26 = arith.constant 0 : index
    %30 = vector.load %arg10[%c0_24, %c0_25, %c0_26] : memref<1x1024x3072xbf16, #tpu.memory_space<vmem>>, vector<1x1024x3072xbf16>
    %31 = vector.shape_cast %30 : vector<1x1024x3072xbf16> to vector<1024x3072xbf16>
    %cst_27 = arith.constant dense<0.000000e+00> : vector<8x3072xf32>
    %32 = tpu.matmul %29, %31, %cst_27 {dimension_numbers = #tpu.dot_dimension_numbers<[1], [0], [0], [1], [0, 0, 1, 1], [], []>} : vector<8x1024xbf16>, vector<1024x3072xbf16>, vector<8x3072xf32> -> vector<8x3072xf32>
    %c0_28 = arith.constant 0 : index
    %c0_29 = arith.constant 0 : index
    %33 = vector.load %arg11[%c0_28, %c0_29] : memref<1x3072xf32, #tpu.memory_space<vmem>>, vector<1x3072xf32>
    %34 = vector.broadcast %33 : vector<1x3072xf32> to vector<8x3072xf32>
    %35 = arith.addf %32, %34 : vector<8x3072xf32>
    %c0_30 = arith.constant 0 : index
    %c0_31 = arith.constant 0 : index
    %36 = vector.load %arg12[%c0_30, %c0_31] : memref<8x3072xf32, #tpu.memory_space<vmem>>, vector<8x3072xf32>
    tpu.vector_store %arg12[%c0_30, %c0_31], %35 {strides = array<i32>} : memref<8x3072xf32, #tpu.memory_space<vmem>>, vector<8x3072xf32>,
    return
  }
  func.func @transform_0(%arg0: i32) -> (i32, i32) {
    %c0_i32 = arith.constant 0 : i32
    %c0_i32_0 = arith.constant 0 : i32
    %c0_i32_1 = arith.constant 0 : i32
    return %c0_i32, %c0_i32_0 : i32, i32
  }
  func.func @transform_1(%arg0: i32) -> (i32, i32) {
    %c0_i32 = arith.constant 0 : i32
    %c0_i32_0 = arith.constant 0 : i32
    %c0_i32_1 = arith.constant 0 : i32
    return %c0_i32, %c0_i32_0 : i32, i32
  }
  func.func @transform_2(%arg0: i32) -> (i32, i32) {
    %c0_i32 = arith.constant 0 : i32
    %c0_i32_0 = arith.constant 0 : i32
    %c0_i32_1 = arith.constant 0 : i32
    return %c0_i32, %c0_i32_0 : i32, i32
  }
  func.func @transform_3(%arg0: i32) -> (i32, i32) {
    %c0_i32 = arith.constant 0 : i32
    %c0_i32_0 = arith.constant 0 : i32
    %c0_i32_1 = arith.constant 0 : i32
    return %c0_i32, %c0_i32_0 : i32, i32
  }
  func.func @transform_4(%arg0: i32) -> (i32, i32) {
    %c0_i32 = arith.constant 0 : i32
    %c0_i32_0 = arith.constant 0 : i32
    %c0_i32_1 = arith.constant 0 : i32
    return %c0_i32, %c0_i32_0 : i32, i32
  }
  func.func @transform_5(%arg0: i32) -> (i32, i32) {
    %c0_i32 = arith.constant 0 : i32
    %c0_i32_0 = arith.constant 0 : i32
    %c0_i32_1 = arith.constant 0 : i32
    return %c0_i32, %c0_i32_0 : i32, i32
  }
  func.func @transform_6(%arg0: i32) -> (i32, i32) {
    %c0_i32 = arith.constant 0 : i32
    %c0_i32_0 = arith.constant 0 : i32
    %c0_i32_1 = arith.constant 0 : i32
    return %c0_i32, %c0_i32_0 : i32, i32
  }
  func.func @transform_7(%arg0: i32) -> (i32, i32) {
    %c0_i32 = arith.constant 0 : i32
    %c0_i32_0 = arith.constant 0 : i32
    %c0_i32_1 = arith.constant 0 : i32
    return %c0_i32, %c0_i32_0 : i32, i32
  }
  func.func @transform_8(%arg0: i32) -> (i32, i32) {
    %c0_i32 = arith.constant 0 : i32
    %c0_i32_0 = arith.constant 0 : i32
    %c0_i32_1 = arith.constant 0 : i32
    return %c0_i32, %c0_i32_0 : i32, i32
  }
  func.func @transform_9(%arg0: i32) -> (i32, i32, i32) {
    %c0_i32 = arith.constant 0 : i32
    %c0_i32_0 = arith.constant 0 : i32
    %c0_i32_1 = arith.constant 0 : i32
    return %arg0, %c0_i32, %c0_i32_0 : i32, i32, i32
  }
  func.func @transform_10(%arg0: i32) -> (i32, i32) {
    %c0_i32 = arith.constant 0 : i32
    %c0_i32_0 = arith.constant 0 : i32
    return %c0_i32, %arg0 : i32, i32
  }
  func.func @transform_11(%arg0: i32) -> (i32, i32) {
    %c0_i32 = arith.constant 0 : i32
    %c0_i32_0 = arith.constant 0 : i32
    return %c0_i32, %arg0 : i32, i32
  }
}

</mosaic_0001>

<bundles_post_ra>
// kernel: decoder_forward.1
= control target key start
LH: loop header
LB: loop body
LE: loop exit
PB: predicated region body
PF: predicated region fallthrough
CT: control target
= control target key end

     0   :  { %s18910_s0 = inlined_call_operand.hbm [shape: f32[8,32], index: 0, kind: input, shape index: {}]   ;;  %s18911_s1 = inlined_call_operand.hbm [shape: f32[32,64], index: 1, kind: input, shape index: {}]   ;;  %s18912_s2 = inlined_call_operand.hbm [shape: f32[1,64], index: 2, kind: input, shape index: {}]   ;;  %s18913_s3 = inlined_call_operand.hbm [shape: f32[64,128], index: 3, kind: input, shape index: {}]   ;;  %s18914_s4 = inlined_call_operand.hbm [shape: f32[1,128], index: 4, kind: input, shape index: {}]   ;;  %s18915_s5 = inlined_call_operand.hbm [shape: f32[128,512], index: 5, kind: input, shape index: {}]   ;;  %s18916_s6 = inlined_call_operand.hbm [shape: f32[1,512], index: 6, kind: input, shape index: {}]   ;;  %s18917_s7 = inlined_call_operand.hbm [shape: f32[512,1024], index: 7, kind: input, shape index: {}]   ;;  %s18918_s8 = inlined_call_operand.hbm [shape: f32[1,1024], index: 8, kind: input, shape index: {}]   ;;  %s18919_s9 = inlined_call_operand.hbm [shape: bf16[2,1024,3072], index: 9, kind: input, shape index: {}]   ;;  %s18920_s10 = inlined_call_operand.hbm [shape: f32[1,6144], index: 10, kind: input, shape index: {}]   ;;  %s18921_s11 = inlined_call_operand.hbm [shape: f32[8,6144], index: 11, kind: output, shape index: {}]  }
   0x1   :  { %18937 = sst [smem:[#allocation31_spill]] %s18911_s1 }
   0x2   :  { %18938 = sst [smem:[#allocation32_spill]] %s18913_s3 }
   0x3   :  { %18939 = sst [smem:[#allocation33_spill]] %s18915_s5 }
   0x4   :  { %18940 = sst [smem:[#allocation34_spill]] %s18917_s7 }
   0x5   :  { %18941 = sst [smem:[#allocation35_spill]] %s18919_s9 }
   0x6   :  { %18942 = sst [smem:[#allocation36_spill]] %s18920_s10 }
   0x7   :  { %18943 = sst [smem:[#allocation37_spill]] %s18921_s11 }
   0x8   :  { %16 = vsyncpa [#allocation3], 0 }
   0x9   :  { %17 = vsyncpa [#allocation6], 0 }
   0xa   :  { %18 = vsyncpa [#allocation9], 0 }
   0xb   :  { %19 = vsyncpa [#allocation12], 0 }
   0xc   :  { %20 = vsyncpa [#allocation15], 0 }
   0xd   :  { %21 = vsyncpa [#allocation18], 0 }
   0xe   :  { %23 = vsyncpa [#allocation18 + $0x1], 0 }
   0xf   :  { %24 = vsyncpa [#allocation4], 0 }
  0x10   :  { %26 = vsyncpa [#allocation4 + $0x1], 0  ;;  %s16673_s17 = smov 0   ;;  %s16675_s18 = smov 0  }
  0x11   :  { %s16677_s19 = smov 0   ;;  %s16679_s20 = smov 0  }
  0x12 LB: > { %s16590_s21 = smov [#allocation5]   ;;  %s16694_s23 = sadd.s32 4294967295, %s16588_s20   ;;  %s16588_s20 = sphi %s16679_s20, %s18983_s20   ;;  %s16584_s19 = sphi %s16677_s19, %s18987_s19   ;;  %s16580_s18 = sphi %s16675_s18, %s18986_s18   ;;  %s16576_s17 = sphi %s16673_s17, %s18985_s17  }
  0x13   : > { %s327_s22 = sshll.u32 %s16590_s21, 4  ;;  %p13638_p0 = scmp.ge.s32.totalorder %s16588_s20, 1  ;;  %s16699_s22 = int_to_ptr.vmem [resolvable:$true] %s327_s22 }
  0x14   : > { %p18925_p1 = scmp.eq.s32.totalorder %s16694_s23, 0  ;;  %p304_p2 = scmp.lt.s32.totalorder %s16588_s20, 3 }
  0x15   : > { %s16591_s25 = smov [#allocation8]   ;;  %s16592_s28 = smov [#allocation11]  }
  0x16   : > { %p16701_p3 = pnand %p13638_p0, %p304_p2  ;;  %s351_s26 = sshll.u32 %s16591_s25, 4  ;;  %s16714_s26 = int_to_ptr.vmem [resolvable:$true] %s351_s26 }
  0x17   : > { %s375_s29 = sshll.u32 %s16592_s28, 4  ;;  %s18947_s1 = sld [smem:[#allocation31_spill]]  ;;  %s16716_s29 = int_to_ptr.vmem [resolvable:$true] %s375_s29 }
  0x18   : > { %s18944_s24 = scalar_select %p16701_p3, 1, 0 }
  0x19   : > { %p16076_p5 = pneg %p16701_p3 }
  0x1a   : > { %18945 = sst [smem:[#allocation28_spill]] %s18944_s24 }
  0x1b   : > { %p16710_p6 = pnand %p16076_p5, %p18925_p1 }
  0x1d   : > { %s18946_s27 = scalar_select %p16710_p6, 1, 0 }
  0x1e   : > { %s16190_s13 = scalar_lea.hbm %s18947_s1, 512  ;;  %p16726_p8 = pneg %p16710_p6 }
  0x1f   : > { %p16191_p7 = scmp.ne.s32.totalorder %s18947_s1, %s16190_s13  ;;  %p16197_p11 = scmp.lt.u32.totalorder %s16190_s13, %s18947_s1 }
  0x21   : > { %p16193_p9 = pnand %p16726_p8, %p16191_p7 }
  0x23   : > { %p16194_p10 = pneg %p16193_p9 }
  0x25   : > { %p16199_p12 = pnand %p16197_p11, %p16194_p10 }
  0x27   : > { %16202 = shalt.err (!%p16199_p12)
}
  0x28   : > { %s16203_s28 = scalar_lea.vmem %s16699_s22, 512  ;;  %p16211_p5 = scmp.lt.s32.totalorder %s16699_s22, %s16699_s22 }
  0x29   : > { %p16204_p13 = scmp.ne.s32.totalorder %s16699_s22, %s16203_s28  ;;  %p16212_p4 = scmp.lt.s32.totalorder %s16203_s28, %s16203_s28 }
  0x2b   : > { %p16206_p0 = pnand %p16204_p13, %p16726_p8  ;;  %p16213_p7 = por %p16212_p4, %p16211_p5 }
  0x2d   : > { %p16207_p2 = pneg %p16206_p0 }
  0x2f   : > { %p16214_p9 = pnand %p16213_p7, %p16207_p2 }
  0x31   : > { %16217 = shalt.err (!%p16214_p9)
}
  0x32   : > { %s16593_s30 = smov 128   ;;  %s16594_s12 = smov 8  }
  0x33   : > { %16082 = dma.hbm_to_vmem [thread:$0]  (!%p16710_p6), %s18947_s1, 512, %s16699_s22, [#allocation6], %s16593_s30, %s16593_s30, %s16594_s12  }
  0x34   : > { %s18949_s3 = sld [smem:[#allocation32_spill]] }
  0x3a   : > { %s16218_s25 = scalar_lea.hbm %s18949_s3, 1024 }
  0x3b   : > { %p16219_p4 = scmp.ne.s32.totalorder %s18949_s3, %s16218_s25  ;;  %p16225_p12 = scmp.lt.u32.totalorder %s16218_s25, %s18949_s3 }
  0x3d   : > { %p16221_p10 = pnand %p16219_p4, %p16726_p8 }
  0x3f   : > { %p16222_p11 = pneg %p16221_p10 }
  0x41   : > { %p16227_p13 = pnand %p16225_p12, %p16222_p11 }
  0x43   : > { %16230 = shalt.err (!%p16227_p13)
}
  0x44   : > { %s16231_s22 = scalar_lea.vmem %s16714_s26, 1024  ;;  %p16239_p7 = scmp.lt.s32.totalorder %s16714_s26, %s16714_s26 }
  0x45   : > { %p16232_p0 = scmp.ne.s32.totalorder %s16714_s26, %s16231_s22  ;;  %p16240_p9 = scmp.lt.s32.totalorder %s16231_s22, %s16231_s22 }
  0x47   : > { %p16234_p2 = pnand %p16232_p0, %p16726_p8  ;;  %p16241_p4 = por %p16240_p9, %p16239_p7 }
  0x49   : > { %p16235_p5 = pneg %p16234_p2 }
  0x4b   : > { %p16242_p10 = pnand %p16241_p4, %p16235_p5 }
  0x4d   : > { %16245 = shalt.err (!%p16242_p10)
}
  0x4e   : > { %16088 = dma.hbm_to_vmem [thread:$0]  (!%p16710_p6), %s18949_s3, 1024, %s16714_s26, [#allocation9], %s16593_s30, %s16593_s30, %s16594_s12  }
  0x4f   : > { %s18950_s5 = sld [smem:[#allocation33_spill]] }
  0x55   : > { %s16246_s14 = scalar_lea.hbm %s18950_s5, 8192 }
  0x56   : > { %p16247_p11 = scmp.ne.s32.totalorder %s18950_s5, %s16246_s14  ;;  %p16253_p0 = scmp.lt.u32.totalorder %s16246_s14, %s18950_s5 }
  0x58   : > { %p16249_p12 = pnand %p16247_p11, %p16726_p8 }
  0x5a   : > { %p16250_p13 = pneg %p16249_p12 }
  0x5c   : > { %p16255_p2 = pnand %p16253_p0, %p16250_p13 }
  0x5e   : > { %16258 = shalt.err (!%p16255_p2)
}
  0x5f   : > { %s16259_s26 = scalar_lea.vmem %s16716_s29, 8192  ;;  %p16267_p4 = scmp.lt.s32.totalorder %s16716_s29, %s16716_s29 }
  0x60   : > { %p16260_p5 = scmp.ne.s32.totalorder %s16716_s29, %s16259_s26  ;;  %p16268_p10 = scmp.lt.s32.totalorder %s16259_s26, %s16259_s26 }
  0x62   : > { %p16262_p7 = pnand %p16260_p5, %p16726_p8  ;;  %p16269_p11 = por %p16268_p10, %p16267_p4 }
  0x64   : > { %p16263_p9 = pneg %p16262_p7 }
  0x66   : > { %p16270_p12 = pnand %p16269_p11, %p16263_p9 }
  0x68   : > { %16273 = shalt.err (!%p16270_p12)
}
  0x69   : > { %s16595_s30 = smov 512   ;;  %s16596_s12 = smov 32  }
  0x6a   : > { %16094 = dma.hbm_to_vmem [thread:$0]  (!%p16710_p6), %s18950_s5, 8192, %s16716_s29, [#allocation12], %s16595_s30, %s16595_s30, %s16596_s12  }
  0x6b   : > { %s16597_s11 = smov [#allocation14]   ;;  %s18951_s7 = sld [smem:[#allocation34_spill]] }
  0x6c   : > { %s399_s24 = sshll.u32 %s16597_s11, 4  ;;  %s400_s24 = int_to_ptr.vmem [resolvable:$true] %s399_s24 }
  0x71   : > { %s16274_s15 = scalar_lea.hbm %s18951_s7, 65536 }
  0x72   : > { %p16275_p13 = scmp.ne.s32.totalorder %s18951_s7, %s16274_s15  ;;  %p16281_p5 = scmp.lt.u32.totalorder %s16274_s15, %s18951_s7 }
  0x74   : > { %p16277_p0 = pnand %p16275_p13, %p16726_p8 }
  0x76   : > { %p16278_p2 = pneg %p16277_p0 }
  0x78   : > { %p16283_p7 = pnand %p16281_p5, %p16278_p2 }
  0x7a   : > { %16286 = shalt.err (!%p16283_p7)
}
  0x7b   : > { %s16287_s29 = scalar_lea.vmem %s400_s24, 65536  ;;  %p16295_p11 = scmp.lt.s32.totalorder %s400_s24, %s400_s24 }
  0x7c   : > { %p16288_p9 = scmp.ne.s32.totalorder %s400_s24, %s16287_s29  ;;  %p16296_p12 = scmp.lt.s32.totalorder %s16287_s29, %s16287_s29 }
  0x7e   : > { %p16290_p4 = pnand %p16288_p9, %p16726_p8  ;;  %p16297_p1 = por %p16296_p12, %p16295_p11 }
  0x80   : > { %p16291_p10 = pneg %p16290_p4 }
  0x82   : > { %p16298_p3 = pnand %p16297_p1, %p16291_p10 }
  0x84   : > { %16301 = shalt.err (!%p16298_p3)
}
  0x85   : > { %s16598_s30 = smov 1024   ;;  %s16599_s12 = smov 64  }
  0x86   : > { %16100 = dma.hbm_to_vmem [thread:$0]  (!%p16710_p6), %s18951_s7, 65536, %s400_s24, [#allocation15], %s16598_s30, %s16598_s30, %s16599_s12  }
  0x87   : > { %s13637_s11 = sadd.s32 4294967294, %s16588_s20   ;;  %s16813_s13 = sadd.s32 1, %s16588_s20  }
  0x88   : > { %18952 = sst [smem:[#allocation29_spill]] %s16813_s13  ;;  %s225_s14 = ssub.s32 %s16588_s20, %s16813_s13 }
  0x89   : > { %s228_s15 = sadd.s32 1, %s16584_s19  ;;  %p226_p1 = scmp.eq.s32.totalorder %s225_s14, 0 }
  0x8a   : > { %p235_p3 = scmp.ne.s32.totalorder %s16584_s19, %s16580_s18  ;;  %p236_p13 = scmp.eq.s32.totalorder %s16588_s20, 0 }
  0x8b   : > { %p241_p0 = scmp.ne.s32.totalorder %s16580_s18, %s16576_s17  ;;  %p18954_p5 = scmp.eq.s32.totalorder %s16694_s23, 0 }
  0x8c   : > { %s16824_s21 = scalar_select %p226_p1, %s16584_s19, %s228_s15  }
  0x8d   : > { %p237_p2 = por %p236_p13, %p235_p3  ;;  %p16828_p7 = por %p18954_p5, %p241_p0 }
  0x8e   : > { %18953 = sst [smem:[#allocation30_spill]] %s16824_s21  ;;  %p291_p9 = scmp.eq.s32.totalorder %s16694_s23, 1 }
  0x8f   : > { %s18955_s25 = scalar_select %p16828_p7, 1, 0 }
  0x90   : > { %p297_p4 = scmp.eq.s32.totalorder %s13637_s11, 1  ;;  %p16124_p10 = scmp.lt.s32.totalorder %s16588_s20, 2 }
  0x91   : > { %s424_s24 = sand.u32 1, %s16588_s20   ;;  %p16835_p11 = por %p291_p9, %p235_p3 }
  0x92   : > { %p16839_p12 = por %p297_p4, %p241_p0  ;;  %s18927_s29 = sand.u32 1, %s16584_s19  }
  0x93   : > { %s18956_s28 = scalar_select %p16835_p11, 1, 0 }
  0x94   : > { %s18957_s26 = scalar_select %p16839_p12, 1, 0 }
  0x95   : > { %s16028_s30 = smul.u32 12288, %s18927_s29  ;;  %p16846_p1 = pnand %p16124_p10, %p237_p2 }
  0x96   : > { %s16029_s22 = smul.u32 196608, %s16588_s20  ;;  %s18959_s9 = sld [smem:[#allocation35_spill]] }
  0x97   : > { %s18958_s12 = scalar_select %p16846_p1, 1, 0 }
  0x98   : > { %s428_s15 = scalar_lea.vmem [#allocation17], %s16028_s30  ;;  %s16858_s29 = scalar_lea.sflag [#allocation18], %s424_s24 }
  0x99   : > { %s435_s1 = sshll.u32 %s428_s15, 4  ;;  %p18934_p13 = pneg %p16846_p1  ;;  %s16856_s1 = int_to_ptr.vmem [resolvable:$true] %s435_s1 }
  0x9c   : > { %s16854_s14 = scalar_lea.hbm %s18959_s9, %s16029_s22  ;;  %s16307_s11 = scalar_lea.hbm %s18959_s9, 393216 }
  0x9d   : > { %s16302_s3 = scalar_lea.hbm %s16854_s14, 196608  ;;  %p16308_p5 = scmp.lt.u32.totalorder %s16854_s14, %s18959_s9 }
  0x9e   : > { %p16303_p3 = scmp.ne.s32.totalorder %s16854_s14, %s16302_s3  ;;  %p16309_p9 = scmp.lt.u32.totalorder %s16307_s11, %s16302_s3 }
  0x9f   : > { %p16311_p10 = scmp.lt.u32.totalorder %s16302_s3, %s16854_s14 }
  0xa0   : > { %p16305_p0 = pnand %p18934_p13, %p16303_p3  ;;  %p16310_p4 = por %p16309_p9, %p16308_p5 }
  0xa2   : > { %p16306_p2 = pneg %p16305_p0  ;;  %p16312_p12 = por %p16311_p10, %p16310_p4 }
  0xa4   : > { %p16313_p11 = pnand %p16312_p12, %p16306_p2 }
  0xa6   : > { %16316 = shalt.err (!%p16313_p11)
}
  0xa7   : > { %s16317_s24 = scalar_lea.vmem %s16856_s1, 196608  ;;  %s16600_s30 = smov [#allocation17]  }
  0xa8   : > { %p16318_p3 = scmp.ne.s32.totalorder %s16856_s1, %s16317_s24  ;;  %s16322_s15 = sshll.u32 %s16600_s30, 4  ;;  %s16323_s15 = int_to_ptr.vmem [resolvable:$false] %s16322_s15 }
  0xa9   : > { %s16324_s5 = scalar_lea.vmem %s16323_s15, 393216  ;;  %p16325_p6 = scmp.lt.s32.totalorder %s16856_s1, %s16323_s15 }
  0xaa   : > { %p16320_p0 = pnand %p16318_p3, %p18934_p13  ;;  %p16326_p5 = scmp.lt.s32.totalorder %s16324_s5, %s16317_s24 }
  0xac   : > { %p16321_p7 = pneg %p16320_p0  ;;  %p16327_p9 = por %p16326_p5, %p16325_p6 }
  0xae   : > { %p16328_p4 = pnand %p16327_p9, %p16321_p7 }
  0xb0   : > { %16331 = shalt.err (!%p16328_p4)
}
  0xb1   : > { %s16601_s3 = smov 1536   ;;  %s16602_s7 = smov 96  }
  0xb2   : > { %16107 = dma.hbm_to_vmem [thread:$0]  (!%p16846_p1), %s16854_s14, 196608, %s16856_s1, %s16858_s29, %s16601_s3, %s16601_s3, %s16602_s7  }
  0xb3   : > { %s16603_s22 = smov [#allocation2]   ;;  %s16604_s11 = smov [#allocation7]  }
  0xb4   : > { %s317_s10 = sshll.u32 %s16603_s22, 4  ;;  %s341_s30 = sshll.u32 %s16604_s11, 4  ;;  %s318_s10 = int_to_ptr.vmem [resolvable:$true] %s317_s10  ;;  %s16886_s30 = int_to_ptr.vmem [resolvable:$true] %s341_s30 }
  0xb5   : > { %s16332_s5 = scalar_lea.hbm %s18910_s0, 128 }
  0xb6   : > { %p16333_p6 = scmp.ne.s32.totalorder %s18910_s0, %s16332_s5  ;;  %p16339_p12 = scmp.lt.u32.totalorder %s16332_s5, %s18910_s0 }
  0xb8   : > { %p16335_p7 = pnand %p16333_p6, %p16726_p8 }
  0xba   : > { %p16336_p11 = pneg %p16335_p7 }
  0xbc   : > { %p16341_p2 = pnand %p16339_p12, %p16336_p11 }
  0xbe   : > { %16344 = shalt.err (!%p16341_p2)
}
  0xbf   : > { %s16345_s14 = scalar_lea.vmem %s318_s10, 128  ;;  %p16353_p5 = scmp.lt.s32.totalorder %s318_s10, %s318_s10 }
  0xc0   : > { %p16346_p10 = scmp.ne.s32.totalorder %s318_s10, %s16345_s14  ;;  %p16354_p9 = scmp.lt.s32.totalorder %s16345_s14, %s16345_s14 }
  0xc2   : > { %p16348_p3 = pnand %p16346_p10, %p16726_p8  ;;  %p16355_p4 = por %p16354_p9, %p16353_p5 }
  0xc4   : > { %p16349_p0 = pneg %p16348_p3 }
  0xc6   : > { %p16356_p13 = pnand %p16355_p4, %p16349_p0 }
  0xc8   : > { %16359 = shalt.err (!%p16356_p13)
}
  0xc9   : > { %p18960_p6 = scmp.ne.s32.totalorder %s18946_s27, 0  ;;  %s16360_s7 = scalar_lea.hbm %s18912_s2, 16 }
  0xca   : > { %p16361_p7 = scmp.ne.s32.totalorder %s18912_s2, %s16360_s7  ;;  %p16367_p13 = scmp.lt.u32.totalorder %s16360_s7, %s18912_s2 }
  0xcb   : > { %16079 = dma.hbm_to_vmem [thread:$0]  (!%p18960_p6), %s18910_s0, 128, %s318_s10, [#allocation3]  }
  0xcc   : > { %p16363_p11 = pnand %p16361_p7, %p16726_p8 }
  0xce   : > { %p16364_p12 = pneg %p16363_p11 }
  0xd0   : > { %p16369_p2 = pnand %p16367_p13, %p16364_p12 }
  0xd2   : > { %16372 = shalt.err (!%p16369_p2)
}
  0xd3   : > { %s16373_s10 = scalar_lea.vmem %s16886_s30, 16  ;;  %s16380_s5 = scalar_lea.vmem %s16886_s30, 32 }
  0xd4   : > { %p16374_p10 = scmp.ne.s32.totalorder %s16886_s30, %s16373_s10  ;;  %p16381_p5 = scmp.lt.s32.totalorder %s16886_s30, %s16886_s30 }
  0xd5   : > { %p16382_p9 = scmp.lt.s32.totalorder %s16380_s5, %s16373_s10 }
  0xd6   : > { %p16376_p3 = pnand %p16374_p10, %p16726_p8 }
  0xd7   : > { %p16383_p4 = por %p16382_p9, %p16381_p5 }
  0xd8   : > { %p16377_p0 = pneg %p16376_p3 }
  0xda   : > { %p16384_p7 = pnand %p16383_p4, %p16377_p0 }
  0xdc   : > { %16387 = shalt.err (!%p16384_p7)
}
  0xdd   : > { %16085 = dma.hbm_to_vmem [thread:$0]  (!%p18960_p6), %s18912_s2, 16, %s16886_s30, [#allocation6]  }
  0xde   : > { %s16605_s9 = smov [#allocation10]   ;;  %s16606_s13 = smov [#allocation13]  }
  0xdf   : > { %s365_s21 = sshll.u32 %s16605_s9, 4  ;;  %s389_s3 = sshll.u32 %s16606_s13, 4  ;;  %s366_s21 = int_to_ptr.vmem [resolvable:$true] %s365_s21  ;;  %s16930_s3 = int_to_ptr.vmem [resolvable:$true] %s389_s3 }
  0xe0   : > { %s16388_s11 = scalar_lea.hbm %s18914_s4, 16 }
  0xe1   : > { %p16389_p11 = scmp.ne.s32.totalorder %s18914_s4, %s16388_s11  ;;  %p16395_p2 = scmp.lt.u32.totalorder %s16388_s11, %s18914_s4 }
  0xe3   : > { %p16391_p12 = pnand %p16389_p11, %p16726_p8 }
  0xe5   : > { %p16392_p13 = pneg %p16391_p12 }
  0xe7   : > { %p16397_p10 = pnand %p16395_p2, %p16392_p13 }
  0xe9   : > { %16400 = shalt.err (!%p16397_p10)
}
  0xea   : > { %s16401_s5 = scalar_lea.vmem %s366_s21, 16  ;;  %s16408_s1 = scalar_lea.vmem %s366_s21, 32 }
  0xeb   : > { %p16402_p3 = scmp.ne.s32.totalorder %s366_s21, %s16401_s5  ;;  %p16409_p9 = scmp.lt.s32.totalorder %s366_s21, %s366_s21 }
  0xec   : > { %p16410_p4 = scmp.lt.s32.totalorder %s16408_s1, %s16401_s5 }
  0xed   : > { %p16404_p0 = pnand %p16402_p3, %p16726_p8 }
  0xee   : > { %p16411_p7 = por %p16410_p4, %p16409_p9 }
  0xef   : > { %p16405_p5 = pneg %p16404_p0 }
  0xf1   : > { %p16412_p1 = pnand %p16411_p7, %p16405_p5 }
  0xf3   : > { %16415 = shalt.err (!%p16412_p1)
}
  0xf4   : > { %16091 = dma.hbm_to_vmem [thread:$0]  (!%p18960_p6), %s18914_s4, 16, %s366_s21, [#allocation9]  }
  0xf5   : > { %s16416_s22 = scalar_lea.hbm %s18916_s6, 64 }
  0xf6   : > { %p16417_p11 = scmp.ne.s32.totalorder %s18916_s6, %s16416_s22  ;;  %p16423_p1 = scmp.lt.u32.totalorder %s16416_s22, %s18916_s6 }
  0xf8   : > { %p16419_p12 = pnand %p16417_p11, %p16726_p8 }
  0xfa   : > { %p16420_p13 = pneg %p16419_p12 }
  0xfc   : > { %p16425_p2 = pnand %p16423_p1, %p16420_p13 }
  0xfe   : > { %16428 = shalt.err (!%p16425_p2)
}
  0xff   : > { %s16429_s21 = scalar_lea.vmem %s16930_s3, 64  ;;  %p16437_p5 = scmp.lt.s32.totalorder %s16930_s3, %s16930_s3 }
 0x100   : > { %p16430_p10 = scmp.ne.s32.totalorder %s16930_s3, %s16429_s21  ;;  %p16438_p9 = scmp.lt.s32.totalorder %s16429_s21, %s16429_s21 }
 0x102   : > { %p16432_p3 = pnand %p16430_p10, %p16726_p8  ;;  %p16439_p4 = por %p16438_p9, %p16437_p5 }
 0x104   : > { %p16433_p0 = pneg %p16432_p3 }
 0x106   : > { %p16440_p7 = pnand %p16439_p4, %p16433_p0 }
 0x108   : > { %16443 = shalt.err (!%p16440_p7)
}
 0x109   : > { %16097 = dma.hbm_to_vmem [thread:$0]  (!%p18960_p6), %s18916_s6, 64, %s16930_s3, [#allocation12]  }
 0x10a   : > { %s18961_s1 = sand.u32 1, %s16584_s19   ;;  %s16607_s9 = smov [#allocation16]  }
 0x10b   : > { %s16030_s14 = smul.u32 24, %s18961_s1  ;;  %s413_s13 = sshll.u32 %s16607_s9, 4  ;;  %s414_s13 = int_to_ptr.vmem [resolvable:$true] %s413_s13 }
 0x10c   : > { %s15204_s7 = smul.u32 384, %s16588_s20  ;;  %s16444_s24 = scalar_lea.hbm %s18918_s8, 128 }
 0x10d   : > { %p16445_p11 = scmp.ne.s32.totalorder %s18918_s8, %s16444_s24  ;;  %p16451_p1 = scmp.lt.u32.totalorder %s16444_s24, %s18918_s8 }
 0x10f   : > { %p16447_p12 = pnand %p16445_p11, %p16726_p8 }
 0x111   : > { %p16448_p13 = pneg %p16447_p12 }
 0x113   : > { %p16453_p2 = pnand %p16451_p1, %p16448_p13 }
 0x115   : > { %16456 = shalt.err (!%p16453_p2)
}
 0x116   : > { %s16457_s3 = scalar_lea.vmem %s414_s13, 128  ;;  %p16465_p5 = scmp.lt.s32.totalorder %s414_s13, %s414_s13 }
 0x117   : > { %p16458_p10 = scmp.ne.s32.totalorder %s414_s13, %s16457_s3  ;;  %p16466_p9 = scmp.lt.s32.totalorder %s16457_s3, %s16457_s3 }
 0x119   : > { %p16460_p3 = pnand %p16458_p10, %p16726_p8  ;;  %p16467_p4 = por %p16466_p9, %p16465_p5 }
 0x11b   : > { %p16461_p0 = pneg %p16460_p3 }
 0x11d   : > { %p16468_p7 = pnand %p16467_p4, %p16461_p0 }
 0x11f   : > { %16471 = shalt.err (!%p16468_p7)
}
 0x120   : > { %16103 = dma.hbm_to_vmem [thread:$0]  (!%p18960_p6), %s18918_s8, 128, %s414_s13, [#allocation15]  }
 0x121   : > { %s18962_s11 = sld [smem:[#allocation36_spill]]  ;;  %s449_s16 = scalar_lea.vmem [#allocation19], %s16030_s14 }
 0x122   : > { %s457_s15 = sshll.u32 %s449_s16, 4  ;;  %p18963_p11 = scmp.ne.s32.totalorder %s18958_s12, 0  ;;  %s458_s15 = int_to_ptr.vmem [resolvable:$true] %s457_s15 }
 0x124   : > { %p18964_p12 = pneg %p18963_p11 }
 0x127   : > { %s16997_s24 = scalar_lea.hbm %s18962_s11, %s15204_s7  ;;  %s16477_s21 = scalar_lea.hbm %s18962_s11, 768 }
 0x128   : > { %s16472_s10 = scalar_lea.hbm %s16997_s24, 384  ;;  %p16478_p6 = scmp.lt.u32.totalorder %s16997_s24, %s18962_s11 }
 0x129   : > { %p16473_p8 = scmp.ne.s32.totalorder %s16997_s24, %s16472_s10  ;;  %p16479_p2 = scmp.lt.u32.totalorder %s16477_s21, %s16472_s10 }
 0x12a   : > { %p16481_p3 = scmp.lt.u32.totalorder %s16472_s10, %s16997_s24 }
 0x12b   : > { %p16475_p13 = pnand %p16473_p8, %p18964_p12  ;;  %p16480_p10 = por %p16479_p2, %p16478_p6 }
 0x12d   : > { %p16476_p1 = pneg %p16475_p13  ;;  %p16482_p0 = por %p16481_p3, %p16480_p10 }
 0x12f   : > { %p16483_p5 = pnand %p16482_p0, %p16476_p1 }
 0x131   : > { %16486 = shalt.err (!%p16483_p5)
}
 0x132   : > { %s16487_s14 = scalar_lea.vmem %s458_s15, 384  ;;  %p18965_p4 = pmov %p18964_p12 }
 0x133   : > { %p16488_p9 = scmp.ne.s32.totalorder %s458_s15, %s16487_s14  ;;  %s16608_s3 = smov [#allocation19]  }
 0x134   : > { %s16492_s5 = sshll.u32 %s16608_s3, 4  ;;  %s16493_s5 = int_to_ptr.vmem [resolvable:$false] %s16492_s5 }
 0x135   : > { %p16490_p7 = pnand %p16488_p9, %p18965_p4  ;;  %s16494_s1 = scalar_lea.vmem %s16493_s5, 768 }
 0x136   : > { %p16495_p12 = scmp.lt.s32.totalorder %s458_s15, %s16493_s5  ;;  %p16496_p13 = scmp.lt.s32.totalorder %s16494_s1, %s16487_s14 }
 0x137   : > { %p16491_p8 = pneg %p16490_p7 }
 0x138   : > { %p16497_p2 = por %p16496_p13, %p16495_p12 }
 0x13a   : > { %p16498_p6 = pnand %p16497_p2, %p16491_p8 }
 0x13c   : > { %16501 = shalt.err (!%p16498_p6)
}
 0x13d   : > { %16110 = dma.hbm_to_vmem [thread:$0]  (!%p18963_p11), %s16997_s24, 384, %s458_s15, %s16858_s29  }
 0x13e   : > { %s18966_s9 = sld [smem:[#allocation28_spill]] }
 0x144   : > { %p18967_p1 = scmp.ne.s32.totalorder %s18966_s9, 0 }
 0x145   : > { %p18968_p10 = scmp.eq.s32.totalorder (!%p18967_p1), %s16694_s23, 0 }
 0x146   : > { %466 = sbr.rel (%p18967_p1) target bundleno = 2998 (0xbb6), region = 64 }
 0x14d   : > { %16547 = dma.done.wait (%p18968_p10), [#allocation3], 128   ;;  %p18969_p3 = pmov %p18968_p10 }
 0x14f   : > { %16549 = vsyncadd (%p18969_p3), [#allocation3], 4294967168  ;;  %p18970_p0 = pmov %p18969_p3 }
 0x151   : > { %16551 = dma.done.wait (%p18970_p0), [#allocation6], 528   ;;  %p18971_p5 = pmov %p18970_p0 }
 0x152   : > { %p18972_p9 = pmov %p18970_p0 }
 0x153   : > { %16553 = vsyncadd (%p18971_p5), [#allocation6], 4294966768 }
 0x154   : > { %16555 = dma.done.wait (%p18972_p9), [#allocation9], 1040   ;;  %p18973_p11 = pmov %p18970_p0 }
 0x155   : > { %p18974_p4 = pmov %p18970_p0 }
 0x156   : > { %16557 = vsyncadd (%p18973_p11), [#allocation9], 4294966256 }
 0x157   : > { %16559 = dma.done.wait (%p18974_p4), [#allocation12], 8256   ;;  %p18975_p7 = pmov %p18970_p0 }
 0x158   : > { %p18976_p8 = pmov %p18970_p0 }
 0x159   : > { %16561 = vsyncadd (%p18975_p7), [#allocation12], 4294959040 }
 0x15a   : > { %16563 = dma.done.wait (%p18976_p8), [#allocation15], 65664   ;;  %p18977_p12 = pmov %p18970_p0 }
 0x15b   : > { %s504_s29 = sand.u32 1, %s16694_s23   ;;  %s17043_s12 = sand.u32 1, %s16580_s18  }
 0x15c   : > { %16565 = vsyncadd (%p18977_p12), [#allocation15], 4294901632  ;;  %s16031_s22 = smul.u32 12288, %s17043_s12  ;;  %s505_s24 = scalar_lea.sflag [#allocation18], %s504_s29 }
 0x15d   : > { %p18978_p13 = scmp.ne.s32.totalorder %s18955_s25, 0 }
 0x15e   : > { %s17046_s16 = scalar_lea.vmem [#allocation17], %s16031_s22 }
 0x15f   : > { %16567 = dma.done.wait (%p18978_p13), %s505_s24, 196992  }
 0x160   : > { %16569 = vsyncadd (%p18978_p13), %s505_s24, 4294770304  ;;  %v16609_v0 = vmov 0.0|0.0   ;;  %vm16610_vm0 = vmmov 0   ;;  %v16611_v1 = vmov 0.0   ;;  %v564_v2 = vld [vmem:[#allocation5] sm:$0xff]  ;;  %v565_v3 = vld [vmem:[#allocation5 + $0x8] sm:$0xff] }
 0x161   : > { %15250 = vmatprep.subr.bf16.mxu0 %v16609_v0  ;;  %15228 = vmatprep.mubr.msk.f32.mxu0 %vm16610_vm0, %v16611_v1  ;;  %v566_v4 = vld [vmem:[#allocation5 + $0x10] sm:$0xff]  ;;  %v15251_v5 = vpack.c.bf16 %v565_v3, %v564_v2  ;;  %v567_v6 = vld [vmem:[#allocation5 + $0x18] sm:$0xff]  ;;  %v650_v7 = vld [vmem:[#allocation8] sm:$0xff]  ;;  %vm575_vm1 = vcmask 261120   ;;  %vm665_vm2 = vcmask 523264   ;;  %s16032_s25 = smul.u32 24, %s17043_s12 }
 0x162   : > { %15256 = vmatprep.subr.bf16.mxu1 %v16609_v0  ;;  %15247 = vmatprep.mubr.msk.f32.mxu1 %vm16610_vm0, %v16611_v1  ;;  %v651_v8 = vld [vmem:[#allocation8 + $0x8] sm:$0xff]  ;;  %v652_v9 = vld [vmem:[#allocation8 + $0x10] sm:$0xff]  ;;  %v653_v10 = vld [vmem:[#allocation8 + $0x18] sm:$0xff]  ;;  %v15254_v11 = vpack.c.bf16 %v567_v6, %v566_v4  ;;  %s16033_s10 = smul.u32 192, %s17043_s12  ;;  %s18979_s7 = sld [smem:[#allocation37_spill]] }
 0x163   : > { %15252 = vmatpush3.bf16.msra.mxu0 %v15251_v5  ;;  %v15257_v12 = vpack.c.bf16 %v651_v8, %v650_v7  ;;  %v15260_v13 = vpack.c.bf16 %v653_v10, %v652_v9  ;;  %v654_v14 = vld [vmem:[#allocation8 + $0x20] sm:$0xff]  ;;  %v655_v15 = vld [vmem:[#allocation8 + $0x28] sm:$0xff]  ;;  %v563_v16 = vld [vmem:[#allocation2] sm:$0xff]  ;;  %s17661_s15 = scalar_lea.vmem [#allocation19], %s16032_s25  ;;  %s15205_s13 = smul.u32 3072, %s16694_s23 }
 0x164   : > { %15253 = vmatprep.subr.bf16.mxu0 %v16609_v0  ;;  %v15263_v17 = vpack.c.bf16 %v655_v15, %v654_v14  ;;  %v656_v18 = vld [vmem:[#allocation8 + $0x30] sm:$0xff]  ;;  %v657_v19 = vld [vmem:[#allocation8 + $0x38] sm:$0xff]  ;;  %v740_v26 = vld [vmem:[#allocation11] sm:$0xff]  ;;  %s17679_s27 = scalar_lea.vmem [#allocation20], %s16033_s10  ;;  %s13445_s3 = scalar_lea.sflag [#allocation4], %s17043_s12 }
 0x165   : > { %15258 = vmatpush3.bf16.msra.mxu1 %v15257_v12  ;;  %v15266_v20 = vpack.c.bf16 %v657_v19, %v656_v18  ;;  %v741_v21 = vld [vmem:[#allocation11 + $0x8] sm:$0xff]  ;;  %v743_v23 = vld [vmem:[#allocation11 + $0x18] sm:$0xff]  ;;  %v744_v27 = vld [vmem:[#allocation11 + $0x20] sm:$0xff]  ;;  %s13459_s21 = sshll.u32 %s17679_s27, 4  ;;  %p18980_p6 = scmp.ne.s32.totalorder %s18956_s28, 0  ;;  %s18865_s21 = int_to_ptr.vmem [resolvable:$true] %s13459_s21 }
 0x166   : > { %15259 = vmatprep.subr.bf16.mxu1 %v16609_v0  ;;  %v745_v22 = vld [vmem:[#allocation11 + $0x28] sm:$0xff]  ;;  %v747_v25 = vld [vmem:[#allocation11 + $0x38] sm:$0xff]  ;;  %v15270_v29 = vpack.c.bf16 %v744_v27, %v740_v26  ;;  %v748_v33 = vld [vmem:[#allocation11 + $0x40] sm:$0xff]  ;;  %s16502_s5 = scalar_lea.vmem %s18865_s21, 3072  ;;  %s16612_s1 = smov [#allocation20]  }
 0x167   : > { %15255 = vmatpush3.bf16.msra.mxu0 %v15254_v11  ;;  %v15268_v24 = vpack.c.bf16 %v745_v22, %v741_v21  ;;  %v15300_v28 = vpack.c.bf16 %v747_v25, %v743_v23  ;;  %v749_v30 = vld [vmem:[#allocation11 + $0x48] sm:$0xff]  ;;  %v752_v34 = vld [vmem:[#allocation11 + $0x60] sm:$0xff]  ;;  %v13661_v3 = vld [vmem:[#allocation7] ss:$0 sm:$0xff]  ;;  %p16503_p2 = scmp.ne.s32.totalorder %s18865_s21, %s16502_s5  ;;  %s16506_s9 = sshll.u32 %s16612_s1, 4  ;;  %s16507_s9 = int_to_ptr.vmem [resolvable:$false] %s16506_s9 }
 0x168   : > { %v753_v31 = vld [vmem:[#allocation11 + $0x68] sm:$0xff]  ;;  %v15274_v35 = vpack.c.bf16 %v752_v34, %v748_v33  ;;  %v756_v39 = vld [vmem:[#allocation11 + $0x80] sm:$0xff]  ;;  %v742_v4 = vld [vmem:[#allocation11 + $0x10] sm:$0xff]  ;;  %s18863_s14 = scalar_lea.hbm %s18979_s7, %s15205_s13  ;;  %s16508_s29 = scalar_lea.vmem %s16507_s9, 6144 }
 0x169   : > { %15261 = vmatpush3.bf16.msra.mxu1 %v15260_v13  ;;  %15269 = vmatprep.subr.bf16.mxu0 %v15268_v24  ;;  %v15272_v32 = vpack.c.bf16 %v753_v31, %v749_v30  ;;  %v757_v36 = vld [vmem:[#allocation11 + $0x88] sm:$0xff]  ;;  %v760_v40 = vld [vmem:[#allocation11 + $0xa0] sm:$0xff]  ;;  %v746_v5 = vld [vmem:[#allocation11 + $0x30] sm:$0xff]  ;;  %p16504_p1 = pnand %p16503_p2, %p18980_p6  ;;  %p16509_p3 = scmp.lt.s32.totalorder %s18865_s21, %s16507_s9 }
 0x16a   : > { %15229 = vmatmul.mubr.msk.f32.vlgmr.msra.gmra.mrb[0].mxu0 %vm575_vm1, %v563_v16  ;;  %15262 = vmatprep.subr.bf16.mxu1 %v16609_v0  ;;  %v761_v37 = vld [vmem:[#allocation11 + $0xa8] sm:$0xff]  ;;  %v15278_v41 = vpack.c.bf16 %v760_v40, %v756_v39  ;;  %v764_v45 = vld [vmem:[#allocation11 + $0xc0] sm:$0xff]  ;;  %v751_v7 = vld [vmem:[#allocation11 + $0x58] sm:$0xff]  ;;  %v15302_v11 = vpack.c.bf16 %v746_v5, %v742_v4  ;;  %p16510_p0 = scmp.lt.s32.totalorder %s16508_s29, %s16502_s5 }
 0x16b   : > { %890 = vmatprep.mubr.f32.mxu0 %v16611_v1  ;;  %15271 = vmatpush1.bf16.msra.mxu0 %v15270_v29  ;;  %v15276_v38 = vpack.c.bf16 %v761_v37, %v757_v36  ;;  %v765_v42 = vld [vmem:[#allocation11 + $0xc8] sm:$0xff]  ;;  %v768_v46 = vld [vmem:[#allocation11 + $0xe0] sm:$0xff]  ;;  %v755_v8 = vld [vmem:[#allocation11 + $0x78] sm:$0xff]  ;;  %p16505_p10 = pneg %p16504_p1 }
 0x16c   : > { %15273 = vmatprep.subr.bf16.mxu0 %v15272_v32  ;;  %v769_v43 = vld [vmem:[#allocation11 + $0xe8] sm:$0xff]  ;;  %v15282_v47 = vpack.c.bf16 %v768_v46, %v764_v45  ;;  %v772_v51 = vld [vmem:[#allocation11 + $0x100] sm:$0xff]  ;;  %v15304_v13 = vpack.c.bf16 %v755_v8, %v751_v7  ;;  %v750_v14 = vld [vmem:[#allocation11 + $0x50] sm:$0xff]  ;;  %p16511_p5 = por %p16510_p0, %p16509_p3 }
 0x16d   : > { %15264 = vmatpush3.bf16.msra.mxu1 %v15263_v17  ;;  %v15280_v44 = vpack.c.bf16 %v769_v43, %v765_v42  ;;  %v773_v48 = vld [vmem:[#allocation11 + $0x108] sm:$0xff]  ;;  %v776_v52 = vld [vmem:[#allocation11 + $0x120] sm:$0xff]  ;;  %v754_v15 = vld [vmem:[#allocation11 + $0x70] sm:$0xff] }
 0x16e   : > { %15265 = vmatprep.subr.bf16.mxu1 %v16609_v0  ;;  %v777_v49 = vld [vmem:[#allocation11 + $0x128] sm:$0xff]  ;;  %v15286_v53 = vpack.c.bf16 %v776_v52, %v772_v51  ;;  %v780_v57 = vld [vmem:[#allocation11 + $0x140] sm:$0xff]  ;;  %v759_v16 = vld [vmem:[#allocation11 + $0x98] sm:$0xff]  ;;  %v15306_v18 = vpack.c.bf16 %v754_v15, %v750_v14  ;;  %p16512_p9 = pnand %p16511_p5, %p16505_p10 }
 0x16f   : > { %15275 = vmatpush1.bf16.msra.mxu0 %v15274_v35  ;;  %v15284_v50 = vpack.c.bf16 %v777_v49, %v773_v48  ;;  %v781_v54 = vld [vmem:[#allocation11 + $0x148] sm:$0xff]  ;;  %v784_v58 = vld [vmem:[#allocation11 + $0x160] sm:$0xff]  ;;  %v763_v17 = vld [vmem:[#allocation11 + $0xb8] sm:$0xff] }
 0x170   : > { %15277 = vmatprep.subr.bf16.mxu0 %v15276_v38  ;;  %v785_v55 = vld [vmem:[#allocation11 + $0x168] sm:$0xff]  ;;  %v15290_v59 = vpack.c.bf16 %v784_v58, %v780_v57  ;;  %v788_v63 = vld [vmem:[#allocation11 + $0x180] sm:$0xff]  ;;  %v15308_v19 = vpack.c.bf16 %v763_v17, %v759_v16  ;;  %v762_v21 = vld [vmem:[#allocation11 + $0xb0] sm:$0xff] }
 0x171   : > { %15267 = vmatpush3.bf16.msra.mxu1 %v15266_v20  ;;  %v15288_v56 = vpack.c.bf16 %v785_v55, %v781_v54  ;;  %v789_v60 = vld [vmem:[#allocation11 + $0x188] sm:$0xff]  ;;  %v792_v0 = vld [vmem:[#allocation11 + $0x1a0] sm:$0xff]  ;;  %v758_v20 = vld [vmem:[#allocation11 + $0x90] sm:$0xff] }
 0x172   : > { %15301 = vmatprep.subr.bf16.mxu1 %v15300_v28  ;;  %v793_v61 = vld [vmem:[#allocation11 + $0x1a8] sm:$0xff]  ;;  %v15294_v2 = vpack.c.bf16 %v792_v0, %v788_v63  ;;  %v767_v22 = vld [vmem:[#allocation11 + $0xd8] sm:$0xff]  ;;  %v15310_v24 = vpack.c.bf16 %v762_v21, %v758_v20  ;;  %v766_v26 = vld [vmem:[#allocation11 + $0xd0] sm:$0xff] }
 0x173   : > { %15279 = vmatpush1.bf16.msra.mxu0 %v15278_v41  ;;  %v15292_v62 = vpack.c.bf16 %v793_v61, %v789_v60  ;;  %v771_v23 = vld [vmem:[#allocation11 + $0xf8] sm:$0xff]  ;;  %v770_v27 = vld [vmem:[#allocation11 + $0xf0] sm:$0xff]  ;;  %v797_v46 = vld [vmem:[#allocation11 + $0x1c8] sm:$0xff] }
 0x174   : > { %15281 = vmatprep.subr.bf16.mxu0 %v15280_v44  ;;  %v15312_v25 = vpack.c.bf16 %v771_v23, %v767_v22  ;;  %v775_v28 = vld [vmem:[#allocation11 + $0x118] sm:$0xff]  ;;  %v15314_v30 = vpack.c.bf16 %v770_v27, %v766_v26  ;;  %v774_v32 = vld [vmem:[#allocation11 + $0x110] sm:$0xff]  ;;  %v796_v51 = vld [vmem:[#allocation11 + $0x1c0] sm:$0xff] }
 0x175   : > { %v779_v29 = vld [vmem:[#allocation11 + $0x138] sm:$0xff]  ;;  %v782_v37 = vld [vmem:[#allocation11 + $0x150] sm:$0xff]  ;;  %v800_v52 = vld [vmem:[#allocation11 + $0x1e0] sm:$0xff] }
 0x176   : > { %v15316_v31 = vpack.c.bf16 %v779_v29, %v775_v28  ;;  %v783_v33 = vld [vmem:[#allocation11 + $0x158] sm:$0xff]  ;;  %v786_v38 = vld [vmem:[#allocation11 + $0x170] sm:$0xff]  ;;  %v15298_v54 = vpack.c.bf16 %v800_v52, %v796_v51  ;;  %v988_v15 = vld [vmem:[#allocation14 + $0x80] sm:$0xff] }
 0x177   : > { %15283 = vmatpush1.bf16.msra.mxu0 %v15282_v47  ;;  %v787_v34 = vld [vmem:[#allocation11 + $0x178] sm:$0xff]  ;;  %v15322_v41 = vpack.c.bf16 %v786_v38, %v782_v37  ;;  %v790_v43 = vld [vmem:[#allocation11 + $0x190] sm:$0xff]  ;;  %v801_v47 = vld [vmem:[#allocation11 + $0x1e8] sm:$0xff] }
 0x178   : > { %15285 = vmatprep.subr.bf16.mxu0 %v15284_v50  ;;  %v15320_v36 = vpack.c.bf16 %v787_v34, %v783_v33  ;;  %v791_v39 = vld [vmem:[#allocation11 + $0x198] sm:$0xff]  ;;  %v794_v44 = vld [vmem:[#allocation11 + $0x1b0] sm:$0xff]  ;;  %v15296_v49 = vpack.c.bf16 %v801_v47, %v797_v46  ;;  %v996_v16 = vld [vmem:[#allocation14 + $0xc0] sm:$0xff] }
 0x179   : > { %v795_v40 = vld [vmem:[#allocation11 + $0x1b8] sm:$0xff]  ;;  %v15326_v45 = vpack.c.bf16 %v794_v44, %v790_v43  ;;  %v798_v55 = vld [vmem:[#allocation11 + $0x1d0] sm:$0xff]  ;;  %v15338_v26 = vpack.c.bf16 %v996_v16, %v988_v15  ;;  %v1004_v28 = vld [vmem:[#allocation14 + $0x100] sm:$0xff] }
 0x17a   : > { %v15324_v42 = vpack.c.bf16 %v795_v40, %v791_v39  ;;  %v799_v48 = vld [vmem:[#allocation11 + $0x1d8] sm:$0xff]  ;;  %v973_v58 = vld [vmem:[#allocation14 + $0x8] sm:$0xff]  ;;  %v1012_v29 = vld [vmem:[#allocation14 + $0x140] sm:$0xff] }
 0x17b   : > { %15287 = vmatpush1.bf16.msra.mxu0 %v15286_v53  ;;  %v803_v50 = vld [vmem:[#allocation11 + $0x1f8] sm:$0xff]  ;;  %v997_v8 = vld [vmem:[#allocation14 + $0xc8] sm:$0xff]  ;;  %v15342_v37 = vpack.c.bf16 %v1012_v29, %v1004_v28  ;;  %v1020_v39 = vld [vmem:[#allocation14 + $0x180] sm:$0xff] }
 0x17c   : > { %15289 = vmatprep.subr.bf16.mxu0 %v15288_v56  ;;  %v15328_v53 = vpack.c.bf16 %v803_v50, %v799_v48  ;;  %v802_v56 = vld [vmem:[#allocation11 + $0x1f0] sm:$0xff]  ;;  %v975_v60 = vld [vmem:[#allocation14 + $0x18] sm:$0xff]  ;;  %v1028_v40 = vld [vmem:[#allocation14 + $0x1c0] sm:$0xff] }
 0x17d   : > { %v15330_v57 = vpack.c.bf16 %v802_v56, %v798_v55  ;;  %v13663_v0 = vld [vmem:[#allocation10] ss:$0 sm:$0xff]  ;;  %v974_v4 = vld [vmem:[#allocation14 + $0x10] sm:$0xff]  ;;  %v1005_v22 = vld [vmem:[#allocation14 + $0x108] sm:$0xff] }
 0x17e   : > { %v982_v5 = vld [vmem:[#allocation14 + $0x50] sm:$0xff]  ;;  %v1013_v23 = vld [vmem:[#allocation14 + $0x148] sm:$0xff]  ;;  %v1039_v47 = vld [vmem:[#allocation14 + $0x218] sm:$0xff] }
 0x17f   : > { %15291 = vmatpush1.bf16.msra.mxu0 %v15290_v59  ;;  %v981_v59 = vld [vmem:[#allocation14 + $0x48] sm:$0xff]  ;;  %v15462_v14 = vpack.c.bf16 %v982_v5, %v974_v4  ;;  %v990_v20 = vld [vmem:[#allocation14 + $0x90] sm:$0xff]  ;;  %v1047_v48 = vld [vmem:[#allocation14 + $0x258] sm:$0xff] }
 0x180   : > { %15293 = vmatprep.subr.bf16.mxu0 %v15292_v62  ;;  %v15332_v61 = vpack.c.bf16 %v981_v59, %v973_v58  ;;  %v983_v62 = vld [vmem:[#allocation14 + $0x58] sm:$0xff]  ;;  %v998_v21 = vld [vmem:[#allocation14 + $0xd0] sm:$0xff]  ;;  %v1021_v33 = vld [vmem:[#allocation14 + $0x188] sm:$0xff] }
 0x181   : > { %v15460_v63 = vpack.c.bf16 %v983_v62, %v975_v60  ;;  %v15466_v27 = vpack.c.bf16 %v998_v21, %v990_v20  ;;  %v1029_v34 = vld [vmem:[#allocation14 + $0x1c8] sm:$0xff]  ;;  %v1022_v43 = vld [vmem:[#allocation14 + $0x190] sm:$0xff]  ;;  %v1036_v51 = vld [vmem:[#allocation14 + $0x200] sm:$0xff] }
 0x182   : > { %v1030_v44 = vld [vmem:[#allocation14 + $0x1d0] sm:$0xff]  ;;  %v1045_v46 = vld [vmem:[#allocation14 + $0x248] sm:$0xff]  ;;  %v1044_v52 = vld [vmem:[#allocation14 + $0x240] sm:$0xff] }
 0x183   : > { %15295 = vmatpush1.bf16.msra.mxu0 %v15294_v2  ;;  %v972_v2 = vld [vmem:[#allocation14] sm:$0xff]  ;;  %v15474_v50 = vpack.c.bf16 %v1030_v44, %v1022_v43  ;;  %v1038_v55 = vld [vmem:[#allocation14 + $0x210] sm:$0xff]  ;;  %v1061_v58 = vld [vmem:[#allocation14 + $0x2c8] sm:$0xff] }
 0x184   : > { %15297 = vmatprep.subr.bf16.mxu0 %v15296_v49  ;;  %v15346_v49 = vpack.c.bf16 %v1028_v40, %v1020_v39  ;;  %v1046_v56 = vld [vmem:[#allocation14 + $0x250] sm:$0xff]  ;;  %v1055_v59 = vld [vmem:[#allocation14 + $0x298] sm:$0xff] }
 0x185   : > { %v1063_v60 = vld [vmem:[#allocation14 + $0x2d8] sm:$0xff]  ;;  %v15478_v62 = vpack.c.bf16 %v1046_v56, %v1038_v55  ;;  %v1054_v4 = vld [vmem:[#allocation14 + $0x290] sm:$0xff] }
 0x186   : > { %v1062_v5 = vld [vmem:[#allocation14 + $0x2d0] sm:$0xff]  ;;  %v1087_v20 = vld [vmem:[#allocation14 + $0x398] sm:$0xff] }
 0x187   : > { %15299 = vmatpush1.bf16.msra.mxu0 %v15298_v54  ;;  %v15476_v54 = vpack.c.bf16 %v1047_v48, %v1039_v47  ;;  %v1070_v16 = vld [vmem:[#allocation14 + $0x310] sm:$0xff]  ;;  %v1095_v21 = vld [vmem:[#allocation14 + $0x3d8] sm:$0xff]  ;;  %v1116_v47 = vld [vmem:[#allocation14 + $0x480] sm:$0xff] }
 0x188   : > { %15333 = vmatprep.subr.bf16.mxu0 %v15332_v61  ;;  %v15350_v61 = vpack.c.bf16 %v1044_v52, %v1036_v51  ;;  %v1086_v28 = vld [vmem:[#allocation14 + $0x390] sm:$0xff]  ;;  %v1119_v43 = vld [vmem:[#allocation14 + $0x498] sm:$0xff]  ;;  %v1124_v48 = vld [vmem:[#allocation14 + $0x4c0] sm:$0xff] }
 0x189   : > { %v1094_v29 = vld [vmem:[#allocation14 + $0x3d0] sm:$0xff]  ;;  %v1127_v44 = vld [vmem:[#allocation14 + $0x4d8] sm:$0xff] }
 0x18a   : > { %v1102_v39 = vld [vmem:[#allocation14 + $0x410] sm:$0xff]  ;;  %v1135_v55 = vld [vmem:[#allocation14 + $0x518] sm:$0xff] }
 0x18b   : > { %v1110_v40 = vld [vmem:[#allocation14 + $0x450] sm:$0xff]  ;;  %v1143_v56 = vld [vmem:[#allocation14 + $0x558] sm:$0xff] }
 0x18c   : > { %v1118_v51 = vld [vmem:[#allocation14 + $0x490] sm:$0xff] }
 0x18d   : > { %v1126_v52 = vld [vmem:[#allocation14 + $0x4d0] sm:$0xff] }
 0x23d   : > { %v645_v6 = vpop.f32.mrb[0].mxu0 }
 0x23e   : > { %v646_v9 = vadd.f32 %v13661_v3, %v645_v6  ;;  %v15230_v10 = vpop.f32.mrb[1].mxu0  ;;  %v980_v3 = vld [vmem:[#allocation14 + $0x40] sm:$0xff]  ;;  %v989_v6 = vld [vmem:[#allocation14 + $0x88] sm:$0xff] }
 0x23f   : > { %v999_v10 = vld [vmem:[#allocation14 + $0xd8] sm:$0xff] }
 0x240   : > { %v649_v12 = vmax.f32 %v646_v9, 0.0  ;;  %v991_v9 = vld [vmem:[#allocation14 + $0x98] sm:$0xff] }
 0x242   : > { %15248 = vmatmul.mubr.msk.f32.vlgmr.msra.gmra.mrb[0].mxu1 %vm665_vm2, %v649_v12 }
 0x243   : > { %15303 = vmatpush1.bf16.msra.mxu1 %v15302_v11  ;;  %961 = vmatprep.mubr.f32.mxu1 %v16611_v1  ;;  %v778_v1 = vld [vmem:[#allocation11 + $0x130] sm:$0xff] }
 0x244   : > { %15305 = vmatprep.subr.bf16.mxu1 %v15304_v13  ;;  %v15318_v35 = vpack.c.bf16 %v778_v1, %v774_v32  ;;  %v15334_v13 = vpack.c.bf16 %v980_v3, %v972_v2  ;;  %v1006_v32 = vld [vmem:[#allocation14 + $0x110] sm:$0xff]  ;;  %v15480_v3 = vpack.c.bf16 %v1063_v60, %v1055_v59  ;;  %v1132_v59 = vld [vmem:[#allocation14 + $0x500] sm:$0xff] }
 0x245   : > { %v1014_v1 = vld [vmem:[#allocation14 + $0x150] sm:$0xff]  ;;  %v1140_v60 = vld [vmem:[#allocation14 + $0x540] sm:$0xff] }
 0x246   : > { %v15470_v38 = vpack.c.bf16 %v1014_v1, %v1006_v32  ;;  %v1103_v32 = vld [vmem:[#allocation14 + $0x418] sm:$0xff] }
 0x247   : > { %15307 = vmatpush1.bf16.msra.mxu1 %v15306_v18  ;;  %v15336_v18 = vpack.c.bf16 %v997_v8, %v989_v6  ;;  %v1069_v6 = vld [vmem:[#allocation14 + $0x308] sm:$0xff]  ;;  %v1071_v8 = vld [vmem:[#allocation14 + $0x318] sm:$0xff] }
 0x248   : > { %15309 = vmatprep.subr.bf16.mxu1 %v15308_v19  ;;  %v15464_v19 = vpack.c.bf16 %v999_v10, %v991_v9  ;;  %v1079_v9 = vld [vmem:[#allocation14 + $0x358] sm:$0xff] }
 0x249   : > { %v15484_v15 = vpack.c.bf16 %v1079_v9, %v1071_v8  ;;  %v1111_v1 = vld [vmem:[#allocation14 + $0x458] sm:$0xff]  ;;  %v1148_v8 = vld [vmem:[#allocation14 + $0x580] sm:$0xff] }
 0x24a   : > { %v1156_v9 = vld [vmem:[#allocation14 + $0x5c0] sm:$0xff] }
 0x24b   : > { %15311 = vmatpush1.bf16.msra.mxu1 %v15310_v24  ;;  %v1007_v24 = vld [vmem:[#allocation14 + $0x118] sm:$0xff] }
 0x24c   : > { %15313 = vmatprep.subr.bf16.mxu1 %v15312_v25  ;;  %v1015_v25 = vld [vmem:[#allocation14 + $0x158] sm:$0xff] }
 0x24f   : > { %15315 = vmatpush1.bf16.msra.mxu1 %v15314_v30  ;;  %v15340_v30 = vpack.c.bf16 %v1013_v23, %v1005_v22 }
 0x250   : > { %15317 = vmatprep.subr.bf16.mxu1 %v15316_v31  ;;  %v15468_v31 = vpack.c.bf16 %v1015_v25, %v1007_v24  ;;  %v1084_v24 = vld [vmem:[#allocation14 + $0x380] sm:$0xff] }
 0x251   : > { %v1092_v25 = vld [vmem:[#allocation14 + $0x3c0] sm:$0xff] }
 0x253   : > { %15319 = vmatpush1.bf16.msra.mxu1 %v15318_v35  ;;  %v1023_v35 = vld [vmem:[#allocation14 + $0x198] sm:$0xff] }
 0x254   : > { %15321 = vmatprep.subr.bf16.mxu1 %v15320_v36  ;;  %v1031_v36 = vld [vmem:[#allocation14 + $0x1d8] sm:$0xff] }
 0x257   : > { %15323 = vmatpush1.bf16.msra.mxu1 %v15322_v41  ;;  %v15344_v41 = vpack.c.bf16 %v1029_v34, %v1021_v33  ;;  %v15362_v33 = vpack.c.bf16 %v1092_v25, %v1084_v24  ;;  %v15490_v34 = vpack.c.bf16 %v1094_v29, %v1086_v28  ;;  %v1166_v24 = vld [vmem:[#allocation14 + $0x610] sm:$0xff]  ;;  %v1183_v28 = vld [vmem:[#allocation14 + $0x698] sm:$0xff] }
 0x258   : > { %15325 = vmatprep.subr.bf16.mxu1 %v15324_v42  ;;  %v15472_v42 = vpack.c.bf16 %v1031_v36, %v1023_v35  ;;  %v1100_v35 = vld [vmem:[#allocation14 + $0x400] sm:$0xff]  ;;  %v1174_v25 = vld [vmem:[#allocation14 + $0x650] sm:$0xff]  ;;  %v1191_v29 = vld [vmem:[#allocation14 + $0x6d8] sm:$0xff] }
 0x259   : > { %v1108_v36 = vld [vmem:[#allocation14 + $0x440] sm:$0xff] }
 0x25b   : > { %15327 = vmatpush1.bf16.msra.mxu1 %v15326_v45  ;;  %v1037_v45 = vld [vmem:[#allocation14 + $0x208] sm:$0xff] }
 0x25c   : > { %15329 = vmatprep.subr.bf16.mxu1 %v15328_v53  ;;  %v15348_v53 = vpack.c.bf16 %v1045_v46, %v1037_v45  ;;  %v15366_v45 = vpack.c.bf16 %v1108_v36, %v1100_v35  ;;  %v15494_v46 = vpack.c.bf16 %v1110_v40, %v1102_v39  ;;  %v1182_v35 = vld [vmem:[#allocation14 + $0x690] sm:$0xff]  ;;  %v1199_v39 = vld [vmem:[#allocation14 + $0x718] sm:$0xff] }
 0x25d   : > { %v1190_v36 = vld [vmem:[#allocation14 + $0x6d0] sm:$0xff]  ;;  %v1207_v40 = vld [vmem:[#allocation14 + $0x758] sm:$0xff] }
 0x25f   : > { %15331 = vmatpush1.bf16.msra.mxu1 %v15330_v57  ;;  %v1053_v57 = vld [vmem:[#allocation14 + $0x288] sm:$0xff] }
 0x260   : > { %15461 = vmatprep.subr.bf16.mxu1 %v15460_v63  ;;  %v1052_v63 = vld [vmem:[#allocation14 + $0x280] sm:$0xff]  ;;  %v15352_v2 = vpack.c.bf16 %v1061_v58, %v1053_v57  ;;  %v15370_v57 = vpack.c.bf16 %v1124_v48, %v1116_v47  ;;  %v15498_v58 = vpack.c.bf16 %v1126_v52, %v1118_v51  ;;  %v1198_v47 = vld [vmem:[#allocation14 + $0x710] sm:$0xff]  ;;  %v1213_v51 = vld [vmem:[#allocation14 + $0x788] sm:$0xff] }
 0x261   : > { %v1206_v48 = vld [vmem:[#allocation14 + $0x750] sm:$0xff]  ;;  %v1221_v52 = vld [vmem:[#allocation14 + $0x7c8] sm:$0xff] }
 0x315   : > { %v735_v7 = vpop.f32.mrb[0].mxu1 }
 0x316   : > { %v736_v11 = vadd.f32 %v13663_v0, %v735_v7  ;;  %v15249_v12 = vpop.f32.mrb[1].mxu1  ;;  %v1060_v0 = vld [vmem:[#allocation14 + $0x2c0] sm:$0xff]  ;;  %v1077_v7 = vld [vmem:[#allocation14 + $0x348] sm:$0xff] }
 0x317   : > { %v15354_v10 = vpack.c.bf16 %v1060_v0, %v1052_v63  ;;  %v1068_v12 = vld [vmem:[#allocation14 + $0x300] sm:$0xff]  ;;  %v1134_v63 = vld [vmem:[#allocation14 + $0x510] sm:$0xff] }
 0x318   : > { %v739_v17 = vmax.f32 %v736_v11, 0.0  ;;  %v15482_v11 = vpack.c.bf16 %v1062_v5, %v1054_v4  ;;  %v1142_v0 = vld [vmem:[#allocation14 + $0x550] sm:$0xff]  ;;  %v1151_v4 = vld [vmem:[#allocation14 + $0x598] sm:$0xff] }
 0x319   : > { %v1159_v5 = vld [vmem:[#allocation14 + $0x5d8] sm:$0xff] }
 0x31a   : > { %891 = vmatmul.mubr.f32.vlgmr.msra.gmra.mrb[2].mxu0 %v739_v17  ;;  %962 = vmatmul.mubr.f32.vlgmr.msra.gmra.mrb[2].mxu1 %v739_v17  ;;  %v1078_v17 = vld [vmem:[#allocation14 + $0x350] sm:$0xff] }
 0x31b   : > { %15335 = vmatpush1.bf16.msra.mxu0 %v15334_v13  ;;  %15463 = vmatpush1.bf16.msra.mxu1 %v15462_v14  ;;  %v1076_v13 = vld [vmem:[#allocation14 + $0x340] sm:$0xff]  ;;  %v15356_v14 = vpack.c.bf16 %v1077_v7, %v1069_v6  ;;  %v15486_v23 = vpack.c.bf16 %v1078_v17, %v1070_v16  ;;  %v15374_v6 = vpack.c.bf16 %v1140_v60, %v1132_v59  ;;  %v1167_v16 = vld [vmem:[#allocation14 + $0x618] sm:$0xff]  ;;  %v1214_v60 = vld [vmem:[#allocation14 + $0x790] sm:$0xff] }
 0x31c   : > { %15337 = vmatprep.subr.bf16.mxu0 %v15336_v18  ;;  %15465 = vmatprep.subr.bf16.mxu1 %v15464_v19  ;;  %v1085_v18 = vld [vmem:[#allocation14 + $0x388] sm:$0xff]  ;;  %v15358_v22 = vpack.c.bf16 %v1076_v13, %v1068_v12  ;;  %v15502_v7 = vpack.c.bf16 %v1142_v0, %v1134_v63  ;;  %v1150_v12 = vld [vmem:[#allocation14 + $0x590] sm:$0xff]  ;;  %v1175_v17 = vld [vmem:[#allocation14 + $0x658] sm:$0xff] }
 0x31d   : > { %v1093_v19 = vld [vmem:[#allocation14 + $0x3c8] sm:$0xff]  ;;  %v1158_v13 = vld [vmem:[#allocation14 + $0x5d0] sm:$0xff] }
 0x31e   : > { %v1229_v63 = vld [vmem:[#allocation14 + $0x808] sm:$0xff] }
 0x31f   : > { %15339 = vmatpush1.bf16.msra.mxu0 %v15338_v26  ;;  %15467 = vmatpush1.bf16.msra.mxu1 %v15466_v27  ;;  %v15360_v26 = vpack.c.bf16 %v1093_v19, %v1085_v18  ;;  %v15488_v27 = vpack.c.bf16 %v1095_v21, %v1087_v20  ;;  %v15378_v18 = vpack.c.bf16 %v1156_v9, %v1148_v8  ;;  %v1164_v20 = vld [vmem:[#allocation14 + $0x600] sm:$0xff]  ;;  %v1237_v0 = vld [vmem:[#allocation14 + $0x848] sm:$0xff]  ;;  %v17061_v9 = vld [vmem:[#allocation13] sm:$0xf] }
 0x320   : > { %15341 = vmatprep.subr.bf16.mxu0 %v15340_v30  ;;  %15469 = vmatprep.subr.bf16.mxu1 %v15468_v31  ;;  %v1101_v30 = vld [vmem:[#allocation14 + $0x408] sm:$0xff]  ;;  %v15506_v19 = vpack.c.bf16 %v1158_v13, %v1150_v12  ;;  %v1172_v21 = vld [vmem:[#allocation14 + $0x640] sm:$0xff] }
 0x321   : > { %v1109_v31 = vld [vmem:[#allocation14 + $0x448] sm:$0xff] }
 0x323   : > { %15343 = vmatpush1.bf16.msra.mxu0 %v15342_v37  ;;  %15471 = vmatpush1.bf16.msra.mxu1 %v15470_v38  ;;  %v15364_v37 = vpack.c.bf16 %v1109_v31, %v1101_v30  ;;  %v15492_v38 = vpack.c.bf16 %v1111_v1, %v1103_v32  ;;  %v15382_v30 = vpack.c.bf16 %v1172_v21, %v1164_v20  ;;  %v1180_v32 = vld [vmem:[#allocation14 + $0x680] sm:$0xff] }
 0x324   : > { %15345 = vmatprep.subr.bf16.mxu0 %v15344_v41  ;;  %15473 = vmatprep.subr.bf16.mxu1 %v15472_v42  ;;  %v1117_v41 = vld [vmem:[#allocation14 + $0x488] sm:$0xff]  ;;  %v15510_v31 = vpack.c.bf16 %v1174_v25, %v1166_v24  ;;  %v1188_v1 = vld [vmem:[#allocation14 + $0x6c0] sm:$0xff] }
 0x325   : > { %v1125_v42 = vld [vmem:[#allocation14 + $0x4c8] sm:$0xff]  ;;  %v1236_v21 = vld [vmem:[#allocation14 + $0x840] sm:$0xff] }
 0x326   : > { %v1245_v25 = vld [vmem:[#allocation14 + $0x888] sm:$0xff] }
 0x327   : > { %15347 = vmatpush1.bf16.msra.mxu0 %v15346_v49  ;;  %15475 = vmatpush1.bf16.msra.mxu1 %v15474_v50  ;;  %v15368_v49 = vpack.c.bf16 %v1125_v42, %v1117_v41  ;;  %v15496_v50 = vpack.c.bf16 %v1127_v44, %v1119_v43  ;;  %v15386_v41 = vpack.c.bf16 %v1188_v1, %v1180_v32  ;;  %v1196_v43 = vld [vmem:[#allocation14 + $0x700] sm:$0xff] }
 0x328   : > { %15349 = vmatprep.subr.bf16.mxu0 %v15348_v53  ;;  %15477 = vmatprep.subr.bf16.mxu1 %v15476_v54  ;;  %v1133_v53 = vld [vmem:[#allocation14 + $0x508] sm:$0xff]  ;;  %v15514_v42 = vpack.c.bf16 %v1190_v36, %v1182_v35  ;;  %v1244_v1 = vld [vmem:[#allocation14 + $0x880] sm:$0xff]  ;;  %v1246_v35 = vld [vmem:[#allocation14 + $0x890] sm:$0xff] }
 0x329   : > { %v1141_v54 = vld [vmem:[#allocation14 + $0x548] sm:$0xff]  ;;  %v1254_v36 = vld [vmem:[#allocation14 + $0x8d0] sm:$0xff] }
 0x32b   : > { %15351 = vmatpush1.bf16.msra.mxu0 %v15350_v61  ;;  %15479 = vmatpush1.bf16.msra.mxu1 %v15478_v62  ;;  %v15372_v61 = vpack.c.bf16 %v1141_v54, %v1133_v53  ;;  %v15500_v62 = vpack.c.bf16 %v1143_v56, %v1135_v55  ;;  %v1215_v53 = vld [vmem:[#allocation14 + $0x798] sm:$0xff]  ;;  %v15392_v54 = vpack.c.bf16 %v1221_v52, %v1213_v51  ;;  %v1212_v56 = vld [vmem:[#allocation14 + $0x780] sm:$0xff]  ;;  %v1270_v51 = vld [vmem:[#allocation14 + $0x950] sm:$0xff] }
 0x32c   : > { %15353 = vmatprep.subr.bf16.mxu0 %v15352_v2  ;;  %15481 = vmatprep.subr.bf16.mxu1 %v15480_v3  ;;  %v1149_v2 = vld [vmem:[#allocation14 + $0x588] sm:$0xff]  ;;  %v1223_v55 = vld [vmem:[#allocation14 + $0x7d8] sm:$0xff] }
 0x32d   : > { %v1157_v3 = vld [vmem:[#allocation14 + $0x5c8] sm:$0xff] }
 0x32e   : > { %v1277_v52 = vld [vmem:[#allocation14 + $0x988] sm:$0xff] }
 0x32f   : > { %15355 = vmatpush1.bf16.msra.mxu0 %v15354_v10  ;;  %15483 = vmatpush1.bf16.msra.mxu1 %v15482_v11  ;;  %v15376_v10 = vpack.c.bf16 %v1157_v3, %v1149_v2  ;;  %v15504_v11 = vpack.c.bf16 %v1159_v5, %v1151_v4  ;;  %v1231_v2 = vld [vmem:[#allocation14 + $0x818] sm:$0xff]  ;;  %v15396_v3 = vpack.c.bf16 %v1237_v0, %v1229_v63  ;;  %v1286_v63 = vld [vmem:[#allocation14 + $0x9d0] sm:$0xff]  ;;  %v1293_v0 = vld [vmem:[#allocation14 + $0xa08] sm:$0xff] }
 0x330   : > { %15357 = vmatprep.subr.bf16.mxu0 %v15356_v14  ;;  %15485 = vmatprep.subr.bf16.mxu1 %v15484_v15  ;;  %v1165_v14 = vld [vmem:[#allocation14 + $0x608] sm:$0xff]  ;;  %v1239_v4 = vld [vmem:[#allocation14 + $0x858] sm:$0xff] }
 0x331   : > { %v1173_v15 = vld [vmem:[#allocation14 + $0x648] sm:$0xff]  ;;  %v15524_v5 = vpack.c.bf16 %v1239_v4, %v1231_v2  ;;  %v1303_v4 = vld [vmem:[#allocation14 + $0xa58] sm:$0xff] }
 0x332   : > { %v1301_v2 = vld [vmem:[#allocation14 + $0xa48] sm:$0xff] }
 0x333   : > { %15359 = vmatpush1.bf16.msra.mxu0 %v15358_v22  ;;  %15487 = vmatpush1.bf16.msra.mxu1 %v15486_v23  ;;  %v15380_v22 = vpack.c.bf16 %v1173_v15, %v1165_v14  ;;  %v15508_v23 = vpack.c.bf16 %v1175_v17, %v1167_v16  ;;  %v1228_v17 = vld [vmem:[#allocation14 + $0x800] sm:$0xff] }
 0x334   : > { %15361 = vmatprep.subr.bf16.mxu0 %v15360_v26  ;;  %15489 = vmatprep.subr.bf16.mxu1 %v15488_v27  ;;  %v1181_v26 = vld [vmem:[#allocation14 + $0x688] sm:$0xff] }
 0x335   : > { %v1189_v27 = vld [vmem:[#allocation14 + $0x6c8] sm:$0xff] }
 0x337   : > { %15363 = vmatpush1.bf16.msra.mxu0 %v15362_v33  ;;  %15491 = vmatpush1.bf16.msra.mxu1 %v15490_v34  ;;  %v15384_v33 = vpack.c.bf16 %v1189_v27, %v1181_v26  ;;  %v15512_v34 = vpack.c.bf16 %v1191_v29, %v1183_v28  ;;  %v1253_v27 = vld [vmem:[#allocation14 + $0x8c8] sm:$0xff]  ;;  %v1247_v28 = vld [vmem:[#allocation14 + $0x898] sm:$0xff] }
 0x338   : > { %15365 = vmatprep.subr.bf16.mxu0 %v15364_v37  ;;  %15493 = vmatprep.subr.bf16.mxu1 %v15492_v38  ;;  %v1197_v37 = vld [vmem:[#allocation14 + $0x708] sm:$0xff]  ;;  %v1255_v29 = vld [vmem:[#allocation14 + $0x8d8] sm:$0xff] }
 0x339   : > { %v1205_v38 = vld [vmem:[#allocation14 + $0x748] sm:$0xff] }
 0x33a   : > { %v15388_v44 = vpack.c.bf16 %v1205_v38, %v1197_v37  ;;  %v1261_v37 = vld [vmem:[#allocation14 + $0x908] sm:$0xff]  ;;  %v15400_v38 = vpack.c.bf16 %v1253_v27, %v1245_v25  ;;  %v1308_v25 = vld [vmem:[#allocation14 + $0xa80] sm:$0xff] }
 0x33b   : > { %15367 = vmatpush1.bf16.msra.mxu0 %v15366_v45  ;;  %15495 = vmatpush1.bf16.msra.mxu1 %v15494_v46  ;;  %v15516_v45 = vpack.c.bf16 %v1207_v40, %v1199_v39  ;;  %v1204_v46 = vld [vmem:[#allocation14 + $0x740] sm:$0xff]  ;;  %v15528_v39 = vpack.c.bf16 %v1255_v29, %v1247_v28  ;;  %v1269_v40 = vld [vmem:[#allocation14 + $0x948] sm:$0xff]  ;;  %v1310_v29 = vld [vmem:[#allocation14 + $0xa90] sm:$0xff] }
 0x33c   : > { %15369 = vmatprep.subr.bf16.mxu0 %v15368_v49  ;;  %15497 = vmatprep.subr.bf16.mxu1 %v15496_v50  ;;  %v15390_v49 = vpack.c.bf16 %v1204_v46, %v1196_v43  ;;  %v15518_v50 = vpack.c.bf16 %v1206_v48, %v1198_v47  ;;  %v1260_v46 = vld [vmem:[#allocation14 + $0x900] sm:$0xff]  ;;  %v15404_v48 = vpack.c.bf16 %v1269_v40, %v1261_v37 }
 0x33d   : > { %v1268_v47 = vld [vmem:[#allocation14 + $0x940] sm:$0xff] }
 0x33f   : > { %15371 = vmatpush1.bf16.msra.mxu0 %v15370_v57  ;;  %15499 = vmatpush1.bf16.msra.mxu1 %v15498_v58  ;;  %v1220_v57 = vld [vmem:[#allocation14 + $0x7c0] sm:$0xff]  ;;  %v15520_v58 = vpack.c.bf16 %v1223_v55, %v1215_v53  ;;  %v1285_v53 = vld [vmem:[#allocation14 + $0x9c8] sm:$0xff]  ;;  %v1287_v55 = vld [vmem:[#allocation14 + $0x9d8] sm:$0xff] }
 0x340   : > { %15373 = vmatprep.subr.bf16.mxu0 %v15372_v61  ;;  %15501 = vmatprep.subr.bf16.mxu1 %v15500_v62  ;;  %v15394_v59 = vpack.c.bf16 %v1220_v57, %v1212_v56  ;;  %v1222_v61 = vld [vmem:[#allocation14 + $0x7d0] sm:$0xff]  ;;  %v15406_v56 = vpack.c.bf16 %v1268_v47, %v1260_v46  ;;  %v1349_v46 = vld [vmem:[#allocation14 + $0xbc8] sm:$0xff]  ;;  %v1343_v47 = vld [vmem:[#allocation14 + $0xb98] sm:$0xff] }
 0x341   : > { %v15522_v62 = vpack.c.bf16 %v1222_v61, %v1214_v60  ;;  %v15408_v60 = vpack.c.bf16 %v1285_v53, %v1277_v52  ;;  %v1348_v52 = vld [vmem:[#allocation14 + $0xbc0] sm:$0xff] }
 0x343   : > { %15375 = vmatpush1.bf16.msra.mxu0 %v15374_v6  ;;  %15503 = vmatpush1.bf16.msra.mxu1 %v15502_v7  ;;  %v806_v6 = vlaneseq }
 0x344   : > { %15377 = vmatprep.subr.bf16.mxu0 %v15376_v10  ;;  %15505 = vmatprep.subr.bf16.mxu1 %v15504_v11 }
 0x345   : > { %v17056_v7 = vshrl.u32 %v806_v6, 7 }
 0x347   : > { %15379 = vmatpush1.bf16.msra.mxu0 %v15378_v18  ;;  %15507 = vmatpush1.bf16.msra.mxu1 %v15506_v19  ;;  %v17059_v8 = vsub.s32 0, %v17056_v7  ;;  %v17064_v10 = vsub.s32 1, %v17056_v7  ;;  %v17067_v11 = vsub.s32 3, %v17056_v7 }
 0x348   : > { %15381 = vmatprep.subr.bf16.mxu0 %v15380_v22  ;;  %15509 = vmatprep.subr.bf16.mxu1 %v15508_v23  ;;  %v1230_v22 = vld [vmem:[#allocation14 + $0x810] sm:$0xff] }
 0x349   : > { %v809_v12 = vrot.slane %v17061_v9, %v17059_v8  ;;  %v813_v13 = vrot.slane %v17061_v9, %v17064_v10  ;;  %v821_v14 = vrot.slane %v17061_v9, %v17067_v11  ;;  %v1238_v23 = vld [vmem:[#allocation14 + $0x850] sm:$0xff] }
 0x34a   : > { %v15526_v32 = vpack.c.bf16 %v1238_v23, %v1230_v22  ;;  %v1319_v22 = vld [vmem:[#allocation14 + $0xad8] sm:$0xff] }
 0x34b   : > { %15383 = vmatpush1.bf16.msra.mxu0 %v15382_v30  ;;  %15511 = vmatpush1.bf16.msra.mxu1 %v15510_v31  ;;  %v15398_v31 = vpack.c.bf16 %v1236_v21, %v1228_v17  ;;  %v1294_v17 = vld [vmem:[#allocation14 + $0xa10] sm:$0xff]  ;;  %v1311_v21 = vld [vmem:[#allocation14 + $0xa98] sm:$0xff] }
 0x34c   : > { %15385 = vmatprep.subr.bf16.mxu0 %v15384_v33  ;;  %15513 = vmatprep.subr.bf16.mxu1 %v15512_v34  ;;  %v1252_v33 = vld [vmem:[#allocation14 + $0x8c0] sm:$0xff]  ;;  %v15544_v28 = vpack.c.bf16 %v1319_v22, %v1311_v21  ;;  %v1374_v22 = vld [vmem:[#allocation14 + $0xc90] sm:$0xff] }
 0x34f   : > { %15387 = vmatpush1.bf16.msra.mxu0 %v15386_v41  ;;  %15515 = vmatpush1.bf16.msra.mxu1 %v15514_v42  ;;  %v1263_v41 = vld [vmem:[#allocation14 + $0x918] sm:$0xff] }
 0x350   : > { %15389 = vmatprep.subr.bf16.mxu0 %v15388_v44  ;;  %15517 = vmatprep.subr.bf16.mxu1 %v15516_v45  ;;  %v1271_v42 = vld [vmem:[#allocation14 + $0x958] sm:$0xff]  ;;  %v15402_v44 = vpack.c.bf16 %v1252_v33, %v1244_v1  ;;  %v15530_v45 = vpack.c.bf16 %v1254_v36, %v1246_v35  ;;  %v1333_v1 = vld [vmem:[#allocation14 + $0xb48] sm:$0xff] }
 0x351   : > { %v1327_v33 = vld [vmem:[#allocation14 + $0xb18] sm:$0xff] }
 0x352   : > { %v1335_v35 = vld [vmem:[#allocation14 + $0xb58] sm:$0xff] }
 0x353   : > { %15391 = vmatpush1.bf16.msra.mxu0 %v15390_v49  ;;  %15519 = vmatpush1.bf16.msra.mxu1 %v15518_v50  ;;  %v15532_v49 = vpack.c.bf16 %v1271_v42, %v1263_v41  ;;  %v1262_v50 = vld [vmem:[#allocation14 + $0x910] sm:$0xff]  ;;  %v15548_v41 = vpack.c.bf16 %v1335_v35, %v1327_v33 }
 0x354   : > { %15393 = vmatprep.subr.bf16.mxu0 %v15392_v54  ;;  %15521 = vmatprep.subr.bf16.mxu1 %v15520_v58  ;;  %v1279_v54 = vld [vmem:[#allocation14 + $0x998] sm:$0xff]  ;;  %v15534_v57 = vpack.c.bf16 %v1270_v51, %v1262_v50  ;;  %v1276_v58 = vld [vmem:[#allocation14 + $0x980] sm:$0xff]  ;;  %v1326_v42 = vld [vmem:[#allocation14 + $0xb10] sm:$0xff] }
 0x355   : > { %v15536_v61 = vpack.c.bf16 %v1287_v55, %v1279_v54  ;;  %v1340_v51 = vld [vmem:[#allocation14 + $0xb80] sm:$0xff]  ;;  %v1342_v55 = vld [vmem:[#allocation14 + $0xb90] sm:$0xff] }
 0x356   : > { %v1390_v35 = vld [vmem:[#allocation14 + $0xd10] sm:$0xff] }
 0x357   : > { %15395 = vmatpush1.bf16.msra.mxu0 %v15394_v59  ;;  %15523 = vmatpush1.bf16.msra.mxu1 %v15522_v62  ;;  %v1284_v59 = vld [vmem:[#allocation14 + $0x9c0] sm:$0xff]  ;;  %v1278_v62 = vld [vmem:[#allocation14 + $0x990] sm:$0xff] }
 0x358   : > { %15397 = vmatprep.subr.bf16.mxu0 %v15396_v3  ;;  %15525 = vmatprep.subr.bf16.mxu1 %v15524_v5  ;;  %v1295_v3 = vld [vmem:[#allocation14 + $0xa18] sm:$0xff]  ;;  %v15410_v5 = vpack.c.bf16 %v1284_v59, %v1276_v58  ;;  %v15538_v6 = vpack.c.bf16 %v1286_v63, %v1278_v62  ;;  %v1365_v58 = vld [vmem:[#allocation14 + $0xc48] sm:$0xff]  ;;  %v1356_v63 = vld [vmem:[#allocation14 + $0xc00] sm:$0xff] }
 0x359   : > { %v1359_v59 = vld [vmem:[#allocation14 + $0xc18] sm:$0xff] }
 0x3ed   : > { %v892_v15 = vpop.f32.mrb[2].mxu0  ;;  %v17075_v16 = vpop.f32.mrb[2].mxu1 }
 0x3ee   : > { %v893_v18 = vadd.f32 %v892_v15, %v809_v12  ;;  %v894_v19 = vpop.f32.mrb[3].mxu0  ;;  %v965_v20 = vpop.f32.mrb[3].mxu1  ;;  %v1292_v12 = vld [vmem:[#allocation14 + $0xa00] sm:$0xff]  ;;  %v15540_v15 = vpack.c.bf16 %v1303_v4, %v1295_v3  ;;  %v1358_v4 = vld [vmem:[#allocation14 + $0xc10] sm:$0xff] }
 0x3ef   : > { %v895_v24 = vadd.f32 %v894_v19, %v813_v13  ;;  %v966_v26 = vadd.f32 %v965_v20, %v821_v14  ;;  %v1300_v13 = vld [vmem:[#allocation14 + $0xa40] sm:$0xff]  ;;  %v15412_v14 = vpack.c.bf16 %v1301_v2, %v1293_v0  ;;  %v1309_v19 = vld [vmem:[#allocation14 + $0xa88] sm:$0xff] }
 0x3f0   : > { %v17079_v34 = vmax.f32 %v893_v18, 0.0  ;;  %v1302_v18 = vld [vmem:[#allocation14 + $0xa50] sm:$0xff]  ;;  %v1317_v20 = vld [vmem:[#allocation14 + $0xac8] sm:$0xff]  ;;  %v15414_v23 = vpack.c.bf16 %v1300_v13, %v1292_v12  ;;  %v1364_v0 = vld [vmem:[#allocation14 + $0xc40] sm:$0xff] }
 0x3f1   : > { %v17077_v30 = vmax.f32 %v895_v24, 0.0  ;;  %v17083_v43 = vmax.f32 %v966_v26, 0.0  ;;  %v15542_v24 = vpack.c.bf16 %v1302_v18, %v1294_v17  ;;  %v1316_v26 = vld [vmem:[#allocation14 + $0xac0] sm:$0xff]  ;;  %v15416_v27 = vpack.c.bf16 %v1317_v20, %v1309_v19  ;;  %v1381_v12 = vld [vmem:[#allocation14 + $0xcc8] sm:$0xff]  ;;  %v1375_v13 = vld [vmem:[#allocation14 + $0xc98] sm:$0xff] }
 0x3f2   : > { %v15418_v36 = vpack.c.bf16 %v1316_v26, %v1308_v25  ;;  %v1372_v18 = vld [vmem:[#allocation14 + $0xc80] sm:$0xff]  ;;  %v1397_v25 = vld [vmem:[#allocation14 + $0xd48] sm:$0xff]  ;;  %v1391_v26 = vld [vmem:[#allocation14 + $0xd18] sm:$0xff] }
 0x3f3   : > { %1590 = vmatprep.mubr.f32.mxu0 %v17077_v30  ;;  %1732 = vmatprep.mubr.f32.mxu1 %v17077_v30  ;;  %v1380_v19 = vld [vmem:[#allocation14 + $0xcc0] sm:$0xff] }
 0x3f4   : > { %1591 = vmatmul.mubr.f32.vlgmr.msra.gmra.mrb[4].mxu0 %v17079_v34  ;;  %1733 = vmatmul.mubr.f32.vlgmr.msra.gmra.mrb[4].mxu1 %v17079_v34 }
 0x3f5   : > { %15399 = vmatpush1.bf16.msra.mxu0 %v15398_v31  ;;  %15527 = vmatpush1.bf16.msra.mxu1 %v15526_v32  ;;  %v1318_v31 = vld [vmem:[#allocation14 + $0xad0] sm:$0xff]  ;;  %v1325_v32 = vld [vmem:[#allocation14 + $0xb08] sm:$0xff] }
 0x3f6   : > { %1661 = vmatprep.mubr.f32.mxu0 %v17083_v43  ;;  %1803 = vmatprep.mubr.f32.mxu1 %v17083_v43  ;;  %v15546_v37 = vpack.c.bf16 %v1318_v31, %v1310_v29  ;;  %v15420_v40 = vpack.c.bf16 %v1333_v1, %v1325_v32  ;;  %v1388_v31 = vld [vmem:[#allocation14 + $0xd00] sm:$0xff] }
 0x3f7   : > { %15401 = vmatprep.subr.bf16.mxu0 %v15400_v38  ;;  %15529 = vmatprep.subr.bf16.mxu1 %v15528_v39  ;;  %v1324_v38 = vld [vmem:[#allocation14 + $0xb00] sm:$0xff] }
 0x3f8   : > { %v1332_v39 = vld [vmem:[#allocation14 + $0xb40] sm:$0xff] }
 0x3f9   : > { %15403 = vmatpush1.bf16.msra.mxu0 %v15402_v44  ;;  %15531 = vmatpush1.bf16.msra.mxu1 %v15530_v45  ;;  %v1334_v44 = vld [vmem:[#allocation14 + $0xb50] sm:$0xff]  ;;  %v1341_v45 = vld [vmem:[#allocation14 + $0xb88] sm:$0xff]  ;;  %v1396_v32 = vld [vmem:[#allocation14 + $0xd40] sm:$0xff] }
 0x3fa   : > { %15405 = vmatprep.subr.bf16.mxu0 %v15404_v48  ;;  %15533 = vmatprep.subr.bf16.mxu1 %v15532_v49  ;;  %v1351_v48 = vld [vmem:[#allocation14 + $0xbd8] sm:$0xff]  ;;  %v15422_v49 = vpack.c.bf16 %v1332_v39, %v1324_v38  ;;  %v15550_v50 = vpack.c.bf16 %v1334_v44, %v1326_v42  ;;  %v15424_v53 = vpack.c.bf16 %v1349_v46, %v1341_v45  ;;  %v1413_v38 = vld [vmem:[#allocation14 + $0xdc8] sm:$0xff]  ;;  %v1404_v44 = vld [vmem:[#allocation14 + $0xd80] sm:$0xff] }
 0x3fb   : > { %v15552_v54 = vpack.c.bf16 %v1351_v48, %v1343_v47  ;;  %v1407_v39 = vld [vmem:[#allocation14 + $0xd98] sm:$0xff]  ;;  %v1412_v45 = vld [vmem:[#allocation14 + $0xdc0] sm:$0xff]  ;;  %v1406_v48 = vld [vmem:[#allocation14 + $0xd90] sm:$0xff] }
 0x3fd   : > { %15407 = vmatpush1.bf16.msra.mxu0 %v15406_v56  ;;  %15535 = vmatpush1.bf16.msra.mxu1 %v15534_v57  ;;  %v1350_v56 = vld [vmem:[#allocation14 + $0xbd0] sm:$0xff]  ;;  %v1357_v57 = vld [vmem:[#allocation14 + $0xc08] sm:$0xff] }
 0x3fe   : > { %15409 = vmatprep.subr.bf16.mxu0 %v15408_v60  ;;  %15537 = vmatprep.subr.bf16.mxu1 %v15536_v61  ;;  %v1367_v60 = vld [vmem:[#allocation14 + $0xc58] sm:$0xff]  ;;  %v15426_v61 = vpack.c.bf16 %v1348_v52, %v1340_v51  ;;  %v15554_v62 = vpack.c.bf16 %v1350_v56, %v1342_v55  ;;  %v15428_v2 = vpack.c.bf16 %v1365_v58, %v1357_v57  ;;  %v1429_v51 = vld [vmem:[#allocation14 + $0xe48] sm:$0xff]  ;;  %v1420_v56 = vld [vmem:[#allocation14 + $0xe00] sm:$0xff] }
 0x3ff   : > { %v15556_v3 = vpack.c.bf16 %v1367_v60, %v1359_v59  ;;  %v1423_v52 = vld [vmem:[#allocation14 + $0xe18] sm:$0xff]  ;;  %v1428_v57 = vld [vmem:[#allocation14 + $0xe40] sm:$0xff]  ;;  %v1422_v60 = vld [vmem:[#allocation14 + $0xe10] sm:$0xff] }
 0x401   : > { %15411 = vmatpush1.bf16.msra.mxu0 %v15410_v5  ;;  %15539 = vmatpush1.bf16.msra.mxu1 %v15538_v6  ;;  %v1366_v5 = vld [vmem:[#allocation14 + $0xc50] sm:$0xff]  ;;  %v1373_v6 = vld [vmem:[#allocation14 + $0xc88] sm:$0xff] }
 0x402   : > { %15413 = vmatprep.subr.bf16.mxu0 %v15412_v14  ;;  %15541 = vmatprep.subr.bf16.mxu1 %v15540_v15  ;;  %v1383_v14 = vld [vmem:[#allocation14 + $0xcd8] sm:$0xff]  ;;  %v15430_v15 = vpack.c.bf16 %v1364_v0, %v1356_v63  ;;  %v15558_v17 = vpack.c.bf16 %v1366_v5, %v1358_v4  ;;  %v15432_v20 = vpack.c.bf16 %v1381_v12, %v1373_v6  ;;  %v1445_v63 = vld [vmem:[#allocation14 + $0xec8] sm:$0xff]  ;;  %v1436_v5 = vld [vmem:[#allocation14 + $0xe80] sm:$0xff] }
 0x403   : > { %v15560_v21 = vpack.c.bf16 %v1383_v14, %v1375_v13  ;;  %v1439_v0 = vld [vmem:[#allocation14 + $0xe98] sm:$0xff]  ;;  %v1444_v6 = vld [vmem:[#allocation14 + $0xec0] sm:$0xff]  ;;  %v1438_v14 = vld [vmem:[#allocation14 + $0xe90] sm:$0xff] }
 0x405   : > { %15415 = vmatpush1.bf16.msra.mxu0 %v15414_v23  ;;  %15543 = vmatpush1.bf16.msra.mxu1 %v15542_v24  ;;  %v1382_v23 = vld [vmem:[#allocation14 + $0xcd0] sm:$0xff]  ;;  %v1389_v24 = vld [vmem:[#allocation14 + $0xd08] sm:$0xff] }
 0x406   : > { %15417 = vmatprep.subr.bf16.mxu0 %v15416_v27  ;;  %15545 = vmatprep.subr.bf16.mxu1 %v15544_v28  ;;  %v1399_v27 = vld [vmem:[#allocation14 + $0xd58] sm:$0xff]  ;;  %v15434_v28 = vpack.c.bf16 %v1380_v19, %v1372_v18  ;;  %v15562_v29 = vpack.c.bf16 %v1382_v23, %v1374_v22  ;;  %v15436_v1 = vpack.c.bf16 %v1397_v25, %v1389_v24  ;;  %v1461_v18 = vld [vmem:[#allocation14 + $0xf48] sm:$0xff]  ;;  %v1452_v23 = vld [vmem:[#allocation14 + $0xf00] sm:$0xff]  ;;  %v17090_v25 = vsub.s32 2, %v17056_v7 }
 0x407   : > { %v15564_v33 = vpack.c.bf16 %v1399_v27, %v1391_v26  ;;  %v1455_v19 = vld [vmem:[#allocation14 + $0xf18] sm:$0xff]  ;;  %v1460_v24 = vld [vmem:[#allocation14 + $0xf40] sm:$0xff] }
 0x409   : > { %15419 = vmatpush1.bf16.msra.mxu0 %v15418_v36  ;;  %15547 = vmatpush1.bf16.msra.mxu1 %v15546_v37  ;;  %v1398_v36 = vld [vmem:[#allocation14 + $0xd50] sm:$0xff]  ;;  %v1405_v37 = vld [vmem:[#allocation14 + $0xd88] sm:$0xff] }
 0x40a   : > { %15421 = vmatprep.subr.bf16.mxu0 %v15420_v40  ;;  %15549 = vmatprep.subr.bf16.mxu1 %v15548_v41  ;;  %v1415_v40 = vld [vmem:[#allocation14 + $0xdd8] sm:$0xff]  ;;  %v15438_v41 = vpack.c.bf16 %v1396_v32, %v1388_v31  ;;  %v15566_v42 = vpack.c.bf16 %v1398_v36, %v1390_v35  ;;  %v15440_v46 = vpack.c.bf16 %v1413_v38, %v1405_v37  ;;  %v1469_v31 = vld [vmem:[#allocation14 + $0xf88] sm:$0xff]  ;;  %v1468_v37 = vld [vmem:[#allocation14 + $0xf80] sm:$0xff] }
 0x40b   : > { %v15568_v47 = vpack.c.bf16 %v1415_v40, %v1407_v39  ;;  %v1477_v32 = vld [vmem:[#allocation14 + $0xfc8] sm:$0xff]  ;;  %v15454_v35 = vpack.c.bf16 %v1460_v24, %v1452_v23  ;;  %v1476_v38 = vld [vmem:[#allocation14 + $0xfc0] sm:$0xff]  ;;  %v817_v39 = vrot.slane %v17061_v9, %v17090_v25  ;;  %v1018_v23 = vld [vmem:[#allocation14 + $0x170] sm:$0xff] }
 0x40c   : > { %v15456_v40 = vpack.c.bf16 %v1477_v32, %v1469_v31  ;;  %v1025_v24 = vld [vmem:[#allocation14 + $0x1a8] sm:$0xff] }
 0x40d   : > { %15423 = vmatpush1.bf16.msra.mxu0 %v15422_v49  ;;  %15551 = vmatpush1.bf16.msra.mxu1 %v15550_v50  ;;  %v1414_v49 = vld [vmem:[#allocation14 + $0xdd0] sm:$0xff]  ;;  %v1421_v50 = vld [vmem:[#allocation14 + $0xe08] sm:$0xff] }
 0x40e   : > { %15425 = vmatprep.subr.bf16.mxu0 %v15424_v53  ;;  %15553 = vmatprep.subr.bf16.mxu1 %v15552_v54  ;;  %v1431_v53 = vld [vmem:[#allocation14 + $0xe58] sm:$0xff]  ;;  %v15442_v54 = vpack.c.bf16 %v1412_v45, %v1404_v44  ;;  %v15570_v55 = vpack.c.bf16 %v1414_v49, %v1406_v48  ;;  %v15444_v58 = vpack.c.bf16 %v1429_v51, %v1421_v50  ;;  %v1478_v44 = vld [vmem:[#allocation14 + $0xfd0] sm:$0xff]  ;;  %v977_v45 = vld [vmem:[#allocation14 + $0x28] sm:$0xff] }
 0x40f   : > { %v15572_v59 = vpack.c.bf16 %v1431_v53, %v1423_v52  ;;  %v987_v48 = vld [vmem:[#allocation14 + $0x78] sm:$0xff]  ;;  %v15458_v49 = vpack.c.bf16 %v1476_v38, %v1468_v37  ;;  %v964_v51 = vadd.f32 %v17075_v16, %v817_v39  ;;  %v976_v53 = vld [vmem:[#allocation14 + $0x20] sm:$0xff]  ;;  %v1041_v37 = vld [vmem:[#allocation14 + $0x228] sm:$0xff] }
 0x410   : > { %v1049_v38 = vld [vmem:[#allocation14 + $0x268] sm:$0xff]  ;;  %v1043_v39 = vld [vmem:[#allocation14 + $0x238] sm:$0xff] }
 0x411   : > { %15427 = vmatpush1.bf16.msra.mxu0 %v15426_v61  ;;  %15555 = vmatpush1.bf16.msra.mxu1 %v15554_v62  ;;  %v1430_v61 = vld [vmem:[#allocation14 + $0xe50] sm:$0xff]  ;;  %v1437_v62 = vld [vmem:[#allocation14 + $0xe88] sm:$0xff] }
 0x412   : > { %15429 = vmatprep.subr.bf16.mxu0 %v15428_v2  ;;  %15557 = vmatprep.subr.bf16.mxu1 %v15556_v3  ;;  %v1447_v2 = vld [vmem:[#allocation14 + $0xed8] sm:$0xff]  ;;  %v15446_v3 = vpack.c.bf16 %v1428_v57, %v1420_v56  ;;  %v15574_v4 = vpack.c.bf16 %v1430_v61, %v1422_v60  ;;  %v15448_v12 = vpack.c.bf16 %v1445_v63, %v1437_v62  ;;  %v986_v56 = vld [vmem:[#allocation14 + $0x70] sm:$0xff]  ;;  %v993_v57 = vld [vmem:[#allocation14 + $0xa8] sm:$0xff]  ;;  %v17095_v62 = vmax.f32 %v964_v51, 0.0 }
 0x413   : > { %v15576_v13 = vpack.c.bf16 %v1447_v2, %v1439_v0  ;;  %v1003_v60 = vld [vmem:[#allocation14 + $0xf8] sm:$0xff]  ;;  %v992_v63 = vld [vmem:[#allocation14 + $0xa0] sm:$0xff]  ;;  %v994_v2 = vld [vmem:[#allocation14 + $0xb0] sm:$0xff] }
 0x414   : > { %v1000_v0 = vld [vmem:[#allocation14 + $0xe0] sm:$0xff]  ;;  %v1065_v51 = vld [vmem:[#allocation14 + $0x2e8] sm:$0xff] }
 0x415   : > { %15431 = vmatpush1.bf16.msra.mxu0 %v15430_v15  ;;  %15559 = vmatpush1.bf16.msra.mxu1 %v15558_v17  ;;  %v1446_v15 = vld [vmem:[#allocation14 + $0xed0] sm:$0xff]  ;;  %v1453_v17 = vld [vmem:[#allocation14 + $0xf08] sm:$0xff] }
 0x416   : > { %15433 = vmatprep.subr.bf16.mxu0 %v15432_v20  ;;  %15561 = vmatprep.subr.bf16.mxu1 %v15560_v21  ;;  %v1463_v20 = vld [vmem:[#allocation14 + $0xf58] sm:$0xff]  ;;  %v15450_v21 = vpack.c.bf16 %v1444_v6, %v1436_v5  ;;  %v15578_v22 = vpack.c.bf16 %v1446_v15, %v1438_v14  ;;  %v15452_v26 = vpack.c.bf16 %v1461_v18, %v1453_v17  ;;  %v1002_v5 = vld [vmem:[#allocation14 + $0xf0] sm:$0xff]  ;;  %v1009_v6 = vld [vmem:[#allocation14 + $0x128] sm:$0xff] }
 0x417   : > { %v15580_v27 = vpack.c.bf16 %v1463_v20, %v1455_v19  ;;  %v1019_v14 = vld [vmem:[#allocation14 + $0x178] sm:$0xff]  ;;  %v15594_v15 = vpack.c.bf16 %v1000_v0, %v992_v63  ;;  %v15722_v17 = vpack.c.bf16 %v1002_v5, %v994_v2  ;;  %v1008_v19 = vld [vmem:[#allocation14 + $0x120] sm:$0xff] }
 0x418   : > { %v1016_v20 = vld [vmem:[#allocation14 + $0x160] sm:$0xff]  ;;  %v1075_v63 = vld [vmem:[#allocation14 + $0x338] sm:$0xff] }
 0x419   : > { %15435 = vmatpush1.bf16.msra.mxu0 %v15434_v28  ;;  %15563 = vmatpush1.bf16.msra.mxu1 %v15562_v29  ;;  %v1454_v28 = vld [vmem:[#allocation14 + $0xf10] sm:$0xff]  ;;  %v1083_v0 = vld [vmem:[#allocation14 + $0x378] sm:$0xff]  ;;  %v1072_v5 = vld [vmem:[#allocation14 + $0x320] sm:$0xff] }
 0x41a   : > { %15437 = vmatprep.subr.bf16.mxu0 %v15436_v1  ;;  %15565 = vmatprep.subr.bf16.mxu1 %v15564_v33  ;;  %v1462_v29 = vld [vmem:[#allocation14 + $0xf50] sm:$0xff]  ;;  %v1471_v1 = vld [vmem:[#allocation14 + $0xf98] sm:$0xff] }
 0x41b   : > { %v1479_v33 = vld [vmem:[#allocation14 + $0xfd8] sm:$0xff]  ;;  %v15582_v36 = vpack.c.bf16 %v1462_v29, %v1454_v28  ;;  %v15598_v29 = vpack.c.bf16 %v1016_v20, %v1008_v19 }
 0x41c   : > { %v1035_v28 = vld [vmem:[#allocation14 + $0x1f8] sm:$0xff] }
 0x41d   : > { %15439 = vmatpush1.bf16.msra.mxu0 %v15438_v41  ;;  %15567 = vmatpush1.bf16.msra.mxu1 %v15566_v42  ;;  %v15584_v41 = vpack.c.bf16 %v1479_v33, %v1471_v1  ;;  %v1470_v42 = vld [vmem:[#allocation14 + $0xf90] sm:$0xff]  ;;  %v1032_v1 = vld [vmem:[#allocation14 + $0x1e0] sm:$0xff]  ;;  %v1099_v19 = vld [vmem:[#allocation14 + $0x3f8] sm:$0xff] }
 0x41e   : > { %15441 = vmatprep.subr.bf16.mxu0 %v15440_v46  ;;  %15569 = vmatprep.subr.bf16.mxu1 %v15568_v47  ;;  %v985_v46 = vld [vmem:[#allocation14 + $0x68] sm:$0xff]  ;;  %v979_v47 = vld [vmem:[#allocation14 + $0x38] sm:$0xff]  ;;  %v15586_v50 = vpack.c.bf16 %v1478_v44, %v1470_v42  ;;  %v1026_v33 = vld [vmem:[#allocation14 + $0x1b0] sm:$0xff]  ;;  %v15604_v44 = vpack.c.bf16 %v1049_v38, %v1041_v37 }
 0x41f   : > { %v15588_v52 = vpack.c.bf16 %v985_v46, %v977_v45  ;;  %v15716_v9 = vpack.c.bf16 %v987_v48, %v979_v47  ;;  %v1040_v45 = vld [vmem:[#allocation14 + $0x220] sm:$0xff]  ;;  %v1042_v47 = vld [vmem:[#allocation14 + $0x230] sm:$0xff] }
 0x420   : > { %v1048_v46 = vld [vmem:[#allocation14 + $0x260] sm:$0xff]  ;;  %v1106_v38 = vld [vmem:[#allocation14 + $0x430] sm:$0xff] }
 0x421   : > { %15443 = vmatpush1.bf16.msra.mxu0 %v15442_v54  ;;  %15571 = vmatpush1.bf16.msra.mxu1 %v15570_v55  ;;  %v984_v54 = vld [vmem:[#allocation14 + $0x60] sm:$0xff]  ;;  %v978_v55 = vld [vmem:[#allocation14 + $0x30] sm:$0xff] }
 0x422   : > { %15445 = vmatprep.subr.bf16.mxu0 %v15444_v58  ;;  %15573 = vmatprep.subr.bf16.mxu1 %v15572_v59  ;;  %v1001_v58 = vld [vmem:[#allocation14 + $0xe8] sm:$0xff]  ;;  %v995_v59 = vld [vmem:[#allocation14 + $0xb8] sm:$0xff]  ;;  %v15590_v61 = vpack.c.bf16 %v984_v54, %v976_v53  ;;  %v15718_v16 = vpack.c.bf16 %v986_v56, %v978_v55  ;;  %v15606_v53 = vpack.c.bf16 %v1048_v46, %v1040_v45  ;;  %v1056_v56 = vld [vmem:[#allocation14 + $0x2a0] sm:$0xff] }
 0x423   : > { %v1112_v37 = vld [vmem:[#allocation14 + $0x460] sm:$0xff]  ;;  %v1131_v45 = vld [vmem:[#allocation14 + $0x4f8] sm:$0xff] }
 0x425   : > { %15447 = vmatpush1.bf16.msra.mxu0 %v15446_v3  ;;  %15575 = vmatpush1.bf16.msra.mxu1 %v15574_v4  ;;  %v15592_v3 = vpack.c.bf16 %v1001_v58, %v993_v57  ;;  %v15720_v4 = vpack.c.bf16 %v1003_v60, %v995_v59  ;;  %v1064_v57 = vld [vmem:[#allocation14 + $0x2e0] sm:$0xff]  ;;  %v1058_v58 = vld [vmem:[#allocation14 + $0x2b0] sm:$0xff] }
 0x426   : > { %15449 = vmatprep.subr.bf16.mxu0 %v15448_v12  ;;  %15577 = vmatprep.subr.bf16.mxu1 %v15576_v13  ;;  %v1017_v12 = vld [vmem:[#allocation14 + $0x168] sm:$0xff]  ;;  %v1011_v13 = vld [vmem:[#allocation14 + $0x138] sm:$0xff]  ;;  %v1066_v60 = vld [vmem:[#allocation14 + $0x2f0] sm:$0xff]  ;;  %v15610_v2 = vpack.c.bf16 %v1064_v57, %v1056_v56 }
 0x427   : > { %v15596_v18 = vpack.c.bf16 %v1017_v12, %v1009_v6  ;;  %v1080_v6 = vld [vmem:[#allocation14 + $0x360] sm:$0xff]  ;;  %v1074_v12 = vld [vmem:[#allocation14 + $0x330] sm:$0xff]  ;;  %v1147_v56 = vld [vmem:[#allocation14 + $0x578] sm:$0xff] }
 0x428   : > { %v15614_v20 = vpack.c.bf16 %v1080_v6, %v1072_v5  ;;  %v1163_v5 = vld [vmem:[#allocation14 + $0x5f8] sm:$0xff] }
 0x429   : > { %15451 = vmatpush1.bf16.msra.mxu0 %v15450_v21  ;;  %15579 = vmatpush1.bf16.msra.mxu1 %v15578_v22  ;;  %v1010_v21 = vld [vmem:[#allocation14 + $0x130] sm:$0xff]  ;;  %v15724_v22 = vpack.c.bf16 %v1019_v14, %v1011_v13  ;;  %v15740_v13 = vpack.c.bf16 %v1083_v0, %v1075_v63 }
 0x42a   : > { %15453 = vmatprep.subr.bf16.mxu0 %v15452_v26  ;;  %15581 = vmatprep.subr.bf16.mxu1 %v15580_v27  ;;  %v1033_v26 = vld [vmem:[#allocation14 + $0x1e8] sm:$0xff]  ;;  %v1027_v27 = vld [vmem:[#allocation14 + $0x1b8] sm:$0xff]  ;;  %v15726_v31 = vpack.c.bf16 %v1018_v23, %v1010_v21  ;;  %v1082_v14 = vld [vmem:[#allocation14 + $0x370] sm:$0xff] }
 0x42b   : > { %v15600_v32 = vpack.c.bf16 %v1033_v26, %v1025_v24  ;;  %v15742_v21 = vpack.c.bf16 %v1082_v14, %v1074_v12  ;;  %v1088_v23 = vld [vmem:[#allocation14 + $0x3a0] sm:$0xff]  ;;  %v1090_v26 = vld [vmem:[#allocation14 + $0x3b0] sm:$0xff] }
 0x42c   : > { %v1096_v24 = vld [vmem:[#allocation14 + $0x3e0] sm:$0xff]  ;;  %v1146_v0 = vld [vmem:[#allocation14 + $0x570] sm:$0xff] }
 0x42d   : > { %15455 = vmatpush1.bf16.msra.mxu0 %v15454_v35  ;;  %15583 = vmatpush1.bf16.msra.mxu1 %v15582_v36  ;;  %v15728_v35 = vpack.c.bf16 %v1035_v28, %v1027_v27  ;;  %v1034_v36 = vld [vmem:[#allocation14 + $0x1f0] sm:$0xff]  ;;  %v1152_v14 = vld [vmem:[#allocation14 + $0x5a0] sm:$0xff] }
 0x42e   : > { %15457 = vmatprep.subr.bf16.mxu0 %v15456_v40  ;;  %15585 = vmatprep.subr.bf16.mxu1 %v15584_v41  ;;  %v1051_v40 = vld [vmem:[#allocation14 + $0x278] sm:$0xff]  ;;  %v15730_v42 = vpack.c.bf16 %v1034_v36, %v1026_v33  ;;  %v1098_v28 = vld [vmem:[#allocation14 + $0x3f0] sm:$0xff]  ;;  %v1104_v36 = vld [vmem:[#allocation14 + $0x420] sm:$0xff] }
 0x42f   : > { %v15732_v48 = vpack.c.bf16 %v1051_v40, %v1043_v39  ;;  %v15746_v33 = vpack.c.bf16 %v1098_v28, %v1090_v26  ;;  %v1114_v40 = vld [vmem:[#allocation14 + $0x470] sm:$0xff]  ;;  %v15622_v46 = vpack.c.bf16 %v1112_v37, %v1104_v36  ;;  %v1168_v28 = vld [vmem:[#allocation14 + $0x620] sm:$0xff]  ;;  %v1195_v36 = vld [vmem:[#allocation14 + $0x6f8] sm:$0xff] }
 0x431   : > { %15459 = vmatpush1.bf16.msra.mxu0 %v15458_v49  ;;  %15587 = vmatpush1.bf16.msra.mxu1 %v15586_v50  ;;  %v1050_v49 = vld [vmem:[#allocation14 + $0x270] sm:$0xff]  ;;  %v1057_v50 = vld [vmem:[#allocation14 + $0x2a8] sm:$0xff] }
 0x432   : > { %15589 = vmatprep.subr.bf16.mxu0 %v15588_v52  ;;  %15717 = vmatprep.subr.bf16.mxu1 %v15716_v9  ;;  %v1059_v52 = vld [vmem:[#allocation14 + $0x2b8] sm:$0xff]  ;;  %v15734_v54 = vpack.c.bf16 %v1050_v49, %v1042_v47  ;;  %v15608_v55 = vpack.c.bf16 %v1065_v51, %v1057_v50  ;;  %v15750_v47 = vpack.c.bf16 %v1114_v40, %v1106_v38  ;;  %v1120_v49 = vld [vmem:[#allocation14 + $0x4a0] sm:$0xff]  ;;  %v1122_v51 = vld [vmem:[#allocation14 + $0x4b0] sm:$0xff] }
 0x433   : > { %v1067_v9 = vld [vmem:[#allocation14 + $0x2f8] sm:$0xff]  ;;  %v1128_v50 = vld [vmem:[#allocation14 + $0x4e0] sm:$0xff] }
 0x434   : > { %1662 = vmatmul.mubr.f32.vlgmr.msra.gmra.mrb[4].mxu0 %v17095_v62  ;;  %1804 = vmatmul.mubr.f32.vlgmr.msra.gmra.mrb[4].mxu1 %v17095_v62  ;;  %v15736_v59 = vpack.c.bf16 %v1067_v9, %v1059_v52  ;;  %v1130_v9 = vld [vmem:[#allocation14 + $0x4f0] sm:$0xff]  ;;  %v15626_v57 = vpack.c.bf16 %v1128_v50, %v1120_v49  ;;  %v1184_v40 = vld [vmem:[#allocation14 + $0x6a0] sm:$0xff]  ;;  %v1211_v49 = vld [vmem:[#allocation14 + $0x778] sm:$0xff] }
 0x435   : > { %15591 = vmatpush1.bf16.msra.mxu0 %v15590_v61  ;;  %1874 = vmatprep.mubr.f32.mxu0 %v17077_v30  ;;  %v1073_v61 = vld [vmem:[#allocation14 + $0x328] sm:$0xff] }
 0x436   : > { %15719 = vmatpush1.bf16.msra.mxu1 %v15718_v16  ;;  %2016 = vmatprep.mubr.f32.mxu1 %v17077_v30  ;;  %v1024_v30 = vld [vmem:[#allocation14 + $0x1a0] sm:$0xff]  ;;  %v1081_v16 = vld [vmem:[#allocation14 + $0x368] sm:$0xff] }
 0x437   : > { %15593 = vmatprep.subr.bf16.mxu0 %v15592_v3  ;;  %15721 = vmatprep.subr.bf16.mxu1 %v15720_v4  ;;  %v15602_v41 = vpack.c.bf16 %v1032_v1, %v1024_v30  ;;  %v15738_v3 = vpack.c.bf16 %v1066_v60, %v1058_v58  ;;  %v15612_v4 = vpack.c.bf16 %v1081_v16, %v1073_v61  ;;  %v1115_v30 = vld [vmem:[#allocation14 + $0x478] sm:$0xff]  ;;  %v1136_v60 = vld [vmem:[#allocation14 + $0x520] sm:$0xff]  ;;  %v1138_v16 = vld [vmem:[#allocation14 + $0x530] sm:$0xff] }
 0x438   : > { %v15618_v1 = vpack.c.bf16 %v1096_v24, %v1088_v23  ;;  %v15754_v58 = vpack.c.bf16 %v1130_v9, %v1122_v51  ;;  %v1144_v61 = vld [vmem:[#allocation14 + $0x560] sm:$0xff]  ;;  %v15758_v12 = vpack.c.bf16 %v1146_v0, %v1138_v16  ;;  %v1179_v23 = vld [vmem:[#allocation14 + $0x678] sm:$0xff] }
 0x439   : > { %15595 = vmatpush1.bf16.msra.mxu0 %v15594_v15  ;;  %v1089_v15 = vld [vmem:[#allocation14 + $0x3a8] sm:$0xff]  ;;  %v15630_v6 = vpack.c.bf16 %v1144_v61, %v1136_v60  ;;  %v1200_v9 = vld [vmem:[#allocation14 + $0x720] sm:$0xff]  ;;  %v1227_v60 = vld [vmem:[#allocation14 + $0x7f8] sm:$0xff] }
 0x43a   : > { %15723 = vmatpush1.bf16.msra.mxu1 %v15722_v17  ;;  %15597 = vmatprep.subr.bf16.mxu0 %v15596_v18  ;;  %v1097_v17 = vld [vmem:[#allocation14 + $0x3e8] sm:$0xff]  ;;  %v1091_v18 = vld [vmem:[#allocation14 + $0x3b8] sm:$0xff]  ;;  %v1216_v0 = vld [vmem:[#allocation14 + $0x7a0] sm:$0xff] }
 0x43b   : > { %15725 = vmatprep.subr.bf16.mxu1 %v15724_v22  ;;  %v15616_v22 = vpack.c.bf16 %v1097_v17, %v1089_v15  ;;  %v15744_v27 = vpack.c.bf16 %v1099_v19, %v1091_v18  ;;  %v1160_v15 = vld [vmem:[#allocation14 + $0x5e0] sm:$0xff]  ;;  %v1154_v17 = vld [vmem:[#allocation14 + $0x5b0] sm:$0xff] }
 0x43c   : > { %v1162_v19 = vld [vmem:[#allocation14 + $0x5f0] sm:$0xff]  ;;  %v15634_v24 = vpack.c.bf16 %v1160_v15, %v1152_v14  ;;  %v1243_v14 = vld [vmem:[#allocation14 + $0x878] sm:$0xff] }
 0x43d   : > { %15599 = vmatpush1.bf16.msra.mxu0 %v15598_v29  ;;  %v1105_v29 = vld [vmem:[#allocation14 + $0x428] sm:$0xff]  ;;  %v15762_v26 = vpack.c.bf16 %v1162_v19, %v1154_v17  ;;  %v1232_v19 = vld [vmem:[#allocation14 + $0x820] sm:$0xff] }
 0x43e   : > { %15727 = vmatpush1.bf16.msra.mxu1 %v15726_v31  ;;  %15601 = vmatprep.subr.bf16.mxu0 %v15600_v32  ;;  %v1113_v31 = vld [vmem:[#allocation14 + $0x468] sm:$0xff]  ;;  %v1107_v32 = vld [vmem:[#allocation14 + $0x438] sm:$0xff] }
 0x43f   : > { %15729 = vmatprep.subr.bf16.mxu1 %v15728_v35  ;;  %v15620_v35 = vpack.c.bf16 %v1113_v31, %v1105_v29  ;;  %v15748_v39 = vpack.c.bf16 %v1115_v30, %v1107_v32  ;;  %v1176_v29 = vld [vmem:[#allocation14 + $0x660] sm:$0xff]  ;;  %v1170_v31 = vld [vmem:[#allocation14 + $0x630] sm:$0xff] }
 0x440   : > { %v1178_v30 = vld [vmem:[#allocation14 + $0x670] sm:$0xff]  ;;  %v15638_v37 = vpack.c.bf16 %v1176_v29, %v1168_v28  ;;  %v1251_v28 = vld [vmem:[#allocation14 + $0x8b8] sm:$0xff] }
 0x441   : > { %15603 = vmatpush1.bf16.msra.mxu0 %v15602_v41  ;;  %v1121_v41 = vld [vmem:[#allocation14 + $0x4a8] sm:$0xff]  ;;  %v15766_v38 = vpack.c.bf16 %v1178_v30, %v1170_v31  ;;  %v1259_v29 = vld [vmem:[#allocation14 + $0x8f8] sm:$0xff]  ;;  %v1256_v30 = vld [vmem:[#allocation14 + $0x8e0] sm:$0xff] }
 0x442   : > { %15731 = vmatpush1.bf16.msra.mxu1 %v15730_v42  ;;  %15605 = vmatprep.subr.bf16.mxu0 %v15604_v44  ;;  %v1129_v42 = vld [vmem:[#allocation14 + $0x4e8] sm:$0xff]  ;;  %v1123_v44 = vld [vmem:[#allocation14 + $0x4b8] sm:$0xff] }
 0x443   : > { %15733 = vmatprep.subr.bf16.mxu1 %v15732_v48  ;;  %v15624_v48 = vpack.c.bf16 %v1129_v42, %v1121_v41  ;;  %v15752_v52 = vpack.c.bf16 %v1131_v45, %v1123_v44  ;;  %v1192_v41 = vld [vmem:[#allocation14 + $0x6e0] sm:$0xff]  ;;  %v1186_v42 = vld [vmem:[#allocation14 + $0x6b0] sm:$0xff] }
 0x444   : > { %v1194_v45 = vld [vmem:[#allocation14 + $0x6f0] sm:$0xff]  ;;  %v15642_v50 = vpack.c.bf16 %v1192_v41, %v1184_v40  ;;  %v1275_v40 = vld [vmem:[#allocation14 + $0x978] sm:$0xff] }
 0x445   : > { %15607 = vmatpush1.bf16.msra.mxu0 %v15606_v53  ;;  %v1137_v53 = vld [vmem:[#allocation14 + $0x528] sm:$0xff]  ;;  %v15770_v51 = vpack.c.bf16 %v1194_v45, %v1186_v42  ;;  %v1264_v45 = vld [vmem:[#allocation14 + $0x920] sm:$0xff] }
 0x446   : > { %15735 = vmatpush1.bf16.msra.mxu1 %v15734_v54  ;;  %15609 = vmatprep.subr.bf16.mxu0 %v15608_v55  ;;  %v1145_v54 = vld [vmem:[#allocation14 + $0x568] sm:$0xff]  ;;  %v1139_v55 = vld [vmem:[#allocation14 + $0x538] sm:$0xff] }
 0x447   : > { %15737 = vmatprep.subr.bf16.mxu1 %v15736_v59  ;;  %v15628_v59 = vpack.c.bf16 %v1145_v54, %v1137_v53  ;;  %v15756_v63 = vpack.c.bf16 %v1147_v56, %v1139_v55  ;;  %v1208_v53 = vld [vmem:[#allocation14 + $0x760] sm:$0xff]  ;;  %v1202_v54 = vld [vmem:[#allocation14 + $0x730] sm:$0xff] }
 0x448   : > { %v1210_v56 = vld [vmem:[#allocation14 + $0x770] sm:$0xff]  ;;  %v15646_v61 = vpack.c.bf16 %v1208_v53, %v1200_v9 }
 0x449   : > { %15611 = vmatpush1.bf16.msra.mxu0 %v15610_v2  ;;  %v1153_v2 = vld [vmem:[#allocation14 + $0x5a8] sm:$0xff]  ;;  %v15774_v16 = vpack.c.bf16 %v1210_v56, %v1202_v54  ;;  %v1288_v56 = vld [vmem:[#allocation14 + $0x9e0] sm:$0xff] }
 0x44a   : > { %15739 = vmatpush1.bf16.msra.mxu1 %v15738_v3  ;;  %15613 = vmatprep.subr.bf16.mxu0 %v15612_v4  ;;  %v1161_v3 = vld [vmem:[#allocation14 + $0x5e8] sm:$0xff]  ;;  %v1155_v4 = vld [vmem:[#allocation14 + $0x5b8] sm:$0xff] }
 0x44b   : > { %15741 = vmatprep.subr.bf16.mxu1 %v15740_v13  ;;  %v15632_v13 = vpack.c.bf16 %v1161_v3, %v1153_v2  ;;  %v15760_v18 = vpack.c.bf16 %v1163_v5, %v1155_v4  ;;  %v1224_v2 = vld [vmem:[#allocation14 + $0x7e0] sm:$0xff]  ;;  %v1218_v3 = vld [vmem:[#allocation14 + $0x7b0] sm:$0xff] }
 0x44c   : > { %v1226_v5 = vld [vmem:[#allocation14 + $0x7f0] sm:$0xff]  ;;  %v15650_v15 = vpack.c.bf16 %v1224_v2, %v1216_v0 }
 0x44d   : > { %15615 = vmatpush1.bf16.msra.mxu0 %v15614_v20  ;;  %v1169_v20 = vld [vmem:[#allocation14 + $0x628] sm:$0xff]  ;;  %v15778_v17 = vpack.c.bf16 %v1226_v5, %v1218_v3  ;;  %v1296_v3 = vld [vmem:[#allocation14 + $0xa20] sm:$0xff]  ;;  %v1298_v5 = vld [vmem:[#allocation14 + $0xa30] sm:$0xff] }
 0x44e   : > { %15743 = vmatpush1.bf16.msra.mxu1 %v15742_v21  ;;  %15617 = vmatprep.subr.bf16.mxu0 %v15616_v22  ;;  %v1177_v21 = vld [vmem:[#allocation14 + $0x668] sm:$0xff]  ;;  %v1171_v22 = vld [vmem:[#allocation14 + $0x638] sm:$0xff] }
 0x44f   : > { %15745 = vmatprep.subr.bf16.mxu1 %v15744_v27  ;;  %v15636_v27 = vpack.c.bf16 %v1177_v21, %v1169_v20  ;;  %v15764_v32 = vpack.c.bf16 %v1179_v23, %v1171_v22  ;;  %v1240_v20 = vld [vmem:[#allocation14 + $0x860] sm:$0xff]  ;;  %v1234_v22 = vld [vmem:[#allocation14 + $0x830] sm:$0xff] }
 0x450   : > { %v1242_v23 = vld [vmem:[#allocation14 + $0x870] sm:$0xff] }
 0x451   : > { %15619 = vmatpush1.bf16.msra.mxu0 %v15618_v1  ;;  %v1185_v1 = vld [vmem:[#allocation14 + $0x6a8] sm:$0xff]  ;;  %v15782_v31 = vpack.c.bf16 %v1242_v23, %v1234_v22  ;;  %v1320_v22 = vld [vmem:[#allocation14 + $0xae0] sm:$0xff]  ;;  %v1314_v23 = vld [vmem:[#allocation14 + $0xab0] sm:$0xff] }
 0x452   : > { %15747 = vmatpush1.bf16.msra.mxu1 %v15746_v33  ;;  %15621 = vmatprep.subr.bf16.mxu0 %v15620_v35  ;;  %v1193_v33 = vld [vmem:[#allocation14 + $0x6e8] sm:$0xff]  ;;  %v1187_v35 = vld [vmem:[#allocation14 + $0x6b8] sm:$0xff] }
 0x453   : > { %15749 = vmatprep.subr.bf16.mxu1 %v15748_v39  ;;  %v15640_v39 = vpack.c.bf16 %v1193_v33, %v1185_v1  ;;  %v15768_v44 = vpack.c.bf16 %v1195_v36, %v1187_v35  ;;  %v1250_v1 = vld [vmem:[#allocation14 + $0x8b0] sm:$0xff]  ;;  %v1265_v36 = vld [vmem:[#allocation14 + $0x928] sm:$0xff] }
 0x454   : > { %v1258_v35 = vld [vmem:[#allocation14 + $0x8f0] sm:$0xff] }
 0x455   : > { %15623 = vmatpush1.bf16.msra.mxu0 %v15622_v46  ;;  %v1201_v46 = vld [vmem:[#allocation14 + $0x728] sm:$0xff]  ;;  %v15786_v42 = vpack.c.bf16 %v1258_v35, %v1250_v1  ;;  %v1336_v35 = vld [vmem:[#allocation14 + $0xb60] sm:$0xff] }
 0x456   : > { %15751 = vmatpush1.bf16.msra.mxu1 %v15750_v47  ;;  %15625 = vmatprep.subr.bf16.mxu0 %v15624_v48  ;;  %v1209_v47 = vld [vmem:[#allocation14 + $0x768] sm:$0xff]  ;;  %v1203_v48 = vld [vmem:[#allocation14 + $0x738] sm:$0xff] }
 0x457   : > { %15753 = vmatprep.subr.bf16.mxu1 %v15752_v52  ;;  %v15644_v52 = vpack.c.bf16 %v1209_v47, %v1201_v46  ;;  %v15772_v55 = vpack.c.bf16 %v1211_v49, %v1203_v48  ;;  %v1272_v46 = vld [vmem:[#allocation14 + $0x960] sm:$0xff]  ;;  %v1266_v47 = vld [vmem:[#allocation14 + $0x930] sm:$0xff] }
 0x458   : > { %v1274_v49 = vld [vmem:[#allocation14 + $0x970] sm:$0xff]  ;;  %v15662_v9 = vpack.c.bf16 %v1272_v46, %v1264_v45 }
 0x459   : > { %15627 = vmatpush1.bf16.msra.mxu0 %v15626_v57  ;;  %v1217_v57 = vld [vmem:[#allocation14 + $0x7a8] sm:$0xff]  ;;  %v15790_v53 = vpack.c.bf16 %v1274_v49, %v1266_v47  ;;  %v1344_v47 = vld [vmem:[#allocation14 + $0xba0] sm:$0xff]  ;;  %v1346_v49 = vld [vmem:[#allocation14 + $0xbb0] sm:$0xff] }
 0x45a   : > { %15755 = vmatpush1.bf16.msra.mxu1 %v15754_v58  ;;  %15629 = vmatprep.subr.bf16.mxu0 %v15628_v59  ;;  %v1225_v58 = vld [vmem:[#allocation14 + $0x7e8] sm:$0xff]  ;;  %v1219_v59 = vld [vmem:[#allocation14 + $0x7b8] sm:$0xff] }
 0x45b   : > { %15757 = vmatprep.subr.bf16.mxu1 %v15756_v63  ;;  %v15648_v63 = vpack.c.bf16 %v1225_v58, %v1217_v57  ;;  %v15776_v4 = vpack.c.bf16 %v1227_v60, %v1219_v59  ;;  %v1282_v57 = vld [vmem:[#allocation14 + $0x9b0] sm:$0xff]  ;;  %v1297_v59 = vld [vmem:[#allocation14 + $0xa28] sm:$0xff] }
 0x45c   : > { %v1305_v60 = vld [vmem:[#allocation14 + $0xa68] sm:$0xff] }
 0x45d   : > { %15631 = vmatpush1.bf16.msra.mxu0 %v15630_v6  ;;  %v1233_v6 = vld [vmem:[#allocation14 + $0x828] sm:$0xff]  ;;  %v15668_v2 = vpack.c.bf16 %v1305_v60, %v1297_v59  ;;  %v1370_v60 = vld [vmem:[#allocation14 + $0xc70] sm:$0xff] }
 0x45e   : > { %15759 = vmatpush1.bf16.msra.mxu1 %v15758_v12  ;;  %15633 = vmatprep.subr.bf16.mxu0 %v15632_v13  ;;  %v1241_v12 = vld [vmem:[#allocation14 + $0x868] sm:$0xff]  ;;  %v1235_v13 = vld [vmem:[#allocation14 + $0x838] sm:$0xff] }
 0x45f   : > { %15761 = vmatprep.subr.bf16.mxu1 %v15760_v18  ;;  %v15652_v18 = vpack.c.bf16 %v1241_v12, %v1233_v6  ;;  %v15780_v21 = vpack.c.bf16 %v1243_v14, %v1235_v13  ;;  %v1306_v12 = vld [vmem:[#allocation14 + $0xa70] sm:$0xff]  ;;  %v1313_v13 = vld [vmem:[#allocation14 + $0xaa8] sm:$0xff] }
 0x460   : > { %v1321_v14 = vld [vmem:[#allocation14 + $0xae8] sm:$0xff] }
 0x461   : > { %15635 = vmatpush1.bf16.msra.mxu0 %v15634_v24  ;;  %v1249_v24 = vld [vmem:[#allocation14 + $0x8a8] sm:$0xff] }
 0x462   : > { %15763 = vmatpush1.bf16.msra.mxu1 %v15762_v26  ;;  %15637 = vmatprep.subr.bf16.mxu0 %v15636_v27  ;;  %v1257_v26 = vld [vmem:[#allocation14 + $0x8e8] sm:$0xff]  ;;  %v15654_v27 = vpack.c.bf16 %v1240_v20, %v1232_v19  ;;  %v15798_v19 = vpack.c.bf16 %v1306_v12, %v1298_v5  ;;  %v15672_v20 = vpack.c.bf16 %v1321_v14, %v1313_v13  ;;  %v1376_v5 = vld [vmem:[#allocation14 + $0xca0] sm:$0xff]  ;;  %v1378_v12 = vld [vmem:[#allocation14 + $0xcb0] sm:$0xff] }
 0x463   : > { %15765 = vmatprep.subr.bf16.mxu1 %v15764_v32  ;;  %v1248_v32 = vld [vmem:[#allocation14 + $0x8a0] sm:$0xff]  ;;  %v15656_v33 = vpack.c.bf16 %v1257_v26, %v1249_v24  ;;  %v1322_v26 = vld [vmem:[#allocation14 + $0xaf0] sm:$0xff] }
 0x464   : > { %v15658_v41 = vpack.c.bf16 %v1256_v30, %v1248_v32  ;;  %v15802_v30 = vpack.c.bf16 %v1322_v26, %v1314_v23  ;;  %v1386_v14 = vld [vmem:[#allocation14 + $0xcf0] sm:$0xff]  ;;  %v1392_v23 = vld [vmem:[#allocation14 + $0xd20] sm:$0xff] }
 0x465   : > { %15639 = vmatpush1.bf16.msra.mxu0 %v15638_v37  ;;  %v1273_v37 = vld [vmem:[#allocation14 + $0x968] sm:$0xff]  ;;  %v1394_v26 = vld [vmem:[#allocation14 + $0xd30] sm:$0xff] }
 0x466   : > { %15767 = vmatpush1.bf16.msra.mxu1 %v15766_v38  ;;  %15641 = vmatprep.subr.bf16.mxu0 %v15640_v39  ;;  %v15784_v38 = vpack.c.bf16 %v1259_v29, %v1251_v28  ;;  %v1267_v39 = vld [vmem:[#allocation14 + $0x938] sm:$0xff]  ;;  %v1337_v28 = vld [vmem:[#allocation14 + $0xb68] sm:$0xff] }
 0x467   : > { %15769 = vmatprep.subr.bf16.mxu1 %v15768_v44  ;;  %v15660_v44 = vpack.c.bf16 %v1273_v37, %v1265_v36  ;;  %v15788_v48 = vpack.c.bf16 %v1275_v40, %v1267_v39  ;;  %v1331_v29 = vld [vmem:[#allocation14 + $0xb38] sm:$0xff]  ;;  %v1330_v36 = vld [vmem:[#allocation14 + $0xb30] sm:$0xff]  ;;  %v1345_v39 = vld [vmem:[#allocation14 + $0xba8] sm:$0xff] }
 0x468   : > { %v1353_v40 = vld [vmem:[#allocation14 + $0xbe8] sm:$0xff] }
 0x469   : > { %15643 = vmatpush1.bf16.msra.mxu0 %v15642_v50  ;;  %v1281_v50 = vld [vmem:[#allocation14 + $0x9a8] sm:$0xff]  ;;  %v15680_v46 = vpack.c.bf16 %v1353_v40, %v1345_v39  ;;  %v1418_v40 = vld [vmem:[#allocation14 + $0xdf0] sm:$0xff] }
 0x46a   : > { %15771 = vmatpush1.bf16.msra.mxu1 %v15770_v51  ;;  %15645 = vmatprep.subr.bf16.mxu0 %v15644_v52  ;;  %v1289_v51 = vld [vmem:[#allocation14 + $0x9e8] sm:$0xff]  ;;  %v1283_v52 = vld [vmem:[#allocation14 + $0x9b8] sm:$0xff] }
 0x46b   : > { %15773 = vmatprep.subr.bf16.mxu1 %v15772_v55  ;;  %v15664_v54 = vpack.c.bf16 %v1289_v51, %v1281_v50  ;;  %v1280_v55 = vld [vmem:[#allocation14 + $0x9a0] sm:$0xff]  ;;  %v1354_v51 = vld [vmem:[#allocation14 + $0xbf0] sm:$0xff] }
 0x46d   : > { %15647 = vmatpush1.bf16.msra.mxu0 %v15646_v61  ;;  %v1299_v61 = vld [vmem:[#allocation14 + $0xa38] sm:$0xff] }
 0x46e   : > { %15775 = vmatpush1.bf16.msra.mxu1 %v15774_v16  ;;  %15649 = vmatprep.subr.bf16.mxu0 %v15648_v63  ;;  %v1307_v16 = vld [vmem:[#allocation14 + $0xa78] sm:$0xff]  ;;  %v15666_v63 = vpack.c.bf16 %v1288_v56, %v1280_v55  ;;  %v15810_v55 = vpack.c.bf16 %v1354_v51, %v1346_v49  ;;  %v1424_v49 = vld [vmem:[#allocation14 + $0xe20] sm:$0xff]  ;;  %v1426_v51 = vld [vmem:[#allocation14 + $0xe30] sm:$0xff] }
 0x46f   : > { %15777 = vmatprep.subr.bf16.mxu1 %v15776_v4  ;;  %v1304_v4 = vld [vmem:[#allocation14 + $0xa60] sm:$0xff]  ;;  %v15796_v6 = vpack.c.bf16 %v1307_v16, %v1299_v61  ;;  %v1377_v61 = vld [vmem:[#allocation14 + $0xca8] sm:$0xff] }
 0x470   : > { %v1385_v16 = vld [vmem:[#allocation14 + $0xce8] sm:$0xff] }
 0x471   : > { %15651 = vmatpush1.bf16.msra.mxu0 %v15650_v15  ;;  %v1315_v15 = vld [vmem:[#allocation14 + $0xab8] sm:$0xff] }
 0x472   : > { %15779 = vmatpush1.bf16.msra.mxu1 %v15778_v17  ;;  %15653 = vmatprep.subr.bf16.mxu0 %v15652_v18  ;;  %v1323_v17 = vld [vmem:[#allocation14 + $0xaf8] sm:$0xff]  ;;  %v15670_v18 = vpack.c.bf16 %v1304_v4, %v1296_v3  ;;  %v15688_v4 = vpack.c.bf16 %v1385_v16, %v1377_v61  ;;  %v1450_v16 = vld [vmem:[#allocation14 + $0xef0] sm:$0xff] }
 0x473   : > { %15781 = vmatprep.subr.bf16.mxu1 %v15780_v21  ;;  %v1312_v21 = vld [vmem:[#allocation14 + $0xaa0] sm:$0xff]  ;;  %v15800_v24 = vpack.c.bf16 %v1323_v17, %v1315_v15  ;;  %v1393_v15 = vld [vmem:[#allocation14 + $0xd28] sm:$0xff] }
 0x474   : > { %1875 = vmatmul.mubr.f32.vlgmr.msra.gmra.mrb[6].mxu0 %v17079_v34  ;;  %v15674_v32 = vpack.c.bf16 %v1320_v22, %v1312_v21  ;;  %v1401_v17 = vld [vmem:[#allocation14 + $0xd68] sm:$0xff]  ;;  %v15818_v21 = vpack.c.bf16 %v1386_v14, %v1378_v12  ;;  %v1456_v12 = vld [vmem:[#allocation14 + $0xf20] sm:$0xff]  ;;  %v1458_v14 = vld [vmem:[#allocation14 + $0xf30] sm:$0xff] }
 0x475   : > { %2017 = vmatmul.mubr.f32.vlgmr.msra.gmra.mrb[6].mxu1 %v17079_v34  ;;  %15655 = vmatpush1.bf16.msra.mxu0 %v15654_v27  ;;  %v1291_v34 = vld [vmem:[#allocation14 + $0x9f8] sm:$0xff]  ;;  %v1329_v27 = vld [vmem:[#allocation14 + $0xb28] sm:$0xff]  ;;  %v15692_v22 = vpack.c.bf16 %v1401_v17, %v1393_v15  ;;  %v1466_v17 = vld [vmem:[#allocation14 + $0xf70] sm:$0xff] }
 0x476   : > { %1945 = vmatprep.mubr.f32.mxu0 %v17083_v43  ;;  %15783 = vmatpush1.bf16.msra.mxu1 %v15782_v31  ;;  %v15792_v58 = vpack.c.bf16 %v1291_v34, %v1283_v52  ;;  %v1339_v31 = vld [vmem:[#allocation14 + $0xb78] sm:$0xff]  ;;  %v15676_v1 = vpack.c.bf16 %v1337_v28, %v1329_v27  ;;  %v1361_v52 = vld [vmem:[#allocation14 + $0xc28] sm:$0xff]  ;;  %v1402_v28 = vld [vmem:[#allocation14 + $0xd70] sm:$0xff] }
 0x477   : > { %2087 = vmatprep.mubr.f32.mxu1 %v17083_v43  ;;  %15657 = vmatprep.subr.bf16.mxu0 %v15656_v33  ;;  %v1290_v43 = vld [vmem:[#allocation14 + $0x9f0] sm:$0xff]  ;;  %v1328_v33 = vld [vmem:[#allocation14 + $0xb20] sm:$0xff]  ;;  %v15804_v37 = vpack.c.bf16 %v1339_v31, %v1331_v29  ;;  %v1369_v34 = vld [vmem:[#allocation14 + $0xc68] sm:$0xff] }
 0x478   : > { %15785 = vmatprep.subr.bf16.mxu1 %v15784_v38  ;;  %v15794_v0 = vpack.c.bf16 %v1290_v43, %v1282_v57  ;;  %v1338_v38 = vld [vmem:[#allocation14 + $0xb70] sm:$0xff]  ;;  %v15684_v56 = vpack.c.bf16 %v1369_v34, %v1361_v52  ;;  %v1360_v57 = vld [vmem:[#allocation14 + $0xc20] sm:$0xff]  ;;  %v1409_v29 = vld [vmem:[#allocation14 + $0xda8] sm:$0xff] }
 0x479   : > { %15659 = vmatpush1.bf16.msra.mxu0 %v15658_v41  ;;  %v1347_v41 = vld [vmem:[#allocation14 + $0xbb8] sm:$0xff]  ;;  %v15806_v45 = vpack.c.bf16 %v1338_v38, %v1330_v36  ;;  %v1362_v43 = vld [vmem:[#allocation14 + $0xc30] sm:$0xff]  ;;  %v1417_v31 = vld [vmem:[#allocation14 + $0xde8] sm:$0xff] }
 0x47a   : > { %15787 = vmatpush1.bf16.msra.mxu1 %v15786_v42  ;;  %15661 = vmatprep.subr.bf16.mxu0 %v15660_v44  ;;  %v1355_v42 = vld [vmem:[#allocation14 + $0xbf8] sm:$0xff]  ;;  %v15678_v44 = vpack.c.bf16 %v1336_v35, %v1328_v33  ;;  %v15814_v3 = vpack.c.bf16 %v1370_v60, %v1362_v43  ;;  %v15822_v33 = vpack.c.bf16 %v1402_v28, %v1394_v26  ;;  %v1408_v36 = vld [vmem:[#allocation14 + $0xda0] sm:$0xff]  ;;  %v1410_v38 = vld [vmem:[#allocation14 + $0xdb0] sm:$0xff] }
 0x47b   : > { %15789 = vmatprep.subr.bf16.mxu1 %v15788_v48  ;;  %v1352_v48 = vld [vmem:[#allocation14 + $0xbe0] sm:$0xff]  ;;  %v15808_v50 = vpack.c.bf16 %v1355_v42, %v1347_v41  ;;  %v15696_v35 = vpack.c.bf16 %v1417_v31, %v1409_v29  ;;  %v1425_v41 = vld [vmem:[#allocation14 + $0xe28] sm:$0xff]  ;;  %v1434_v34 = vld [vmem:[#allocation14 + $0xe70] sm:$0xff] }
 0x47c   : > { %v1433_v42 = vld [vmem:[#allocation14 + $0xe68] sm:$0xff]  ;;  %v1440_v43 = vld [vmem:[#allocation14 + $0xea0] sm:$0xff]  ;;  %v1442_v60 = vld [vmem:[#allocation14 + $0xeb0] sm:$0xff] }
 0x47d   : > { %15663 = vmatpush1.bf16.msra.mxu0 %v15662_v9  ;;  %v1363_v9 = vld [vmem:[#allocation14 + $0xc38] sm:$0xff]  ;;  %v1472_v26 = vld [vmem:[#allocation14 + $0xfa0] sm:$0xff]  ;;  %v1474_v28 = vld [vmem:[#allocation14 + $0xfb0] sm:$0xff] }
 0x47e   : > { %15791 = vmatpush1.bf16.msra.mxu1 %v15790_v53  ;;  %15665 = vmatprep.subr.bf16.mxu0 %v15664_v54  ;;  %v1371_v53 = vld [vmem:[#allocation14 + $0xc78] sm:$0xff]  ;;  %v15682_v54 = vpack.c.bf16 %v1352_v48, %v1344_v47  ;;  %v15826_v47 = vpack.c.bf16 %v1418_v40, %v1410_v38  ;;  %v15700_v48 = vpack.c.bf16 %v1433_v42, %v1425_v41  ;;  %v1482_v31 = vld [vmem:[#allocation14 + $0xff0] sm:$0xff]  ;;  %v2146_v40 = vld [vmem:[%s17046_s16 + $0x120] sm:$0xff] }
 0x47f   : > { %15793 = vmatprep.subr.bf16.mxu1 %v15792_v58  ;;  %v1368_v58 = vld [vmem:[#allocation14 + $0xc60] sm:$0xff]  ;;  %v15812_v59 = vpack.c.bf16 %v1371_v53, %v1363_v9  ;;  %v1441_v9 = vld [vmem:[#allocation14 + $0xea8] sm:$0xff]  ;;  %v2135_v41 = vld [vmem:[%s17046_s16 + $0xc8] sm:$0xff] }
 0x480   : > { %v1449_v53 = vld [vmem:[#allocation14 + $0xee8] sm:$0xff]  ;;  %v2147_v42 = vld [vmem:[%s17046_s16 + $0x128] sm:$0xff] }
 0x481   : > { %15667 = vmatpush1.bf16.msra.mxu0 %v15666_v63  ;;  %v1379_v63 = vld [vmem:[#allocation14 + $0xcb8] sm:$0xff] }
 0x482   : > { %15795 = vmatpush1.bf16.msra.mxu1 %v15794_v0  ;;  %15669 = vmatprep.subr.bf16.mxu0 %v15668_v2  ;;  %v1387_v0 = vld [vmem:[#allocation14 + $0xcf8] sm:$0xff]  ;;  %v15686_v2 = vpack.c.bf16 %v1368_v58, %v1360_v57  ;;  %v15830_v57 = vpack.c.bf16 %v1434_v34, %v1426_v51  ;;  %v15704_v58 = vpack.c.bf16 %v1449_v53, %v1441_v9  ;;  %v2171_v51 = vld [vmem:[%s17046_s16 + $0x1e8] sm:$0xff] }
 0x483   : > { %15797 = vmatprep.subr.bf16.mxu1 %v15796_v6  ;;  %v1384_v6 = vld [vmem:[#allocation14 + $0xce0] sm:$0xff]  ;;  %v15816_v13 = vpack.c.bf16 %v1387_v0, %v1379_v63  ;;  %v1457_v63 = vld [vmem:[#allocation14 + $0xf28] sm:$0xff]  ;;  %v13691_v34 = vcombine.low %v2135_v41, %v2147_v42 }
 0x484   : > { %v1465_v0 = vld [vmem:[#allocation14 + $0xf68] sm:$0xff] }
 0x485   : > { %15671 = vmatpush1.bf16.msra.mxu0 %v15670_v18  ;;  %v1395_v18 = vld [vmem:[#allocation14 + $0xd38] sm:$0xff] }
 0x486   : > { %15799 = vmatpush1.bf16.msra.mxu1 %v15798_v19  ;;  %15673 = vmatprep.subr.bf16.mxu0 %v15672_v20  ;;  %v1403_v19 = vld [vmem:[#allocation14 + $0xd78] sm:$0xff]  ;;  %v15690_v20 = vpack.c.bf16 %v1384_v6, %v1376_v5  ;;  %v15834_v5 = vpack.c.bf16 %v1450_v16, %v1442_v60  ;;  %v15708_v6 = vpack.c.bf16 %v1465_v0, %v1457_v63  ;;  %v2206_v60 = vld [vmem:[%s17046_s16 + $0x300] sm:$0xff]  ;;  %v2207_v16 = vld [vmem:[%s17046_s16 + $0x308] sm:$0xff] }
 0x487   : > { %15801 = vmatprep.subr.bf16.mxu1 %v15800_v24  ;;  %v1400_v24 = vld [vmem:[#allocation14 + $0xd60] sm:$0xff]  ;;  %v15820_v27 = vpack.c.bf16 %v1403_v19, %v1395_v18  ;;  %v1473_v18 = vld [vmem:[#allocation14 + $0xfa8] sm:$0xff]  ;;  %v2219_v63 = vld [vmem:[%s17046_s16 + $0x368] sm:$0xff] }
 0x488   : > { %v1481_v19 = vld [vmem:[#allocation14 + $0xfe8] sm:$0xff] }
 0x489   : > { %15675 = vmatpush1.bf16.msra.mxu0 %v15674_v32  ;;  %v1411_v32 = vld [vmem:[#allocation14 + $0xdb8] sm:$0xff] }
 0x48a   : > { %15803 = vmatpush1.bf16.msra.mxu1 %v15802_v30  ;;  %15677 = vmatprep.subr.bf16.mxu0 %v15676_v1  ;;  %v1419_v30 = vld [vmem:[#allocation14 + $0xdf8] sm:$0xff]  ;;  %v15694_v1 = vpack.c.bf16 %v1400_v24, %v1392_v23  ;;  %v15838_v23 = vpack.c.bf16 %v1466_v17, %v1458_v14  ;;  %v15712_v24 = vpack.c.bf16 %v1481_v19, %v1473_v18  ;;  %v2254_v19 = vld [vmem:[%s17046_s16 + $0x480] sm:$0xff] }
 0x48b   : > { %15805 = vmatprep.subr.bf16.mxu1 %v15804_v37  ;;  %v1416_v37 = vld [vmem:[#allocation14 + $0xde0] sm:$0xff]  ;;  %v15824_v39 = vpack.c.bf16 %v1419_v30, %v1411_v32  ;;  %v2110_v32 = vld [vmem:[%s17046_s16] sm:$0xff] }
 0x48c   : > { %v2122_v30 = vld [vmem:[%s17046_s16 + $0x60] sm:$0xff] }
 0x48d   : > { %15679 = vmatpush1.bf16.msra.mxu0 %v15678_v44  ;;  %v1427_v44 = vld [vmem:[#allocation14 + $0xe38] sm:$0xff] }
 0x48e   : > { %15807 = vmatpush1.bf16.msra.mxu1 %v15806_v45  ;;  %15681 = vmatprep.subr.bf16.mxu0 %v15680_v46  ;;  %v1435_v45 = vld [vmem:[#allocation14 + $0xe78] sm:$0xff]  ;;  %v15698_v46 = vpack.c.bf16 %v1416_v37, %v1408_v36  ;;  %v15842_v36 = vpack.c.bf16 %v1482_v31, %v1474_v28  ;;  %v13666_v37 = vcombine.high %v2110_v32, %v2122_v30  ;;  %v2278_v28 = vld [vmem:[%s17046_s16 + $0x540] sm:$0xff]  ;;  %v2279_v31 = vld [vmem:[%s17046_s16 + $0x548] sm:$0xff] }
 0x48f   : > { %15809 = vmatprep.subr.bf16.mxu1 %v15808_v50  ;;  %v1432_v50 = vld [vmem:[#allocation14 + $0xe60] sm:$0xff]  ;;  %v15828_v52 = vpack.c.bf16 %v1435_v45, %v1427_v44  ;;  %v13665_v44 = vcombine.low %v2110_v32, %v2122_v30  ;;  %v2291_v32 = vld [vmem:[%s17046_s16 + $0x5a8] sm:$0xff] }
 0x491   : > { %15683 = vmatpush1.bf16.msra.mxu0 %v15682_v54  ;;  %v1443_v54 = vld [vmem:[#allocation14 + $0xeb8] sm:$0xff] }
 0x492   : > { %15811 = vmatpush1.bf16.msra.mxu1 %v15810_v55  ;;  %15685 = vmatprep.subr.bf16.mxu0 %v15684_v56  ;;  %v1451_v55 = vld [vmem:[#allocation14 + $0xef8] sm:$0xff]  ;;  %v15702_v56 = vpack.c.bf16 %v1432_v50, %v1424_v49  ;;  %v2170_v49 = vld [vmem:[%s17046_s16 + $0x1e0] sm:$0xff]  ;;  %v2159_v50 = vld [vmem:[%s17046_s16 + $0x188] sm:$0xff] }
 0x493   : > { %15813 = vmatprep.subr.bf16.mxu1 %v15812_v59  ;;  %v1448_v59 = vld [vmem:[#allocation14 + $0xee0] sm:$0xff]  ;;  %v15832_v61 = vpack.c.bf16 %v1451_v55, %v1443_v54  ;;  %v13716_v53 = vcombine.high %v2159_v50, %v2171_v51  ;;  %v2182_v54 = vld [vmem:[%s17046_s16 + $0x240] sm:$0xff] }
 0x494   : > { %v2194_v55 = vld [vmem:[%s17046_s16 + $0x2a0] sm:$0xff] }
 0x495   : > { %15687 = vmatpush1.bf16.msra.mxu0 %v15686_v2  ;;  %v1459_v2 = vld [vmem:[#allocation14 + $0xf38] sm:$0xff]  ;;  %v13737_v0 = vcombine.low %v2182_v54, %v2194_v55 }
 0x496   : > { %15815 = vmatpush1.bf16.msra.mxu1 %v15814_v3  ;;  %15689 = vmatprep.subr.bf16.mxu0 %v15688_v4  ;;  %v1467_v3 = vld [vmem:[#allocation14 + $0xf78] sm:$0xff]  ;;  %v15706_v4 = vpack.c.bf16 %v1448_v59, %v1440_v43  ;;  %v13738_v43 = vcombine.high %v2182_v54, %v2194_v55  ;;  %v2363_v54 = vld [vmem:[%s17046_s16 + $0x7e8] sm:$0xff] }
 0x497   : > { %15817 = vmatprep.subr.bf16.mxu1 %v15816_v13  ;;  %v1464_v13 = vld [vmem:[#allocation14 + $0xf60] sm:$0xff]  ;;  %v15836_v15 = vpack.c.bf16 %v1467_v3, %v1459_v2 }
 0x499   : > { %15691 = vmatpush1.bf16.msra.mxu0 %v15690_v20  ;;  %v1475_v20 = vld [vmem:[#allocation14 + $0xfb8] sm:$0xff] }
 0x49a   : > { %15819 = vmatpush1.bf16.msra.mxu1 %v15818_v21  ;;  %15693 = vmatprep.subr.bf16.mxu0 %v15692_v22  ;;  %v1483_v21 = vld [vmem:[#allocation14 + $0xff8] sm:$0xff]  ;;  %v15710_v22 = vpack.c.bf16 %v1464_v13, %v1456_v12  ;;  %v2231_v12 = vld [vmem:[%s17046_s16 + $0x3c8] sm:$0xff] }
 0x49b   : > { %15821 = vmatprep.subr.bf16.mxu1 %v15820_v27  ;;  %v1480_v27 = vld [vmem:[#allocation14 + $0xfe0] sm:$0xff]  ;;  %v15840_v29 = vpack.c.bf16 %v1483_v21, %v1475_v20  ;;  %v2243_v13 = vld [vmem:[%s17046_s16 + $0x428] sm:$0xff]  ;;  %v2266_v20 = vld [vmem:[%s17046_s16 + $0x4e0] sm:$0xff] }
 0x49c   : > { %v13788_v18 = vcombine.high %v2231_v12, %v2243_v13  ;;  %v2255_v21 = vld [vmem:[%s17046_s16 + $0x488] sm:$0xff]  ;;  %v13809_v30 = vcombine.low %v2254_v19, %v2266_v20 }
 0x49d   : > { %15695 = vmatpush1.bf16.msra.mxu0 %v15694_v1  ;;  %v2111_v1 = vld [vmem:[%s17046_s16 + $0x8] sm:$0xff] }
 0x49e   : > { %15823 = vmatpush1.bf16.msra.mxu1 %v15822_v33  ;;  %15697 = vmatprep.subr.bf16.mxu0 %v15696_v35  ;;  %v2123_v33 = vld [vmem:[%s17046_s16 + $0x68] sm:$0xff]  ;;  %v15714_v35 = vpack.c.bf16 %v1480_v27, %v1472_v26  ;;  %v13810_v26 = vcombine.high %v2254_v19, %v2266_v20 }
 0x49f   : > { %15825 = vmatprep.subr.bf16.mxu1 %v15824_v39  ;;  %v13668_v38 = vcombine.high %v2111_v1, %v2123_v33  ;;  %v2134_v39 = vld [vmem:[%s17046_s16 + $0xc0] sm:$0xff]  ;;  %v13667_v45 = vcombine.low %v2111_v1, %v2123_v33  ;;  %v2435_v19 = vld [vmem:[%s17046_s16 + $0xa28] sm:$0xff] }
 0x4a1   : > { %15699 = vmatpush1.bf16.msra.mxu0 %v15698_v46  ;;  %v13690_v46 = vcombine.high %v2134_v39, %v2146_v40 }
 0x4a2   : > { %15827 = vmatpush1.bf16.msra.mxu1 %v15826_v47  ;;  %15701 = vmatprep.subr.bf16.mxu0 %v15700_v48  ;;  %v13692_v47 = vcombine.high %v2135_v41, %v2147_v42  ;;  %v2158_v48 = vld [vmem:[%s17046_s16 + $0x180] sm:$0xff]  ;;  %v13835_v41 = vcombine.low %v2279_v31, %v2291_v32 }
 0x4a3   : > { %15829 = vmatprep.subr.bf16.mxu1 %v15828_v52  ;;  %v13689_v52 = vcombine.low %v2134_v39, %v2146_v40  ;;  %v13714_v9 = vcombine.high %v2158_v48, %v2170_v49  ;;  %v2315_v39 = vld [vmem:[%s17046_s16 + $0x668] sm:$0xff] }
 0x4a5   : > { %15703 = vmatpush1.bf16.msra.mxu0 %v15702_v56  ;;  %v2183_v56 = vld [vmem:[%s17046_s16 + $0x248] sm:$0xff] }
 0x4a6   : > { %15831 = vmatpush1.bf16.msra.mxu1 %v15830_v57  ;;  %15705 = vmatprep.subr.bf16.mxu0 %v15704_v58  ;;  %v2195_v57 = vld [vmem:[%s17046_s16 + $0x2a8] sm:$0xff]  ;;  %v13713_v58 = vcombine.low %v2158_v48, %v2170_v49 }
 0x4a7   : > { %15833 = vmatprep.subr.bf16.mxu1 %v15832_v61  ;;  %v13740_v59 = vcombine.high %v2183_v56, %v2195_v57  ;;  %v2218_v61 = vld [vmem:[%s17046_s16 + $0x360] sm:$0xff]  ;;  %v13739_v2 = vcombine.low %v2183_v56, %v2195_v57  ;;  %v2339_v48 = vld [vmem:[%s17046_s16 + $0x728] sm:$0xff] }
 0x4a8   : > { %v13762_v3 = vcombine.high %v2206_v60, %v2218_v61  ;;  %v13761_v14 = vcombine.low %v2206_v60, %v2218_v61  ;;  %v2387_v60 = vld [vmem:[%s17046_s16 + $0x8a8] sm:$0xff] }
 0x4a9   : > { %15707 = vmatpush1.bf16.msra.mxu0 %v15706_v4  ;;  %v13764_v4 = vcombine.high %v2207_v16, %v2219_v63 }
 0x4aa   : > { %15835 = vmatpush1.bf16.msra.mxu1 %v15834_v5  ;;  %15709 = vmatprep.subr.bf16.mxu0 %v15708_v6  ;;  %v2230_v5 = vld [vmem:[%s17046_s16 + $0x3c0] sm:$0xff] }
 0x4ab   : > { %15837 = vmatprep.subr.bf16.mxu1 %v15836_v15  ;;  %v2242_v6 = vld [vmem:[%s17046_s16 + $0x420] sm:$0xff]  ;;  %v13763_v15 = vcombine.low %v2207_v16, %v2219_v63 }
 0x4ac   : > { %v13786_v17 = vcombine.high %v2230_v5, %v2242_v6 }
 0x4ad   : > { %15711 = vmatpush1.bf16.msra.mxu0 %v15710_v22  ;;  %v2267_v22 = vld [vmem:[%s17046_s16 + $0x4e8] sm:$0xff] }
 0x4ae   : > { %15839 = vmatpush1.bf16.msra.mxu1 %v15838_v23  ;;  %15713 = vmatprep.subr.bf16.mxu0 %v15712_v24  ;;  %v13785_v23 = vcombine.low %v2230_v5, %v2242_v6  ;;  %v13787_v24 = vcombine.low %v2231_v12, %v2243_v13  ;;  %v13812_v27 = vcombine.high %v2255_v21, %v2267_v22  ;;  %v2411_v5 = vld [vmem:[%s17046_s16 + $0x968] sm:$0xff] }
 0x4af   : > { %15841 = vmatprep.subr.bf16.mxu1 %v15840_v29  ;;  %v2290_v29 = vld [vmem:[%s17046_s16 + $0x5a0] sm:$0xff]  ;;  %v13811_v1 = vcombine.low %v2255_v21, %v2267_v22 }
 0x4b0   : > { %v13834_v33 = vcombine.high %v2278_v28, %v2290_v29  ;;  %v13833_v40 = vcombine.low %v2278_v28, %v2290_v29  ;;  %v2459_v28 = vld [vmem:[%s17046_s16 + $0xae8] sm:$0xff] }
 0x4b1   : > { %15715 = vmatpush1.bf16.msra.mxu0 %v15714_v35  ;;  %v13836_v35 = vcombine.high %v2279_v31, %v2291_v32 }
 0x4b2   : > { %15843 = vmatpush1.bf16.msra.mxu1 %v15842_v36  ;;  %11452 = vmatprep.subr.bf16.mxu0 %v13666_v37  ;;  %v2302_v36 = vld [vmem:[%s17046_s16 + $0x600] sm:$0xff] }
 0x4b3   : > { %11616 = vmatprep.subr.bf16.mxu1 %v13668_v38  ;;  %v2314_v37 = vld [vmem:[%s17046_s16 + $0x660] sm:$0xff]  ;;  %v2303_v38 = vld [vmem:[%s17046_s16 + $0x608] sm:$0xff] }
 0x4b4   : > { %1946 = vmatmul.mubr.f32.vlgmr.msra.gmra.mrb[6].mxu0 %v17095_v62  ;;  %v13858_v42 = vcombine.high %v2302_v36, %v2314_v37  ;;  %v13857_v49 = vcombine.low %v2302_v36, %v2314_v37  ;;  %v2483_v36 = vld [vmem:[%s17046_s16 + $0xba8] sm:$0xff] }
 0x4b5   : > { %2088 = vmatmul.mubr.f32.vlgmr.msra.gmra.mrb[6].mxu1 %v17095_v62  ;;  %11453 = vmatpush1.bf16.msra.mxu0 %v13665_v44  ;;  %v13715_v62 = vcombine.low %v2159_v50, %v2171_v51  ;;  %v13860_v44 = vcombine.high %v2303_v38, %v2315_v39  ;;  %v13859_v50 = vcombine.low %v2303_v38, %v2315_v39 }
 0x4b6   : > { %11617 = vmatpush1.bf16.msra.mxu1 %v13667_v45  ;;  %11454 = vmatprep.subr.bf16.mxu0 %v13690_v46  ;;  %v2326_v45 = vld [vmem:[%s17046_s16 + $0x6c0] sm:$0xff] }
 0x4b7   : > { %11618 = vmatprep.subr.bf16.mxu1 %v13692_v47  ;;  %v2338_v46 = vld [vmem:[%s17046_s16 + $0x720] sm:$0xff]  ;;  %v2327_v47 = vld [vmem:[%s17046_s16 + $0x6c8] sm:$0xff] }
 0x4b8   : > { %v13882_v51 = vcombine.high %v2326_v45, %v2338_v46  ;;  %v13881_v55 = vcombine.low %v2326_v45, %v2338_v46  ;;  %v13883_v56 = vcombine.low %v2327_v47, %v2339_v48  ;;  %v2507_v45 = vld [vmem:[%s17046_s16 + $0xc68] sm:$0xff] }
 0x4b9   : > { %11455 = vmatpush1.bf16.msra.mxu0 %v13689_v52  ;;  %v13884_v52 = vcombine.high %v2327_v47, %v2339_v48 }
 0x4ba   : > { %11619 = vmatpush1.bf16.msra.mxu1 %v13691_v34  ;;  %11456 = vmatprep.subr.bf16.mxu0 %v13714_v9  ;;  %v2350_v34 = vld [vmem:[%s17046_s16 + $0x780] sm:$0xff] }
 0x4bb   : > { %11620 = vmatprep.subr.bf16.mxu1 %v13716_v53  ;;  %v2362_v9 = vld [vmem:[%s17046_s16 + $0x7e0] sm:$0xff]  ;;  %v2351_v53 = vld [vmem:[%s17046_s16 + $0x788] sm:$0xff] }
 0x4bc   : > { %v13906_v57 = vcombine.high %v2350_v34, %v2362_v9  ;;  %v13905_v61 = vcombine.low %v2350_v34, %v2362_v9  ;;  %v13907_v16 = vcombine.low %v2351_v53, %v2363_v54 }
 0x4bd   : > { %11457 = vmatpush1.bf16.msra.mxu0 %v13713_v58  ;;  %v13908_v58 = vcombine.high %v2351_v53, %v2363_v54 }
 0x4be   : > { %11621 = vmatpush1.bf16.msra.mxu1 %v13715_v62  ;;  %11458 = vmatprep.subr.bf16.mxu0 %v13738_v43  ;;  %v2374_v62 = vld [vmem:[%s17046_s16 + $0x840] sm:$0xff] }
 0x4bf   : > { %11622 = vmatprep.subr.bf16.mxu1 %v13740_v59  ;;  %v2386_v43 = vld [vmem:[%s17046_s16 + $0x8a0] sm:$0xff]  ;;  %v2375_v59 = vld [vmem:[%s17046_s16 + $0x848] sm:$0xff] }
 0x4c0   : > { %v13930_v63 = vcombine.high %v2374_v62, %v2386_v43  ;;  %v13929_v6 = vcombine.low %v2374_v62, %v2386_v43  ;;  %v13931_v12 = vcombine.low %v2375_v59, %v2387_v60 }
 0x4c1   : > { %11459 = vmatpush1.bf16.msra.mxu0 %v13737_v0  ;;  %v13932_v0 = vcombine.high %v2375_v59, %v2387_v60  ;;  %v2518_v59 = vld [vmem:[%s17046_s16 + $0xcc0] sm:$0xff] }
 0x4c2   : > { %11623 = vmatpush1.bf16.msra.mxu1 %v13739_v2  ;;  %11460 = vmatprep.subr.bf16.mxu0 %v13762_v3  ;;  %v2398_v2 = vld [vmem:[%s17046_s16 + $0x900] sm:$0xff] }
 0x4c3   : > { %11624 = vmatprep.subr.bf16.mxu1 %v13764_v4  ;;  %v2410_v3 = vld [vmem:[%s17046_s16 + $0x960] sm:$0xff]  ;;  %v2399_v4 = vld [vmem:[%s17046_s16 + $0x908] sm:$0xff] }
 0x4c4   : > { %v13954_v13 = vcombine.high %v2398_v2, %v2410_v3  ;;  %v13953_v20 = vcombine.low %v2398_v2, %v2410_v3  ;;  %v13955_v21 = vcombine.low %v2399_v4, %v2411_v5 }
 0x4c5   : > { %11461 = vmatpush1.bf16.msra.mxu0 %v13761_v14  ;;  %v13956_v14 = vcombine.high %v2399_v4, %v2411_v5  ;;  %v2542_v5 = vld [vmem:[%s17046_s16 + $0xd80] sm:$0xff] }
 0x4c6   : > { %11625 = vmatpush1.bf16.msra.mxu1 %v13763_v15  ;;  %11462 = vmatprep.subr.bf16.mxu0 %v13786_v17  ;;  %v2422_v15 = vld [vmem:[%s17046_s16 + $0x9c0] sm:$0xff] }
 0x4c7   : > { %11626 = vmatprep.subr.bf16.mxu1 %v13788_v18  ;;  %v2434_v17 = vld [vmem:[%s17046_s16 + $0xa20] sm:$0xff]  ;;  %v2423_v18 = vld [vmem:[%s17046_s16 + $0x9c8] sm:$0xff] }
 0x4c8   : > { %v13978_v22 = vcombine.high %v2422_v15, %v2434_v17  ;;  %v13977_v29 = vcombine.low %v2422_v15, %v2434_v17  ;;  %v13979_v31 = vcombine.low %v2423_v18, %v2435_v19  ;;  %v2555_v15 = vld [vmem:[%s17046_s16 + $0xde8] sm:$0xff] }
 0x4c9   : > { %11463 = vmatpush1.bf16.msra.mxu0 %v13785_v23  ;;  %v13980_v23 = vcombine.high %v2423_v18, %v2435_v19 }
 0x4ca   : > { %11627 = vmatpush1.bf16.msra.mxu1 %v13787_v24  ;;  %11464 = vmatprep.subr.bf16.mxu0 %v13810_v26  ;;  %v2446_v24 = vld [vmem:[%s17046_s16 + $0xa80] sm:$0xff] }
 0x4cb   : > { %11628 = vmatprep.subr.bf16.mxu1 %v13812_v27  ;;  %v2458_v26 = vld [vmem:[%s17046_s16 + $0xae0] sm:$0xff]  ;;  %v2447_v27 = vld [vmem:[%s17046_s16 + $0xa88] sm:$0xff] }
 0x4cc   : > { %v14002_v32 = vcombine.high %v2446_v24, %v2458_v26  ;;  %v14001_v37 = vcombine.low %v2446_v24, %v2458_v26  ;;  %v14003_v38 = vcombine.low %v2447_v27, %v2459_v28  ;;  %v2567_v24 = vld [vmem:[%s17046_s16 + $0xe48] sm:$0xff] }
 0x4cd   : > { %11465 = vmatpush1.bf16.msra.mxu0 %v13809_v30  ;;  %v14004_v30 = vcombine.high %v2447_v27, %v2459_v28  ;;  %v2579_v26 = vld [vmem:[%s17046_s16 + $0xea8] sm:$0xff] }
 0x4ce   : > { %11629 = vmatpush1.bf16.msra.mxu1 %v13811_v1  ;;  %11466 = vmatprep.subr.bf16.mxu0 %v13834_v33  ;;  %v2470_v1 = vld [vmem:[%s17046_s16 + $0xb40] sm:$0xff] }
 0x4cf   : > { %11630 = vmatprep.subr.bf16.mxu1 %v13836_v35  ;;  %v2482_v33 = vld [vmem:[%s17046_s16 + $0xba0] sm:$0xff]  ;;  %v2471_v35 = vld [vmem:[%s17046_s16 + $0xb48] sm:$0xff] }
 0x4d0   : > { %v14026_v39 = vcombine.high %v2470_v1, %v2482_v33  ;;  %v14025_v46 = vcombine.low %v2470_v1, %v2482_v33  ;;  %v14027_v47 = vcombine.low %v2471_v35, %v2483_v36  ;;  %v2591_v1 = vld [vmem:[%s17046_s16 + $0xf08] sm:$0xff] }
 0x4d1   : > { %11467 = vmatpush1.bf16.msra.mxu0 %v13833_v40  ;;  %v14028_v40 = vcombine.high %v2471_v35, %v2483_v36  ;;  %v2603_v33 = vld [vmem:[%s17046_s16 + $0xf68] sm:$0xff]  ;;  %v14123_v36 = vcombine.low %v2567_v24, %v2579_v26 }
 0x4d2   : > { %11631 = vmatpush1.bf16.msra.mxu1 %v13835_v41  ;;  %11468 = vmatprep.subr.bf16.mxu0 %v13858_v42  ;;  %v2494_v41 = vld [vmem:[%s17046_s16 + $0xc00] sm:$0xff] }
 0x4d3   : > { %11632 = vmatprep.subr.bf16.mxu1 %v13860_v44  ;;  %v2506_v42 = vld [vmem:[%s17046_s16 + $0xc60] sm:$0xff]  ;;  %v2495_v44 = vld [vmem:[%s17046_s16 + $0xc08] sm:$0xff] }
 0x4d4   : > { %v14050_v48 = vcombine.high %v2494_v41, %v2506_v42  ;;  %v14049_v2 = vcombine.low %v2494_v41, %v2506_v42  ;;  %v14051_v3 = vcombine.low %v2495_v44, %v2507_v45  ;;  %v2615_v41 = vld [vmem:[%s17046_s16 + $0xfc8] sm:$0xff] }
 0x4d5   : > { %11469 = vmatpush1.bf16.msra.mxu0 %v13857_v49  ;;  %v14052_v49 = vcombine.high %v2495_v44, %v2507_v45  ;;  %v2627_v42 = vld [vmem:[%s17046_s16 + $0x1028] sm:$0xff]  ;;  %v14147_v45 = vcombine.low %v2591_v1, %v2603_v33 }
 0x4d6   : > { %11633 = vmatpush1.bf16.msra.mxu1 %v13859_v50  ;;  %11470 = vmatprep.subr.bf16.mxu0 %v13882_v51  ;;  %v17175_v50 = vld [vmem:[#allocation16] sm:$0xff] }
 0x4d7   : > { %11634 = vmatprep.subr.bf16.mxu1 %v13884_v52  ;;  %v1489_v51 = vrot.slane %v17175_v50, %v17059_v8  ;;  %v1493_v52 = vrot.slane %v17175_v50, %v17064_v10  ;;  %v1501_v34 = vrot.slane %v17175_v50, %v17067_v11 }
 0x4d9   : > { %11471 = vmatpush1.bf16.msra.mxu0 %v13881_v55 }
 0x4da   : > { %11635 = vmatpush1.bf16.msra.mxu1 %v13883_v56  ;;  %11472 = vmatprep.subr.bf16.mxu0 %v13906_v57 }
 0x4db   : > { %11636 = vmatprep.subr.bf16.mxu1 %v13908_v58 }
 0x4dd   : > { %11473 = vmatpush1.bf16.msra.mxu0 %v13905_v61  ;;  %v2530_v61 = vld [vmem:[%s17046_s16 + $0xd20] sm:$0xff] }
 0x4de   : > { %11637 = vmatpush1.bf16.msra.mxu1 %v13907_v16  ;;  %11474 = vmatprep.subr.bf16.mxu0 %v13930_v63  ;;  %v2519_v16 = vld [vmem:[%s17046_s16 + $0xcc8] sm:$0xff]  ;;  %v14073_v18 = vcombine.low %v2518_v59, %v2530_v61 }
 0x4df   : > { %11638 = vmatprep.subr.bf16.mxu1 %v13932_v0  ;;  %v2531_v63 = vld [vmem:[%s17046_s16 + $0xd28] sm:$0xff] }
 0x4e0   : > { %v14075_v19 = vcombine.low %v2519_v16, %v2531_v63 }
 0x4e1   : > { %11475 = vmatpush1.bf16.msra.mxu0 %v13929_v6  ;;  %v14074_v6 = vcombine.high %v2518_v59, %v2530_v61 }
 0x4e2   : > { %11639 = vmatpush1.bf16.msra.mxu1 %v13931_v12  ;;  %11476 = vmatprep.subr.bf16.mxu0 %v13954_v13  ;;  %v14076_v12 = vcombine.high %v2519_v16, %v2531_v63  ;;  %v2554_v13 = vld [vmem:[%s17046_s16 + $0xde0] sm:$0xff] }
 0x4e3   : > { %11640 = vmatprep.subr.bf16.mxu1 %v13956_v14  ;;  %v2543_v14 = vld [vmem:[%s17046_s16 + $0xd88] sm:$0xff]  ;;  %v14097_v27 = vcombine.low %v2542_v5, %v2554_v13  ;;  %v2686_v16 = vld [vmem:[%s17046_s16 + $0x1200] sm:$0xff] }
 0x4e4   : > { %v14099_v28 = vcombine.low %v2543_v14, %v2555_v15  ;;  %v2698_v63 = vld [vmem:[%s17046_s16 + $0x1260] sm:$0xff] }
 0x4e5   : > { %11477 = vmatpush1.bf16.msra.mxu0 %v13953_v20  ;;  %v14098_v20 = vcombine.high %v2542_v5, %v2554_v13 }
 0x4e6   : > { %11641 = vmatpush1.bf16.msra.mxu1 %v13955_v21  ;;  %11478 = vmatprep.subr.bf16.mxu0 %v13978_v22  ;;  %v14100_v21 = vcombine.high %v2543_v14, %v2555_v15  ;;  %v2566_v22 = vld [vmem:[%s17046_s16 + $0xe40] sm:$0xff] }
 0x4e7   : > { %11642 = vmatprep.subr.bf16.mxu1 %v13980_v23  ;;  %v2578_v23 = vld [vmem:[%s17046_s16 + $0xea0] sm:$0xff] }
 0x4e8   : > { %v14121_v35 = vcombine.low %v2566_v22, %v2578_v23  ;;  %v2710_v14 = vld [vmem:[%s17046_s16 + $0x12c0] sm:$0xff] }
 0x4e9   : > { %11479 = vmatpush1.bf16.msra.mxu0 %v13977_v29  ;;  %v14122_v29 = vcombine.high %v2566_v22, %v2578_v23  ;;  %v2722_v15 = vld [vmem:[%s17046_s16 + $0x1320] sm:$0xff] }
 0x4ea   : > { %11643 = vmatpush1.bf16.msra.mxu1 %v13979_v31  ;;  %11480 = vmatprep.subr.bf16.mxu0 %v14002_v32  ;;  %v14124_v31 = vcombine.high %v2567_v24, %v2579_v26  ;;  %v2590_v32 = vld [vmem:[%s17046_s16 + $0xf00] sm:$0xff]  ;;  %v14266_v22 = vcombine.high %v2710_v14, %v2722_v15 }
 0x4eb   : > { %11644 = vmatprep.subr.bf16.mxu1 %v14004_v30  ;;  %v2602_v30 = vld [vmem:[%s17046_s16 + $0xf60] sm:$0xff] }
 0x4ec   : > { %v14145_v44 = vcombine.low %v2590_v32, %v2602_v30  ;;  %v2734_v24 = vld [vmem:[%s17046_s16 + $0x1380] sm:$0xff] }
 0x4ed   : > { %11481 = vmatpush1.bf16.msra.mxu0 %v14001_v37  ;;  %v14146_v37 = vcombine.high %v2590_v32, %v2602_v30  ;;  %v2746_v26 = vld [vmem:[%s17046_s16 + $0x13e0] sm:$0xff] }
 0x4ee   : > { %11645 = vmatpush1.bf16.msra.mxu1 %v14003_v38  ;;  %11482 = vmatprep.subr.bf16.mxu0 %v14026_v39  ;;  %v14148_v38 = vcombine.high %v2591_v1, %v2603_v33  ;;  %v2614_v39 = vld [vmem:[%s17046_s16 + $0xfc0] sm:$0xff]  ;;  %v14290_v32 = vcombine.high %v2734_v24, %v2746_v26 }
 0x4ef   : > { %11646 = vmatprep.subr.bf16.mxu1 %v14028_v40  ;;  %v2626_v40 = vld [vmem:[%s17046_s16 + $0x1020] sm:$0xff] }
 0x4f0   : > { %v2758_v1 = vld [vmem:[%s17046_s16 + $0x1440] sm:$0xff] }
 0x4f1   : > { %11483 = vmatpush1.bf16.msra.mxu0 %v14025_v46  ;;  %v14170_v46 = vcombine.high %v2614_v39, %v2626_v40  ;;  %v2770_v33 = vld [vmem:[%s17046_s16 + $0x14a0] sm:$0xff] }
 0x4f2   : > { %11647 = vmatpush1.bf16.msra.mxu1 %v14027_v47  ;;  %11493 = vmatprep.subr.bf16.mxu0 %v14050_v48  ;;  %v14172_v47 = vcombine.high %v2615_v41, %v2627_v42  ;;  %v2638_v48 = vld [vmem:[%s17046_s16 + $0x1080] sm:$0xff] }
 0x4f3   : > { %11657 = vmatprep.subr.bf16.mxu1 %v14052_v49  ;;  %v2650_v49 = vld [vmem:[%s17046_s16 + $0x10e0] sm:$0xff] }
 0x507   : > { %v1663_v9 = vpop.f32.mrb[4].mxu0  ;;  %v17183_v53 = vpop.f32.mrb[4].mxu1 }
 0x508   : > { %v15844_v54 = vadd.f32 %v1663_v9, %v1489_v51  ;;  %v1665_v55 = vpop.f32.mrb[5].mxu0  ;;  %v1807_v56 = vpop.f32.mrb[5].mxu1  ;;  %v2639_v51 = vld [vmem:[%s17046_s16 + $0x1088] sm:$0xff]  ;;  %v14171_v9 = vcombine.low %v2615_v41, %v2627_v42  ;;  %v2782_v41 = vld [vmem:[%s17046_s16 + $0x1500] sm:$0xff] }
 0x509   : > { %v15845_v57 = vadd.f32 %v1665_v55, %v1493_v52  ;;  %v15847_v58 = vadd.f32 %v1807_v56, %v1501_v34  ;;  %v2651_v52 = vld [vmem:[%s17046_s16 + $0x10e8] sm:$0xff]  ;;  %v14169_v34 = vcombine.low %v2614_v39, %v2626_v40  ;;  %v2662_v56 = vld [vmem:[%s17046_s16 + $0x1140] sm:$0xff]  ;;  %v14314_v39 = vcombine.high %v2758_v1, %v2770_v33 }
 0x50a   : > { %v2094_v62 = vmax.f32 %v15844_v54, 0.0  ;;  %v14194_v54 = vcombine.high %v2638_v48, %v2650_v49  ;;  %v14196_v55 = vcombine.high %v2639_v51, %v2651_v52  ;;  %v14195_v59 = vcombine.low %v2639_v51, %v2651_v52  ;;  %v2794_v42 = vld [vmem:[%s17046_s16 + $0x1560] sm:$0xff] }
 0x50b   : > { %v2095_v43 = vmax.f32 %v15845_v57, 0.0  ;;  %v2097_v60 = vmax.f32 %v15847_v58, 0.0  ;;  %v2674_v57 = vld [vmem:[%s17046_s16 + $0x11a0] sm:$0xff]  ;;  %v2663_v58 = vld [vmem:[%s17046_s16 + $0x1148] sm:$0xff] }
 0x50c   : > { %v17191_v4 = vpack.c.bf16 %v2094_v62, %v2094_v62  ;;  %v2675_v62 = vld [vmem:[%s17046_s16 + $0x11a8] sm:$0xff]  ;;  %v14217_v5 = vcombine.low %v2662_v56, %v2674_v57  ;;  %v2806_v51 = vld [vmem:[%s17046_s16 + $0x15c0] sm:$0xff] }
 0x50d   : > { %v17189_v0 = vpack.c.bf16 %v2095_v43, %v2095_v43  ;;  %v17199_v17 = vpack.c.bf16 %v2097_v60, %v2097_v60  ;;  %v14193_v43 = vcombine.low %v2638_v48, %v2650_v49  ;;  %v14218_v60 = vcombine.high %v2662_v56, %v2674_v57  ;;  %v2818_v52 = vld [vmem:[%s17046_s16 + $0x1620] sm:$0xff] }
 0x50e   : > { %v14220_v61 = vcombine.high %v2663_v58, %v2675_v62  ;;  %v14338_v48 = vcombine.high %v2782_v41, %v2794_v42  ;;  %v14362_v56 = vcombine.high %v2806_v51, %v2818_v52 }
 0x50f   : > { %11484 = vmatprep.mubr.bf16.mxu0 %v17189_v0  ;;  %11648 = vmatprep.mubr.bf16.mxu1 %v17189_v0 }
 0x510   : > { %11485 = vmatmul.mubr.bf16.vlgmr.msra.gmra.mrb[8].mxu0 %v17191_v4  ;;  %11649 = vmatmul.mubr.bf16.vlgmr.msra.gmra.mrb[8].mxu1 %v17191_v4 }
 0x511   : > { %11494 = vmatpush1.bf16.msra.mxu0 %v14049_v2  ;;  %11658 = vmatpush1.bf16.msra.mxu1 %v14051_v3  ;;  %v2687_v2 = vld [vmem:[%s17046_s16 + $0x1208] sm:$0xff] }
 0x512   : > { %11525 = vmatprep.mubr.bf16.mxu0 %v17199_v17  ;;  %11689 = vmatprep.mubr.bf16.mxu1 %v17199_v17  ;;  %v2699_v3 = vld [vmem:[%s17046_s16 + $0x1268] sm:$0xff] }
 0x513   : > { %11495 = vmatprep.subr.bf16.mxu0 %v14074_v6  ;;  %11659 = vmatprep.subr.bf16.mxu1 %v14076_v12  ;;  %v14219_v6 = vcombine.low %v2663_v58, %v2675_v62  ;;  %v14242_v12 = vcombine.high %v2686_v16, %v2698_v63  ;;  %v14244_v13 = vcombine.high %v2687_v2, %v2699_v3  ;;  %v2830_v58 = vld [vmem:[%s17046_s16 + $0x1680] sm:$0xff] }
 0x514   : > { %v2842_v62 = vld [vmem:[%s17046_s16 + $0x16e0] sm:$0xff] }
 0x515   : > { %11496 = vmatpush1.bf16.msra.mxu0 %v14073_v18  ;;  %11660 = vmatpush1.bf16.msra.mxu1 %v14075_v19  ;;  %v2711_v18 = vld [vmem:[%s17046_s16 + $0x12c8] sm:$0xff] }
 0x516   : > { %11497 = vmatprep.subr.bf16.mxu0 %v14098_v20  ;;  %11661 = vmatprep.subr.bf16.mxu1 %v14100_v21  ;;  %v2723_v19 = vld [vmem:[%s17046_s16 + $0x1328] sm:$0xff]  ;;  %v14241_v20 = vcombine.low %v2686_v16, %v2698_v63  ;;  %v14243_v21 = vcombine.low %v2687_v2, %v2699_v3  ;;  %v1497_v16 = vrot.slane %v17175_v50, %v17090_v25  ;;  %v2854_v3 = vld [vmem:[%s17046_s16 + $0x1740] sm:$0xff] }
 0x517   : > { %v14268_v23 = vcombine.high %v2711_v18, %v2723_v19  ;;  %v14386_v63 = vcombine.high %v2830_v58, %v2842_v62 }
 0x519   : > { %11498 = vmatpush1.bf16.msra.mxu0 %v14097_v27  ;;  %11662 = vmatpush1.bf16.msra.mxu1 %v14099_v28  ;;  %v2735_v27 = vld [vmem:[%s17046_s16 + $0x1388] sm:$0xff] }
 0x51a   : > { %11499 = vmatprep.subr.bf16.mxu0 %v14122_v29  ;;  %11663 = vmatprep.subr.bf16.mxu1 %v14124_v31  ;;  %v2747_v28 = vld [vmem:[%s17046_s16 + $0x13e8] sm:$0xff]  ;;  %v14265_v29 = vcombine.low %v2710_v14, %v2722_v15  ;;  %v14267_v31 = vcombine.low %v2711_v18, %v2723_v19  ;;  %v15846_v15 = vadd.f32 %v17183_v53, %v1497_v16  ;;  %v3010_v16 = vld [vmem:[%s17046_s16 + $0x1c20] sm:$0xff] }
 0x51b   : > { %v14292_v30 = vcombine.high %v2735_v27, %v2747_v28 }
 0x51d   : > { %11500 = vmatpush1.bf16.msra.mxu0 %v14121_v35  ;;  %11664 = vmatpush1.bf16.msra.mxu1 %v14123_v36  ;;  %v2759_v35 = vld [vmem:[%s17046_s16 + $0x1448] sm:$0xff] }
 0x51e   : > { %11501 = vmatprep.subr.bf16.mxu0 %v14146_v37  ;;  %11665 = vmatprep.subr.bf16.mxu1 %v14148_v38  ;;  %v2771_v36 = vld [vmem:[%s17046_s16 + $0x14a8] sm:$0xff]  ;;  %v14289_v37 = vcombine.low %v2734_v24, %v2746_v26  ;;  %v14291_v38 = vcombine.low %v2735_v27, %v2747_v28  ;;  %v2096_v27 = vmax.f32 %v15846_v15, 0.0 }
 0x51f   : > { %v14316_v40 = vcombine.high %v2759_v35, %v2771_v36  ;;  %v3023_v15 = vld [vmem:[%s17046_s16 + $0x1c88] sm:$0xff] }
 0x521   : > { %11502 = vmatpush1.bf16.msra.mxu0 %v14145_v44  ;;  %11666 = vmatpush1.bf16.msra.mxu1 %v14147_v45  ;;  %v2783_v44 = vld [vmem:[%s17046_s16 + $0x1508] sm:$0xff] }
 0x522   : > { %11503 = vmatprep.subr.bf16.mxu0 %v14170_v46  ;;  %11667 = vmatprep.subr.bf16.mxu1 %v14172_v47  ;;  %v2795_v45 = vld [vmem:[%s17046_s16 + $0x1568] sm:$0xff]  ;;  %v14313_v46 = vcombine.low %v2758_v1, %v2770_v33  ;;  %v14315_v47 = vcombine.low %v2759_v35, %v2771_v36  ;;  %v17268_v35 = vpack.c.bf16 %v2096_v27, %v2096_v27 }
 0x523   : > { %v14340_v49 = vcombine.high %v2783_v44, %v2795_v45  ;;  %v3059_v27 = vld [vmem:[%s17046_s16 + $0x1da8] sm:$0xff] }
 0x525   : > { %11504 = vmatpush1.bf16.msra.mxu0 %v14169_v34  ;;  %11668 = vmatpush1.bf16.msra.mxu1 %v14171_v9  ;;  %v2807_v34 = vld [vmem:[%s17046_s16 + $0x15c8] sm:$0xff] }
 0x526   : > { %11505 = vmatprep.subr.bf16.mxu0 %v14194_v54  ;;  %11669 = vmatprep.subr.bf16.mxu1 %v14196_v55  ;;  %v2819_v9 = vld [vmem:[%s17046_s16 + $0x1628] sm:$0xff]  ;;  %v14337_v54 = vcombine.low %v2782_v41, %v2794_v42  ;;  %v14339_v55 = vcombine.low %v2783_v44, %v2795_v45 }
 0x527   : > { %v14364_v57 = vcombine.high %v2807_v34, %v2819_v9  ;;  %v2939_v41 = vld [vmem:[%s17046_s16 + $0x19e8] sm:$0xff] }
 0x529   : > { %11506 = vmatpush1.bf16.msra.mxu0 %v14193_v43  ;;  %11670 = vmatpush1.bf16.msra.mxu1 %v14195_v59  ;;  %v2831_v43 = vld [vmem:[%s17046_s16 + $0x1688] sm:$0xff] }
 0x52a   : > { %11507 = vmatprep.subr.bf16.mxu0 %v14218_v60  ;;  %11671 = vmatprep.subr.bf16.mxu1 %v14220_v61  ;;  %v2843_v59 = vld [vmem:[%s17046_s16 + $0x16e8] sm:$0xff]  ;;  %v14361_v60 = vcombine.low %v2806_v51, %v2818_v52  ;;  %v14363_v61 = vcombine.low %v2807_v34, %v2819_v9 }
 0x52b   : > { %v14388_v2 = vcombine.high %v2831_v43, %v2843_v59  ;;  %v14387_v14 = vcombine.low %v2831_v43, %v2843_v59  ;;  %v2963_v51 = vld [vmem:[%s17046_s16 + $0x1aa8] sm:$0xff] }
 0x52d   : > { %11508 = vmatpush1.bf16.msra.mxu0 %v14217_v5  ;;  %11672 = vmatpush1.bf16.msra.mxu1 %v14219_v6  ;;  %v2866_v5 = vld [vmem:[%s17046_s16 + $0x17a0] sm:$0xff]  ;;  %v2855_v6 = vld [vmem:[%s17046_s16 + $0x1748] sm:$0xff] }
 0x52e   : > { %11509 = vmatprep.subr.bf16.mxu0 %v14242_v12  ;;  %11673 = vmatprep.subr.bf16.mxu1 %v14244_v13  ;;  %v2867_v12 = vld [vmem:[%s17046_s16 + $0x17a8] sm:$0xff]  ;;  %v14385_v13 = vcombine.low %v2830_v58, %v2842_v62  ;;  %v14410_v18 = vcombine.high %v2854_v3, %v2866_v5  ;;  %v14409_v24 = vcombine.low %v2854_v3, %v2866_v5 }
 0x52f   : > { %v14412_v19 = vcombine.high %v2855_v6, %v2867_v12  ;;  %v14411_v26 = vcombine.low %v2855_v6, %v2867_v12  ;;  %v2987_v58 = vld [vmem:[%s17046_s16 + $0x1b68] sm:$0xff] }
 0x531   : > { %11510 = vmatpush1.bf16.msra.mxu0 %v14241_v20  ;;  %11674 = vmatpush1.bf16.msra.mxu1 %v14243_v21  ;;  %v2878_v20 = vld [vmem:[%s17046_s16 + $0x1800] sm:$0xff] }
 0x532   : > { %11511 = vmatprep.subr.bf16.mxu0 %v14266_v22  ;;  %11675 = vmatprep.subr.bf16.mxu1 %v14268_v23  ;;  %v2890_v21 = vld [vmem:[%s17046_s16 + $0x1860] sm:$0xff]  ;;  %v2879_v22 = vld [vmem:[%s17046_s16 + $0x1808] sm:$0xff] }
 0x533   : > { %v2891_v23 = vld [vmem:[%s17046_s16 + $0x1868] sm:$0xff]  ;;  %v14434_v53 = vcombine.high %v2878_v20, %v2890_v21  ;;  %v14433_v1 = vcombine.low %v2878_v20, %v2890_v21 }
 0x534   : > { %v14436_v28 = vcombine.high %v2879_v22, %v2891_v23  ;;  %v14435_v33 = vcombine.low %v2879_v22, %v2891_v23  ;;  %v3046_v23 = vld [vmem:[%s17046_s16 + $0x1d40] sm:$0xff] }
 0x535   : > { %11512 = vmatpush1.bf16.msra.mxu0 %v14265_v29  ;;  %11676 = vmatpush1.bf16.msra.mxu1 %v14267_v31  ;;  %v2902_v29 = vld [vmem:[%s17046_s16 + $0x18c0] sm:$0xff] }
 0x536   : > { %11513 = vmatprep.subr.bf16.mxu0 %v14290_v32  ;;  %11677 = vmatprep.subr.bf16.mxu1 %v14292_v30  ;;  %v2914_v31 = vld [vmem:[%s17046_s16 + $0x1920] sm:$0xff]  ;;  %v2903_v32 = vld [vmem:[%s17046_s16 + $0x18c8] sm:$0xff] }
 0x537   : > { %v2915_v30 = vld [vmem:[%s17046_s16 + $0x1928] sm:$0xff]  ;;  %v14458_v36 = vcombine.high %v2902_v29, %v2914_v31  ;;  %v14457_v42 = vcombine.low %v2902_v29, %v2914_v31 }
 0x538   : > { %v14459_v44 = vcombine.low %v2903_v32, %v2915_v30 }
 0x539   : > { %11514 = vmatpush1.bf16.msra.mxu0 %v14289_v37  ;;  %11678 = vmatpush1.bf16.msra.mxu1 %v14291_v38  ;;  %v14460_v37 = vcombine.high %v2903_v32, %v2915_v30  ;;  %v2926_v38 = vld [vmem:[%s17046_s16 + $0x1980] sm:$0xff] }
 0x53a   : > { %11515 = vmatprep.subr.bf16.mxu0 %v14314_v39  ;;  %11679 = vmatprep.subr.bf16.mxu1 %v14316_v40  ;;  %v2938_v39 = vld [vmem:[%s17046_s16 + $0x19e0] sm:$0xff]  ;;  %v2927_v40 = vld [vmem:[%s17046_s16 + $0x1988] sm:$0xff] }
 0x53b   : > { %v14482_v45 = vcombine.high %v2926_v38, %v2938_v39  ;;  %v14481_v52 = vcombine.low %v2926_v38, %v2938_v39  ;;  %v14483_v34 = vcombine.low %v2927_v40, %v2939_v41  ;;  %v3070_v32 = vld [vmem:[%s17046_s16 + $0x1e00] sm:$0xff] }
 0x53c   : > { %v3082_v30 = vld [vmem:[%s17046_s16 + $0x1e60] sm:$0xff] }
 0x53d   : > { %11516 = vmatpush1.bf16.msra.mxu0 %v14313_v46  ;;  %11680 = vmatpush1.bf16.msra.mxu1 %v14315_v47  ;;  %v14484_v46 = vcombine.high %v2927_v40, %v2939_v41  ;;  %v2950_v47 = vld [vmem:[%s17046_s16 + $0x1a40] sm:$0xff]  ;;  %v14626_v38 = vcombine.high %v3070_v32, %v3082_v30 }
 0x53e   : > { %11517 = vmatprep.subr.bf16.mxu0 %v14338_v48  ;;  %11681 = vmatprep.subr.bf16.mxu1 %v14340_v49  ;;  %v2962_v48 = vld [vmem:[%s17046_s16 + $0x1aa0] sm:$0xff]  ;;  %v2951_v49 = vld [vmem:[%s17046_s16 + $0x1a48] sm:$0xff] }
 0x53f   : > { %v14506_v9 = vcombine.high %v2950_v47, %v2962_v48  ;;  %v14505_v62 = vcombine.low %v2950_v47, %v2962_v48  ;;  %v14507_v43 = vcombine.low %v2951_v49, %v2963_v51  ;;  %v3094_v40 = vld [vmem:[%s17046_s16 + $0x1ec0] sm:$0xff] }
 0x540   : > { %v3106_v41 = vld [vmem:[%s17046_s16 + $0x1f20] sm:$0xff] }
 0x541   : > { %11518 = vmatpush1.bf16.msra.mxu0 %v14337_v54  ;;  %11682 = vmatpush1.bf16.msra.mxu1 %v14339_v55  ;;  %v14508_v54 = vcombine.high %v2951_v49, %v2963_v51  ;;  %v2974_v55 = vld [vmem:[%s17046_s16 + $0x1b00] sm:$0xff]  ;;  %v14650_v47 = vcombine.high %v3094_v40, %v3106_v41 }
 0x542   : > { %11519 = vmatprep.subr.bf16.mxu0 %v14362_v56  ;;  %11683 = vmatprep.subr.bf16.mxu1 %v14364_v57  ;;  %v2986_v56 = vld [vmem:[%s17046_s16 + $0x1b60] sm:$0xff]  ;;  %v2975_v57 = vld [vmem:[%s17046_s16 + $0x1b08] sm:$0xff] }
 0x543   : > { %v14530_v59 = vcombine.high %v2974_v55, %v2986_v56  ;;  %v14529_v3 = vcombine.low %v2974_v55, %v2986_v56  ;;  %v14531_v5 = vcombine.low %v2975_v57, %v2987_v58  ;;  %v3118_v49 = vld [vmem:[%s17046_s16 + $0x1f80] sm:$0xff] }
 0x544   : > { %v3130_v51 = vld [vmem:[%s17046_s16 + $0x1fe0] sm:$0xff] }
 0x545   : > { %11520 = vmatpush1.bf16.msra.mxu0 %v14361_v60  ;;  %11684 = vmatpush1.bf16.msra.mxu1 %v14363_v61  ;;  %v14532_v60 = vcombine.high %v2975_v57, %v2987_v58  ;;  %v2998_v61 = vld [vmem:[%s17046_s16 + $0x1bc0] sm:$0xff]  ;;  %v14674_v55 = vcombine.high %v3118_v49, %v3130_v51 }
 0x546   : > { %11521 = vmatprep.subr.bf16.mxu0 %v14386_v63  ;;  %11685 = vmatprep.subr.bf16.mxu1 %v14388_v2  ;;  %v2999_v63 = vld [vmem:[%s17046_s16 + $0x1bc8] sm:$0xff]  ;;  %v14554_v6 = vcombine.high %v2998_v61, %v3010_v16  ;;  %v3142_v57 = vld [vmem:[%s17046_s16 + $0x2040] sm:$0xff] }
 0x547   : > { %v3011_v2 = vld [vmem:[%s17046_s16 + $0x1c28] sm:$0xff]  ;;  %v3154_v58 = vld [vmem:[%s17046_s16 + $0x20a0] sm:$0xff] }
 0x548   : > { %v14556_v12 = vcombine.high %v2999_v63, %v3011_v2  ;;  %v14555_v20 = vcombine.low %v2999_v63, %v3011_v2  ;;  %v3166_v63 = vld [vmem:[%s17046_s16 + $0x2100] sm:$0xff] }
 0x549   : > { %11522 = vmatpush1.bf16.msra.mxu0 %v14385_v13  ;;  %11686 = vmatpush1.bf16.msra.mxu1 %v14387_v14  ;;  %v3022_v13 = vld [vmem:[%s17046_s16 + $0x1c80] sm:$0xff] }
 0x54a   : > { %11523 = vmatprep.subr.bf16.mxu0 %v14410_v18  ;;  %11687 = vmatprep.subr.bf16.mxu1 %v14412_v19  ;;  %v3034_v14 = vld [vmem:[%s17046_s16 + $0x1ce0] sm:$0xff]  ;;  %v3035_v18 = vld [vmem:[%s17046_s16 + $0x1ce8] sm:$0xff]  ;;  %v14553_v19 = vcombine.low %v2998_v61, %v3010_v16  ;;  %v14698_v61 = vcombine.high %v3142_v57, %v3154_v58 }
 0x54b   : > { %v14578_v21 = vcombine.high %v3022_v13, %v3034_v14  ;;  %v14580_v22 = vcombine.high %v3023_v15, %v3035_v18  ;;  %v3178_v2 = vld [vmem:[%s17046_s16 + $0x2160] sm:$0xff] }
 0x54d   : > { %11524 = vmatpush1.bf16.msra.mxu0 %v14409_v24  ;;  %11688 = vmatpush1.bf16.msra.mxu1 %v14411_v26  ;;  %v3058_v24 = vld [vmem:[%s17046_s16 + $0x1da0] sm:$0xff]  ;;  %v3047_v26 = vld [vmem:[%s17046_s16 + $0x1d48] sm:$0xff] }
 0x54e   : > { %11534 = vmatprep.subr.bf16.mxu0 %v14434_v53  ;;  %11698 = vmatprep.subr.bf16.mxu1 %v14436_v28  ;;  %v14577_v53 = vcombine.low %v3022_v13, %v3034_v14  ;;  %v14579_v28 = vcombine.low %v3023_v15, %v3035_v18  ;;  %v14602_v29 = vcombine.high %v3046_v23, %v3058_v24  ;;  %v3190_v15 = vld [vmem:[%s17046_s16 + $0x21c0] sm:$0xff] }
 0x54f   : > { %v14604_v31 = vcombine.high %v3047_v26, %v3059_v27  ;;  %v14722_v13 = vcombine.high %v3166_v63, %v3178_v2  ;;  %v3202_v18 = vld [vmem:[%s17046_s16 + $0x2220] sm:$0xff] }
 0x550   : > { %11526 = vmatmul.mubr.bf16.vlgmr.msra.gmra.mrb[8].mxu0 %v17268_v35  ;;  %11690 = vmatmul.mubr.bf16.vlgmr.msra.gmra.mrb[8].mxu1 %v17268_v35 }
 0x551   : > { %11535 = vmatpush1.bf16.msra.mxu0 %v14433_v1  ;;  %11699 = vmatpush1.bf16.msra.mxu1 %v14435_v33  ;;  %v3071_v1 = vld [vmem:[%s17046_s16 + $0x1e08] sm:$0xff] }
 0x552   : > { %11536 = vmatprep.subr.bf16.mxu0 %v14458_v36  ;;  %11700 = vmatprep.subr.bf16.mxu1 %v14460_v37  ;;  %v3083_v33 = vld [vmem:[%s17046_s16 + $0x1e68] sm:$0xff]  ;;  %v14601_v36 = vcombine.low %v3046_v23, %v3058_v24  ;;  %v14603_v37 = vcombine.low %v3047_v26, %v3059_v27  ;;  %v14746_v23 = vcombine.high %v3190_v15, %v3202_v18  ;;  %v3214_v26 = vld [vmem:[%s17046_s16 + $0x2280] sm:$0xff] }
 0x553   : > { %v14628_v39 = vcombine.high %v3071_v1, %v3083_v33  ;;  %v3226_v27 = vld [vmem:[%s17046_s16 + $0x22e0] sm:$0xff] }
 0x555   : > { %11537 = vmatpush1.bf16.msra.mxu0 %v14457_v42  ;;  %11701 = vmatpush1.bf16.msra.mxu1 %v14459_v44  ;;  %v3095_v42 = vld [vmem:[%s17046_s16 + $0x1ec8] sm:$0xff] }
 0x556   : > { %11538 = vmatprep.subr.bf16.mxu0 %v14482_v45  ;;  %11702 = vmatprep.subr.bf16.mxu1 %v14484_v46  ;;  %v3107_v44 = vld [vmem:[%s17046_s16 + $0x1f28] sm:$0xff]  ;;  %v14625_v45 = vcombine.low %v3070_v32, %v3082_v30  ;;  %v14627_v46 = vcombine.low %v3071_v1, %v3083_v33  ;;  %v17328_v30 = vsub.s32 5, %v17056_v7  ;;  %v14770_v1 = vcombine.high %v3214_v26, %v3226_v27 }
 0x557   : > { %v14652_v48 = vcombine.high %v3095_v42, %v3107_v44 }
 0x559   : > { %11539 = vmatpush1.bf16.msra.mxu0 %v14481_v52  ;;  %11703 = vmatpush1.bf16.msra.mxu1 %v14483_v34  ;;  %v3119_v52 = vld [vmem:[%s17046_s16 + $0x1f88] sm:$0xff] }
 0x55a   : > { %11540 = vmatprep.subr.bf16.mxu0 %v14506_v9  ;;  %11704 = vmatprep.subr.bf16.mxu1 %v14508_v54  ;;  %v3131_v34 = vld [vmem:[%s17046_s16 + $0x1fe8] sm:$0xff]  ;;  %v14649_v9 = vcombine.low %v3094_v40, %v3106_v41  ;;  %v14651_v54 = vcombine.low %v3095_v42, %v3107_v44  ;;  %v14769_v42 = vcombine.low %v3214_v26, %v3226_v27 }
 0x55b   : > { %v14676_v56 = vcombine.high %v3119_v52, %v3131_v34  ;;  %v3251_v40 = vld [vmem:[%s17046_s16 + $0x23a8] sm:$0xff] }
 0x55d   : > { %11541 = vmatpush1.bf16.msra.mxu0 %v14505_v62  ;;  %11705 = vmatpush1.bf16.msra.mxu1 %v14507_v43  ;;  %v3143_v62 = vld [vmem:[%s17046_s16 + $0x2048] sm:$0xff] }
 0x55e   : > { %11542 = vmatprep.subr.bf16.mxu0 %v14530_v59  ;;  %11706 = vmatprep.subr.bf16.mxu1 %v14532_v60  ;;  %v3155_v43 = vld [vmem:[%s17046_s16 + $0x20a8] sm:$0xff]  ;;  %v14673_v59 = vcombine.low %v3118_v49, %v3130_v51  ;;  %v14675_v60 = vcombine.low %v3119_v52, %v3131_v34  ;;  %v3262_v49 = vld [vmem:[%s17046_s16 + $0x2400] sm:$0xff] }
 0x55f   : > { %v14700_v16 = vcombine.high %v3143_v62, %v3155_v43  ;;  %v3274_v52 = vld [vmem:[%s17046_s16 + $0x2460] sm:$0xff]  ;;  %v3263_v34 = vld [vmem:[%s17046_s16 + $0x2408] sm:$0xff] }
 0x561   : > { %11543 = vmatpush1.bf16.msra.mxu0 %v14529_v3  ;;  %11707 = vmatpush1.bf16.msra.mxu1 %v14531_v5  ;;  %v3167_v3 = vld [vmem:[%s17046_s16 + $0x2108] sm:$0xff] }
 0x562   : > { %11544 = vmatprep.subr.bf16.mxu0 %v14554_v6  ;;  %11708 = vmatprep.subr.bf16.mxu1 %v14556_v12  ;;  %v3179_v5 = vld [vmem:[%s17046_s16 + $0x2168] sm:$0xff]  ;;  %v14697_v6 = vcombine.low %v3142_v57, %v3154_v58  ;;  %v14699_v12 = vcombine.low %v3143_v62, %v3155_v43 }
 0x563   : > { %v14724_v14 = vcombine.high %v3167_v3, %v3179_v5 }
 0x565   : > { %11545 = vmatpush1.bf16.msra.mxu0 %v14553_v19  ;;  %11709 = vmatpush1.bf16.msra.mxu1 %v14555_v20  ;;  %v3191_v19 = vld [vmem:[%s17046_s16 + $0x21c8] sm:$0xff] }
 0x566   : > { %11546 = vmatprep.subr.bf16.mxu0 %v14578_v21  ;;  %11710 = vmatprep.subr.bf16.mxu1 %v14580_v22  ;;  %v3203_v20 = vld [vmem:[%s17046_s16 + $0x2228] sm:$0xff]  ;;  %v14721_v21 = vcombine.low %v3166_v63, %v3178_v2  ;;  %v14723_v22 = vcombine.low %v3167_v3, %v3179_v5  ;;  %v3286_v63 = vld [vmem:[%s17046_s16 + $0x24c0] sm:$0xff] }
 0x567   : > { %v14748_v24 = vcombine.high %v3191_v19, %v3203_v20  ;;  %v14747_v32 = vcombine.low %v3191_v19, %v3203_v20  ;;  %v3298_v3 = vld [vmem:[%s17046_s16 + $0x2520] sm:$0xff]  ;;  %v3287_v5 = vld [vmem:[%s17046_s16 + $0x24c8] sm:$0xff] }
 0x568   : > { %v14842_v19 = vcombine.high %v3286_v63, %v3298_v3  ;;  %v14841_v26 = vcombine.low %v3286_v63, %v3298_v3  ;;  %v3442_v3 = vld [vmem:[%s17046_s16 + $0x29a0] sm:$0xff] }
 0x569   : > { %11547 = vmatpush1.bf16.msra.mxu0 %v14577_v53  ;;  %11711 = vmatpush1.bf16.msra.mxu1 %v14579_v28  ;;  %v3215_v53 = vld [vmem:[%s17046_s16 + $0x2288] sm:$0xff] }
 0x56a   : > { %11548 = vmatprep.subr.bf16.mxu0 %v14602_v29  ;;  %11712 = vmatprep.subr.bf16.mxu1 %v14604_v31  ;;  %v3227_v28 = vld [vmem:[%s17046_s16 + $0x22e8] sm:$0xff]  ;;  %v17325_v29 = vsub.s32 4, %v17056_v7  ;;  %v14745_v31 = vcombine.low %v3190_v15, %v3202_v18  ;;  %v3310_v18 = vld [vmem:[%s17046_s16 + $0x2580] sm:$0xff] }
 0x56b   : > { %v14772_v33 = vcombine.high %v3215_v53, %v3227_v28  ;;  %v14771_v44 = vcombine.low %v3215_v53, %v3227_v28 }
 0x56c   : > { %v1505_v41 = vrot.slane %v17175_v50, %v17325_v29 }
 0x56d   : > { %11549 = vmatpush1.bf16.msra.mxu0 %v14601_v36  ;;  %11713 = vmatpush1.bf16.msra.mxu1 %v14603_v37  ;;  %v17331_v36 = vsub.s32 7, %v17056_v7  ;;  %v3238_v37 = vld [vmem:[%s17046_s16 + $0x2340] sm:$0xff] }
 0x56e   : > { %11550 = vmatprep.subr.bf16.mxu0 %v14626_v38  ;;  %11714 = vmatprep.subr.bf16.mxu1 %v14628_v39  ;;  %v3250_v38 = vld [vmem:[%s17046_s16 + $0x23a0] sm:$0xff]  ;;  %v3239_v39 = vld [vmem:[%s17046_s16 + $0x2348] sm:$0xff] }
 0x56f   : > { %v14795_v62 = vcombine.low %v3239_v39, %v3251_v40 }
 0x571   : > { %11551 = vmatpush1.bf16.msra.mxu0 %v14625_v45  ;;  %11715 = vmatpush1.bf16.msra.mxu1 %v14627_v46  ;;  %v1509_v45 = vrot.slane %v17175_v50, %v17328_v30  ;;  %v1517_v46 = vrot.slane %v17175_v50, %v17331_v36  ;;  %v14793_v50 = vcombine.low %v3238_v37, %v3250_v38 }
 0x572   : > { %11552 = vmatprep.subr.bf16.mxu0 %v14650_v47  ;;  %11716 = vmatprep.subr.bf16.mxu1 %v14652_v48  ;;  %v14794_v47 = vcombine.high %v3238_v37, %v3250_v38  ;;  %v14796_v48 = vcombine.high %v3239_v39, %v3251_v40 }
 0x575   : > { %11553 = vmatpush1.bf16.msra.mxu0 %v14649_v9  ;;  %11717 = vmatpush1.bf16.msra.mxu1 %v14651_v54  ;;  %v3275_v9 = vld [vmem:[%s17046_s16 + $0x2468] sm:$0xff] }
 0x576   : > { %11554 = vmatprep.subr.bf16.mxu0 %v14674_v55  ;;  %11718 = vmatprep.subr.bf16.mxu1 %v14676_v56 }
 0x579   : > { %11555 = vmatpush1.bf16.msra.mxu0 %v14673_v59  ;;  %11719 = vmatpush1.bf16.msra.mxu1 %v14675_v60  ;;  %v14818_v60 = vcombine.high %v3262_v49, %v3274_v52 }
 0x57a   : > { %11556 = vmatprep.subr.bf16.mxu0 %v14698_v61  ;;  %11720 = vmatprep.subr.bf16.mxu1 %v14700_v16  ;;  %v14820_v61 = vcombine.high %v3263_v34, %v3275_v9 }
 0x57d   : > { %11557 = vmatpush1.bf16.msra.mxu0 %v14697_v6  ;;  %11721 = vmatpush1.bf16.msra.mxu1 %v14699_v12  ;;  %v3299_v6 = vld [vmem:[%s17046_s16 + $0x2528] sm:$0xff] }
 0x57e   : > { %11558 = vmatprep.subr.bf16.mxu0 %v14722_v13  ;;  %11722 = vmatprep.subr.bf16.mxu1 %v14724_v14  ;;  %v14817_v13 = vcombine.low %v3262_v49, %v3274_v52  ;;  %v14819_v14 = vcombine.low %v3263_v34, %v3275_v9  ;;  %v14844_v20 = vcombine.high %v3287_v5, %v3299_v6  ;;  %v3394_v52 = vld [vmem:[%s17046_s16 + $0x2820] sm:$0xff]  ;;  %v3383_v34 = vld [vmem:[%s17046_s16 + $0x27c8] sm:$0xff] }
 0x57f   : > { %v14843_v27 = vcombine.low %v3287_v5, %v3299_v6  ;;  %v3395_v9 = vld [vmem:[%s17046_s16 + $0x2828] sm:$0xff] }
 0x580   : > { %v3431_v5 = vld [vmem:[%s17046_s16 + $0x2948] sm:$0xff] }
 0x581   : > { %11559 = vmatpush1.bf16.msra.mxu0 %v14721_v21  ;;  %11723 = vmatpush1.bf16.msra.mxu1 %v14723_v22  ;;  %v3322_v21 = vld [vmem:[%s17046_s16 + $0x25e0] sm:$0xff]  ;;  %v3311_v22 = vld [vmem:[%s17046_s16 + $0x2588] sm:$0xff] }
 0x582   : > { %11560 = vmatprep.subr.bf16.mxu0 %v14746_v23  ;;  %11724 = vmatprep.subr.bf16.mxu1 %v14748_v24  ;;  %v3323_v23 = vld [vmem:[%s17046_s16 + $0x25e8] sm:$0xff]  ;;  %v14866_v53 = vcombine.high %v3310_v18, %v3322_v21  ;;  %v14865_v37 = vcombine.low %v3310_v18, %v3322_v21  ;;  %v3466_v21 = vld [vmem:[%s17046_s16 + $0x2a60] sm:$0xff] }
 0x583   : > { %v14868_v28 = vcombine.high %v3311_v22, %v3323_v23  ;;  %v14867_v38 = vcombine.low %v3311_v22, %v3323_v23  ;;  %v3443_v6 = vld [vmem:[%s17046_s16 + $0x29a8] sm:$0xff] }
 0x584   : > { %v3455_v22 = vld [vmem:[%s17046_s16 + $0x2a08] sm:$0xff] }
 0x585   : > { %11561 = vmatpush1.bf16.msra.mxu0 %v14745_v31  ;;  %11725 = vmatpush1.bf16.msra.mxu1 %v14747_v32  ;;  %v3334_v31 = vld [vmem:[%s17046_s16 + $0x2640] sm:$0xff]  ;;  %v3467_v23 = vld [vmem:[%s17046_s16 + $0x2a68] sm:$0xff] }
 0x586   : > { %11562 = vmatprep.subr.bf16.mxu0 %v14770_v1  ;;  %11726 = vmatprep.subr.bf16.mxu1 %v14772_v33  ;;  %v3346_v32 = vld [vmem:[%s17046_s16 + $0x26a0] sm:$0xff]  ;;  %v3335_v1 = vld [vmem:[%s17046_s16 + $0x2648] sm:$0xff] }
 0x587   : > { %v1947_v51 = vpop.f32.mrb[6].mxu0  ;;  %v3347_v33 = vld [vmem:[%s17046_s16 + $0x26a8] sm:$0xff]  ;;  %v14890_v39 = vcombine.high %v3334_v31, %v3346_v32 }
 0x588   : > { %v15848_v54 = vadd.f32 %v1947_v51, %v1505_v41  ;;  %v17347_v55 = vpop.f32.mrb[6].mxu1  ;;  %v1949_v56 = vpop.f32.mrb[7].mxu0  ;;  %v14892_v40 = vcombine.high %v3335_v1, %v3347_v33  ;;  %v3358_v41 = vld [vmem:[%s17046_s16 + $0x2700] sm:$0xff] }
 0x589   : > { %v15849_v57 = vadd.f32 %v1949_v56, %v1509_v45  ;;  %v2091_v58 = vpop.f32.mrb[7].mxu1  ;;  %11563 = vmatpush1.bf16.msra.mxu0 %v14769_v42  ;;  %11727 = vmatpush1.bf16.msra.mxu1 %v14771_v44  ;;  %v3370_v42 = vld [vmem:[%s17046_s16 + $0x2760] sm:$0xff]  ;;  %v3359_v44 = vld [vmem:[%s17046_s16 + $0x2708] sm:$0xff] }
 0x58a   : > { %v2098_v43 = vmax.f32 %v15848_v54, 0.0  ;;  %v15851_v59 = vadd.f32 %v2091_v58, %v1517_v46  ;;  %11564 = vmatprep.subr.bf16.mxu0 %v14794_v47  ;;  %11728 = vmatprep.subr.bf16.mxu1 %v14796_v48  ;;  %v3371_v45 = vld [vmem:[%s17046_s16 + $0x2768] sm:$0xff]  ;;  %v14889_v46 = vcombine.low %v3334_v31, %v3346_v32  ;;  %v14891_v47 = vcombine.low %v3335_v1, %v3347_v33  ;;  %v3382_v51 = vld [vmem:[%s17046_s16 + $0x27c0] sm:$0xff] }
 0x58b   : > { %v2099_v16 = vmax.f32 %v15849_v57, 0.0  ;;  %v14914_v48 = vcombine.high %v3358_v41, %v3370_v42  ;;  %v14916_v49 = vcombine.high %v3359_v44, %v3371_v45  ;;  %v14913_v54 = vcombine.low %v3358_v41, %v3370_v42  ;;  %v3478_v31 = vld [vmem:[%s17046_s16 + $0x2ac0] sm:$0xff]  ;;  %v3479_v1 = vld [vmem:[%s17046_s16 + $0x2ac8] sm:$0xff] }
 0x58c   : > { %v2101_v2 = vmax.f32 %v15851_v59, 0.0  ;;  %v17355_v15 = vpack.c.bf16 %v2098_v43, %v2098_v43  ;;  %v14915_v56 = vcombine.low %v3359_v44, %v3371_v45  ;;  %v14938_v57 = vcombine.high %v3382_v51, %v3394_v52  ;;  %v3407_v43 = vld [vmem:[%s17046_s16 + $0x2888] sm:$0xff]  ;;  %v3490_v32 = vld [vmem:[%s17046_s16 + $0x2b20] sm:$0xff] }
 0x58d   : > { %v17353_v12 = vpack.c.bf16 %v2099_v16, %v2099_v16  ;;  %11565 = vmatpush1.bf16.msra.mxu0 %v14793_v50  ;;  %11729 = vmatpush1.bf16.msra.mxu1 %v14795_v62  ;;  %v14940_v58 = vcombine.high %v3383_v34, %v3395_v9  ;;  %v3406_v50 = vld [vmem:[%s17046_s16 + $0x2880] sm:$0xff]  ;;  %v3419_v59 = vld [vmem:[%s17046_s16 + $0x28e8] sm:$0xff] }
 0x58e   : > { %11575 = vmatprep.subr.bf16.mxu0 %v14818_v60  ;;  %11739 = vmatprep.subr.bf16.mxu1 %v14820_v61  ;;  %v17363_v24 = vpack.c.bf16 %v2101_v2, %v2101_v2  ;;  %v3418_v62 = vld [vmem:[%s17046_s16 + $0x28e0] sm:$0xff]  ;;  %v14937_v60 = vcombine.low %v3382_v51, %v3394_v52  ;;  %v14939_v61 = vcombine.low %v3383_v34, %v3395_v9  ;;  %v3491_v33 = vld [vmem:[%s17046_s16 + $0x2b28] sm:$0xff] }
 0x58f   : > { %11566 = vmatprep.mubr.bf16.mxu0 %v17353_v12  ;;  %11730 = vmatprep.mubr.bf16.mxu1 %v17353_v12  ;;  %v14962_v16 = vcombine.high %v3406_v50, %v3418_v62  ;;  %v14964_v63 = vcombine.high %v3407_v43, %v3419_v59  ;;  %v3430_v2 = vld [vmem:[%s17046_s16 + $0x2940] sm:$0xff]  ;;  %v3503_v44 = vld [vmem:[%s17046_s16 + $0x2b88] sm:$0xff] }
 0x590   : > { %11567 = vmatmul.mubr.bf16.vlgmr.msra.gmra.mrb[8].mxu0 %v17355_v15  ;;  %11731 = vmatmul.mubr.bf16.vlgmr.msra.gmra.mrb[8].mxu1 %v17355_v15  ;;  %v14986_v18 = vcombine.high %v3430_v2, %v3442_v3  ;;  %v3502_v41 = vld [vmem:[%s17046_s16 + $0x2b80] sm:$0xff]  ;;  %v3515_v45 = vld [vmem:[%s17046_s16 + $0x2be8] sm:$0xff] }
 0x591   : > { %11576 = vmatpush1.bf16.msra.mxu0 %v14817_v13  ;;  %11740 = vmatpush1.bf16.msra.mxu1 %v14819_v14  ;;  %v14961_v13 = vcombine.low %v3406_v50, %v3418_v62  ;;  %v14963_v14 = vcombine.low %v3407_v43, %v3419_v59  ;;  %v3514_v42 = vld [vmem:[%s17046_s16 + $0x2be0] sm:$0xff]  ;;  %v3527_v34 = vld [vmem:[%s17046_s16 + $0x2c48] sm:$0xff] }
 0x592   : > { %11607 = vmatprep.mubr.bf16.mxu0 %v17363_v24  ;;  %11771 = vmatprep.mubr.bf16.mxu1 %v17363_v24  ;;  %v3526_v51 = vld [vmem:[%s17046_s16 + $0x2c40] sm:$0xff]  ;;  %v3539_v9 = vld [vmem:[%s17046_s16 + $0x2ca8] sm:$0xff] }
 0x593   : > { %11577 = vmatprep.subr.bf16.mxu0 %v14842_v19  ;;  %11741 = vmatprep.subr.bf16.mxu1 %v14844_v20  ;;  %v14988_v19 = vcombine.high %v3431_v5, %v3443_v6  ;;  %v3454_v20 = vld [vmem:[%s17046_s16 + $0x2a00] sm:$0xff]  ;;  %v3551_v43 = vld [vmem:[%s17046_s16 + $0x2d08] sm:$0xff] }
 0x594   : > { %v3538_v52 = vld [vmem:[%s17046_s16 + $0x2ca0] sm:$0xff]  ;;  %v3563_v59 = vld [vmem:[%s17046_s16 + $0x2d68] sm:$0xff] }
 0x595   : > { %11578 = vmatpush1.bf16.msra.mxu0 %v14841_v26  ;;  %11742 = vmatpush1.bf16.msra.mxu1 %v14843_v27  ;;  %v14985_v26 = vcombine.low %v3430_v2, %v3442_v3  ;;  %v14987_v27 = vcombine.low %v3431_v5, %v3443_v6  ;;  %v3550_v50 = vld [vmem:[%s17046_s16 + $0x2d00] sm:$0xff]  ;;  %v3575_v5 = vld [vmem:[%s17046_s16 + $0x2dc8] sm:$0xff] }
 0x596   : > { %11579 = vmatprep.subr.bf16.mxu0 %v14866_v53  ;;  %11743 = vmatprep.subr.bf16.mxu1 %v14868_v28  ;;  %v15010_v53 = vcombine.high %v3454_v20, %v3466_v21  ;;  %v15012_v28 = vcombine.high %v3455_v22, %v3467_v23  ;;  %v3562_v62 = vld [vmem:[%s17046_s16 + $0x2d60] sm:$0xff]  ;;  %v3587_v6 = vld [vmem:[%s17046_s16 + $0x2e28] sm:$0xff] }
 0x597   : > { %v3574_v2 = vld [vmem:[%s17046_s16 + $0x2dc0] sm:$0xff] }
 0x598   : > { %v3586_v3 = vld [vmem:[%s17046_s16 + $0x2e20] sm:$0xff] }
 0x599   : > { %11580 = vmatpush1.bf16.msra.mxu0 %v14865_v37  ;;  %11744 = vmatpush1.bf16.msra.mxu1 %v14867_v38  ;;  %v15009_v37 = vcombine.low %v3454_v20, %v3466_v21  ;;  %v15011_v38 = vcombine.low %v3455_v22, %v3467_v23  ;;  %v15132_v20 = vcombine.high %v3575_v5, %v3587_v6  ;;  %v3598_v21 = vld [vmem:[%s17046_s16 + $0x2e80] sm:$0xff]  ;;  %v3599_v23 = vld [vmem:[%s17046_s16 + $0x2e88] sm:$0xff] }
 0x59a   : > { %11581 = vmatprep.subr.bf16.mxu0 %v14890_v39  ;;  %11745 = vmatprep.subr.bf16.mxu1 %v14892_v40  ;;  %v15034_v39 = vcombine.high %v3478_v31, %v3490_v32  ;;  %v15036_v40 = vcombine.high %v3479_v1, %v3491_v33  ;;  %v3610_v22 = vld [vmem:[%s17046_s16 + $0x2ee0] sm:$0xff] }
 0x59d   : > { %11582 = vmatpush1.bf16.msra.mxu0 %v14889_v46  ;;  %11746 = vmatpush1.bf16.msra.mxu1 %v14891_v47  ;;  %v15033_v46 = vcombine.low %v3478_v31, %v3490_v32  ;;  %v15035_v47 = vcombine.low %v3479_v1, %v3491_v33  ;;  %v15154_v31 = vcombine.high %v3598_v21, %v3610_v22  ;;  %v3622_v1 = vld [vmem:[%s17046_s16 + $0x2f40] sm:$0xff] }
 0x59e   : > { %11583 = vmatprep.subr.bf16.mxu0 %v14914_v48  ;;  %11747 = vmatprep.subr.bf16.mxu1 %v14916_v49  ;;  %v15058_v48 = vcombine.high %v3502_v41, %v3514_v42  ;;  %v15060_v49 = vcombine.high %v3503_v44, %v3515_v45  ;;  %v3634_v33 = vld [vmem:[%s17046_s16 + $0x2fa0] sm:$0xff] }
 0x5a1   : > { %11584 = vmatpush1.bf16.msra.mxu0 %v14913_v54  ;;  %11748 = vmatpush1.bf16.msra.mxu1 %v14915_v56  ;;  %v15057_v54 = vcombine.low %v3502_v41, %v3514_v42  ;;  %v15059_v56 = vcombine.low %v3503_v44, %v3515_v45  ;;  %v15178_v42 = vcombine.high %v3622_v1, %v3634_v33  ;;  %v2112_v45 = vld [vmem:[%s17046_s16 + $0x10] sm:$0xff] }
 0x5a2   : > { %11585 = vmatprep.subr.bf16.mxu0 %v14938_v57  ;;  %11749 = vmatprep.subr.bf16.mxu1 %v14940_v58  ;;  %v15082_v57 = vcombine.high %v3526_v51, %v3538_v52  ;;  %v15084_v58 = vcombine.high %v3527_v34, %v3539_v9 }
 0x5a5   : > { %11586 = vmatpush1.bf16.msra.mxu0 %v14937_v60  ;;  %11750 = vmatpush1.bf16.msra.mxu1 %v14939_v61  ;;  %v15081_v60 = vcombine.low %v3526_v51, %v3538_v52  ;;  %v15083_v61 = vcombine.low %v3527_v34, %v3539_v9  ;;  %v2136_v9 = vld [vmem:[%s17046_s16 + $0xd0] sm:$0xff] }
 0x5a6   : > { %11587 = vmatprep.subr.bf16.mxu0 %v14962_v16  ;;  %11751 = vmatprep.subr.bf16.mxu1 %v14964_v63  ;;  %v15106_v16 = vcombine.high %v3550_v50, %v3562_v62  ;;  %v15108_v63 = vcombine.high %v3551_v43, %v3563_v59 }
 0x5a9   : > { %11588 = vmatpush1.bf16.msra.mxu0 %v14961_v13  ;;  %11752 = vmatpush1.bf16.msra.mxu1 %v14963_v14  ;;  %v15105_v13 = vcombine.low %v3550_v50, %v3562_v62  ;;  %v15107_v14 = vcombine.low %v3551_v43, %v3563_v59 }
 0x5aa   : > { %11589 = vmatprep.subr.bf16.mxu0 %v14986_v18  ;;  %11753 = vmatprep.subr.bf16.mxu1 %v14988_v19  ;;  %v17414_v18 = vsub.s32 6, %v17056_v7  ;;  %v15130_v19 = vcombine.high %v3574_v2, %v3586_v3 }
 0x5ad   : > { %11590 = vmatpush1.bf16.msra.mxu0 %v14985_v26  ;;  %11754 = vmatpush1.bf16.msra.mxu1 %v14987_v27  ;;  %v3611_v26 = vld [vmem:[%s17046_s16 + $0x2ee8] sm:$0xff]  ;;  %v15129_v27 = vcombine.low %v3574_v2, %v3586_v3 }
 0x5ae   : > { %11591 = vmatprep.subr.bf16.mxu0 %v15010_v53  ;;  %11755 = vmatprep.subr.bf16.mxu1 %v15012_v28  ;;  %v15131_v53 = vcombine.low %v3575_v5, %v3587_v6  ;;  %v16187_v28 = vld [vmem:[#allocation16] sm:$0xff]  ;;  %v15156_v32 = vcombine.high %v3599_v23, %v3611_v26 }
 0x5af   : > { %v1513_v7 = vrot.slane %v16187_v28, %v17414_v18  ;;  %v2209_v28 = vld [vmem:[%s17046_s16 + $0x318] sm:$0xff] }
 0x5b1   : > { %11592 = vmatpush1.bf16.msra.mxu0 %v15009_v37  ;;  %11756 = vmatpush1.bf16.msra.mxu1 %v15011_v38  ;;  %v3623_v37 = vld [vmem:[%s17046_s16 + $0x2f48] sm:$0xff]  ;;  %v15850_v41 = vadd.f32 %v17347_v55, %v1513_v7  ;;  %v2221_v7 = vld [vmem:[%s17046_s16 + $0x378] sm:$0xff] }
 0x5b2   : > { %11593 = vmatprep.subr.bf16.mxu0 %v15034_v39  ;;  %11757 = vmatprep.subr.bf16.mxu1 %v15036_v40  ;;  %v3635_v38 = vld [vmem:[%s17046_s16 + $0x2fa8] sm:$0xff]  ;;  %v15153_v39 = vcombine.low %v3598_v21, %v3610_v22  ;;  %v15155_v40 = vcombine.low %v3599_v23, %v3611_v26 }
 0x5b3   : > { %v15180_v44 = vcombine.high %v3623_v37, %v3635_v38  ;;  %v15179_v51 = vcombine.low %v3623_v37, %v3635_v38  ;;  %v2100_v52 = vmax.f32 %v15850_v41, 0.0  ;;  %v2232_v37 = vld [vmem:[%s17046_s16 + $0x3d0] sm:$0xff] }
 0x5b4   : > { %v2244_v38 = vld [vmem:[%s17046_s16 + $0x430] sm:$0xff] }
 0x5b5   : > { %11594 = vmatpush1.bf16.msra.mxu0 %v15033_v46  ;;  %11758 = vmatpush1.bf16.msra.mxu1 %v15035_v47  ;;  %v2124_v46 = vld [vmem:[%s17046_s16 + $0x70] sm:$0xff]  ;;  %v2113_v47 = vld [vmem:[%s17046_s16 + $0x18] sm:$0xff]  ;;  %v17434_v50 = vpack.c.bf16 %v2100_v52, %v2100_v52 }
 0x5b6   : > { %11595 = vmatprep.subr.bf16.mxu0 %v15058_v48  ;;  %11759 = vmatprep.subr.bf16.mxu1 %v15060_v49  ;;  %v2125_v48 = vld [vmem:[%s17046_s16 + $0x78] sm:$0xff]  ;;  %v15177_v49 = vcombine.low %v3622_v1, %v3634_v33  ;;  %v13670_v55 = vcombine.high %v2112_v45, %v2124_v46  ;;  %v13768_v33 = vcombine.high %v2209_v28, %v2221_v7 }
 0x5b7   : > { %v13672_v34 = vcombine.high %v2113_v47, %v2125_v48  ;;  %v13671_v62 = vcombine.low %v2113_v47, %v2125_v48  ;;  %v2268_v47 = vld [vmem:[%s17046_s16 + $0x4f0] sm:$0xff]  ;;  %v2257_v48 = vld [vmem:[%s17046_s16 + $0x498] sm:$0xff] }
 0x5b9   : > { %11596 = vmatpush1.bf16.msra.mxu0 %v15057_v54  ;;  %11760 = vmatpush1.bf16.msra.mxu1 %v15059_v56  ;;  %v2148_v54 = vld [vmem:[%s17046_s16 + $0x130] sm:$0xff]  ;;  %v2137_v56 = vld [vmem:[%s17046_s16 + $0xd8] sm:$0xff] }
 0x5ba   : > { %11597 = vmatprep.subr.bf16.mxu0 %v15082_v57  ;;  %11761 = vmatprep.subr.bf16.mxu1 %v15084_v58  ;;  %v2149_v57 = vld [vmem:[%s17046_s16 + $0x138] sm:$0xff]  ;;  %v13669_v58 = vcombine.low %v2112_v45, %v2124_v46  ;;  %v13694_v43 = vcombine.high %v2136_v9, %v2148_v54  ;;  %v13693_v2 = vcombine.low %v2136_v9, %v2148_v54  ;;  %v2256_v46 = vld [vmem:[%s17046_s16 + $0x490] sm:$0xff] }
 0x5bb   : > { %v13696_v59 = vcombine.high %v2137_v56, %v2149_v57  ;;  %v13695_v3 = vcombine.low %v2137_v56, %v2149_v57  ;;  %v2280_v9 = vld [vmem:[%s17046_s16 + $0x550] sm:$0xff]  ;;  %v2281_v56 = vld [vmem:[%s17046_s16 + $0x558] sm:$0xff] }
 0x5bc   : > { %v2292_v54 = vld [vmem:[%s17046_s16 + $0x5b0] sm:$0xff]  ;;  %v2293_v57 = vld [vmem:[%s17046_s16 + $0x5b8] sm:$0xff] }
 0x5bd   : > { %11598 = vmatpush1.bf16.msra.mxu0 %v15081_v60  ;;  %11762 = vmatpush1.bf16.msra.mxu1 %v15083_v61  ;;  %v2160_v60 = vld [vmem:[%s17046_s16 + $0x190] sm:$0xff] }
 0x5be   : > { %11599 = vmatprep.subr.bf16.mxu0 %v15106_v16  ;;  %11763 = vmatprep.subr.bf16.mxu1 %v15108_v63  ;;  %v2172_v61 = vld [vmem:[%s17046_s16 + $0x1f0] sm:$0xff]  ;;  %v2161_v16 = vld [vmem:[%s17046_s16 + $0x198] sm:$0xff] }
 0x5bf   : > { %v2173_v63 = vld [vmem:[%s17046_s16 + $0x1f8] sm:$0xff]  ;;  %v13718_v5 = vcombine.high %v2160_v60, %v2172_v61  ;;  %v13717_v21 = vcombine.low %v2160_v60, %v2172_v61  ;;  %v2304_v60 = vld [vmem:[%s17046_s16 + $0x610] sm:$0xff] }
 0x5c0   : > { %v13720_v6 = vcombine.high %v2161_v16, %v2173_v63  ;;  %v13719_v22 = vcombine.low %v2161_v16, %v2173_v63  ;;  %v2316_v61 = vld [vmem:[%s17046_s16 + $0x670] sm:$0xff]  ;;  %v2305_v16 = vld [vmem:[%s17046_s16 + $0x618] sm:$0xff] }
 0x5c1   : > { %11600 = vmatpush1.bf16.msra.mxu0 %v15105_v13  ;;  %11764 = vmatpush1.bf16.msra.mxu1 %v15107_v14  ;;  %v2184_v13 = vld [vmem:[%s17046_s16 + $0x250] sm:$0xff]  ;;  %v2317_v63 = vld [vmem:[%s17046_s16 + $0x678] sm:$0xff] }
 0x5c2   : > { %11601 = vmatprep.subr.bf16.mxu0 %v15130_v19  ;;  %11765 = vmatprep.subr.bf16.mxu1 %v15132_v20  ;;  %v2196_v14 = vld [vmem:[%s17046_s16 + $0x2b0] sm:$0xff]  ;;  %v2185_v19 = vld [vmem:[%s17046_s16 + $0x258] sm:$0xff] }
 0x5c3   : > { %v2197_v20 = vld [vmem:[%s17046_s16 + $0x2b8] sm:$0xff]  ;;  %v13742_v23 = vcombine.high %v2184_v13, %v2196_v14 }
 0x5c4   : > { %v13744_v26 = vcombine.high %v2185_v19, %v2197_v20 }
 0x5c5   : > { %11602 = vmatpush1.bf16.msra.mxu0 %v15129_v27  ;;  %11766 = vmatpush1.bf16.msra.mxu1 %v15131_v53  ;;  %v2208_v27 = vld [vmem:[%s17046_s16 + $0x310] sm:$0xff] }
 0x5c6   : > { %11603 = vmatprep.subr.bf16.mxu0 %v15154_v31  ;;  %11767 = vmatprep.subr.bf16.mxu1 %v15156_v32  ;;  %v2220_v53 = vld [vmem:[%s17046_s16 + $0x370] sm:$0xff]  ;;  %v13741_v31 = vcombine.low %v2184_v13, %v2196_v14  ;;  %v13743_v32 = vcombine.low %v2185_v19, %v2197_v20  ;;  %v2329_v19 = vld [vmem:[%s17046_s16 + $0x6d8] sm:$0xff] }
 0x5c7   : > { %v13766_v1 = vcombine.high %v2208_v27, %v2220_v53  ;;  %v13765_v41 = vcombine.low %v2208_v27, %v2220_v53  ;;  %v2328_v13 = vld [vmem:[%s17046_s16 + $0x6d0] sm:$0xff]  ;;  %v2341_v20 = vld [vmem:[%s17046_s16 + $0x738] sm:$0xff] }
 0x5c8   : > { %v2340_v14 = vld [vmem:[%s17046_s16 + $0x730] sm:$0xff] }
 0x5c9   : > { %11604 = vmatpush1.bf16.msra.mxu0 %v15153_v39  ;;  %11768 = vmatpush1.bf16.msra.mxu1 %v15155_v40  ;;  %v2233_v39 = vld [vmem:[%s17046_s16 + $0x3d8] sm:$0xff]  ;;  %v2352_v27 = vld [vmem:[%s17046_s16 + $0x790] sm:$0xff] }
 0x5ca   : > { %11605 = vmatprep.subr.bf16.mxu0 %v15178_v42  ;;  %11769 = vmatprep.subr.bf16.mxu1 %v15180_v44  ;;  %v2245_v40 = vld [vmem:[%s17046_s16 + $0x438] sm:$0xff]  ;;  %v13767_v42 = vcombine.low %v2209_v28, %v2221_v7  ;;  %v13790_v44 = vcombine.high %v2232_v37, %v2244_v38  ;;  %v2364_v53 = vld [vmem:[%s17046_s16 + $0x7f0] sm:$0xff] }
 0x5cb   : > { %v13792_v45 = vcombine.high %v2233_v39, %v2245_v40  ;;  %v13791_v52 = vcombine.low %v2233_v39, %v2245_v40  ;;  %v2353_v28 = vld [vmem:[%s17046_s16 + $0x798] sm:$0xff] }
 0x5cc   : > { %v2365_v7 = vld [vmem:[%s17046_s16 + $0x7f8] sm:$0xff] }
 0x5cd   : > { %11606 = vmatpush1.bf16.msra.mxu0 %v15177_v49  ;;  %11770 = vmatpush1.bf16.msra.mxu1 %v15179_v51  ;;  %v2269_v49 = vld [vmem:[%s17046_s16 + $0x4f8] sm:$0xff]  ;;  %v13789_v51 = vcombine.low %v2232_v37, %v2244_v38  ;;  %v2376_v37 = vld [vmem:[%s17046_s16 + $0x850] sm:$0xff] }
 0x5ce   : > { %11780 = vmatprep.subr.bf16.mxu0 %v13670_v55  ;;  %11944 = vmatprep.subr.bf16.mxu1 %v13672_v34  ;;  %v13814_v55 = vcombine.high %v2256_v46, %v2268_v47  ;;  %v13816_v34 = vcombine.high %v2257_v48, %v2269_v49  ;;  %v2388_v38 = vld [vmem:[%s17046_s16 + $0x8b0] sm:$0xff]  ;;  %v2377_v39 = vld [vmem:[%s17046_s16 + $0x858] sm:$0xff] }
 0x5cf   : > { %v2389_v40 = vld [vmem:[%s17046_s16 + $0x8b8] sm:$0xff] }
 0x5d0   : > { %11608 = vmatmul.mubr.bf16.vlgmr.msra.gmra.mrb[8].mxu0 %v17434_v50  ;;  %11772 = vmatmul.mubr.bf16.vlgmr.msra.gmra.mrb[8].mxu1 %v17434_v50 }
 0x5d1   : > { %11781 = vmatpush1.bf16.msra.mxu0 %v13669_v58  ;;  %11812 = vmatprep.mubr.bf16.mxu0 %v17189_v0  ;;  %v13813_v58 = vcombine.low %v2256_v46, %v2268_v47  ;;  %v2400_v46 = vld [vmem:[%s17046_s16 + $0x910] sm:$0xff] }
 0x5d2   : > { %11945 = vmatpush1.bf16.msra.mxu1 %v13671_v62  ;;  %11976 = vmatprep.mubr.bf16.mxu1 %v17189_v0  ;;  %v13815_v62 = vcombine.low %v2257_v48, %v2269_v49  ;;  %v2412_v47 = vld [vmem:[%s17046_s16 + $0x970] sm:$0xff]  ;;  %v2401_v48 = vld [vmem:[%s17046_s16 + $0x918] sm:$0xff] }
 0x5d3   : > { %11782 = vmatprep.subr.bf16.mxu0 %v13694_v43  ;;  %11946 = vmatprep.subr.bf16.mxu1 %v13696_v59  ;;  %v13838_v43 = vcombine.high %v2280_v9, %v2292_v54  ;;  %v13840_v59 = vcombine.high %v2281_v56, %v2293_v57  ;;  %v2413_v49 = vld [vmem:[%s17046_s16 + $0x978] sm:$0xff] }
 0x5d5   : > { %11783 = vmatpush1.bf16.msra.mxu0 %v13693_v2  ;;  %v13837_v2 = vcombine.low %v2280_v9, %v2292_v54  ;;  %v2424_v9 = vld [vmem:[%s17046_s16 + $0x9d0] sm:$0xff] }
 0x5d6   : > { %11947 = vmatpush1.bf16.msra.mxu1 %v13695_v3  ;;  %11784 = vmatprep.subr.bf16.mxu0 %v13718_v5  ;;  %v13839_v3 = vcombine.low %v2281_v56, %v2293_v57  ;;  %v13862_v5 = vcombine.high %v2304_v60, %v2316_v61  ;;  %v2436_v54 = vld [vmem:[%s17046_s16 + $0xa30] sm:$0xff]  ;;  %v2425_v56 = vld [vmem:[%s17046_s16 + $0x9d8] sm:$0xff] }
 0x5d7   : > { %11948 = vmatprep.subr.bf16.mxu1 %v13720_v6  ;;  %v13864_v6 = vcombine.high %v2305_v16, %v2317_v63  ;;  %v2437_v57 = vld [vmem:[%s17046_s16 + $0xa38] sm:$0xff] }
 0x5d9   : > { %11785 = vmatpush1.bf16.msra.mxu0 %v13717_v21  ;;  %v13861_v21 = vcombine.low %v2304_v60, %v2316_v61  ;;  %v2448_v60 = vld [vmem:[%s17046_s16 + $0xa90] sm:$0xff] }
 0x5da   : > { %11949 = vmatpush1.bf16.msra.mxu1 %v13719_v22  ;;  %11786 = vmatprep.subr.bf16.mxu0 %v13742_v23  ;;  %v13863_v22 = vcombine.low %v2305_v16, %v2317_v63  ;;  %v13886_v23 = vcombine.high %v2328_v13, %v2340_v14  ;;  %v2460_v61 = vld [vmem:[%s17046_s16 + $0xaf0] sm:$0xff]  ;;  %v2449_v16 = vld [vmem:[%s17046_s16 + $0xa98] sm:$0xff] }
 0x5db   : > { %11950 = vmatprep.subr.bf16.mxu1 %v13744_v26  ;;  %v13888_v26 = vcombine.high %v2329_v19, %v2341_v20  ;;  %v2461_v63 = vld [vmem:[%s17046_s16 + $0xaf8] sm:$0xff] }
 0x5dd   : > { %11787 = vmatpush1.bf16.msra.mxu0 %v13741_v31  ;;  %v13885_v31 = vcombine.low %v2328_v13, %v2340_v14  ;;  %v2472_v13 = vld [vmem:[%s17046_s16 + $0xb50] sm:$0xff] }
 0x5de   : > { %11951 = vmatpush1.bf16.msra.mxu1 %v13743_v32  ;;  %11788 = vmatprep.subr.bf16.mxu0 %v13766_v1  ;;  %v13887_v32 = vcombine.low %v2329_v19, %v2341_v20  ;;  %v13910_v1 = vcombine.high %v2352_v27, %v2364_v53  ;;  %v2484_v14 = vld [vmem:[%s17046_s16 + $0xbb0] sm:$0xff]  ;;  %v2473_v19 = vld [vmem:[%s17046_s16 + $0xb58] sm:$0xff] }
 0x5df   : > { %11952 = vmatprep.subr.bf16.mxu1 %v13768_v33  ;;  %v13912_v33 = vcombine.high %v2353_v28, %v2365_v7  ;;  %v2485_v20 = vld [vmem:[%s17046_s16 + $0xbb8] sm:$0xff] }
 0x5e1   : > { %11789 = vmatpush1.bf16.msra.mxu0 %v13765_v41  ;;  %v13909_v41 = vcombine.low %v2352_v27, %v2364_v53  ;;  %v2496_v27 = vld [vmem:[%s17046_s16 + $0xc10] sm:$0xff] }
 0x5e2   : > { %11953 = vmatpush1.bf16.msra.mxu1 %v13767_v42  ;;  %11790 = vmatprep.subr.bf16.mxu0 %v13790_v44  ;;  %v13911_v42 = vcombine.low %v2353_v28, %v2365_v7  ;;  %v13934_v44 = vcombine.high %v2376_v37, %v2388_v38  ;;  %v2508_v53 = vld [vmem:[%s17046_s16 + $0xc70] sm:$0xff]  ;;  %v2497_v28 = vld [vmem:[%s17046_s16 + $0xc18] sm:$0xff] }
 0x5e3   : > { %11954 = vmatprep.subr.bf16.mxu1 %v13792_v45  ;;  %v13936_v45 = vcombine.high %v2377_v39, %v2389_v40  ;;  %v2509_v7 = vld [vmem:[%s17046_s16 + $0xc78] sm:$0xff] }
 0x5e5   : > { %11791 = vmatpush1.bf16.msra.mxu0 %v13789_v51  ;;  %v13933_v51 = vcombine.low %v2376_v37, %v2388_v38  ;;  %v2520_v37 = vld [vmem:[%s17046_s16 + $0xcd0] sm:$0xff] }
 0x5e6   : > { %11955 = vmatpush1.bf16.msra.mxu1 %v13791_v52  ;;  %11792 = vmatprep.subr.bf16.mxu0 %v13814_v55  ;;  %v13935_v52 = vcombine.low %v2377_v39, %v2389_v40  ;;  %v13958_v55 = vcombine.high %v2400_v46, %v2412_v47  ;;  %v2532_v38 = vld [vmem:[%s17046_s16 + $0xd30] sm:$0xff]  ;;  %v14053_v39 = vcombine.low %v2496_v27, %v2508_v53  ;;  %v2521_v40 = vld [vmem:[%s17046_s16 + $0xcd8] sm:$0xff] }
 0x5e7   : > { %11956 = vmatprep.subr.bf16.mxu1 %v13816_v34  ;;  %v13960_v34 = vcombine.high %v2401_v48, %v2413_v49 }
 0x5e9   : > { %11793 = vmatpush1.bf16.msra.mxu0 %v13813_v58  ;;  %v13957_v58 = vcombine.low %v2400_v46, %v2412_v47  ;;  %v2556_v46 = vld [vmem:[%s17046_s16 + $0xdf0] sm:$0xff] }
 0x5ea   : > { %11957 = vmatpush1.bf16.msra.mxu1 %v13815_v62  ;;  %11794 = vmatprep.subr.bf16.mxu0 %v13838_v43  ;;  %v13959_v62 = vcombine.low %v2401_v48, %v2413_v49  ;;  %v13982_v43 = vcombine.high %v2424_v9, %v2436_v54  ;;  %v2545_v48 = vld [vmem:[%s17046_s16 + $0xd98] sm:$0xff] }
 0x5eb   : > { %11958 = vmatprep.subr.bf16.mxu1 %v13840_v59  ;;  %v13984_v59 = vcombine.high %v2425_v56, %v2437_v57  ;;  %v2557_v49 = vld [vmem:[%s17046_s16 + $0xdf8] sm:$0xff] }
 0x5ed   : > { %11795 = vmatpush1.bf16.msra.mxu0 %v13837_v2  ;;  %v13981_v2 = vcombine.low %v2424_v9, %v2436_v54  ;;  %v2568_v9 = vld [vmem:[%s17046_s16 + $0xe50] sm:$0xff] }
 0x5ee   : > { %11959 = vmatpush1.bf16.msra.mxu1 %v13839_v3  ;;  %11796 = vmatprep.subr.bf16.mxu0 %v13862_v5  ;;  %v13983_v3 = vcombine.low %v2425_v56, %v2437_v57  ;;  %v14006_v5 = vcombine.high %v2448_v60, %v2460_v61  ;;  %v2580_v54 = vld [vmem:[%s17046_s16 + $0xeb0] sm:$0xff]  ;;  %v2569_v56 = vld [vmem:[%s17046_s16 + $0xe58] sm:$0xff] }
 0x5ef   : > { %11960 = vmatprep.subr.bf16.mxu1 %v13864_v6  ;;  %v14008_v6 = vcombine.high %v2449_v16, %v2461_v63  ;;  %v2581_v57 = vld [vmem:[%s17046_s16 + $0xeb8] sm:$0xff] }
 0x5f1   : > { %11797 = vmatpush1.bf16.msra.mxu0 %v13861_v21  ;;  %v14005_v21 = vcombine.low %v2448_v60, %v2460_v61  ;;  %v2592_v60 = vld [vmem:[%s17046_s16 + $0xf10] sm:$0xff] }
 0x5f2   : > { %11961 = vmatpush1.bf16.msra.mxu1 %v13863_v22  ;;  %11798 = vmatprep.subr.bf16.mxu0 %v13886_v23  ;;  %v14007_v22 = vcombine.low %v2449_v16, %v2461_v63  ;;  %v14030_v23 = vcombine.high %v2472_v13, %v2484_v14  ;;  %v2604_v61 = vld [vmem:[%s17046_s16 + $0xf70] sm:$0xff]  ;;  %v2593_v16 = vld [vmem:[%s17046_s16 + $0xf18] sm:$0xff] }
 0x5f3   : > { %11962 = vmatprep.subr.bf16.mxu1 %v13888_v26  ;;  %v14032_v26 = vcombine.high %v2473_v19, %v2485_v20  ;;  %v2605_v63 = vld [vmem:[%s17046_s16 + $0xf78] sm:$0xff] }
 0x5f5   : > { %11799 = vmatpush1.bf16.msra.mxu0 %v13885_v31  ;;  %v14029_v31 = vcombine.low %v2472_v13, %v2484_v14  ;;  %v2616_v13 = vld [vmem:[%s17046_s16 + $0xfd0] sm:$0xff] }
 0x5f6   : > { %11963 = vmatpush1.bf16.msra.mxu1 %v13887_v32  ;;  %11800 = vmatprep.subr.bf16.mxu0 %v13910_v1  ;;  %v14031_v32 = vcombine.low %v2473_v19, %v2485_v20  ;;  %v14054_v1 = vcombine.high %v2496_v27, %v2508_v53  ;;  %v2628_v14 = vld [vmem:[%s17046_s16 + $0x1030] sm:$0xff]  ;;  %v2617_v19 = vld [vmem:[%s17046_s16 + $0xfd8] sm:$0xff] }
 0x5f7   : > { %11964 = vmatprep.subr.bf16.mxu1 %v13912_v33  ;;  %v14056_v33 = vcombine.high %v2497_v28, %v2509_v7  ;;  %v2629_v20 = vld [vmem:[%s17046_s16 + $0x1038] sm:$0xff]  ;;  %v2640_v27 = vld [vmem:[%s17046_s16 + $0x1090] sm:$0xff] }
 0x5f8   : > { %v2652_v53 = vld [vmem:[%s17046_s16 + $0x10f0] sm:$0xff] }
 0x5f9   : > { %11801 = vmatpush1.bf16.msra.mxu0 %v13909_v41  ;;  %v2533_v41 = vld [vmem:[%s17046_s16 + $0xd38] sm:$0xff] }
 0x5fa   : > { %11965 = vmatpush1.bf16.msra.mxu1 %v13911_v42  ;;  %11802 = vmatprep.subr.bf16.mxu0 %v13934_v44  ;;  %v14055_v42 = vcombine.low %v2497_v28, %v2509_v7  ;;  %v14078_v44 = vcombine.high %v2520_v37, %v2532_v38  ;;  %v14080_v47 = vcombine.high %v2521_v40, %v2533_v41  ;;  %v2641_v28 = vld [vmem:[%s17046_s16 + $0x1098] sm:$0xff] }
 0x5fb   : > { %11966 = vmatprep.subr.bf16.mxu1 %v13936_v45  ;;  %v2544_v45 = vld [vmem:[%s17046_s16 + $0xd90] sm:$0xff]  ;;  %v2653_v7 = vld [vmem:[%s17046_s16 + $0x10f8] sm:$0xff] }
 0x5fd   : > { %11803 = vmatpush1.bf16.msra.mxu0 %v13933_v51  ;;  %v14077_v51 = vcombine.low %v2520_v37, %v2532_v38  ;;  %v2664_v37 = vld [vmem:[%s17046_s16 + $0x1150] sm:$0xff] }
 0x5fe   : > { %11967 = vmatpush1.bf16.msra.mxu1 %v13935_v52  ;;  %11804 = vmatprep.subr.bf16.mxu0 %v13958_v55  ;;  %v14079_v52 = vcombine.low %v2521_v40, %v2533_v41  ;;  %v14102_v55 = vcombine.high %v2544_v45, %v2556_v46  ;;  %v2676_v38 = vld [vmem:[%s17046_s16 + $0x11b0] sm:$0xff]  ;;  %v2677_v40 = vld [vmem:[%s17046_s16 + $0x11b8] sm:$0xff]  ;;  %v14197_v41 = vcombine.low %v2640_v27, %v2652_v53 }
 0x5ff   : > { %11968 = vmatprep.subr.bf16.mxu1 %v13960_v34  ;;  %v14104_v34 = vcombine.high %v2545_v48, %v2557_v49 }
 0x601   : > { %11805 = vmatpush1.bf16.msra.mxu0 %v13957_v58  ;;  %v14101_v58 = vcombine.low %v2544_v45, %v2556_v46  ;;  %v2688_v46 = vld [vmem:[%s17046_s16 + $0x1210] sm:$0xff] }
 0x602   : > { %11969 = vmatpush1.bf16.msra.mxu1 %v13959_v62  ;;  %11806 = vmatprep.subr.bf16.mxu0 %v13982_v43  ;;  %v14103_v62 = vcombine.low %v2545_v48, %v2557_v49  ;;  %v14126_v43 = vcombine.high %v2568_v9, %v2580_v54  ;;  %v2689_v48 = vld [vmem:[%s17046_s16 + $0x1218] sm:$0xff] }
 0x603   : > { %11970 = vmatprep.subr.bf16.mxu1 %v13984_v59  ;;  %v14128_v59 = vcombine.high %v2569_v56, %v2581_v57  ;;  %v2701_v49 = vld [vmem:[%s17046_s16 + $0x1278] sm:$0xff] }
 0x605   : > { %11807 = vmatpush1.bf16.msra.mxu0 %v13981_v2  ;;  %v14125_v2 = vcombine.low %v2568_v9, %v2580_v54  ;;  %v2712_v9 = vld [vmem:[%s17046_s16 + $0x12d0] sm:$0xff] }
 0x606   : > { %11971 = vmatpush1.bf16.msra.mxu1 %v13983_v3  ;;  %11808 = vmatprep.subr.bf16.mxu0 %v14006_v5  ;;  %v14127_v3 = vcombine.low %v2569_v56, %v2581_v57  ;;  %v14150_v5 = vcombine.high %v2592_v60, %v2604_v61  ;;  %v2724_v54 = vld [vmem:[%s17046_s16 + $0x1330] sm:$0xff]  ;;  %v2713_v56 = vld [vmem:[%s17046_s16 + $0x12d8] sm:$0xff] }
 0x607   : > { %11972 = vmatprep.subr.bf16.mxu1 %v14008_v6  ;;  %v14152_v6 = vcombine.high %v2593_v16, %v2605_v63  ;;  %v2725_v57 = vld [vmem:[%s17046_s16 + $0x1338] sm:$0xff] }
 0x609   : > { %11809 = vmatpush1.bf16.msra.mxu0 %v14005_v21  ;;  %v14149_v21 = vcombine.low %v2592_v60, %v2604_v61  ;;  %v2736_v60 = vld [vmem:[%s17046_s16 + $0x1390] sm:$0xff] }
 0x60a   : > { %11973 = vmatpush1.bf16.msra.mxu1 %v14007_v22  ;;  %11810 = vmatprep.subr.bf16.mxu0 %v14030_v23  ;;  %v14151_v22 = vcombine.low %v2593_v16, %v2605_v63  ;;  %v14174_v23 = vcombine.high %v2616_v13, %v2628_v14  ;;  %v2748_v61 = vld [vmem:[%s17046_s16 + $0x13f0] sm:$0xff]  ;;  %v2737_v16 = vld [vmem:[%s17046_s16 + $0x1398] sm:$0xff] }
 0x60b   : > { %11974 = vmatprep.subr.bf16.mxu1 %v14032_v26  ;;  %v14176_v26 = vcombine.high %v2617_v19, %v2629_v20  ;;  %v2749_v63 = vld [vmem:[%s17046_s16 + $0x13f8] sm:$0xff] }
 0x60d   : > { %11811 = vmatpush1.bf16.msra.mxu0 %v14029_v31  ;;  %v14173_v31 = vcombine.low %v2616_v13, %v2628_v14  ;;  %v2760_v13 = vld [vmem:[%s17046_s16 + $0x1450] sm:$0xff] }
 0x60e   : > { %11975 = vmatpush1.bf16.msra.mxu1 %v14031_v32  ;;  %11821 = vmatprep.subr.bf16.mxu0 %v14054_v1  ;;  %v14175_v32 = vcombine.low %v2617_v19, %v2629_v20  ;;  %v14198_v1 = vcombine.high %v2640_v27, %v2652_v53  ;;  %v2772_v14 = vld [vmem:[%s17046_s16 + $0x14b0] sm:$0xff]  ;;  %v2761_v19 = vld [vmem:[%s17046_s16 + $0x1458] sm:$0xff] }
 0x60f   : > { %11985 = vmatprep.subr.bf16.mxu1 %v14056_v33  ;;  %v14200_v33 = vcombine.high %v2641_v28, %v2653_v7  ;;  %v2773_v20 = vld [vmem:[%s17046_s16 + $0x14b8] sm:$0xff]  ;;  %v2784_v27 = vld [vmem:[%s17046_s16 + $0x1510] sm:$0xff] }
 0x610   : > { %11813 = vmatmul.mubr.bf16.vlgmr.msra.gmra.mrb[12].mxu0 %v17191_v4  ;;  %v2796_v53 = vld [vmem:[%s17046_s16 + $0x1570] sm:$0xff] }
 0x611   : > { %11977 = vmatmul.mubr.bf16.vlgmr.msra.gmra.mrb[12].mxu1 %v17191_v4  ;;  %11822 = vmatpush1.bf16.msra.mxu0 %v14053_v39  ;;  %v2665_v39 = vld [vmem:[%s17046_s16 + $0x1158] sm:$0xff] }
 0x612   : > { %11853 = vmatprep.mubr.bf16.mxu0 %v17199_v17  ;;  %11986 = vmatpush1.bf16.msra.mxu1 %v14055_v42  ;;  %v14199_v42 = vcombine.low %v2641_v28, %v2653_v7  ;;  %v14224_v45 = vcombine.high %v2665_v39, %v2677_v40  ;;  %v2785_v28 = vld [vmem:[%s17046_s16 + $0x1518] sm:$0xff] }
 0x613   : > { %12017 = vmatprep.mubr.bf16.mxu1 %v17199_v17  ;;  %11823 = vmatprep.subr.bf16.mxu0 %v14078_v44  ;;  %v14222_v44 = vcombine.high %v2664_v37, %v2676_v38  ;;  %v2797_v7 = vld [vmem:[%s17046_s16 + $0x1578] sm:$0xff] }
 0x614   : > { %11987 = vmatprep.subr.bf16.mxu1 %v14080_v47  ;;  %v2700_v47 = vld [vmem:[%s17046_s16 + $0x1270] sm:$0xff] }
 0x615   : > { %11824 = vmatpush1.bf16.msra.mxu0 %v14077_v51  ;;  %v14221_v51 = vcombine.low %v2664_v37, %v2676_v38  ;;  %v2808_v37 = vld [vmem:[%s17046_s16 + $0x15d0] sm:$0xff] }
 0x616   : > { %11988 = vmatpush1.bf16.msra.mxu1 %v14079_v52  ;;  %11825 = vmatprep.subr.bf16.mxu0 %v14102_v55  ;;  %v14223_v52 = vcombine.low %v2665_v39, %v2677_v40  ;;  %v14246_v55 = vcombine.high %v2688_v46, %v2700_v47  ;;  %v2820_v38 = vld [vmem:[%s17046_s16 + $0x1630] sm:$0xff]  ;;  %v2809_v39 = vld [vmem:[%s17046_s16 + $0x15d8] sm:$0xff] }
 0x617   : > { %11989 = vmatprep.subr.bf16.mxu1 %v14104_v34  ;;  %v14248_v34 = vcombine.high %v2689_v48, %v2701_v49  ;;  %v2821_v40 = vld [vmem:[%s17046_s16 + $0x1638] sm:$0xff] }
 0x619   : > { %11826 = vmatpush1.bf16.msra.mxu0 %v14101_v58  ;;  %v14245_v58 = vcombine.low %v2688_v46, %v2700_v47  ;;  %v2832_v46 = vld [vmem:[%s17046_s16 + $0x1690] sm:$0xff] }
 0x61a   : > { %11990 = vmatpush1.bf16.msra.mxu1 %v14103_v62  ;;  %11827 = vmatprep.subr.bf16.mxu0 %v14126_v43  ;;  %v14247_v62 = vcombine.low %v2689_v48, %v2701_v49  ;;  %v14270_v43 = vcombine.high %v2712_v9, %v2724_v54  ;;  %v2844_v47 = vld [vmem:[%s17046_s16 + $0x16f0] sm:$0xff]  ;;  %v2833_v48 = vld [vmem:[%s17046_s16 + $0x1698] sm:$0xff] }
 0x61b   : > { %11991 = vmatprep.subr.bf16.mxu1 %v14128_v59  ;;  %v14272_v59 = vcombine.high %v2713_v56, %v2725_v57  ;;  %v2845_v49 = vld [vmem:[%s17046_s16 + $0x16f8] sm:$0xff] }
 0x61d   : > { %11828 = vmatpush1.bf16.msra.mxu0 %v14125_v2  ;;  %v14269_v2 = vcombine.low %v2712_v9, %v2724_v54  ;;  %v2856_v9 = vld [vmem:[%s17046_s16 + $0x1750] sm:$0xff] }
 0x61e   : > { %11992 = vmatpush1.bf16.msra.mxu1 %v14127_v3  ;;  %11829 = vmatprep.subr.bf16.mxu0 %v14150_v5  ;;  %v14271_v3 = vcombine.low %v2713_v56, %v2725_v57  ;;  %v14294_v5 = vcombine.high %v2736_v60, %v2748_v61  ;;  %v2868_v54 = vld [vmem:[%s17046_s16 + $0x17b0] sm:$0xff]  ;;  %v2857_v56 = vld [vmem:[%s17046_s16 + $0x1758] sm:$0xff] }
 0x61f   : > { %11993 = vmatprep.subr.bf16.mxu1 %v14152_v6  ;;  %v14296_v6 = vcombine.high %v2737_v16, %v2749_v63  ;;  %v2869_v57 = vld [vmem:[%s17046_s16 + $0x17b8] sm:$0xff] }
 0x621   : > { %11830 = vmatpush1.bf16.msra.mxu0 %v14149_v21  ;;  %v14293_v21 = vcombine.low %v2736_v60, %v2748_v61  ;;  %v2880_v60 = vld [vmem:[%s17046_s16 + $0x1810] sm:$0xff] }
 0x622   : > { %11994 = vmatpush1.bf16.msra.mxu1 %v14151_v22  ;;  %11831 = vmatprep.subr.bf16.mxu0 %v14174_v23  ;;  %v14295_v22 = vcombine.low %v2737_v16, %v2749_v63  ;;  %v14318_v23 = vcombine.high %v2760_v13, %v2772_v14  ;;  %v2892_v61 = vld [vmem:[%s17046_s16 + $0x1870] sm:$0xff]  ;;  %v2881_v16 = vld [vmem:[%s17046_s16 + $0x1818] sm:$0xff] }
 0x623   : > { %11995 = vmatprep.subr.bf16.mxu1 %v14176_v26  ;;  %v14320_v26 = vcombine.high %v2761_v19, %v2773_v20  ;;  %v2893_v63 = vld [vmem:[%s17046_s16 + $0x1878] sm:$0xff] }
 0x625   : > { %11832 = vmatpush1.bf16.msra.mxu0 %v14173_v31  ;;  %v14317_v31 = vcombine.low %v2760_v13, %v2772_v14  ;;  %v2904_v13 = vld [vmem:[%s17046_s16 + $0x18d0] sm:$0xff] }
 0x626   : > { %11996 = vmatpush1.bf16.msra.mxu1 %v14175_v32  ;;  %11833 = vmatprep.subr.bf16.mxu0 %v14198_v1  ;;  %v14319_v32 = vcombine.low %v2761_v19, %v2773_v20  ;;  %v14342_v1 = vcombine.high %v2784_v27, %v2796_v53  ;;  %v2916_v14 = vld [vmem:[%s17046_s16 + $0x1930] sm:$0xff]  ;;  %v14437_v19 = vcombine.low %v2880_v60, %v2892_v61  ;;  %v2905_v20 = vld [vmem:[%s17046_s16 + $0x18d8] sm:$0xff] }
 0x627   : > { %11997 = vmatprep.subr.bf16.mxu1 %v14200_v33  ;;  %v14344_v33 = vcombine.high %v2785_v28, %v2797_v7 }
 0x629   : > { %11834 = vmatpush1.bf16.msra.mxu0 %v14197_v41  ;;  %v14341_v41 = vcombine.low %v2784_v27, %v2796_v53  ;;  %v2940_v27 = vld [vmem:[%s17046_s16 + $0x19f0] sm:$0xff] }
 0x62a   : > { %11998 = vmatpush1.bf16.msra.mxu1 %v14199_v42  ;;  %11835 = vmatprep.subr.bf16.mxu0 %v14222_v44  ;;  %v14343_v42 = vcombine.low %v2785_v28, %v2797_v7  ;;  %v14366_v44 = vcombine.high %v2808_v37, %v2820_v38  ;;  %v2929_v28 = vld [vmem:[%s17046_s16 + $0x1998] sm:$0xff] }
 0x62b   : > { %11999 = vmatprep.subr.bf16.mxu1 %v14224_v45  ;;  %v14368_v45 = vcombine.high %v2809_v39, %v2821_v40  ;;  %v2941_v7 = vld [vmem:[%s17046_s16 + $0x19f8] sm:$0xff] }
 0x62d   : > { %11836 = vmatpush1.bf16.msra.mxu0 %v14221_v51  ;;  %v14365_v51 = vcombine.low %v2808_v37, %v2820_v38  ;;  %v2952_v37 = vld [vmem:[%s17046_s16 + $0x1a50] sm:$0xff] }
 0x62e   : > { %12000 = vmatpush1.bf16.msra.mxu1 %v14223_v52  ;;  %11837 = vmatprep.subr.bf16.mxu0 %v14246_v55  ;;  %v14367_v52 = vcombine.low %v2809_v39, %v2821_v40  ;;  %v14390_v55 = vcombine.high %v2832_v46, %v2844_v47  ;;  %v2964_v38 = vld [vmem:[%s17046_s16 + $0x1ab0] sm:$0xff]  ;;  %v2953_v39 = vld [vmem:[%s17046_s16 + $0x1a58] sm:$0xff] }
 0x62f   : > { %12001 = vmatprep.subr.bf16.mxu1 %v14248_v34  ;;  %v14392_v34 = vcombine.high %v2833_v48, %v2845_v49  ;;  %v2965_v40 = vld [vmem:[%s17046_s16 + $0x1ab8] sm:$0xff] }
 0x631   : > { %11838 = vmatpush1.bf16.msra.mxu0 %v14245_v58  ;;  %v14389_v58 = vcombine.low %v2832_v46, %v2844_v47  ;;  %v2976_v46 = vld [vmem:[%s17046_s16 + $0x1b10] sm:$0xff] }
 0x632   : > { %12002 = vmatpush1.bf16.msra.mxu1 %v14247_v62  ;;  %11839 = vmatprep.subr.bf16.mxu0 %v14270_v43  ;;  %v14391_v62 = vcombine.low %v2833_v48, %v2845_v49  ;;  %v14414_v43 = vcombine.high %v2856_v9, %v2868_v54  ;;  %v2988_v47 = vld [vmem:[%s17046_s16 + $0x1b70] sm:$0xff]  ;;  %v2977_v48 = vld [vmem:[%s17046_s16 + $0x1b18] sm:$0xff] }
 0x633   : > { %12003 = vmatprep.subr.bf16.mxu1 %v14272_v59  ;;  %v14416_v59 = vcombine.high %v2857_v56, %v2869_v57  ;;  %v2989_v49 = vld [vmem:[%s17046_s16 + $0x1b78] sm:$0xff] }
 0x635   : > { %11840 = vmatpush1.bf16.msra.mxu0 %v14269_v2  ;;  %v14413_v2 = vcombine.low %v2856_v9, %v2868_v54  ;;  %v3000_v9 = vld [vmem:[%s17046_s16 + $0x1bd0] sm:$0xff] }
 0x636   : > { %12004 = vmatpush1.bf16.msra.mxu1 %v14271_v3  ;;  %11841 = vmatprep.subr.bf16.mxu0 %v14294_v5  ;;  %v14415_v3 = vcombine.low %v2857_v56, %v2869_v57  ;;  %v14438_v5 = vcombine.high %v2880_v60, %v2892_v61  ;;  %v3012_v54 = vld [vmem:[%s17046_s16 + $0x1c30] sm:$0xff]  ;;  %v3001_v56 = vld [vmem:[%s17046_s16 + $0x1bd8] sm:$0xff] }
 0x637   : > { %12005 = vmatprep.subr.bf16.mxu1 %v14296_v6  ;;  %v14440_v6 = vcombine.high %v2881_v16, %v2893_v63  ;;  %v3013_v57 = vld [vmem:[%s17046_s16 + $0x1c38] sm:$0xff]  ;;  %v3024_v60 = vld [vmem:[%s17046_s16 + $0x1c90] sm:$0xff] }
 0x638   : > { %v3036_v61 = vld [vmem:[%s17046_s16 + $0x1cf0] sm:$0xff] }
 0x639   : > { %11842 = vmatpush1.bf16.msra.mxu0 %v14293_v21  ;;  %v2917_v21 = vld [vmem:[%s17046_s16 + $0x1938] sm:$0xff] }
 0x63a   : > { %12006 = vmatpush1.bf16.msra.mxu1 %v14295_v22  ;;  %11843 = vmatprep.subr.bf16.mxu0 %v14318_v23  ;;  %v14439_v22 = vcombine.low %v2881_v16, %v2893_v63  ;;  %v14462_v23 = vcombine.high %v2904_v13, %v2916_v14  ;;  %v14464_v53 = vcombine.high %v2905_v20, %v2917_v21  ;;  %v3025_v16 = vld [vmem:[%s17046_s16 + $0x1c98] sm:$0xff] }
 0x63b   : > { %12007 = vmatprep.subr.bf16.mxu1 %v14320_v26  ;;  %v2928_v26 = vld [vmem:[%s17046_s16 + $0x1990] sm:$0xff]  ;;  %v3037_v63 = vld [vmem:[%s17046_s16 + $0x1cf8] sm:$0xff] }
 0x63d   : > { %11844 = vmatpush1.bf16.msra.mxu0 %v14317_v31  ;;  %v14461_v31 = vcombine.low %v2904_v13, %v2916_v14  ;;  %v3048_v13 = vld [vmem:[%s17046_s16 + $0x1d50] sm:$0xff] }
 0x63e   : > { %12008 = vmatpush1.bf16.msra.mxu1 %v14319_v32  ;;  %11845 = vmatprep.subr.bf16.mxu0 %v14342_v1  ;;  %v14463_v32 = vcombine.low %v2905_v20, %v2917_v21  ;;  %v14486_v1 = vcombine.high %v2928_v26, %v2940_v27  ;;  %v3060_v14 = vld [vmem:[%s17046_s16 + $0x1db0] sm:$0xff]  ;;  %v3061_v20 = vld [vmem:[%s17046_s16 + $0x1db8] sm:$0xff]  ;;  %v14581_v21 = vcombine.low %v3024_v60, %v3036_v61 }
 0x63f   : > { %12009 = vmatprep.subr.bf16.mxu1 %v14344_v33  ;;  %v14488_v33 = vcombine.high %v2929_v28, %v2941_v7 }
 0x641   : > { %11846 = vmatpush1.bf16.msra.mxu0 %v14341_v41  ;;  %v14485_v41 = vcombine.low %v2928_v26, %v2940_v27  ;;  %v3072_v27 = vld [vmem:[%s17046_s16 + $0x1e10] sm:$0xff] }
 0x642   : > { %12010 = vmatpush1.bf16.msra.mxu1 %v14343_v42  ;;  %11847 = vmatprep.subr.bf16.mxu0 %v14366_v44  ;;  %v14487_v42 = vcombine.low %v2929_v28, %v2941_v7  ;;  %v14510_v44 = vcombine.high %v2952_v37, %v2964_v38  ;;  %v3073_v28 = vld [vmem:[%s17046_s16 + $0x1e18] sm:$0xff] }
 0x643   : > { %12011 = vmatprep.subr.bf16.mxu1 %v14368_v45  ;;  %v14512_v45 = vcombine.high %v2953_v39, %v2965_v40  ;;  %v3085_v7 = vld [vmem:[%s17046_s16 + $0x1e78] sm:$0xff] }
 0x645   : > { %11848 = vmatpush1.bf16.msra.mxu0 %v14365_v51  ;;  %v14509_v51 = vcombine.low %v2952_v37, %v2964_v38  ;;  %v3096_v37 = vld [vmem:[%s17046_s16 + $0x1ed0] sm:$0xff] }
 0x646   : > { %12012 = vmatpush1.bf16.msra.mxu1 %v14367_v52  ;;  %11849 = vmatprep.subr.bf16.mxu0 %v14390_v55  ;;  %v14511_v52 = vcombine.low %v2953_v39, %v2965_v40  ;;  %v14534_v55 = vcombine.high %v2976_v46, %v2988_v47  ;;  %v3108_v38 = vld [vmem:[%s17046_s16 + $0x1f30] sm:$0xff]  ;;  %v3097_v39 = vld [vmem:[%s17046_s16 + $0x1ed8] sm:$0xff] }
 0x647   : > { %12013 = vmatprep.subr.bf16.mxu1 %v14392_v34  ;;  %v14536_v34 = vcombine.high %v2977_v48, %v2989_v49  ;;  %v3109_v40 = vld [vmem:[%s17046_s16 + $0x1f38] sm:$0xff] }
 0x649   : > { %11850 = vmatpush1.bf16.msra.mxu0 %v14389_v58  ;;  %v14533_v58 = vcombine.low %v2976_v46, %v2988_v47  ;;  %v3120_v46 = vld [vmem:[%s17046_s16 + $0x1f90] sm:$0xff] }
 0x64a   : > { %12014 = vmatpush1.bf16.msra.mxu1 %v14391_v62  ;;  %11851 = vmatprep.subr.bf16.mxu0 %v14414_v43  ;;  %v14535_v62 = vcombine.low %v2977_v48, %v2989_v49  ;;  %v14558_v43 = vcombine.high %v3000_v9, %v3012_v54  ;;  %v3132_v47 = vld [vmem:[%s17046_s16 + $0x1ff0] sm:$0xff]  ;;  %v3121_v48 = vld [vmem:[%s17046_s16 + $0x1f98] sm:$0xff] }
 0x64b   : > { %12015 = vmatprep.subr.bf16.mxu1 %v14416_v59  ;;  %v14560_v59 = vcombine.high %v3001_v56, %v3013_v57  ;;  %v3133_v49 = vld [vmem:[%s17046_s16 + $0x1ff8] sm:$0xff] }
 0x64d   : > { %11852 = vmatpush1.bf16.msra.mxu0 %v14413_v2  ;;  %v14557_v2 = vcombine.low %v3000_v9, %v3012_v54  ;;  %v3144_v9 = vld [vmem:[%s17046_s16 + $0x2050] sm:$0xff] }
 0x64e   : > { %12016 = vmatpush1.bf16.msra.mxu1 %v14415_v3  ;;  %11862 = vmatprep.subr.bf16.mxu0 %v14438_v5  ;;  %v14559_v3 = vcombine.low %v3001_v56, %v3013_v57  ;;  %v14582_v5 = vcombine.high %v3024_v60, %v3036_v61  ;;  %v3156_v54 = vld [vmem:[%s17046_s16 + $0x20b0] sm:$0xff]  ;;  %v3145_v56 = vld [vmem:[%s17046_s16 + $0x2058] sm:$0xff] }
 0x64f   : > { %12026 = vmatprep.subr.bf16.mxu1 %v14440_v6  ;;  %v14584_v6 = vcombine.high %v3025_v16, %v3037_v63  ;;  %v3157_v57 = vld [vmem:[%s17046_s16 + $0x20b8] sm:$0xff]  ;;  %v3168_v60 = vld [vmem:[%s17046_s16 + $0x2110] sm:$0xff] }
 0x650   : > { %11854 = vmatmul.mubr.bf16.vlgmr.msra.gmra.mrb[12].mxu0 %v17268_v35  ;;  %v3180_v61 = vld [vmem:[%s17046_s16 + $0x2170] sm:$0xff] }
 0x651   : > { %12018 = vmatmul.mubr.bf16.vlgmr.msra.gmra.mrb[12].mxu1 %v17268_v35  ;;  %11863 = vmatpush1.bf16.msra.mxu0 %v14437_v19  ;;  %v3049_v19 = vld [vmem:[%s17046_s16 + $0x1d58] sm:$0xff] }
 0x652   : > { %11894 = vmatprep.mubr.bf16.mxu0 %v17353_v12  ;;  %12027 = vmatpush1.bf16.msra.mxu1 %v14439_v22  ;;  %v14583_v22 = vcombine.low %v3025_v16, %v3037_v63  ;;  %v14608_v26 = vcombine.high %v3049_v19, %v3061_v20  ;;  %v3169_v16 = vld [vmem:[%s17046_s16 + $0x2118] sm:$0xff] }
 0x653   : > { %12058 = vmatprep.mubr.bf16.mxu1 %v17353_v12  ;;  %11864 = vmatprep.subr.bf16.mxu0 %v14462_v23  ;;  %v14606_v23 = vcombine.high %v3048_v13, %v3060_v14  ;;  %v3181_v63 = vld [vmem:[%s17046_s16 + $0x2178] sm:$0xff] }
 0x654   : > { %12028 = vmatprep.subr.bf16.mxu1 %v14464_v53  ;;  %v3084_v53 = vld [vmem:[%s17046_s16 + $0x1e70] sm:$0xff] }
 0x655   : > { %11865 = vmatpush1.bf16.msra.mxu0 %v14461_v31  ;;  %v14605_v31 = vcombine.low %v3048_v13, %v3060_v14  ;;  %v3192_v13 = vld [vmem:[%s17046_s16 + $0x21d0] sm:$0xff] }
 0x656   : > { %12029 = vmatpush1.bf16.msra.mxu1 %v14463_v32  ;;  %11866 = vmatprep.subr.bf16.mxu0 %v14486_v1  ;;  %v14607_v32 = vcombine.low %v3049_v19, %v3061_v20  ;;  %v14630_v1 = vcombine.high %v3072_v27, %v3084_v53  ;;  %v3204_v14 = vld [vmem:[%s17046_s16 + $0x2230] sm:$0xff]  ;;  %v3193_v19 = vld [vmem:[%s17046_s16 + $0x21d8] sm:$0xff] }
 0x657   : > { %12030 = vmatprep.subr.bf16.mxu1 %v14488_v33  ;;  %v14632_v33 = vcombine.high %v3073_v28, %v3085_v7  ;;  %v3205_v20 = vld [vmem:[%s17046_s16 + $0x2238] sm:$0xff] }
 0x659   : > { %11867 = vmatpush1.bf16.msra.mxu0 %v14485_v41  ;;  %v14629_v41 = vcombine.low %v3072_v27, %v3084_v53  ;;  %v3216_v27 = vld [vmem:[%s17046_s16 + $0x2290] sm:$0xff] }
 0x65a   : > { %12031 = vmatpush1.bf16.msra.mxu1 %v14487_v42  ;;  %11868 = vmatprep.subr.bf16.mxu0 %v14510_v44  ;;  %v14631_v42 = vcombine.low %v3073_v28, %v3085_v7  ;;  %v14654_v44 = vcombine.high %v3096_v37, %v3108_v38  ;;  %v3228_v53 = vld [vmem:[%s17046_s16 + $0x22f0] sm:$0xff]  ;;  %v3217_v28 = vld [vmem:[%s17046_s16 + $0x2298] sm:$0xff] }
 0x65b   : > { %12032 = vmatprep.subr.bf16.mxu1 %v14512_v45  ;;  %v14656_v45 = vcombine.high %v3097_v39, %v3109_v40  ;;  %v3229_v7 = vld [vmem:[%s17046_s16 + $0x22f8] sm:$0xff] }
 0x65d   : > { %11869 = vmatpush1.bf16.msra.mxu0 %v14509_v51  ;;  %v14653_v51 = vcombine.low %v3096_v37, %v3108_v38  ;;  %v3240_v37 = vld [vmem:[%s17046_s16 + $0x2350] sm:$0xff] }
 0x65e   : > { %12033 = vmatpush1.bf16.msra.mxu1 %v14511_v52  ;;  %11870 = vmatprep.subr.bf16.mxu0 %v14534_v55  ;;  %v14655_v52 = vcombine.low %v3097_v39, %v3109_v40  ;;  %v14678_v55 = vcombine.high %v3120_v46, %v3132_v47  ;;  %v3252_v38 = vld [vmem:[%s17046_s16 + $0x23b0] sm:$0xff]  ;;  %v3241_v39 = vld [vmem:[%s17046_s16 + $0x2358] sm:$0xff] }
 0x65f   : > { %12034 = vmatprep.subr.bf16.mxu1 %v14536_v34  ;;  %v14680_v34 = vcombine.high %v3121_v48, %v3133_v49  ;;  %v3253_v40 = vld [vmem:[%s17046_s16 + $0x23b8] sm:$0xff] }
 0x661   : > { %11871 = vmatpush1.bf16.msra.mxu0 %v14533_v58  ;;  %v14677_v58 = vcombine.low %v3120_v46, %v3132_v47  ;;  %v3264_v46 = vld [vmem:[%s17046_s16 + $0x2410] sm:$0xff] }
 0x662   : > { %12035 = vmatpush1.bf16.msra.mxu1 %v14535_v62  ;;  %11872 = vmatprep.subr.bf16.mxu0 %v14558_v43  ;;  %v14679_v62 = vcombine.low %v3121_v48, %v3133_v49  ;;  %v14702_v43 = vcombine.high %v3144_v9, %v3156_v54  ;;  %v3276_v47 = vld [vmem:[%s17046_s16 + $0x2470] sm:$0xff]  ;;  %v3265_v48 = vld [vmem:[%s17046_s16 + $0x2418] sm:$0xff] }
 0x663   : > { %12036 = vmatprep.subr.bf16.mxu1 %v14560_v59  ;;  %v14704_v59 = vcombine.high %v3145_v56, %v3157_v57  ;;  %v3277_v49 = vld [vmem:[%s17046_s16 + $0x2478] sm:$0xff] }
 0x665   : > { %11873 = vmatpush1.bf16.msra.mxu0 %v14557_v2  ;;  %v14701_v2 = vcombine.low %v3144_v9, %v3156_v54  ;;  %v3288_v9 = vld [vmem:[%s17046_s16 + $0x24d0] sm:$0xff] }
 0x666   : > { %12037 = vmatpush1.bf16.msra.mxu1 %v14559_v3  ;;  %11874 = vmatprep.subr.bf16.mxu0 %v14582_v5  ;;  %v14703_v3 = vcombine.low %v3145_v56, %v3157_v57  ;;  %v14726_v5 = vcombine.high %v3168_v60, %v3180_v61  ;;  %v3300_v54 = vld [vmem:[%s17046_s16 + $0x2530] sm:$0xff]  ;;  %v14821_v56 = vcombine.low %v3264_v46, %v3276_v47  ;;  %v3289_v57 = vld [vmem:[%s17046_s16 + $0x24d8] sm:$0xff] }
 0x667   : > { %12038 = vmatprep.subr.bf16.mxu1 %v14584_v6  ;;  %v14728_v6 = vcombine.high %v3169_v16, %v3181_v63 }
 0x669   : > { %11875 = vmatpush1.bf16.msra.mxu0 %v14581_v21  ;;  %v14725_v21 = vcombine.low %v3168_v60, %v3180_v61  ;;  %v3324_v60 = vld [vmem:[%s17046_s16 + $0x25f0] sm:$0xff] }
 0x66a   : > { %12039 = vmatpush1.bf16.msra.mxu1 %v14583_v22  ;;  %11876 = vmatprep.subr.bf16.mxu0 %v14606_v23  ;;  %v14727_v22 = vcombine.low %v3169_v16, %v3181_v63  ;;  %v14750_v23 = vcombine.high %v3192_v13, %v3204_v14  ;;  %v3313_v16 = vld [vmem:[%s17046_s16 + $0x2598] sm:$0xff] }
 0x66b   : > { %12040 = vmatprep.subr.bf16.mxu1 %v14608_v26  ;;  %v14752_v26 = vcombine.high %v3193_v19, %v3205_v20  ;;  %v3325_v63 = vld [vmem:[%s17046_s16 + $0x25f8] sm:$0xff] }
 0x66d   : > { %11877 = vmatpush1.bf16.msra.mxu0 %v14605_v31  ;;  %v14749_v31 = vcombine.low %v3192_v13, %v3204_v14  ;;  %v3336_v13 = vld [vmem:[%s17046_s16 + $0x2650] sm:$0xff] }
 0x66e   : > { %12041 = vmatpush1.bf16.msra.mxu1 %v14607_v32  ;;  %11878 = vmatprep.subr.bf16.mxu0 %v14630_v1  ;;  %v14751_v32 = vcombine.low %v3193_v19, %v3205_v20  ;;  %v14774_v1 = vcombine.high %v3216_v27, %v3228_v53  ;;  %v3348_v14 = vld [vmem:[%s17046_s16 + $0x26b0] sm:$0xff]  ;;  %v3337_v19 = vld [vmem:[%s17046_s16 + $0x2658] sm:$0xff] }
 0x66f   : > { %12042 = vmatprep.subr.bf16.mxu1 %v14632_v33  ;;  %v14776_v33 = vcombine.high %v3217_v28, %v3229_v7  ;;  %v3349_v20 = vld [vmem:[%s17046_s16 + $0x26b8] sm:$0xff] }
 0x671   : > { %11879 = vmatpush1.bf16.msra.mxu0 %v14629_v41  ;;  %v14773_v41 = vcombine.low %v3216_v27, %v3228_v53  ;;  %v3360_v27 = vld [vmem:[%s17046_s16 + $0x2710] sm:$0xff] }
 0x672   : > { %12043 = vmatpush1.bf16.msra.mxu1 %v14631_v42  ;;  %11880 = vmatprep.subr.bf16.mxu0 %v14654_v44  ;;  %v14775_v42 = vcombine.low %v3217_v28, %v3229_v7  ;;  %v14798_v44 = vcombine.high %v3240_v37, %v3252_v38  ;;  %v3372_v53 = vld [vmem:[%s17046_s16 + $0x2770] sm:$0xff]  ;;  %v3361_v28 = vld [vmem:[%s17046_s16 + $0x2718] sm:$0xff] }
 0x673   : > { %12044 = vmatprep.subr.bf16.mxu1 %v14656_v45  ;;  %v14800_v45 = vcombine.high %v3241_v39, %v3253_v40  ;;  %v3373_v7 = vld [vmem:[%s17046_s16 + $0x2778] sm:$0xff] }
 0x675   : > { %11881 = vmatpush1.bf16.msra.mxu0 %v14653_v51  ;;  %v14797_v51 = vcombine.low %v3240_v37, %v3252_v38  ;;  %v3384_v37 = vld [vmem:[%s17046_s16 + $0x27d0] sm:$0xff] }
 0x676   : > { %12045 = vmatpush1.bf16.msra.mxu1 %v14655_v52  ;;  %11882 = vmatprep.subr.bf16.mxu0 %v14678_v55  ;;  %v14799_v52 = vcombine.low %v3241_v39, %v3253_v40  ;;  %v14822_v55 = vcombine.high %v3264_v46, %v3276_v47  ;;  %v3396_v38 = vld [vmem:[%s17046_s16 + $0x2830] sm:$0xff]  ;;  %v3385_v39 = vld [vmem:[%s17046_s16 + $0x27d8] sm:$0xff] }
 0x677   : > { %12046 = vmatprep.subr.bf16.mxu1 %v14680_v34  ;;  %v14824_v34 = vcombine.high %v3265_v48, %v3277_v49  ;;  %v3397_v40 = vld [vmem:[%s17046_s16 + $0x2838] sm:$0xff]  ;;  %v3408_v47 = vld [vmem:[%s17046_s16 + $0x2890] sm:$0xff] }
 0x678   : > { %v14944_v46 = vcombine.high %v3385_v39, %v3397_v40 }
 0x679   : > { %11883 = vmatpush1.bf16.msra.mxu0 %v14677_v58  ;;  %v3301_v58 = vld [vmem:[%s17046_s16 + $0x2538] sm:$0xff] }
 0x67a   : > { %12047 = vmatpush1.bf16.msra.mxu1 %v14679_v62  ;;  %11884 = vmatprep.subr.bf16.mxu0 %v14702_v43  ;;  %v14823_v62 = vcombine.low %v3265_v48, %v3277_v49  ;;  %v14846_v43 = vcombine.high %v3288_v9, %v3300_v54  ;;  %v14848_v61 = vcombine.high %v3289_v57, %v3301_v58  ;;  %v3420_v48 = vld [vmem:[%s17046_s16 + $0x28f0] sm:$0xff] }
 0x67b   : > { %12048 = vmatprep.subr.bf16.mxu1 %v14704_v59  ;;  %v3312_v59 = vld [vmem:[%s17046_s16 + $0x2590] sm:$0xff] }
 0x67d   : > { %11885 = vmatpush1.bf16.msra.mxu0 %v14701_v2  ;;  %v14845_v2 = vcombine.low %v3288_v9, %v3300_v54  ;;  %v14941_v54 = vcombine.low %v3384_v37, %v3396_v38 }
 0x67e   : > { %12049 = vmatpush1.bf16.msra.mxu1 %v14703_v3  ;;  %11886 = vmatprep.subr.bf16.mxu0 %v14726_v5  ;;  %v14847_v3 = vcombine.low %v3289_v57, %v3301_v58  ;;  %v14870_v5 = vcombine.high %v3312_v59, %v3324_v60  ;;  %v14966_v57 = vcombine.high %v3408_v47, %v3420_v48 }
 0x67f   : > { %12050 = vmatprep.subr.bf16.mxu1 %v14728_v6  ;;  %v14872_v6 = vcombine.high %v3313_v16, %v3325_v63 }
 0x681   : > { %11887 = vmatpush1.bf16.msra.mxu0 %v14725_v21  ;;  %v14869_v21 = vcombine.low %v3312_v59, %v3324_v60  ;;  %v3432_v59 = vld [vmem:[%s17046_s16 + $0x2950] sm:$0xff] }
 0x682   : > { %12051 = vmatpush1.bf16.msra.mxu1 %v14727_v22  ;;  %11888 = vmatprep.subr.bf16.mxu0 %v14750_v23  ;;  %v14871_v22 = vcombine.low %v3313_v16, %v3325_v63  ;;  %v14894_v23 = vcombine.high %v3336_v13, %v3348_v14  ;;  %v3444_v60 = vld [vmem:[%s17046_s16 + $0x29b0] sm:$0xff] }
 0x683   : > { %12052 = vmatprep.subr.bf16.mxu1 %v14752_v26  ;;  %v14896_v26 = vcombine.high %v3337_v19, %v3349_v20 }
 0x685   : > { %11889 = vmatpush1.bf16.msra.mxu0 %v14749_v31  ;;  %v14893_v31 = vcombine.low %v3336_v13, %v3348_v14 }
 0x686   : > { %12053 = vmatpush1.bf16.msra.mxu1 %v14751_v32  ;;  %11890 = vmatprep.subr.bf16.mxu0 %v14774_v1  ;;  %v14895_v32 = vcombine.low %v3337_v19, %v3349_v20  ;;  %v14918_v1 = vcombine.high %v3360_v27, %v3372_v53  ;;  %v14965_v20 = vcombine.low %v3408_v47, %v3420_v48  ;;  %v3504_v47 = vld [vmem:[%s17046_s16 + $0x2b90] sm:$0xff] }
 0x687   : > { %12054 = vmatprep.subr.bf16.mxu1 %v14776_v33  ;;  %v14920_v33 = vcombine.high %v3361_v28, %v3373_v7  ;;  %v3516_v48 = vld [vmem:[%s17046_s16 + $0x2bf0] sm:$0xff] }
 0x689   : > { %11891 = vmatpush1.bf16.msra.mxu0 %v14773_v41  ;;  %v14917_v41 = vcombine.low %v3360_v27, %v3372_v53  ;;  %v3456_v53 = vld [vmem:[%s17046_s16 + $0x2a10] sm:$0xff] }
 0x68a   : > { %12055 = vmatpush1.bf16.msra.mxu1 %v14775_v42  ;;  %11892 = vmatprep.subr.bf16.mxu0 %v14798_v44  ;;  %v3646_v42 = vld [vmem:[%s17661_s15] sm:$0xff]  ;;  %v14919_v44 = vcombine.low %v3361_v28, %v3373_v7  ;;  %v3468_v28 = vld [vmem:[%s17046_s16 + $0x2a70] sm:$0xff] }
 0x68b   : > { %12056 = vmatprep.subr.bf16.mxu1 %v14800_v45  ;;  %v14942_v45 = vcombine.high %v3384_v37, %v3396_v38  ;;  %v3655_v49 = vrot.slane %v3646_v42, %v17059_v8  ;;  %v3667_v9 = vrot.slane %v3646_v42, %v17067_v11  ;;  %v3457_v7 = vld [vmem:[%s17046_s16 + $0x2a18] sm:$0xff]  ;;  %v3480_v38 = vld [vmem:[%s17046_s16 + $0x2ad0] sm:$0xff] }
 0x68d   : > { %11893 = vmatpush1.bf16.msra.mxu0 %v14797_v51  ;;  %v3663_v51 = vrot.slane %v3646_v42, %v17090_v25 }
 0x68e   : > { %12057 = vmatpush1.bf16.msra.mxu1 %v14799_v52  ;;  %11903 = vmatprep.subr.bf16.mxu0 %v14822_v55  ;;  %v3409_v52 = vld [vmem:[%s17046_s16 + $0x2898] sm:$0xff] }
 0x68f   : > { %12067 = vmatprep.subr.bf16.mxu1 %v14824_v34  ;;  %v3421_v55 = vld [vmem:[%s17046_s16 + $0x28f8] sm:$0xff]  ;;  %v3659_v34 = vrot.slane %v3646_v42, %v17064_v10  ;;  %v15013_v42 = vcombine.low %v3456_v53, %v3468_v28 }
 0x690   : > { %11895 = vmatmul.mubr.bf16.vlgmr.msra.gmra.mrb[12].mxu0 %v17355_v15 }
 0x691   : > { %12059 = vmatmul.mubr.bf16.vlgmr.msra.gmra.mrb[12].mxu1 %v17355_v15  ;;  %11904 = vmatpush1.bf16.msra.mxu0 %v14821_v56  ;;  %v14943_v56 = vcombine.low %v3385_v39, %v3397_v40  ;;  %v3492_v39 = vld [vmem:[%s17046_s16 + $0x2b30] sm:$0xff]  ;;  %v3481_v40 = vld [vmem:[%s17046_s16 + $0x2ad8] sm:$0xff] }
 0x692   : > { %11935 = vmatprep.mubr.bf16.mxu0 %v17363_v24  ;;  %12068 = vmatpush1.bf16.msra.mxu1 %v14823_v62 }
 0x693   : > { %12099 = vmatprep.mubr.bf16.mxu1 %v17363_v24  ;;  %11905 = vmatprep.subr.bf16.mxu0 %v14846_v43  ;;  %v14968_v43 = vcombine.high %v3409_v52, %v3421_v55 }
 0x694   : > { %12069 = vmatprep.subr.bf16.mxu1 %v14848_v61 }
 0x695   : > { %11906 = vmatpush1.bf16.msra.mxu0 %v14845_v2 }
 0x696   : > { %12070 = vmatpush1.bf16.msra.mxu1 %v14847_v3  ;;  %11907 = vmatprep.subr.bf16.mxu0 %v14870_v5  ;;  %v3433_v3 = vld [vmem:[%s17046_s16 + $0x2958] sm:$0xff] }
 0x697   : > { %12071 = vmatprep.subr.bf16.mxu1 %v14872_v6  ;;  %v3445_v5 = vld [vmem:[%s17046_s16 + $0x29b8] sm:$0xff] }
 0x698   : > { %v14992_v27 = vcombine.high %v3433_v3, %v3445_v5 }
 0x699   : > { %11908 = vmatpush1.bf16.msra.mxu0 %v14869_v21 }
 0x69a   : > { %12072 = vmatpush1.bf16.msra.mxu1 %v14871_v22  ;;  %11909 = vmatprep.subr.bf16.mxu0 %v14894_v23  ;;  %v14967_v23 = vcombine.low %v3409_v52, %v3421_v55  ;;  %v15037_v52 = vcombine.low %v3480_v38, %v3492_v39 }
 0x69b   : > { %12073 = vmatprep.subr.bf16.mxu1 %v14896_v26  ;;  %v14990_v26 = vcombine.high %v3432_v59, %v3444_v60 }
 0x69d   : > { %11910 = vmatpush1.bf16.msra.mxu0 %v14893_v31  ;;  %v3469_v31 = vld [vmem:[%s17046_s16 + $0x2a78] sm:$0xff] }
 0x69e   : > { %12074 = vmatpush1.bf16.msra.mxu1 %v14895_v32  ;;  %11911 = vmatprep.subr.bf16.mxu0 %v14918_v1  ;;  %v14989_v32 = vcombine.low %v3432_v59, %v3444_v60  ;;  %v14991_v1 = vcombine.low %v3433_v3, %v3445_v5  ;;  %v15016_v37 = vcombine.high %v3457_v7, %v3469_v31 }
 0x69f   : > { %12075 = vmatprep.subr.bf16.mxu1 %v14920_v33  ;;  %v15014_v33 = vcombine.high %v3456_v53, %v3468_v28  ;;  %v3600_v53 = vld [vmem:[%s17046_s16 + $0x2e90] sm:$0xff] }
 0x6a0   : > { %v3612_v28 = vld [vmem:[%s17046_s16 + $0x2ef0] sm:$0xff] }
 0x6a1   : > { %11912 = vmatpush1.bf16.msra.mxu0 %v14917_v41  ;;  %v3493_v41 = vld [vmem:[%s17046_s16 + $0x2b38] sm:$0xff] }
 0x6a2   : > { %12076 = vmatpush1.bf16.msra.mxu1 %v14919_v44  ;;  %11913 = vmatprep.subr.bf16.mxu0 %v14942_v45  ;;  %v15015_v44 = vcombine.low %v3457_v7, %v3469_v31  ;;  %v15038_v45 = vcombine.high %v3480_v38, %v3492_v39  ;;  %v15039_v55 = vcombine.low %v3481_v40, %v3493_v41  ;;  %v3601_v7 = vld [vmem:[%s17046_s16 + $0x2e98] sm:$0xff]  ;;  %v3624_v38 = vld [vmem:[%s17046_s16 + $0x2f50] sm:$0xff] }
 0x6a3   : > { %v11609_v58 = vpop.f32.mrb[8].mxu0  ;;  %v11773_v62 = vpop.f32.mrb[8].mxu1  ;;  %12077 = vmatprep.subr.bf16.mxu1 %v14944_v46  ;;  %v15040_v46 = vcombine.high %v3481_v40, %v3493_v41  ;;  %v3613_v31 = vld [vmem:[%s17046_s16 + $0x2ef8] sm:$0xff]  ;;  %v3636_v39 = vld [vmem:[%s17046_s16 + $0x2fb0] sm:$0xff] }
 0x6a4   : > { %v15852_v61 = vadd.f32 %v11609_v58, %v3655_v49  ;;  %v15854_v16 = vadd.f32 %v11773_v62, %v3663_v51  ;;  %v11611_v63 = vpop.f32.mrb[9].mxu0  ;;  %v11775_v2 = vpop.f32.mrb[9].mxu1  ;;  %v3505_v49 = vld [vmem:[%s17046_s16 + $0x2b98] sm:$0xff]  ;;  %v15061_v62 = vcombine.low %v3504_v47, %v3516_v48 }
 0x6a5   : > { %v15853_v6 = vadd.f32 %v11611_v63, %v3659_v34  ;;  %v15855_v13 = vadd.f32 %v11775_v2, %v3667_v9  ;;  %v11613_v14 = vpop.f32.mrb[10].mxu0  ;;  %v11777_v19 = vpop.f32.mrb[10].mxu1  ;;  %11914 = vmatpush1.bf16.msra.mxu0 %v14941_v54  ;;  %v3517_v51 = vld [vmem:[%s17046_s16 + $0x2bf8] sm:$0xff]  ;;  %v15062_v34 = vcombine.high %v3504_v47, %v3516_v48  ;;  %v3528_v54 = vld [vmem:[%s17046_s16 + $0x2c50] sm:$0xff]  ;;  %v2114_v47 = vld [vmem:[%s17046_s16 + $0x20] sm:$0xff] }
 0x6a6   : > { %13420 = vst [vmem:[%s17679_s27] sm:$0xff] %v15852_v61  ;;  %13422 = vst [vmem:[%s17679_s27 + $0x10] sm:$0xff] %v15854_v16  ;;  %12078 = vmatpush1.bf16.msra.mxu1 %v14943_v56  ;;  %v11614_v21 = vpop.f32.mrb[11].mxu0  ;;  %v11778_v22 = vpop.f32.mrb[11].mxu1  ;;  %11915 = vmatprep.subr.bf16.mxu0 %v14966_v57  ;;  %v15064_v9 = vcombine.high %v3505_v49, %v3517_v51  ;;  %v3540_v56 = vld [vmem:[%s17046_s16 + $0x2cb0] sm:$0xff]  ;;  %v3529_v57 = vld [vmem:[%s17046_s16 + $0x2c58] sm:$0xff] }
 0x6a7   : > { %13421 = vst [vmem:[%s17679_s27 + $0x8] sm:$0xff] %v15853_v6  ;;  %13423 = vst [vmem:[%s17679_s27 + $0x18] sm:$0xff] %v15855_v13  ;;  %12079 = vmatprep.subr.bf16.mxu1 %v14968_v43  ;;  %v3541_v58 = vld [vmem:[%s17046_s16 + $0x2cb8] sm:$0xff]  ;;  %v15063_v43 = vcombine.low %v3505_v49, %v3517_v51  ;;  %v15086_v59 = vcombine.high %v3528_v54, %v3540_v56  ;;  %v3552_v61 = vld [vmem:[%s17046_s16 + $0x2d10] sm:$0xff]  ;;  %v15085_v3 = vcombine.low %v3528_v54, %v3540_v56 }
 0x6a8   : > { %v15088_v60 = vcombine.high %v3529_v57, %v3541_v58  ;;  %v3564_v16 = vld [vmem:[%s17046_s16 + $0x2d70] sm:$0xff]  ;;  %v3553_v63 = vld [vmem:[%s17046_s16 + $0x2d18] sm:$0xff]  ;;  %v15087_v5 = vcombine.low %v3529_v57, %v3541_v58  ;;  %v2126_v48 = vld [vmem:[%s17046_s16 + $0x80] sm:$0xff] }
 0x6a9   : > { %11916 = vmatpush1.bf16.msra.mxu0 %v14965_v20  ;;  %v3565_v2 = vld [vmem:[%s17046_s16 + $0x2d78] sm:$0xff]  ;;  %v15110_v6 = vcombine.high %v3552_v61, %v3564_v16  ;;  %v3576_v14 = vld [vmem:[%s17046_s16 + $0x2dd0] sm:$0xff]  ;;  %v15109_v22 = vcombine.low %v3552_v61, %v3564_v16  ;;  %v2115_v49 = vld [vmem:[%s17046_s16 + $0x28] sm:$0xff]  ;;  %v13673_v57 = vcombine.low %v2114_v47, %v2126_v48 }
 0x6aa   : > { %12080 = vmatpush1.bf16.msra.mxu1 %v14967_v23  ;;  %11917 = vmatprep.subr.bf16.mxu0 %v14990_v26  ;;  %v15112_v13 = vcombine.high %v3553_v63, %v3565_v2  ;;  %v3588_v19 = vld [vmem:[%s17046_s16 + $0x2e30] sm:$0xff]  ;;  %v3577_v20 = vld [vmem:[%s17046_s16 + $0x2dd8] sm:$0xff]  ;;  %v15111_v23 = vcombine.low %v3553_v63, %v3565_v2  ;;  %v2127_v51 = vld [vmem:[%s17046_s16 + $0x88] sm:$0xff] }
 0x6ab   : > { %12081 = vmatprep.subr.bf16.mxu1 %v14992_v27  ;;  %v3589_v21 = vld [vmem:[%s17046_s16 + $0x2e38] sm:$0xff]  ;;  %v15134_v26 = vcombine.high %v3576_v14, %v3588_v19  ;;  %v2138_v54 = vld [vmem:[%s17046_s16 + $0xe0] sm:$0xff]  ;;  %v2139_v58 = vld [vmem:[%s17046_s16 + $0xe8] sm:$0xff] }
 0x6ac   : > { %v15136_v27 = vcombine.high %v3577_v20, %v3589_v21  ;;  %v3625_v40 = vld [vmem:[%s17046_s16 + $0x2f58] sm:$0xff]  ;;  %v2150_v56 = vld [vmem:[%s17046_s16 + $0x140] sm:$0xff]  ;;  %v2163_v63 = vld [vmem:[%s17046_s16 + $0x1a8] sm:$0xff] }
 0x6ad   : > { %11918 = vmatpush1.bf16.msra.mxu0 %v14989_v32  ;;  %v15133_v32 = vcombine.low %v3576_v14, %v3588_v19  ;;  %v3637_v41 = vld [vmem:[%s17046_s16 + $0x2fb8] sm:$0xff]  ;;  %v2174_v61 = vld [vmem:[%s17046_s16 + $0x200] sm:$0xff]  ;;  %v2175_v2 = vld [vmem:[%s17046_s16 + $0x208] sm:$0xff] }
 0x6ae   : > { %12082 = vmatpush1.bf16.msra.mxu1 %v14991_v1  ;;  %11919 = vmatprep.subr.bf16.mxu0 %v15014_v33  ;;  %v15135_v1 = vcombine.low %v3577_v20, %v3589_v21  ;;  %v15158_v33 = vcombine.high %v3600_v53, %v3612_v28  ;;  %v2186_v14 = vld [vmem:[%s17046_s16 + $0x260] sm:$0xff]  ;;  %v2187_v20 = vld [vmem:[%s17046_s16 + $0x268] sm:$0xff] }
 0x6af   : > { %12083 = vmatprep.subr.bf16.mxu1 %v15016_v37  ;;  %v15160_v37 = vcombine.high %v3601_v7, %v3613_v31  ;;  %v2198_v19 = vld [vmem:[%s17046_s16 + $0x2c0] sm:$0xff]  ;;  %v2199_v21 = vld [vmem:[%s17046_s16 + $0x2c8] sm:$0xff] }
 0x6b1   : > { %11920 = vmatpush1.bf16.msra.mxu0 %v15013_v42  ;;  %v15157_v42 = vcombine.low %v3600_v53, %v3612_v28  ;;  %v2210_v53 = vld [vmem:[%s17046_s16 + $0x320] sm:$0xff] }
 0x6b2   : > { %12084 = vmatpush1.bf16.msra.mxu1 %v15015_v44  ;;  %11921 = vmatprep.subr.bf16.mxu0 %v15038_v45  ;;  %v15159_v44 = vcombine.low %v3601_v7, %v3613_v31  ;;  %v15182_v45 = vcombine.high %v3624_v38, %v3636_v39  ;;  %v2222_v28 = vld [vmem:[%s17046_s16 + $0x380] sm:$0xff]  ;;  %v2211_v7 = vld [vmem:[%s17046_s16 + $0x328] sm:$0xff] }
 0x6b3   : > { %12085 = vmatprep.subr.bf16.mxu1 %v15040_v46  ;;  %v15184_v46 = vcombine.high %v3625_v40, %v3637_v41  ;;  %v2223_v31 = vld [vmem:[%s17046_s16 + $0x388] sm:$0xff] }
 0x6b5   : > { %11922 = vmatpush1.bf16.msra.mxu0 %v15037_v52  ;;  %v15181_v52 = vcombine.low %v3624_v38, %v3636_v39  ;;  %v2234_v38 = vld [vmem:[%s17046_s16 + $0x3e0] sm:$0xff] }
 0x6b6   : > { %12086 = vmatpush1.bf16.msra.mxu1 %v15039_v55  ;;  %11923 = vmatprep.subr.bf16.mxu0 %v15062_v34  ;;  %v15183_v55 = vcombine.low %v3625_v40, %v3637_v41  ;;  %v13674_v34 = vcombine.high %v2114_v47, %v2126_v48  ;;  %v2246_v39 = vld [vmem:[%s17046_s16 + $0x440] sm:$0xff]  ;;  %v2235_v40 = vld [vmem:[%s17046_s16 + $0x3e8] sm:$0xff] }
 0x6b7   : > { %12087 = vmatprep.subr.bf16.mxu1 %v15064_v9  ;;  %v13676_v9 = vcombine.high %v2115_v49, %v2127_v51  ;;  %v2247_v41 = vld [vmem:[%s17046_s16 + $0x448] sm:$0xff]  ;;  %v2258_v47 = vld [vmem:[%s17046_s16 + $0x4a0] sm:$0xff] }
 0x6b8   : > { %v2270_v48 = vld [vmem:[%s17046_s16 + $0x500] sm:$0xff] }
 0x6b9   : > { %11924 = vmatpush1.bf16.msra.mxu0 %v15061_v62  ;;  %v2151_v62 = vld [vmem:[%s17046_s16 + $0x148] sm:$0xff] }
 0x6ba   : > { %12088 = vmatpush1.bf16.msra.mxu1 %v15063_v43  ;;  %11925 = vmatprep.subr.bf16.mxu0 %v15086_v59  ;;  %v13675_v43 = vcombine.low %v2115_v49, %v2127_v51  ;;  %v13698_v59 = vcombine.high %v2138_v54, %v2150_v56  ;;  %v13700_v16 = vcombine.high %v2139_v58, %v2151_v62  ;;  %v2259_v49 = vld [vmem:[%s17046_s16 + $0x4a8] sm:$0xff] }
 0x6bb   : > { %12089 = vmatprep.subr.bf16.mxu1 %v15088_v60  ;;  %v2162_v60 = vld [vmem:[%s17046_s16 + $0x1a0] sm:$0xff]  ;;  %v2271_v51 = vld [vmem:[%s17046_s16 + $0x508] sm:$0xff] }
 0x6bd   : > { %11926 = vmatpush1.bf16.msra.mxu0 %v15085_v3  ;;  %v13697_v3 = vcombine.low %v2138_v54, %v2150_v56  ;;  %v2282_v54 = vld [vmem:[%s17046_s16 + $0x560] sm:$0xff] }
 0x6be   : > { %12090 = vmatpush1.bf16.msra.mxu1 %v15087_v5  ;;  %11927 = vmatprep.subr.bf16.mxu0 %v15110_v6  ;;  %v13699_v5 = vcombine.low %v2139_v58, %v2151_v62  ;;  %v13722_v6 = vcombine.high %v2162_v60, %v2174_v61  ;;  %v2294_v56 = vld [vmem:[%s17046_s16 + $0x5c0] sm:$0xff]  ;;  %v2295_v58 = vld [vmem:[%s17046_s16 + $0x5c8] sm:$0xff]  ;;  %v13817_v62 = vcombine.low %v2258_v47, %v2270_v48 }
 0x6bf   : > { %12091 = vmatprep.subr.bf16.mxu1 %v15112_v13  ;;  %v13724_v13 = vcombine.high %v2163_v63, %v2175_v2 }
 0x6c1   : > { %11928 = vmatpush1.bf16.msra.mxu0 %v15109_v22  ;;  %v13721_v22 = vcombine.low %v2162_v60, %v2174_v61  ;;  %v2306_v61 = vld [vmem:[%s17046_s16 + $0x620] sm:$0xff] }
 0x6c2   : > { %12092 = vmatpush1.bf16.msra.mxu1 %v15111_v23  ;;  %11929 = vmatprep.subr.bf16.mxu0 %v15134_v26  ;;  %v13723_v23 = vcombine.low %v2163_v63, %v2175_v2  ;;  %v13746_v26 = vcombine.high %v2186_v14, %v2198_v19  ;;  %v2307_v63 = vld [vmem:[%s17046_s16 + $0x628] sm:$0xff] }
 0x6c3   : > { %12093 = vmatprep.subr.bf16.mxu1 %v15136_v27  ;;  %v13748_v27 = vcombine.high %v2187_v20, %v2199_v21  ;;  %v2319_v2 = vld [vmem:[%s17046_s16 + $0x688] sm:$0xff] }
 0x6c5   : > { %11930 = vmatpush1.bf16.msra.mxu0 %v15133_v32  ;;  %v13745_v32 = vcombine.low %v2186_v14, %v2198_v19  ;;  %v2330_v14 = vld [vmem:[%s17046_s16 + $0x6e0] sm:$0xff] }
 0x6c6   : > { %12094 = vmatpush1.bf16.msra.mxu1 %v15135_v1  ;;  %11931 = vmatprep.subr.bf16.mxu0 %v15158_v33  ;;  %v13747_v1 = vcombine.low %v2187_v20, %v2199_v21  ;;  %v13770_v33 = vcombine.high %v2210_v53, %v2222_v28  ;;  %v2342_v19 = vld [vmem:[%s17046_s16 + $0x740] sm:$0xff]  ;;  %v2331_v20 = vld [vmem:[%s17046_s16 + $0x6e8] sm:$0xff] }
 0x6c7   : > { %12095 = vmatprep.subr.bf16.mxu1 %v15160_v37  ;;  %v13772_v37 = vcombine.high %v2211_v7, %v2223_v31  ;;  %v2343_v21 = vld [vmem:[%s17046_s16 + $0x748] sm:$0xff] }
 0x6c9   : > { %11932 = vmatpush1.bf16.msra.mxu0 %v15157_v42  ;;  %v13769_v42 = vcombine.low %v2210_v53, %v2222_v28  ;;  %v2354_v53 = vld [vmem:[%s17046_s16 + $0x7a0] sm:$0xff] }
 0x6ca   : > { %12096 = vmatpush1.bf16.msra.mxu1 %v15159_v44  ;;  %11933 = vmatprep.subr.bf16.mxu0 %v15182_v45  ;;  %v13771_v44 = vcombine.low %v2211_v7, %v2223_v31  ;;  %v13794_v45 = vcombine.high %v2234_v38, %v2246_v39  ;;  %v2366_v28 = vld [vmem:[%s17046_s16 + $0x800] sm:$0xff]  ;;  %v2355_v7 = vld [vmem:[%s17046_s16 + $0x7a8] sm:$0xff] }
 0x6cb   : > { %12097 = vmatprep.subr.bf16.mxu1 %v15184_v46  ;;  %v13796_v46 = vcombine.high %v2235_v40, %v2247_v41  ;;  %v2367_v31 = vld [vmem:[%s17046_s16 + $0x808] sm:$0xff] }
 0x6cd   : > { %11934 = vmatpush1.bf16.msra.mxu0 %v15181_v52  ;;  %v13793_v52 = vcombine.low %v2234_v38, %v2246_v39  ;;  %v2378_v38 = vld [vmem:[%s17046_s16 + $0x860] sm:$0xff] }
 0x6ce   : > { %12098 = vmatpush1.bf16.msra.mxu1 %v15183_v55  ;;  %12108 = vmatprep.subr.bf16.mxu0 %v13674_v34  ;;  %v13795_v55 = vcombine.low %v2235_v40, %v2247_v41  ;;  %v13818_v34 = vcombine.high %v2258_v47, %v2270_v48  ;;  %v2390_v39 = vld [vmem:[%s17046_s16 + $0x8c0] sm:$0xff]  ;;  %v2379_v40 = vld [vmem:[%s17046_s16 + $0x868] sm:$0xff] }
 0x6cf   : > { %12272 = vmatprep.subr.bf16.mxu1 %v13676_v9  ;;  %v13820_v9 = vcombine.high %v2259_v49, %v2271_v51  ;;  %v2391_v41 = vld [vmem:[%s17046_s16 + $0x8c8] sm:$0xff]  ;;  %v2402_v47 = vld [vmem:[%s17046_s16 + $0x920] sm:$0xff] }
 0x6d0   : > { %11936 = vmatmul.mubr.bf16.vlgmr.msra.gmra.mrb[12].mxu0 %v17434_v50  ;;  %v2414_v48 = vld [vmem:[%s17046_s16 + $0x980] sm:$0xff] }
 0x6d1   : > { %12100 = vmatmul.mubr.bf16.vlgmr.msra.gmra.mrb[12].mxu1 %v17434_v50  ;;  %12109 = vmatpush1.bf16.msra.mxu0 %v13673_v57  ;;  %v2283_v57 = vld [vmem:[%s17046_s16 + $0x568] sm:$0xff] }
 0x6d2   : > { %12140 = vmatprep.mubr.bf16.mxu0 %v17189_v0  ;;  %12273 = vmatpush1.bf16.msra.mxu1 %v13675_v43  ;;  %v13819_v43 = vcombine.low %v2259_v49, %v2271_v51  ;;  %v13844_v60 = vcombine.high %v2283_v57, %v2295_v58  ;;  %v2403_v49 = vld [vmem:[%s17046_s16 + $0x928] sm:$0xff] }
 0x6d3   : > { %12304 = vmatprep.mubr.bf16.mxu1 %v17189_v0  ;;  %12110 = vmatprep.subr.bf16.mxu0 %v13698_v59  ;;  %v13842_v59 = vcombine.high %v2282_v54, %v2294_v56  ;;  %v2415_v51 = vld [vmem:[%s17046_s16 + $0x988] sm:$0xff] }
 0x6d4   : > { %12274 = vmatprep.subr.bf16.mxu1 %v13700_v16  ;;  %v2318_v16 = vld [vmem:[%s17046_s16 + $0x680] sm:$0xff] }
 0x6d5   : > { %12111 = vmatpush1.bf16.msra.mxu0 %v13697_v3  ;;  %v13841_v3 = vcombine.low %v2282_v54, %v2294_v56  ;;  %v2426_v54 = vld [vmem:[%s17046_s16 + $0x9e0] sm:$0xff] }
 0x6d6   : > { %12275 = vmatpush1.bf16.msra.mxu1 %v13699_v5  ;;  %12112 = vmatprep.subr.bf16.mxu0 %v13722_v6  ;;  %v13843_v5 = vcombine.low %v2283_v57, %v2295_v58  ;;  %v13866_v6 = vcombine.high %v2306_v61, %v2318_v16  ;;  %v2438_v56 = vld [vmem:[%s17046_s16 + $0xa40] sm:$0xff]  ;;  %v2427_v57 = vld [vmem:[%s17046_s16 + $0x9e8] sm:$0xff] }
 0x6d7   : > { %12276 = vmatprep.subr.bf16.mxu1 %v13724_v13  ;;  %v13868_v13 = vcombine.high %v2307_v63, %v2319_v2  ;;  %v2439_v58 = vld [vmem:[%s17046_s16 + $0xa48] sm:$0xff] }
 0x6d9   : > { %12113 = vmatpush1.bf16.msra.mxu0 %v13721_v22  ;;  %v13865_v22 = vcombine.low %v2306_v61, %v2318_v16  ;;  %v2450_v61 = vld [vmem:[%s17046_s16 + $0xaa0] sm:$0xff] }
 0x6da   : > { %12277 = vmatpush1.bf16.msra.mxu1 %v13723_v23  ;;  %12114 = vmatprep.subr.bf16.mxu0 %v13746_v26  ;;  %v13867_v23 = vcombine.low %v2307_v63, %v2319_v2  ;;  %v13890_v26 = vcombine.high %v2330_v14, %v2342_v19  ;;  %v2462_v16 = vld [vmem:[%s17046_s16 + $0xb00] sm:$0xff]  ;;  %v2451_v63 = vld [vmem:[%s17046_s16 + $0xaa8] sm:$0xff] }
 0x6db   : > { %12278 = vmatprep.subr.bf16.mxu1 %v13748_v27  ;;  %v13892_v27 = vcombine.high %v2331_v20, %v2343_v21  ;;  %v2463_v2 = vld [vmem:[%s17046_s16 + $0xb08] sm:$0xff] }
 0x6dd   : > { %12115 = vmatpush1.bf16.msra.mxu0 %v13745_v32  ;;  %v13889_v32 = vcombine.low %v2330_v14, %v2342_v19  ;;  %v2474_v14 = vld [vmem:[%s17046_s16 + $0xb60] sm:$0xff] }
 0x6de   : > { %12279 = vmatpush1.bf16.msra.mxu1 %v13747_v1  ;;  %12116 = vmatprep.subr.bf16.mxu0 %v13770_v33  ;;  %v13891_v1 = vcombine.low %v2331_v20, %v2343_v21  ;;  %v13914_v33 = vcombine.high %v2354_v53, %v2366_v28  ;;  %v2486_v19 = vld [vmem:[%s17046_s16 + $0xbc0] sm:$0xff]  ;;  %v2475_v20 = vld [vmem:[%s17046_s16 + $0xb68] sm:$0xff] }
 0x6df   : > { %12280 = vmatprep.subr.bf16.mxu1 %v13772_v37  ;;  %v13916_v37 = vcombine.high %v2355_v7, %v2367_v31  ;;  %v2487_v21 = vld [vmem:[%s17046_s16 + $0xbc8] sm:$0xff] }
 0x6e1   : > { %12117 = vmatpush1.bf16.msra.mxu0 %v13769_v42  ;;  %v13913_v42 = vcombine.low %v2354_v53, %v2366_v28  ;;  %v2498_v53 = vld [vmem:[%s17046_s16 + $0xc20] sm:$0xff] }
 0x6e2   : > { %12281 = vmatpush1.bf16.msra.mxu1 %v13771_v44  ;;  %12118 = vmatprep.subr.bf16.mxu0 %v13794_v45  ;;  %v13915_v44 = vcombine.low %v2355_v7, %v2367_v31  ;;  %v13938_v45 = vcombine.high %v2378_v38, %v2390_v39  ;;  %v2510_v28 = vld [vmem:[%s17046_s16 + $0xc80] sm:$0xff]  ;;  %v2499_v7 = vld [vmem:[%s17046_s16 + $0xc28] sm:$0xff] }
 0x6e3   : > { %12282 = vmatprep.subr.bf16.mxu1 %v13796_v46  ;;  %v13940_v46 = vcombine.high %v2379_v40, %v2391_v41  ;;  %v2511_v31 = vld [vmem:[%s17046_s16 + $0xc88] sm:$0xff] }
 0x6e5   : > { %12119 = vmatpush1.bf16.msra.mxu0 %v13793_v52  ;;  %v13937_v52 = vcombine.low %v2378_v38, %v2390_v39  ;;  %v2522_v38 = vld [vmem:[%s17046_s16 + $0xce0] sm:$0xff] }
 0x6e6   : > { %12283 = vmatpush1.bf16.msra.mxu1 %v13795_v55  ;;  %12120 = vmatprep.subr.bf16.mxu0 %v13818_v34  ;;  %v13939_v55 = vcombine.low %v2379_v40, %v2391_v41  ;;  %v13962_v34 = vcombine.high %v2402_v47, %v2414_v48  ;;  %v2534_v39 = vld [vmem:[%s17046_s16 + $0xd40] sm:$0xff]  ;;  %v14057_v40 = vcombine.low %v2498_v53, %v2510_v28  ;;  %v2523_v41 = vld [vmem:[%s17046_s16 + $0xce8] sm:$0xff] }
 0x6e7   : > { %12284 = vmatprep.subr.bf16.mxu1 %v13820_v9  ;;  %v13964_v9 = vcombine.high %v2403_v49, %v2415_v51 }
 0x6e9   : > { %12121 = vmatpush1.bf16.msra.mxu0 %v13817_v62  ;;  %v13961_v62 = vcombine.low %v2402_v47, %v2414_v48  ;;  %v2558_v47 = vld [vmem:[%s17046_s16 + $0xe00] sm:$0xff] }
 0x6ea   : > { %12285 = vmatpush1.bf16.msra.mxu1 %v13819_v43  ;;  %12122 = vmatprep.subr.bf16.mxu0 %v13842_v59  ;;  %v13963_v43 = vcombine.low %v2403_v49, %v2415_v51  ;;  %v13986_v59 = vcombine.high %v2426_v54, %v2438_v56  ;;  %v2547_v49 = vld [vmem:[%s17046_s16 + $0xda8] sm:$0xff] }
 0x6eb   : > { %12286 = vmatprep.subr.bf16.mxu1 %v13844_v60  ;;  %v13988_v60 = vcombine.high %v2427_v57, %v2439_v58  ;;  %v2559_v51 = vld [vmem:[%s17046_s16 + $0xe08] sm:$0xff] }
 0x6ed   : > { %12123 = vmatpush1.bf16.msra.mxu0 %v13841_v3  ;;  %v13985_v3 = vcombine.low %v2426_v54, %v2438_v56  ;;  %v2570_v54 = vld [vmem:[%s17046_s16 + $0xe60] sm:$0xff] }
 0x6ee   : > { %12287 = vmatpush1.bf16.msra.mxu1 %v13843_v5  ;;  %12124 = vmatprep.subr.bf16.mxu0 %v13866_v6  ;;  %v13987_v5 = vcombine.low %v2427_v57, %v2439_v58  ;;  %v14010_v6 = vcombine.high %v2450_v61, %v2462_v16  ;;  %v2582_v56 = vld [vmem:[%s17046_s16 + $0xec0] sm:$0xff]  ;;  %v2571_v57 = vld [vmem:[%s17046_s16 + $0xe68] sm:$0xff] }
 0x6ef   : > { %12288 = vmatprep.subr.bf16.mxu1 %v13868_v13  ;;  %v14012_v13 = vcombine.high %v2451_v63, %v2463_v2  ;;  %v2583_v58 = vld [vmem:[%s17046_s16 + $0xec8] sm:$0xff] }
 0x6f1   : > { %12125 = vmatpush1.bf16.msra.mxu0 %v13865_v22  ;;  %v14009_v22 = vcombine.low %v2450_v61, %v2462_v16  ;;  %v2594_v61 = vld [vmem:[%s17046_s16 + $0xf20] sm:$0xff] }
 0x6f2   : > { %12289 = vmatpush1.bf16.msra.mxu1 %v13867_v23  ;;  %12126 = vmatprep.subr.bf16.mxu0 %v13890_v26  ;;  %v14011_v23 = vcombine.low %v2451_v63, %v2463_v2  ;;  %v14034_v26 = vcombine.high %v2474_v14, %v2486_v19  ;;  %v2606_v16 = vld [vmem:[%s17046_s16 + $0xf80] sm:$0xff]  ;;  %v2595_v63 = vld [vmem:[%s17046_s16 + $0xf28] sm:$0xff] }
 0x6f3   : > { %12290 = vmatprep.subr.bf16.mxu1 %v13892_v27  ;;  %v14036_v27 = vcombine.high %v2475_v20, %v2487_v21  ;;  %v2607_v2 = vld [vmem:[%s17046_s16 + $0xf88] sm:$0xff] }
 0x6f5   : > { %12127 = vmatpush1.bf16.msra.mxu0 %v13889_v32  ;;  %v14033_v32 = vcombine.low %v2474_v14, %v2486_v19  ;;  %v2618_v14 = vld [vmem:[%s17046_s16 + $0xfe0] sm:$0xff] }
 0x6f6   : > { %12291 = vmatpush1.bf16.msra.mxu1 %v13891_v1  ;;  %12128 = vmatprep.subr.bf16.mxu0 %v13914_v33  ;;  %v14035_v1 = vcombine.low %v2475_v20, %v2487_v21  ;;  %v14058_v33 = vcombine.high %v2498_v53, %v2510_v28  ;;  %v2630_v19 = vld [vmem:[%s17046_s16 + $0x1040] sm:$0xff]  ;;  %v2619_v20 = vld [vmem:[%s17046_s16 + $0xfe8] sm:$0xff] }
 0x6f7   : > { %12292 = vmatprep.subr.bf16.mxu1 %v13916_v37  ;;  %v14060_v37 = vcombine.high %v2499_v7, %v2511_v31  ;;  %v2631_v21 = vld [vmem:[%s17046_s16 + $0x1048] sm:$0xff]  ;;  %v2642_v53 = vld [vmem:[%s17046_s16 + $0x10a0] sm:$0xff] }
 0x6f8   : > { %v2654_v28 = vld [vmem:[%s17046_s16 + $0x1100] sm:$0xff] }
 0x6f9   : > { %12129 = vmatpush1.bf16.msra.mxu0 %v13913_v42  ;;  %v2535_v42 = vld [vmem:[%s17046_s16 + $0xd48] sm:$0xff] }
 0x6fa   : > { %12293 = vmatpush1.bf16.msra.mxu1 %v13915_v44  ;;  %12130 = vmatprep.subr.bf16.mxu0 %v13938_v45  ;;  %v14059_v44 = vcombine.low %v2499_v7, %v2511_v31  ;;  %v14082_v45 = vcombine.high %v2522_v38, %v2534_v39  ;;  %v14084_v48 = vcombine.high %v2523_v41, %v2535_v42  ;;  %v2643_v7 = vld [vmem:[%s17046_s16 + $0x10a8] sm:$0xff] }
 0x6fb   : > { %12294 = vmatprep.subr.bf16.mxu1 %v13940_v46  ;;  %v2546_v46 = vld [vmem:[%s17046_s16 + $0xda0] sm:$0xff]  ;;  %v2655_v31 = vld [vmem:[%s17046_s16 + $0x1108] sm:$0xff] }
 0x6fd   : > { %12131 = vmatpush1.bf16.msra.mxu0 %v13937_v52  ;;  %v14081_v52 = vcombine.low %v2522_v38, %v2534_v39  ;;  %v2666_v38 = vld [vmem:[%s17046_s16 + $0x1160] sm:$0xff] }
 0x6fe   : > { %12295 = vmatpush1.bf16.msra.mxu1 %v13939_v55  ;;  %12132 = vmatprep.subr.bf16.mxu0 %v13962_v34  ;;  %v14083_v55 = vcombine.low %v2523_v41, %v2535_v42  ;;  %v14106_v34 = vcombine.high %v2546_v46, %v2558_v47  ;;  %v2678_v39 = vld [vmem:[%s17046_s16 + $0x11c0] sm:$0xff]  ;;  %v2679_v41 = vld [vmem:[%s17046_s16 + $0x11c8] sm:$0xff]  ;;  %v14201_v42 = vcombine.low %v2642_v53, %v2654_v28 }
 0x6ff   : > { %12296 = vmatprep.subr.bf16.mxu1 %v13964_v9  ;;  %v14108_v9 = vcombine.high %v2547_v49, %v2559_v51 }
 0x701   : > { %12133 = vmatpush1.bf16.msra.mxu0 %v13961_v62  ;;  %v14105_v62 = vcombine.low %v2546_v46, %v2558_v47  ;;  %v2690_v47 = vld [vmem:[%s17046_s16 + $0x1220] sm:$0xff] }
 0x702   : > { %12297 = vmatpush1.bf16.msra.mxu1 %v13963_v43  ;;  %12134 = vmatprep.subr.bf16.mxu0 %v13986_v59  ;;  %v14107_v43 = vcombine.low %v2547_v49, %v2559_v51  ;;  %v14130_v59 = vcombine.high %v2570_v54, %v2582_v56  ;;  %v2691_v49 = vld [vmem:[%s17046_s16 + $0x1228] sm:$0xff] }
 0x703   : > { %12298 = vmatprep.subr.bf16.mxu1 %v13988_v60  ;;  %v14132_v60 = vcombine.high %v2571_v57, %v2583_v58  ;;  %v2703_v51 = vld [vmem:[%s17046_s16 + $0x1288] sm:$0xff] }
 0x705   : > { %12135 = vmatpush1.bf16.msra.mxu0 %v13985_v3  ;;  %v14129_v3 = vcombine.low %v2570_v54, %v2582_v56  ;;  %v2714_v54 = vld [vmem:[%s17046_s16 + $0x12e0] sm:$0xff] }
 0x706   : > { %12299 = vmatpush1.bf16.msra.mxu1 %v13987_v5  ;;  %12136 = vmatprep.subr.bf16.mxu0 %v14010_v6  ;;  %v14131_v5 = vcombine.low %v2571_v57, %v2583_v58  ;;  %v14154_v6 = vcombine.high %v2594_v61, %v2606_v16  ;;  %v2726_v56 = vld [vmem:[%s17046_s16 + $0x1340] sm:$0xff]  ;;  %v2715_v57 = vld [vmem:[%s17046_s16 + $0x12e8] sm:$0xff] }
 0x707   : > { %12300 = vmatprep.subr.bf16.mxu1 %v14012_v13  ;;  %v14156_v13 = vcombine.high %v2595_v63, %v2607_v2  ;;  %v2727_v58 = vld [vmem:[%s17046_s16 + $0x1348] sm:$0xff] }
 0x709   : > { %12137 = vmatpush1.bf16.msra.mxu0 %v14009_v22  ;;  %v14153_v22 = vcombine.low %v2594_v61, %v2606_v16  ;;  %v2738_v61 = vld [vmem:[%s17046_s16 + $0x13a0] sm:$0xff] }
 0x70a   : > { %12301 = vmatpush1.bf16.msra.mxu1 %v14011_v23  ;;  %12138 = vmatprep.subr.bf16.mxu0 %v14034_v26  ;;  %v14155_v23 = vcombine.low %v2595_v63, %v2607_v2  ;;  %v14178_v26 = vcombine.high %v2618_v14, %v2630_v19  ;;  %v2750_v16 = vld [vmem:[%s17046_s16 + $0x1400] sm:$0xff]  ;;  %v2739_v63 = vld [vmem:[%s17046_s16 + $0x13a8] sm:$0xff] }
 0x70b   : > { %12302 = vmatprep.subr.bf16.mxu1 %v14036_v27  ;;  %v14180_v27 = vcombine.high %v2619_v20, %v2631_v21  ;;  %v2751_v2 = vld [vmem:[%s17046_s16 + $0x1408] sm:$0xff] }
 0x70d   : > { %12139 = vmatpush1.bf16.msra.mxu0 %v14033_v32  ;;  %v14177_v32 = vcombine.low %v2618_v14, %v2630_v19  ;;  %v2762_v14 = vld [vmem:[%s17046_s16 + $0x1460] sm:$0xff] }
 0x70e   : > { %12303 = vmatpush1.bf16.msra.mxu1 %v14035_v1  ;;  %12149 = vmatprep.subr.bf16.mxu0 %v14058_v33  ;;  %v14179_v1 = vcombine.low %v2619_v20, %v2631_v21  ;;  %v14202_v33 = vcombine.high %v2642_v53, %v2654_v28  ;;  %v2774_v19 = vld [vmem:[%s17046_s16 + $0x14c0] sm:$0xff]  ;;  %v2763_v20 = vld [vmem:[%s17046_s16 + $0x1468] sm:$0xff] }
 0x70f   : > { %12313 = vmatprep.subr.bf16.mxu1 %v14060_v37  ;;  %v14204_v37 = vcombine.high %v2643_v7, %v2655_v31  ;;  %v2775_v21 = vld [vmem:[%s17046_s16 + $0x14c8] sm:$0xff]  ;;  %v2786_v53 = vld [vmem:[%s17046_s16 + $0x1520] sm:$0xff] }
 0x710   : > { %12141 = vmatmul.mubr.bf16.vlgmr.msra.gmra.mrb[16].mxu0 %v17191_v4  ;;  %v2798_v28 = vld [vmem:[%s17046_s16 + $0x1580] sm:$0xff] }
 0x711   : > { %12305 = vmatmul.mubr.bf16.vlgmr.msra.gmra.mrb[16].mxu1 %v17191_v4  ;;  %12150 = vmatpush1.bf16.msra.mxu0 %v14057_v40  ;;  %v2667_v40 = vld [vmem:[%s17046_s16 + $0x1168] sm:$0xff] }
 0x712   : > { %12181 = vmatprep.mubr.bf16.mxu0 %v17199_v17  ;;  %12314 = vmatpush1.bf16.msra.mxu1 %v14059_v44  ;;  %v14203_v44 = vcombine.low %v2643_v7, %v2655_v31  ;;  %v14228_v46 = vcombine.high %v2667_v40, %v2679_v41  ;;  %v2787_v7 = vld [vmem:[%s17046_s16 + $0x1528] sm:$0xff] }
 0x713   : > { %12345 = vmatprep.mubr.bf16.mxu1 %v17199_v17  ;;  %12151 = vmatprep.subr.bf16.mxu0 %v14082_v45  ;;  %v14226_v45 = vcombine.high %v2666_v38, %v2678_v39  ;;  %v2799_v31 = vld [vmem:[%s17046_s16 + $0x1588] sm:$0xff] }
 0x714   : > { %12315 = vmatprep.subr.bf16.mxu1 %v14084_v48  ;;  %v2702_v48 = vld [vmem:[%s17046_s16 + $0x1280] sm:$0xff] }
 0x715   : > { %12152 = vmatpush1.bf16.msra.mxu0 %v14081_v52  ;;  %v14225_v52 = vcombine.low %v2666_v38, %v2678_v39  ;;  %v2810_v38 = vld [vmem:[%s17046_s16 + $0x15e0] sm:$0xff] }
 0x716   : > { %12316 = vmatpush1.bf16.msra.mxu1 %v14083_v55  ;;  %12153 = vmatprep.subr.bf16.mxu0 %v14106_v34  ;;  %v14227_v55 = vcombine.low %v2667_v40, %v2679_v41  ;;  %v14250_v34 = vcombine.high %v2690_v47, %v2702_v48  ;;  %v2822_v39 = vld [vmem:[%s17046_s16 + $0x1640] sm:$0xff]  ;;  %v2811_v40 = vld [vmem:[%s17046_s16 + $0x15e8] sm:$0xff] }
 0x717   : > { %12317 = vmatprep.subr.bf16.mxu1 %v14108_v9  ;;  %v14252_v9 = vcombine.high %v2691_v49, %v2703_v51  ;;  %v2823_v41 = vld [vmem:[%s17046_s16 + $0x1648] sm:$0xff] }
 0x719   : > { %12154 = vmatpush1.bf16.msra.mxu0 %v14105_v62  ;;  %v14249_v62 = vcombine.low %v2690_v47, %v2702_v48  ;;  %v2834_v47 = vld [vmem:[%s17046_s16 + $0x16a0] sm:$0xff] }
 0x71a   : > { %12318 = vmatpush1.bf16.msra.mxu1 %v14107_v43  ;;  %12155 = vmatprep.subr.bf16.mxu0 %v14130_v59  ;;  %v14251_v43 = vcombine.low %v2691_v49, %v2703_v51  ;;  %v14274_v59 = vcombine.high %v2714_v54, %v2726_v56  ;;  %v2846_v48 = vld [vmem:[%s17046_s16 + $0x1700] sm:$0xff]  ;;  %v2835_v49 = vld [vmem:[%s17046_s16 + $0x16a8] sm:$0xff] }
 0x71b   : > { %12319 = vmatprep.subr.bf16.mxu1 %v14132_v60  ;;  %v14276_v60 = vcombine.high %v2715_v57, %v2727_v58  ;;  %v2847_v51 = vld [vmem:[%s17046_s16 + $0x1708] sm:$0xff] }
 0x71d   : > { %12156 = vmatpush1.bf16.msra.mxu0 %v14129_v3  ;;  %v14273_v3 = vcombine.low %v2714_v54, %v2726_v56  ;;  %v2858_v54 = vld [vmem:[%s17046_s16 + $0x1760] sm:$0xff] }
 0x71e   : > { %12320 = vmatpush1.bf16.msra.mxu1 %v14131_v5  ;;  %12157 = vmatprep.subr.bf16.mxu0 %v14154_v6  ;;  %v14275_v5 = vcombine.low %v2715_v57, %v2727_v58  ;;  %v14298_v6 = vcombine.high %v2738_v61, %v2750_v16  ;;  %v2870_v56 = vld [vmem:[%s17046_s16 + $0x17c0] sm:$0xff]  ;;  %v2859_v57 = vld [vmem:[%s17046_s16 + $0x1768] sm:$0xff] }
 0x71f   : > { %12321 = vmatprep.subr.bf16.mxu1 %v14156_v13  ;;  %v14300_v13 = vcombine.high %v2739_v63, %v2751_v2  ;;  %v2871_v58 = vld [vmem:[%s17046_s16 + $0x17c8] sm:$0xff] }
 0x721   : > { %12158 = vmatpush1.bf16.msra.mxu0 %v14153_v22  ;;  %v14297_v22 = vcombine.low %v2738_v61, %v2750_v16  ;;  %v2882_v61 = vld [vmem:[%s17046_s16 + $0x1820] sm:$0xff] }
 0x722   : > { %12322 = vmatpush1.bf16.msra.mxu1 %v14155_v23  ;;  %12159 = vmatprep.subr.bf16.mxu0 %v14178_v26  ;;  %v14299_v23 = vcombine.low %v2739_v63, %v2751_v2  ;;  %v14322_v26 = vcombine.high %v2762_v14, %v2774_v19  ;;  %v2894_v16 = vld [vmem:[%s17046_s16 + $0x1880] sm:$0xff]  ;;  %v2883_v63 = vld [vmem:[%s17046_s16 + $0x1828] sm:$0xff] }
 0x723   : > { %12323 = vmatprep.subr.bf16.mxu1 %v14180_v27  ;;  %v14324_v27 = vcombine.high %v2763_v20, %v2775_v21  ;;  %v2895_v2 = vld [vmem:[%s17046_s16 + $0x1888] sm:$0xff] }
 0x725   : > { %12160 = vmatpush1.bf16.msra.mxu0 %v14177_v32  ;;  %v14321_v32 = vcombine.low %v2762_v14, %v2774_v19  ;;  %v2906_v14 = vld [vmem:[%s17046_s16 + $0x18e0] sm:$0xff] }
 0x726   : > { %12324 = vmatpush1.bf16.msra.mxu1 %v14179_v1  ;;  %12161 = vmatprep.subr.bf16.mxu0 %v14202_v33  ;;  %v14323_v1 = vcombine.low %v2763_v20, %v2775_v21  ;;  %v14346_v33 = vcombine.high %v2786_v53, %v2798_v28  ;;  %v2918_v19 = vld [vmem:[%s17046_s16 + $0x1940] sm:$0xff]  ;;  %v14441_v20 = vcombine.low %v2882_v61, %v2894_v16  ;;  %v2907_v21 = vld [vmem:[%s17046_s16 + $0x18e8] sm:$0xff] }
 0x727   : > { %12325 = vmatprep.subr.bf16.mxu1 %v14204_v37  ;;  %v14348_v37 = vcombine.high %v2787_v7, %v2799_v31 }
 0x729   : > { %12162 = vmatpush1.bf16.msra.mxu0 %v14201_v42  ;;  %v14345_v42 = vcombine.low %v2786_v53, %v2798_v28  ;;  %v2942_v53 = vld [vmem:[%s17046_s16 + $0x1a00] sm:$0xff] }
 0x72a   : > { %12326 = vmatpush1.bf16.msra.mxu1 %v14203_v44  ;;  %12163 = vmatprep.subr.bf16.mxu0 %v14226_v45  ;;  %v14347_v44 = vcombine.low %v2787_v7, %v2799_v31  ;;  %v14370_v45 = vcombine.high %v2810_v38, %v2822_v39  ;;  %v2931_v7 = vld [vmem:[%s17046_s16 + $0x19a8] sm:$0xff] }
 0x72b   : > { %12327 = vmatprep.subr.bf16.mxu1 %v14228_v46  ;;  %v14372_v46 = vcombine.high %v2811_v40, %v2823_v41  ;;  %v2943_v31 = vld [vmem:[%s17046_s16 + $0x1a08] sm:$0xff] }
 0x72d   : > { %12164 = vmatpush1.bf16.msra.mxu0 %v14225_v52  ;;  %v14369_v52 = vcombine.low %v2810_v38, %v2822_v39  ;;  %v2954_v38 = vld [vmem:[%s17046_s16 + $0x1a60] sm:$0xff] }
 0x72e   : > { %12328 = vmatpush1.bf16.msra.mxu1 %v14227_v55  ;;  %12165 = vmatprep.subr.bf16.mxu0 %v14250_v34  ;;  %v14371_v55 = vcombine.low %v2811_v40, %v2823_v41  ;;  %v14394_v34 = vcombine.high %v2834_v47, %v2846_v48  ;;  %v2966_v39 = vld [vmem:[%s17046_s16 + $0x1ac0] sm:$0xff]  ;;  %v2955_v40 = vld [vmem:[%s17046_s16 + $0x1a68] sm:$0xff] }
 0x72f   : > { %12329 = vmatprep.subr.bf16.mxu1 %v14252_v9  ;;  %v14396_v9 = vcombine.high %v2835_v49, %v2847_v51  ;;  %v2967_v41 = vld [vmem:[%s17046_s16 + $0x1ac8] sm:$0xff] }
 0x731   : > { %12166 = vmatpush1.bf16.msra.mxu0 %v14249_v62  ;;  %v14393_v62 = vcombine.low %v2834_v47, %v2846_v48  ;;  %v2978_v47 = vld [vmem:[%s17046_s16 + $0x1b20] sm:$0xff] }
 0x732   : > { %12330 = vmatpush1.bf16.msra.mxu1 %v14251_v43  ;;  %12167 = vmatprep.subr.bf16.mxu0 %v14274_v59  ;;  %v14395_v43 = vcombine.low %v2835_v49, %v2847_v51  ;;  %v14418_v59 = vcombine.high %v2858_v54, %v2870_v56  ;;  %v2990_v48 = vld [vmem:[%s17046_s16 + $0x1b80] sm:$0xff]  ;;  %v2979_v49 = vld [vmem:[%s17046_s16 + $0x1b28] sm:$0xff] }
 0x733   : > { %12331 = vmatprep.subr.bf16.mxu1 %v14276_v60  ;;  %v14420_v60 = vcombine.high %v2859_v57, %v2871_v58  ;;  %v2991_v51 = vld [vmem:[%s17046_s16 + $0x1b88] sm:$0xff] }
 0x735   : > { %12168 = vmatpush1.bf16.msra.mxu0 %v14273_v3  ;;  %v14417_v3 = vcombine.low %v2858_v54, %v2870_v56  ;;  %v3002_v54 = vld [vmem:[%s17046_s16 + $0x1be0] sm:$0xff] }
 0x736   : > { %12332 = vmatpush1.bf16.msra.mxu1 %v14275_v5  ;;  %12169 = vmatprep.subr.bf16.mxu0 %v14298_v6  ;;  %v14419_v5 = vcombine.low %v2859_v57, %v2871_v58  ;;  %v14442_v6 = vcombine.high %v2882_v61, %v2894_v16  ;;  %v3014_v56 = vld [vmem:[%s17046_s16 + $0x1c40] sm:$0xff]  ;;  %v3003_v57 = vld [vmem:[%s17046_s16 + $0x1be8] sm:$0xff] }
 0x737   : > { %12333 = vmatprep.subr.bf16.mxu1 %v14300_v13  ;;  %v14444_v13 = vcombine.high %v2883_v63, %v2895_v2  ;;  %v3015_v58 = vld [vmem:[%s17046_s16 + $0x1c48] sm:$0xff]  ;;  %v3026_v61 = vld [vmem:[%s17046_s16 + $0x1ca0] sm:$0xff] }
 0x738   : > { %v3038_v16 = vld [vmem:[%s17046_s16 + $0x1d00] sm:$0xff] }
 0x739   : > { %12170 = vmatpush1.bf16.msra.mxu0 %v14297_v22  ;;  %v2919_v22 = vld [vmem:[%s17046_s16 + $0x1948] sm:$0xff] }
 0x73a   : > { %12334 = vmatpush1.bf16.msra.mxu1 %v14299_v23  ;;  %12171 = vmatprep.subr.bf16.mxu0 %v14322_v26  ;;  %v14443_v23 = vcombine.low %v2883_v63, %v2895_v2  ;;  %v14466_v26 = vcombine.high %v2906_v14, %v2918_v19  ;;  %v14468_v28 = vcombine.high %v2907_v21, %v2919_v22  ;;  %v3027_v63 = vld [vmem:[%s17046_s16 + $0x1ca8] sm:$0xff] }
 0x73b   : > { %12335 = vmatprep.subr.bf16.mxu1 %v14324_v27  ;;  %v2930_v27 = vld [vmem:[%s17046_s16 + $0x19a0] sm:$0xff]  ;;  %v3039_v2 = vld [vmem:[%s17046_s16 + $0x1d08] sm:$0xff] }
 0x73d   : > { %12172 = vmatpush1.bf16.msra.mxu0 %v14321_v32  ;;  %v14465_v32 = vcombine.low %v2906_v14, %v2918_v19  ;;  %v3050_v14 = vld [vmem:[%s17046_s16 + $0x1d60] sm:$0xff] }
 0x73e   : > { %12336 = vmatpush1.bf16.msra.mxu1 %v14323_v1  ;;  %12173 = vmatprep.subr.bf16.mxu0 %v14346_v33  ;;  %v14467_v1 = vcombine.low %v2907_v21, %v2919_v22  ;;  %v14490_v33 = vcombine.high %v2930_v27, %v2942_v53  ;;  %v3062_v19 = vld [vmem:[%s17046_s16 + $0x1dc0] sm:$0xff]  ;;  %v3063_v21 = vld [vmem:[%s17046_s16 + $0x1dc8] sm:$0xff]  ;;  %v14585_v22 = vcombine.low %v3026_v61, %v3038_v16 }
 0x73f   : > { %12337 = vmatprep.subr.bf16.mxu1 %v14348_v37  ;;  %v14492_v37 = vcombine.high %v2931_v7, %v2943_v31 }
 0x741   : > { %12174 = vmatpush1.bf16.msra.mxu0 %v14345_v42  ;;  %v14489_v42 = vcombine.low %v2930_v27, %v2942_v53  ;;  %v3074_v53 = vld [vmem:[%s17046_s16 + $0x1e20] sm:$0xff] }
 0x742   : > { %12338 = vmatpush1.bf16.msra.mxu1 %v14347_v44  ;;  %12175 = vmatprep.subr.bf16.mxu0 %v14370_v45  ;;  %v14491_v44 = vcombine.low %v2931_v7, %v2943_v31  ;;  %v14514_v45 = vcombine.high %v2954_v38, %v2966_v39  ;;  %v3075_v7 = vld [vmem:[%s17046_s16 + $0x1e28] sm:$0xff] }
 0x743   : > { %12339 = vmatprep.subr.bf16.mxu1 %v14372_v46  ;;  %v14516_v46 = vcombine.high %v2955_v40, %v2967_v41  ;;  %v3087_v31 = vld [vmem:[%s17046_s16 + $0x1e88] sm:$0xff] }
 0x745   : > { %12176 = vmatpush1.bf16.msra.mxu0 %v14369_v52  ;;  %v14513_v52 = vcombine.low %v2954_v38, %v2966_v39  ;;  %v3098_v38 = vld [vmem:[%s17046_s16 + $0x1ee0] sm:$0xff] }
 0x746   : > { %12340 = vmatpush1.bf16.msra.mxu1 %v14371_v55  ;;  %12177 = vmatprep.subr.bf16.mxu0 %v14394_v34  ;;  %v14515_v55 = vcombine.low %v2955_v40, %v2967_v41  ;;  %v14538_v34 = vcombine.high %v2978_v47, %v2990_v48  ;;  %v3110_v39 = vld [vmem:[%s17046_s16 + $0x1f40] sm:$0xff]  ;;  %v3099_v40 = vld [vmem:[%s17046_s16 + $0x1ee8] sm:$0xff] }
 0x747   : > { %12341 = vmatprep.subr.bf16.mxu1 %v14396_v9  ;;  %v14540_v9 = vcombine.high %v2979_v49, %v2991_v51  ;;  %v3111_v41 = vld [vmem:[%s17046_s16 + $0x1f48] sm:$0xff] }
 0x749   : > { %12178 = vmatpush1.bf16.msra.mxu0 %v14393_v62  ;;  %v14537_v62 = vcombine.low %v2978_v47, %v2990_v48  ;;  %v3122_v47 = vld [vmem:[%s17046_s16 + $0x1fa0] sm:$0xff] }
 0x74a   : > { %12342 = vmatpush1.bf16.msra.mxu1 %v14395_v43  ;;  %12179 = vmatprep.subr.bf16.mxu0 %v14418_v59  ;;  %v14539_v43 = vcombine.low %v2979_v49, %v2991_v51  ;;  %v14562_v59 = vcombine.high %v3002_v54, %v3014_v56  ;;  %v3134_v48 = vld [vmem:[%s17046_s16 + $0x2000] sm:$0xff]  ;;  %v3123_v49 = vld [vmem:[%s17046_s16 + $0x1fa8] sm:$0xff] }
 0x74b   : > { %12343 = vmatprep.subr.bf16.mxu1 %v14420_v60  ;;  %v14564_v60 = vcombine.high %v3003_v57, %v3015_v58  ;;  %v3135_v51 = vld [vmem:[%s17046_s16 + $0x2008] sm:$0xff] }
 0x74d   : > { %12180 = vmatpush1.bf16.msra.mxu0 %v14417_v3  ;;  %v14561_v3 = vcombine.low %v3002_v54, %v3014_v56  ;;  %v3146_v54 = vld [vmem:[%s17046_s16 + $0x2060] sm:$0xff] }
 0x74e   : > { %12344 = vmatpush1.bf16.msra.mxu1 %v14419_v5  ;;  %12190 = vmatprep.subr.bf16.mxu0 %v14442_v6  ;;  %v14563_v5 = vcombine.low %v3003_v57, %v3015_v58  ;;  %v14586_v6 = vcombine.high %v3026_v61, %v3038_v16  ;;  %v3158_v56 = vld [vmem:[%s17046_s16 + $0x20c0] sm:$0xff]  ;;  %v3147_v57 = vld [vmem:[%s17046_s16 + $0x2068] sm:$0xff] }
 0x74f   : > { %12354 = vmatprep.subr.bf16.mxu1 %v14444_v13  ;;  %v14588_v13 = vcombine.high %v3027_v63, %v3039_v2  ;;  %v3159_v58 = vld [vmem:[%s17046_s16 + $0x20c8] sm:$0xff]  ;;  %v3170_v61 = vld [vmem:[%s17046_s16 + $0x2120] sm:$0xff] }
 0x750   : > { %12182 = vmatmul.mubr.bf16.vlgmr.msra.gmra.mrb[16].mxu0 %v17268_v35  ;;  %v3182_v16 = vld [vmem:[%s17046_s16 + $0x2180] sm:$0xff] }
 0x751   : > { %12346 = vmatmul.mubr.bf16.vlgmr.msra.gmra.mrb[16].mxu1 %v17268_v35  ;;  %12191 = vmatpush1.bf16.msra.mxu0 %v14441_v20  ;;  %v3051_v20 = vld [vmem:[%s17046_s16 + $0x1d68] sm:$0xff] }
 0x752   : > { %12222 = vmatprep.mubr.bf16.mxu0 %v17353_v12  ;;  %12355 = vmatpush1.bf16.msra.mxu1 %v14443_v23  ;;  %v14587_v23 = vcombine.low %v3027_v63, %v3039_v2  ;;  %v14612_v27 = vcombine.high %v3051_v20, %v3063_v21  ;;  %v3171_v63 = vld [vmem:[%s17046_s16 + $0x2128] sm:$0xff] }
 0x753   : > { %12386 = vmatprep.mubr.bf16.mxu1 %v17353_v12  ;;  %12192 = vmatprep.subr.bf16.mxu0 %v14466_v26  ;;  %v14610_v26 = vcombine.high %v3050_v14, %v3062_v19  ;;  %v3183_v2 = vld [vmem:[%s17046_s16 + $0x2188] sm:$0xff] }
 0x754   : > { %12356 = vmatprep.subr.bf16.mxu1 %v14468_v28  ;;  %v3086_v28 = vld [vmem:[%s17046_s16 + $0x1e80] sm:$0xff] }
 0x755   : > { %12193 = vmatpush1.bf16.msra.mxu0 %v14465_v32  ;;  %v14609_v32 = vcombine.low %v3050_v14, %v3062_v19  ;;  %v3194_v14 = vld [vmem:[%s17046_s16 + $0x21e0] sm:$0xff] }
 0x756   : > { %12357 = vmatpush1.bf16.msra.mxu1 %v14467_v1  ;;  %12194 = vmatprep.subr.bf16.mxu0 %v14490_v33  ;;  %v14611_v1 = vcombine.low %v3051_v20, %v3063_v21  ;;  %v14634_v33 = vcombine.high %v3074_v53, %v3086_v28  ;;  %v3206_v19 = vld [vmem:[%s17046_s16 + $0x2240] sm:$0xff]  ;;  %v3195_v20 = vld [vmem:[%s17046_s16 + $0x21e8] sm:$0xff] }
 0x757   : > { %12358 = vmatprep.subr.bf16.mxu1 %v14492_v37  ;;  %v14636_v37 = vcombine.high %v3075_v7, %v3087_v31  ;;  %v3207_v21 = vld [vmem:[%s17046_s16 + $0x2248] sm:$0xff] }
 0x759   : > { %12195 = vmatpush1.bf16.msra.mxu0 %v14489_v42  ;;  %v14633_v42 = vcombine.low %v3074_v53, %v3086_v28  ;;  %v3218_v53 = vld [vmem:[%s17046_s16 + $0x22a0] sm:$0xff] }
 0x75a   : > { %12359 = vmatpush1.bf16.msra.mxu1 %v14491_v44  ;;  %12196 = vmatprep.subr.bf16.mxu0 %v14514_v45  ;;  %v14635_v44 = vcombine.low %v3075_v7, %v3087_v31  ;;  %v14658_v45 = vcombine.high %v3098_v38, %v3110_v39  ;;  %v3230_v28 = vld [vmem:[%s17046_s16 + $0x2300] sm:$0xff]  ;;  %v3219_v7 = vld [vmem:[%s17046_s16 + $0x22a8] sm:$0xff] }
 0x75b   : > { %12360 = vmatprep.subr.bf16.mxu1 %v14516_v46  ;;  %v14660_v46 = vcombine.high %v3099_v40, %v3111_v41  ;;  %v3231_v31 = vld [vmem:[%s17046_s16 + $0x2308] sm:$0xff] }
 0x75d   : > { %12197 = vmatpush1.bf16.msra.mxu0 %v14513_v52  ;;  %v14657_v52 = vcombine.low %v3098_v38, %v3110_v39  ;;  %v3242_v38 = vld [vmem:[%s17046_s16 + $0x2360] sm:$0xff] }
 0x75e   : > { %12361 = vmatpush1.bf16.msra.mxu1 %v14515_v55  ;;  %12198 = vmatprep.subr.bf16.mxu0 %v14538_v34  ;;  %v14659_v55 = vcombine.low %v3099_v40, %v3111_v41  ;;  %v14682_v34 = vcombine.high %v3122_v47, %v3134_v48  ;;  %v3254_v39 = vld [vmem:[%s17046_s16 + $0x23c0] sm:$0xff]  ;;  %v3243_v40 = vld [vmem:[%s17046_s16 + $0x2368] sm:$0xff] }
 0x75f   : > { %12362 = vmatprep.subr.bf16.mxu1 %v14540_v9  ;;  %v14684_v9 = vcombine.high %v3123_v49, %v3135_v51  ;;  %v3255_v41 = vld [vmem:[%s17046_s16 + $0x23c8] sm:$0xff] }
 0x761   : > { %12199 = vmatpush1.bf16.msra.mxu0 %v14537_v62  ;;  %v14681_v62 = vcombine.low %v3122_v47, %v3134_v48  ;;  %v3266_v47 = vld [vmem:[%s17046_s16 + $0x2420] sm:$0xff] }
 0x762   : > { %12363 = vmatpush1.bf16.msra.mxu1 %v14539_v43  ;;  %12200 = vmatprep.subr.bf16.mxu0 %v14562_v59  ;;  %v14683_v43 = vcombine.low %v3123_v49, %v3135_v51  ;;  %v14706_v59 = vcombine.high %v3146_v54, %v3158_v56  ;;  %v3278_v48 = vld [vmem:[%s17046_s16 + $0x2480] sm:$0xff]  ;;  %v3267_v49 = vld [vmem:[%s17046_s16 + $0x2428] sm:$0xff] }
 0x763   : > { %12364 = vmatprep.subr.bf16.mxu1 %v14564_v60  ;;  %v14708_v60 = vcombine.high %v3147_v57, %v3159_v58  ;;  %v3279_v51 = vld [vmem:[%s17046_s16 + $0x2488] sm:$0xff] }
 0x765   : > { %12201 = vmatpush1.bf16.msra.mxu0 %v14561_v3  ;;  %v14705_v3 = vcombine.low %v3146_v54, %v3158_v56  ;;  %v3290_v54 = vld [vmem:[%s17046_s16 + $0x24e0] sm:$0xff] }
 0x766   : > { %12365 = vmatpush1.bf16.msra.mxu1 %v14563_v5  ;;  %12202 = vmatprep.subr.bf16.mxu0 %v14586_v6  ;;  %v14707_v5 = vcombine.low %v3147_v57, %v3159_v58  ;;  %v14730_v6 = vcombine.high %v3170_v61, %v3182_v16  ;;  %v3302_v56 = vld [vmem:[%s17046_s16 + $0x2540] sm:$0xff]  ;;  %v14825_v57 = vcombine.low %v3266_v47, %v3278_v48  ;;  %v3291_v58 = vld [vmem:[%s17046_s16 + $0x24e8] sm:$0xff] }
 0x767   : > { %12366 = vmatprep.subr.bf16.mxu1 %v14588_v13  ;;  %v14732_v13 = vcombine.high %v3171_v63, %v3183_v2 }
 0x769   : > { %12203 = vmatpush1.bf16.msra.mxu0 %v14585_v22  ;;  %v14729_v22 = vcombine.low %v3170_v61, %v3182_v16  ;;  %v3326_v61 = vld [vmem:[%s17046_s16 + $0x2600] sm:$0xff] }
 0x76a   : > { %12367 = vmatpush1.bf16.msra.mxu1 %v14587_v23  ;;  %12204 = vmatprep.subr.bf16.mxu0 %v14610_v26  ;;  %v14731_v23 = vcombine.low %v3171_v63, %v3183_v2  ;;  %v14754_v26 = vcombine.high %v3194_v14, %v3206_v19  ;;  %v3315_v63 = vld [vmem:[%s17046_s16 + $0x25a8] sm:$0xff] }
 0x76b   : > { %12368 = vmatprep.subr.bf16.mxu1 %v14612_v27  ;;  %v14756_v27 = vcombine.high %v3195_v20, %v3207_v21  ;;  %v3327_v2 = vld [vmem:[%s17046_s16 + $0x2608] sm:$0xff] }
 0x76d   : > { %12205 = vmatpush1.bf16.msra.mxu0 %v14609_v32  ;;  %v14753_v32 = vcombine.low %v3194_v14, %v3206_v19  ;;  %v3338_v14 = vld [vmem:[%s17046_s16 + $0x2660] sm:$0xff] }
 0x76e   : > { %12369 = vmatpush1.bf16.msra.mxu1 %v14611_v1  ;;  %12206 = vmatprep.subr.bf16.mxu0 %v14634_v33  ;;  %v14755_v1 = vcombine.low %v3195_v20, %v3207_v21  ;;  %v14778_v33 = vcombine.high %v3218_v53, %v3230_v28  ;;  %v3350_v19 = vld [vmem:[%s17046_s16 + $0x26c0] sm:$0xff]  ;;  %v3339_v20 = vld [vmem:[%s17046_s16 + $0x2668] sm:$0xff] }
 0x76f   : > { %12370 = vmatprep.subr.bf16.mxu1 %v14636_v37  ;;  %v14780_v37 = vcombine.high %v3219_v7, %v3231_v31  ;;  %v3351_v21 = vld [vmem:[%s17046_s16 + $0x26c8] sm:$0xff] }
 0x771   : > { %12207 = vmatpush1.bf16.msra.mxu0 %v14633_v42  ;;  %v14777_v42 = vcombine.low %v3218_v53, %v3230_v28  ;;  %v3362_v53 = vld [vmem:[%s17046_s16 + $0x2720] sm:$0xff] }
 0x772   : > { %12371 = vmatpush1.bf16.msra.mxu1 %v14635_v44  ;;  %12208 = vmatprep.subr.bf16.mxu0 %v14658_v45  ;;  %v14779_v44 = vcombine.low %v3219_v7, %v3231_v31  ;;  %v14802_v45 = vcombine.high %v3242_v38, %v3254_v39  ;;  %v3374_v28 = vld [vmem:[%s17046_s16 + $0x2780] sm:$0xff]  ;;  %v3363_v7 = vld [vmem:[%s17046_s16 + $0x2728] sm:$0xff] }
 0x773   : > { %12372 = vmatprep.subr.bf16.mxu1 %v14660_v46  ;;  %v14804_v46 = vcombine.high %v3243_v40, %v3255_v41  ;;  %v3375_v31 = vld [vmem:[%s17046_s16 + $0x2788] sm:$0xff] }
 0x775   : > { %12209 = vmatpush1.bf16.msra.mxu0 %v14657_v52  ;;  %v14801_v52 = vcombine.low %v3242_v38, %v3254_v39  ;;  %v3386_v38 = vld [vmem:[%s17046_s16 + $0x27e0] sm:$0xff] }
 0x776   : > { %12373 = vmatpush1.bf16.msra.mxu1 %v14659_v55  ;;  %12210 = vmatprep.subr.bf16.mxu0 %v14682_v34  ;;  %v14803_v55 = vcombine.low %v3243_v40, %v3255_v41  ;;  %v14826_v34 = vcombine.high %v3266_v47, %v3278_v48  ;;  %v3398_v39 = vld [vmem:[%s17046_s16 + $0x2840] sm:$0xff]  ;;  %v3387_v40 = vld [vmem:[%s17046_s16 + $0x27e8] sm:$0xff] }
 0x777   : > { %12374 = vmatprep.subr.bf16.mxu1 %v14684_v9  ;;  %v14828_v9 = vcombine.high %v3267_v49, %v3279_v51  ;;  %v3399_v41 = vld [vmem:[%s17046_s16 + $0x2848] sm:$0xff]  ;;  %v3410_v47 = vld [vmem:[%s17046_s16 + $0x28a0] sm:$0xff] }
 0x778   : > { %v3422_v48 = vld [vmem:[%s17046_s16 + $0x2900] sm:$0xff] }
 0x779   : > { %12211 = vmatpush1.bf16.msra.mxu0 %v14681_v62  ;;  %v3303_v62 = vld [vmem:[%s17046_s16 + $0x2548] sm:$0xff] }
 0x77a   : > { %12375 = vmatpush1.bf16.msra.mxu1 %v14683_v43  ;;  %12212 = vmatprep.subr.bf16.mxu0 %v14706_v59  ;;  %v14827_v43 = vcombine.low %v3267_v49, %v3279_v51  ;;  %v14850_v59 = vcombine.high %v3290_v54, %v3302_v56  ;;  %v14852_v16 = vcombine.high %v3291_v58, %v3303_v62  ;;  %v16188_v49 = vld [vmem:[%s17661_s15] sm:$0xff] }
 0x77b   : > { %12376 = vmatprep.subr.bf16.mxu1 %v14708_v60  ;;  %v3314_v60 = vld [vmem:[%s17046_s16 + $0x25a0] sm:$0xff]  ;;  %v3671_v51 = vrot.slane %v16188_v49, %v17325_v29 }
 0x77d   : > { %12213 = vmatpush1.bf16.msra.mxu0 %v14705_v3  ;;  %v14849_v3 = vcombine.low %v3290_v54, %v3302_v56  ;;  %v14945_v54 = vcombine.low %v3386_v38, %v3398_v39  ;;  %v3683_v56 = vrot.slane %v16188_v49, %v17331_v36 }
 0x77e   : > { %12377 = vmatpush1.bf16.msra.mxu1 %v14707_v5  ;;  %12214 = vmatprep.subr.bf16.mxu0 %v14730_v6  ;;  %v14851_v5 = vcombine.low %v3291_v58, %v3303_v62  ;;  %v14874_v6 = vcombine.high %v3314_v60, %v3326_v61  ;;  %v14970_v58 = vcombine.high %v3410_v47, %v3422_v48 }
 0x77f   : > { %12378 = vmatprep.subr.bf16.mxu1 %v14732_v13  ;;  %v14876_v13 = vcombine.high %v3315_v63, %v3327_v2 }
 0x781   : > { %12215 = vmatpush1.bf16.msra.mxu0 %v14729_v22  ;;  %v14873_v22 = vcombine.low %v3314_v60, %v3326_v61  ;;  %v3446_v60 = vld [vmem:[%s17046_s16 + $0x29c0] sm:$0xff] }
 0x782   : > { %12379 = vmatpush1.bf16.msra.mxu1 %v14731_v23  ;;  %12216 = vmatprep.subr.bf16.mxu0 %v14754_v26  ;;  %v14875_v23 = vcombine.low %v3315_v63, %v3327_v2  ;;  %v14898_v26 = vcombine.high %v3338_v14, %v3350_v19  ;;  %v3435_v2 = vld [vmem:[%s17046_s16 + $0x2968] sm:$0xff] }
 0x783   : > { %12380 = vmatprep.subr.bf16.mxu1 %v14756_v27  ;;  %v14900_v27 = vcombine.high %v3339_v20, %v3351_v21 }
 0x785   : > { %12217 = vmatpush1.bf16.msra.mxu0 %v14753_v32  ;;  %v14897_v32 = vcombine.low %v3338_v14, %v3350_v19  ;;  %v14969_v19 = vcombine.low %v3410_v47, %v3422_v48  ;;  %v3506_v48 = vld [vmem:[%s17046_s16 + $0x2ba0] sm:$0xff] }
 0x786   : > { %12381 = vmatpush1.bf16.msra.mxu1 %v14755_v1  ;;  %12218 = vmatprep.subr.bf16.mxu0 %v14778_v33  ;;  %v14899_v1 = vcombine.low %v3339_v20, %v3351_v21  ;;  %v14922_v33 = vcombine.high %v3362_v53, %v3374_v28 }
 0x787   : > { %12382 = vmatprep.subr.bf16.mxu1 %v14780_v37  ;;  %v14924_v37 = vcombine.high %v3363_v7, %v3375_v31 }
 0x789   : > { %12219 = vmatpush1.bf16.msra.mxu0 %v14777_v42  ;;  %v14921_v42 = vcombine.low %v3362_v53, %v3374_v28  ;;  %v3458_v28 = vld [vmem:[%s17046_s16 + $0x2a20] sm:$0xff] }
 0x78a   : > { %12383 = vmatpush1.bf16.msra.mxu1 %v14779_v44  ;;  %12220 = vmatprep.subr.bf16.mxu0 %v14802_v45  ;;  %v14923_v44 = vcombine.low %v3363_v7, %v3375_v31  ;;  %v14946_v45 = vcombine.high %v3386_v38, %v3398_v39  ;;  %v3470_v7 = vld [vmem:[%s17046_s16 + $0x2a80] sm:$0xff]  ;;  %v3459_v31 = vld [vmem:[%s17046_s16 + $0x2a28] sm:$0xff] }
 0x78b   : > { %12384 = vmatprep.subr.bf16.mxu1 %v14804_v46  ;;  %v14948_v46 = vcombine.high %v3387_v40, %v3399_v41  ;;  %v3482_v39 = vld [vmem:[%s17046_s16 + $0x2ae0] sm:$0xff] }
 0x78d   : > { %12221 = vmatpush1.bf16.msra.mxu0 %v14801_v52  ;;  %v3411_v52 = vld [vmem:[%s17046_s16 + $0x28a8] sm:$0xff] }
 0x78e   : > { %12385 = vmatpush1.bf16.msra.mxu1 %v14803_v55  ;;  %12231 = vmatprep.subr.bf16.mxu0 %v14826_v34  ;;  %v3423_v55 = vld [vmem:[%s17046_s16 + $0x2908] sm:$0xff]  ;;  %v3679_v34 = vrot.slane %v16188_v49, %v17414_v18 }
 0x78f   : > { %12395 = vmatprep.subr.bf16.mxu1 %v14828_v9  ;;  %v3675_v9 = vrot.slane %v16188_v49, %v17328_v30  ;;  %v3518_v49 = vld [vmem:[%s17046_s16 + $0x2c00] sm:$0xff] }
 0x790   : > { %12223 = vmatmul.mubr.bf16.vlgmr.msra.gmra.mrb[16].mxu0 %v17355_v15 }
 0x791   : > { %12387 = vmatmul.mubr.bf16.vlgmr.msra.gmra.mrb[16].mxu1 %v17355_v15  ;;  %12232 = vmatpush1.bf16.msra.mxu0 %v14825_v57  ;;  %v14947_v57 = vcombine.low %v3387_v40, %v3399_v41  ;;  %v3494_v40 = vld [vmem:[%s17046_s16 + $0x2b40] sm:$0xff]  ;;  %v3483_v41 = vld [vmem:[%s17046_s16 + $0x2ae8] sm:$0xff] }
 0x792   : > { %12263 = vmatprep.mubr.bf16.mxu0 %v17363_v24  ;;  %12396 = vmatpush1.bf16.msra.mxu1 %v14827_v43  ;;  %v14972_v43 = vcombine.high %v3411_v52, %v3423_v55 }
 0x793   : > { %12427 = vmatprep.mubr.bf16.mxu1 %v17363_v24  ;;  %12233 = vmatprep.subr.bf16.mxu0 %v14850_v59  ;;  %v3434_v59 = vld [vmem:[%s17046_s16 + $0x2960] sm:$0xff] }
 0x794   : > { %12397 = vmatprep.subr.bf16.mxu1 %v14852_v16 }
 0x795   : > { %12234 = vmatpush1.bf16.msra.mxu0 %v14849_v3  ;;  %v3447_v3 = vld [vmem:[%s17046_s16 + $0x29c8] sm:$0xff] }
 0x796   : > { %12398 = vmatpush1.bf16.msra.mxu1 %v14851_v5  ;;  %12235 = vmatprep.subr.bf16.mxu0 %v14874_v6  ;;  %v14996_v53 = vcombine.high %v3435_v2, %v3447_v3 }
 0x797   : > { %12399 = vmatprep.subr.bf16.mxu1 %v14876_v13 }
 0x799   : > { %12236 = vmatpush1.bf16.msra.mxu0 %v14873_v22 }
 0x79a   : > { %12400 = vmatpush1.bf16.msra.mxu1 %v14875_v23  ;;  %12237 = vmatprep.subr.bf16.mxu0 %v14898_v26  ;;  %v14971_v23 = vcombine.low %v3411_v52, %v3423_v55  ;;  %v14994_v26 = vcombine.high %v3434_v59, %v3446_v60  ;;  %v3519_v52 = vld [vmem:[%s17046_s16 + $0x2c08] sm:$0xff]  ;;  %v15041_v55 = vcombine.low %v3482_v39, %v3494_v40 }
 0x79b   : > { %12401 = vmatprep.subr.bf16.mxu1 %v14900_v27 }
 0x79d   : > { %12238 = vmatpush1.bf16.msra.mxu0 %v14897_v32  ;;  %v3471_v32 = vld [vmem:[%s17046_s16 + $0x2a88] sm:$0xff] }
 0x79e   : > { %12402 = vmatpush1.bf16.msra.mxu1 %v14899_v1  ;;  %12239 = vmatprep.subr.bf16.mxu0 %v14922_v33  ;;  %v14993_v1 = vcombine.low %v3434_v59, %v3446_v60  ;;  %v14995_v33 = vcombine.low %v3435_v2, %v3447_v3  ;;  %v15020_v38 = vcombine.high %v3459_v31, %v3471_v32  ;;  %v3555_v2 = vld [vmem:[%s17046_s16 + $0x2d28] sm:$0xff] }
 0x79f   : > { %12403 = vmatprep.subr.bf16.mxu1 %v14924_v37  ;;  %v15018_v37 = vcombine.high %v3458_v28, %v3470_v7  ;;  %v3567_v3 = vld [vmem:[%s17046_s16 + $0x2d88] sm:$0xff] }
 0x7a1   : > { %12240 = vmatpush1.bf16.msra.mxu0 %v14921_v42  ;;  %v3495_v42 = vld [vmem:[%s17046_s16 + $0x2b48] sm:$0xff] }
 0x7a2   : > { %12404 = vmatpush1.bf16.msra.mxu1 %v14923_v44  ;;  %12241 = vmatprep.subr.bf16.mxu0 %v14946_v45  ;;  %v15017_v44 = vcombine.low %v3458_v28, %v3470_v7  ;;  %v15019_v45 = vcombine.low %v3459_v31, %v3471_v32  ;;  %v15044_v47 = vcombine.high %v3483_v41, %v3495_v42  ;;  %v3602_v28 = vld [vmem:[%s17046_s16 + $0x2ea0] sm:$0xff]  ;;  %v3603_v31 = vld [vmem:[%s17046_s16 + $0x2ea8] sm:$0xff] }
 0x7a3   : > { %v11937_v62 = vpop.f32.mrb[12].mxu0  ;;  %12405 = vmatprep.subr.bf16.mxu1 %v14948_v46  ;;  %v15042_v46 = vcombine.high %v3482_v39, %v3494_v40  ;;  %v3614_v7 = vld [vmem:[%s17046_s16 + $0x2f00] sm:$0xff]  ;;  %v3615_v32 = vld [vmem:[%s17046_s16 + $0x2f08] sm:$0xff] }
 0x7a4   : > { %v15856_v61 = vadd.f32 %v11937_v62, %v3671_v51  ;;  %v12101_v16 = vpop.f32.mrb[12].mxu1  ;;  %v11939_v63 = vpop.f32.mrb[13].mxu0  ;;  %v3507_v51 = vld [vmem:[%s17046_s16 + $0x2ba8] sm:$0xff]  ;;  %v3626_v39 = vld [vmem:[%s17046_s16 + $0x2f60] sm:$0xff] }
 0x7a5   : > { %v15858_v5 = vadd.f32 %v12101_v16, %v3679_v34  ;;  %v15857_v6 = vadd.f32 %v11939_v63, %v3675_v9  ;;  %v12103_v13 = vpop.f32.mrb[13].mxu1  ;;  %v11941_v14 = vpop.f32.mrb[14].mxu0  ;;  %12242 = vmatpush1.bf16.msra.mxu0 %v14945_v54  ;;  %v15043_v34 = vcombine.low %v3483_v41, %v3495_v42  ;;  %v15066_v9 = vcombine.high %v3506_v48, %v3518_v49  ;;  %v3543_v62 = vld [vmem:[%s17046_s16 + $0x2cc8] sm:$0xff]  ;;  %v3554_v16 = vld [vmem:[%s17046_s16 + $0x2d20] sm:$0xff] }
 0x7a6   : > { %13424 = vst [vmem:[%s17679_s27 + $0x20] sm:$0xff] %v15856_v61  ;;  %v15859_v20 = vadd.f32 %v12103_v13, %v3683_v56  ;;  %v12105_v21 = vpop.f32.mrb[14].mxu1  ;;  %12406 = vmatpush1.bf16.msra.mxu1 %v14947_v57  ;;  %v11942_v22 = vpop.f32.mrb[15].mxu0  ;;  %12243 = vmatprep.subr.bf16.mxu0 %v14970_v58  ;;  %v15068_v54 = vcombine.high %v3507_v51, %v3519_v52  ;;  %v3530_v56 = vld [vmem:[%s17046_s16 + $0x2c60] sm:$0xff]  ;;  %v3531_v58 = vld [vmem:[%s17046_s16 + $0x2c68] sm:$0xff] }
 0x7a7   : > { %13426 = vst [vmem:[%s17679_s27 + $0x30] sm:$0xff] %v15858_v5  ;;  %13425 = vst [vmem:[%s17679_s27 + $0x28] sm:$0xff] %v15857_v6  ;;  %v12106_v27 = vpop.f32.mrb[15].mxu1  ;;  %12407 = vmatprep.subr.bf16.mxu1 %v14972_v43  ;;  %v3542_v57 = vld [vmem:[%s17046_s16 + $0x2cc0] sm:$0xff]  ;;  %v15065_v43 = vcombine.low %v3506_v48, %v3518_v49  ;;  %v15067_v59 = vcombine.low %v3507_v51, %v3519_v52  ;;  %v15092_v61 = vcombine.high %v3531_v58, %v3543_v62  ;;  %v3579_v21 = vld [vmem:[%s17046_s16 + $0x2de8] sm:$0xff] }
 0x7a8   : > { %13427 = vst [vmem:[%s17679_s27 + $0x38] sm:$0xff] %v15859_v20  ;;  %v15090_v60 = vcombine.high %v3530_v56, %v3542_v57  ;;  %v3566_v63 = vld [vmem:[%s17046_s16 + $0x2d80] sm:$0xff]  ;;  %v15089_v5 = vcombine.low %v3530_v56, %v3542_v57  ;;  %v15091_v6 = vcombine.low %v3531_v58, %v3543_v62  ;;  %v15116_v14 = vcombine.high %v3555_v2, %v3567_v3  ;;  %v3591_v22 = vld [vmem:[%s17046_s16 + $0x2e48] sm:$0xff]  ;;  %v2116_v48 = vld [vmem:[%s17046_s16 + $0x30] sm:$0xff] }
 0x7a9   : > { %12244 = vmatpush1.bf16.msra.mxu0 %v14969_v19  ;;  %v15114_v13 = vcombine.high %v3554_v16, %v3566_v63  ;;  %v3578_v19 = vld [vmem:[%s17046_s16 + $0x2de0] sm:$0xff]  ;;  %v3627_v41 = vld [vmem:[%s17046_s16 + $0x2f68] sm:$0xff]  ;;  %v2128_v49 = vld [vmem:[%s17046_s16 + $0x90] sm:$0xff] }
 0x7aa   : > { %12408 = vmatpush1.bf16.msra.mxu1 %v14971_v23  ;;  %12245 = vmatprep.subr.bf16.mxu0 %v14994_v26  ;;  %v3590_v20 = vld [vmem:[%s17046_s16 + $0x2e40] sm:$0xff]  ;;  %v15113_v23 = vcombine.low %v3554_v16, %v3566_v63  ;;  %v15115_v26 = vcombine.low %v3555_v2, %v3567_v3  ;;  %v3639_v42 = vld [vmem:[%s17046_s16 + $0x2fc8] sm:$0xff]  ;;  %v2117_v51 = vld [vmem:[%s17046_s16 + $0x38] sm:$0xff]  ;;  %v13677_v58 = vcombine.low %v2116_v48, %v2128_v49 }
 0x7ab   : > { %12409 = vmatprep.subr.bf16.mxu1 %v14996_v53  ;;  %v15138_v27 = vcombine.high %v3578_v19, %v3590_v20  ;;  %v15140_v53 = vcombine.high %v3579_v21, %v3591_v22  ;;  %v3638_v40 = vld [vmem:[%s17046_s16 + $0x2fc0] sm:$0xff]  ;;  %v2129_v52 = vld [vmem:[%s17046_s16 + $0x98] sm:$0xff]  ;;  %v2140_v56 = vld [vmem:[%s17046_s16 + $0xf0] sm:$0xff] }
 0x7ac   : > { %v2152_v57 = vld [vmem:[%s17046_s16 + $0x150] sm:$0xff]  ;;  %v2141_v62 = vld [vmem:[%s17046_s16 + $0xf8] sm:$0xff] }
 0x7ad   : > { %12246 = vmatpush1.bf16.msra.mxu0 %v14993_v1  ;;  %v15137_v1 = vcombine.low %v3578_v19, %v3590_v20  ;;  %v2176_v16 = vld [vmem:[%s17046_s16 + $0x210] sm:$0xff]  ;;  %v2165_v2 = vld [vmem:[%s17046_s16 + $0x1b8] sm:$0xff] }
 0x7ae   : > { %12410 = vmatpush1.bf16.msra.mxu1 %v14995_v33  ;;  %12247 = vmatprep.subr.bf16.mxu0 %v15018_v37  ;;  %v15139_v33 = vcombine.low %v3579_v21, %v3591_v22  ;;  %v15162_v37 = vcombine.high %v3602_v28, %v3614_v7  ;;  %v2177_v3 = vld [vmem:[%s17046_s16 + $0x218] sm:$0xff]  ;;  %v2188_v19 = vld [vmem:[%s17046_s16 + $0x270] sm:$0xff] }
 0x7af   : > { %12411 = vmatprep.subr.bf16.mxu1 %v15020_v38  ;;  %v15164_v38 = vcombine.high %v3603_v31, %v3615_v32  ;;  %v2200_v20 = vld [vmem:[%s17046_s16 + $0x2d0] sm:$0xff]  ;;  %v2189_v21 = vld [vmem:[%s17046_s16 + $0x278] sm:$0xff] }
 0x7b0   : > { %v2201_v22 = vld [vmem:[%s17046_s16 + $0x2d8] sm:$0xff] }
 0x7b1   : > { %12248 = vmatpush1.bf16.msra.mxu0 %v15017_v44  ;;  %v15161_v44 = vcombine.low %v3602_v28, %v3614_v7  ;;  %v2212_v28 = vld [vmem:[%s17046_s16 + $0x330] sm:$0xff] }
 0x7b2   : > { %12412 = vmatpush1.bf16.msra.mxu1 %v15019_v45  ;;  %12249 = vmatprep.subr.bf16.mxu0 %v15042_v46  ;;  %v15163_v45 = vcombine.low %v3603_v31, %v3615_v32  ;;  %v15186_v46 = vcombine.high %v3626_v39, %v3638_v40  ;;  %v2224_v7 = vld [vmem:[%s17046_s16 + $0x390] sm:$0xff]  ;;  %v2213_v31 = vld [vmem:[%s17046_s16 + $0x338] sm:$0xff] }
 0x7b3   : > { %12413 = vmatprep.subr.bf16.mxu1 %v15044_v47  ;;  %v15188_v47 = vcombine.high %v3627_v41, %v3639_v42  ;;  %v2225_v32 = vld [vmem:[%s17046_s16 + $0x398] sm:$0xff] }
 0x7b5   : > { %12250 = vmatpush1.bf16.msra.mxu0 %v15041_v55  ;;  %v15185_v55 = vcombine.low %v3626_v39, %v3638_v40  ;;  %v2236_v39 = vld [vmem:[%s17046_s16 + $0x3f0] sm:$0xff] }
 0x7b6   : > { %12414 = vmatpush1.bf16.msra.mxu1 %v15043_v34  ;;  %12251 = vmatprep.subr.bf16.mxu0 %v15066_v9  ;;  %v15187_v34 = vcombine.low %v3627_v41, %v3639_v42  ;;  %v13678_v9 = vcombine.high %v2116_v48, %v2128_v49  ;;  %v2248_v40 = vld [vmem:[%s17046_s16 + $0x450] sm:$0xff]  ;;  %v2237_v41 = vld [vmem:[%s17046_s16 + $0x3f8] sm:$0xff] }
 0x7b7   : > { %12415 = vmatprep.subr.bf16.mxu1 %v15068_v54  ;;  %v13680_v54 = vcombine.high %v2117_v51, %v2129_v52  ;;  %v2249_v42 = vld [vmem:[%s17046_s16 + $0x458] sm:$0xff]  ;;  %v2260_v48 = vld [vmem:[%s17046_s16 + $0x4b0] sm:$0xff] }
 0x7b8   : > { %v2272_v49 = vld [vmem:[%s17046_s16 + $0x510] sm:$0xff] }
 0x7b9   : > { %12252 = vmatpush1.bf16.msra.mxu0 %v15065_v43  ;;  %v2153_v43 = vld [vmem:[%s17046_s16 + $0x158] sm:$0xff] }
 0x7ba   : > { %12416 = vmatpush1.bf16.msra.mxu1 %v15067_v59  ;;  %12253 = vmatprep.subr.bf16.mxu0 %v15090_v60  ;;  %v13679_v59 = vcombine.low %v2117_v51, %v2129_v52  ;;  %v13702_v60 = vcombine.high %v2140_v56, %v2152_v57  ;;  %v13704_v63 = vcombine.high %v2141_v62, %v2153_v43  ;;  %v2261_v51 = vld [vmem:[%s17046_s16 + $0x4b8] sm:$0xff] }
 0x7bb   : > { %12417 = vmatprep.subr.bf16.mxu1 %v15092_v61  ;;  %v2164_v61 = vld [vmem:[%s17046_s16 + $0x1b0] sm:$0xff]  ;;  %v2273_v52 = vld [vmem:[%s17046_s16 + $0x518] sm:$0xff] }
 0x7bd   : > { %12254 = vmatpush1.bf16.msra.mxu0 %v15089_v5  ;;  %v13701_v5 = vcombine.low %v2140_v56, %v2152_v57  ;;  %v2284_v56 = vld [vmem:[%s17046_s16 + $0x570] sm:$0xff] }
 0x7be   : > { %12418 = vmatpush1.bf16.msra.mxu1 %v15091_v6  ;;  %12255 = vmatprep.subr.bf16.mxu0 %v15114_v13  ;;  %v13703_v6 = vcombine.low %v2141_v62, %v2153_v43  ;;  %v13726_v13 = vcombine.high %v2164_v61, %v2176_v16  ;;  %v2296_v57 = vld [vmem:[%s17046_s16 + $0x5d0] sm:$0xff]  ;;  %v2297_v62 = vld [vmem:[%s17046_s16 + $0x5d8] sm:$0xff]  ;;  %v13821_v43 = vcombine.low %v2260_v48, %v2272_v49 }
 0x7bf   : > { %12419 = vmatprep.subr.bf16.mxu1 %v15116_v14  ;;  %v13728_v14 = vcombine.high %v2165_v2, %v2177_v3 }
 0x7c1   : > { %12256 = vmatpush1.bf16.msra.mxu0 %v15113_v23  ;;  %v13725_v23 = vcombine.low %v2164_v61, %v2176_v16  ;;  %v2308_v16 = vld [vmem:[%s17046_s16 + $0x630] sm:$0xff] }
 0x7c2   : > { %12420 = vmatpush1.bf16.msra.mxu1 %v15115_v26  ;;  %12257 = vmatprep.subr.bf16.mxu0 %v15138_v27  ;;  %v13727_v26 = vcombine.low %v2165_v2, %v2177_v3  ;;  %v13750_v27 = vcombine.high %v2188_v19, %v2200_v20  ;;  %v2309_v2 = vld [vmem:[%s17046_s16 + $0x638] sm:$0xff] }
 0x7c3   : > { %12421 = vmatprep.subr.bf16.mxu1 %v15140_v53  ;;  %v13752_v53 = vcombine.high %v2189_v21, %v2201_v22  ;;  %v2321_v3 = vld [vmem:[%s17046_s16 + $0x698] sm:$0xff] }
 0x7c5   : > { %12258 = vmatpush1.bf16.msra.mxu0 %v15137_v1  ;;  %v13749_v1 = vcombine.low %v2188_v19, %v2200_v20  ;;  %v2332_v19 = vld [vmem:[%s17046_s16 + $0x6f0] sm:$0xff] }
 0x7c6   : > { %12422 = vmatpush1.bf16.msra.mxu1 %v15139_v33  ;;  %12259 = vmatprep.subr.bf16.mxu0 %v15162_v37  ;;  %v13751_v33 = vcombine.low %v2189_v21, %v2201_v22  ;;  %v13774_v37 = vcombine.high %v2212_v28, %v2224_v7  ;;  %v2344_v20 = vld [vmem:[%s17046_s16 + $0x750] sm:$0xff]  ;;  %v2333_v21 = vld [vmem:[%s17046_s16 + $0x6f8] sm:$0xff] }
 0x7c7   : > { %12423 = vmatprep.subr.bf16.mxu1 %v15164_v38  ;;  %v13776_v38 = vcombine.high %v2213_v31, %v2225_v32  ;;  %v2345_v22 = vld [vmem:[%s17046_s16 + $0x758] sm:$0xff] }
 0x7c9   : > { %12260 = vmatpush1.bf16.msra.mxu0 %v15161_v44  ;;  %v13773_v44 = vcombine.low %v2212_v28, %v2224_v7  ;;  %v2356_v28 = vld [vmem:[%s17046_s16 + $0x7b0] sm:$0xff] }
 0x7ca   : > { %12424 = vmatpush1.bf16.msra.mxu1 %v15163_v45  ;;  %12261 = vmatprep.subr.bf16.mxu0 %v15186_v46  ;;  %v13775_v45 = vcombine.low %v2213_v31, %v2225_v32  ;;  %v13798_v46 = vcombine.high %v2236_v39, %v2248_v40  ;;  %v2368_v7 = vld [vmem:[%s17046_s16 + $0x810] sm:$0xff]  ;;  %v2357_v31 = vld [vmem:[%s17046_s16 + $0x7b8] sm:$0xff] }
 0x7cb   : > { %12425 = vmatprep.subr.bf16.mxu1 %v15188_v47  ;;  %v13800_v47 = vcombine.high %v2237_v41, %v2249_v42  ;;  %v2369_v32 = vld [vmem:[%s17046_s16 + $0x818] sm:$0xff] }
 0x7cd   : > { %12262 = vmatpush1.bf16.msra.mxu0 %v15185_v55  ;;  %v13797_v55 = vcombine.low %v2236_v39, %v2248_v40  ;;  %v2380_v39 = vld [vmem:[%s17046_s16 + $0x870] sm:$0xff] }
 0x7ce   : > { %12426 = vmatpush1.bf16.msra.mxu1 %v15187_v34  ;;  %12436 = vmatprep.subr.bf16.mxu0 %v13678_v9  ;;  %v13799_v34 = vcombine.low %v2237_v41, %v2249_v42  ;;  %v13822_v9 = vcombine.high %v2260_v48, %v2272_v49  ;;  %v2392_v40 = vld [vmem:[%s17046_s16 + $0x8d0] sm:$0xff]  ;;  %v2381_v41 = vld [vmem:[%s17046_s16 + $0x878] sm:$0xff] }
 0x7cf   : > { %12600 = vmatprep.subr.bf16.mxu1 %v13680_v54  ;;  %v13824_v54 = vcombine.high %v2261_v51, %v2273_v52  ;;  %v2393_v42 = vld [vmem:[%s17046_s16 + $0x8d8] sm:$0xff]  ;;  %v2404_v48 = vld [vmem:[%s17046_s16 + $0x930] sm:$0xff] }
 0x7d0   : > { %12264 = vmatmul.mubr.bf16.vlgmr.msra.gmra.mrb[16].mxu0 %v17434_v50  ;;  %v2416_v49 = vld [vmem:[%s17046_s16 + $0x990] sm:$0xff] }
 0x7d1   : > { %12428 = vmatmul.mubr.bf16.vlgmr.msra.gmra.mrb[16].mxu1 %v17434_v50  ;;  %12437 = vmatpush1.bf16.msra.mxu0 %v13677_v58  ;;  %v2285_v58 = vld [vmem:[%s17046_s16 + $0x578] sm:$0xff] }
 0x7d2   : > { %12468 = vmatprep.mubr.bf16.mxu0 %v17189_v0  ;;  %12601 = vmatpush1.bf16.msra.mxu1 %v13679_v59  ;;  %v13823_v59 = vcombine.low %v2261_v51, %v2273_v52  ;;  %v13848_v61 = vcombine.high %v2285_v58, %v2297_v62  ;;  %v2405_v51 = vld [vmem:[%s17046_s16 + $0x938] sm:$0xff] }
 0x7d3   : > { %12632 = vmatprep.mubr.bf16.mxu1 %v17189_v0  ;;  %12438 = vmatprep.subr.bf16.mxu0 %v13702_v60  ;;  %v13846_v60 = vcombine.high %v2284_v56, %v2296_v57  ;;  %v2417_v52 = vld [vmem:[%s17046_s16 + $0x998] sm:$0xff] }
 0x7d4   : > { %12602 = vmatprep.subr.bf16.mxu1 %v13704_v63  ;;  %v2320_v63 = vld [vmem:[%s17046_s16 + $0x690] sm:$0xff] }
 0x7d5   : > { %12439 = vmatpush1.bf16.msra.mxu0 %v13701_v5  ;;  %v13845_v5 = vcombine.low %v2284_v56, %v2296_v57  ;;  %v2428_v56 = vld [vmem:[%s17046_s16 + $0x9f0] sm:$0xff] }
 0x7d6   : > { %12603 = vmatpush1.bf16.msra.mxu1 %v13703_v6  ;;  %12440 = vmatprep.subr.bf16.mxu0 %v13726_v13  ;;  %v13847_v6 = vcombine.low %v2285_v58, %v2297_v62  ;;  %v13870_v13 = vcombine.high %v2308_v16, %v2320_v63  ;;  %v2440_v57 = vld [vmem:[%s17046_s16 + $0xa50] sm:$0xff]  ;;  %v2429_v58 = vld [vmem:[%s17046_s16 + $0x9f8] sm:$0xff] }
 0x7d7   : > { %12604 = vmatprep.subr.bf16.mxu1 %v13728_v14  ;;  %v13872_v14 = vcombine.high %v2309_v2, %v2321_v3  ;;  %v2441_v62 = vld [vmem:[%s17046_s16 + $0xa58] sm:$0xff] }
 0x7d9   : > { %12441 = vmatpush1.bf16.msra.mxu0 %v13725_v23  ;;  %v13869_v23 = vcombine.low %v2308_v16, %v2320_v63  ;;  %v2452_v16 = vld [vmem:[%s17046_s16 + $0xab0] sm:$0xff] }
 0x7da   : > { %12605 = vmatpush1.bf16.msra.mxu1 %v13727_v26  ;;  %12442 = vmatprep.subr.bf16.mxu0 %v13750_v27  ;;  %v13871_v26 = vcombine.low %v2309_v2, %v2321_v3  ;;  %v13894_v27 = vcombine.high %v2332_v19, %v2344_v20  ;;  %v2464_v63 = vld [vmem:[%s17046_s16 + $0xb10] sm:$0xff]  ;;  %v2453_v2 = vld [vmem:[%s17046_s16 + $0xab8] sm:$0xff] }
 0x7db   : > { %12606 = vmatprep.subr.bf16.mxu1 %v13752_v53  ;;  %v13896_v53 = vcombine.high %v2333_v21, %v2345_v22  ;;  %v2465_v3 = vld [vmem:[%s17046_s16 + $0xb18] sm:$0xff] }
 0x7dd   : > { %12443 = vmatpush1.bf16.msra.mxu0 %v13749_v1  ;;  %v13893_v1 = vcombine.low %v2332_v19, %v2344_v20  ;;  %v2476_v19 = vld [vmem:[%s17046_s16 + $0xb70] sm:$0xff] }
 0x7de   : > { %12607 = vmatpush1.bf16.msra.mxu1 %v13751_v33  ;;  %12444 = vmatprep.subr.bf16.mxu0 %v13774_v37  ;;  %v13895_v33 = vcombine.low %v2333_v21, %v2345_v22  ;;  %v13918_v37 = vcombine.high %v2356_v28, %v2368_v7  ;;  %v2488_v20 = vld [vmem:[%s17046_s16 + $0xbd0] sm:$0xff]  ;;  %v2477_v21 = vld [vmem:[%s17046_s16 + $0xb78] sm:$0xff] }
 0x7df   : > { %12608 = vmatprep.subr.bf16.mxu1 %v13776_v38  ;;  %v13920_v38 = vcombine.high %v2357_v31, %v2369_v32  ;;  %v2489_v22 = vld [vmem:[%s17046_s16 + $0xbd8] sm:$0xff] }
 0x7e1   : > { %12445 = vmatpush1.bf16.msra.mxu0 %v13773_v44  ;;  %v13917_v44 = vcombine.low %v2356_v28, %v2368_v7  ;;  %v2500_v28 = vld [vmem:[%s17046_s16 + $0xc30] sm:$0xff] }
 0x7e2   : > { %12609 = vmatpush1.bf16.msra.mxu1 %v13775_v45  ;;  %12446 = vmatprep.subr.bf16.mxu0 %v13798_v46  ;;  %v13919_v45 = vcombine.low %v2357_v31, %v2369_v32  ;;  %v13942_v46 = vcombine.high %v2380_v39, %v2392_v40  ;;  %v2512_v7 = vld [vmem:[%s17046_s16 + $0xc90] sm:$0xff]  ;;  %v2501_v31 = vld [vmem:[%s17046_s16 + $0xc38] sm:$0xff] }
 0x7e3   : > { %12610 = vmatprep.subr.bf16.mxu1 %v13800_v47  ;;  %v13944_v47 = vcombine.high %v2381_v41, %v2393_v42  ;;  %v2513_v32 = vld [vmem:[%s17046_s16 + $0xc98] sm:$0xff] }
 0x7e5   : > { %12447 = vmatpush1.bf16.msra.mxu0 %v13797_v55  ;;  %v13941_v55 = vcombine.low %v2380_v39, %v2392_v40  ;;  %v2524_v39 = vld [vmem:[%s17046_s16 + $0xcf0] sm:$0xff] }
 0x7e6   : > { %12611 = vmatpush1.bf16.msra.mxu1 %v13799_v34  ;;  %12448 = vmatprep.subr.bf16.mxu0 %v13822_v9  ;;  %v13943_v34 = vcombine.low %v2381_v41, %v2393_v42  ;;  %v13966_v9 = vcombine.high %v2404_v48, %v2416_v49  ;;  %v2536_v40 = vld [vmem:[%s17046_s16 + $0xd50] sm:$0xff]  ;;  %v14061_v41 = vcombine.low %v2500_v28, %v2512_v7  ;;  %v2525_v42 = vld [vmem:[%s17046_s16 + $0xcf8] sm:$0xff] }
 0x7e7   : > { %12612 = vmatprep.subr.bf16.mxu1 %v13824_v54  ;;  %v13968_v54 = vcombine.high %v2405_v51, %v2417_v52 }
 0x7e9   : > { %12449 = vmatpush1.bf16.msra.mxu0 %v13821_v43  ;;  %v13965_v43 = vcombine.low %v2404_v48, %v2416_v49  ;;  %v2560_v48 = vld [vmem:[%s17046_s16 + $0xe10] sm:$0xff] }
 0x7ea   : > { %12613 = vmatpush1.bf16.msra.mxu1 %v13823_v59  ;;  %12450 = vmatprep.subr.bf16.mxu0 %v13846_v60  ;;  %v13967_v59 = vcombine.low %v2405_v51, %v2417_v52  ;;  %v13990_v60 = vcombine.high %v2428_v56, %v2440_v57  ;;  %v2549_v51 = vld [vmem:[%s17046_s16 + $0xdb8] sm:$0xff] }
 0x7eb   : > { %12614 = vmatprep.subr.bf16.mxu1 %v13848_v61  ;;  %v13992_v61 = vcombine.high %v2429_v58, %v2441_v62  ;;  %v2561_v52 = vld [vmem:[%s17046_s16 + $0xe18] sm:$0xff] }
 0x7ed   : > { %12451 = vmatpush1.bf16.msra.mxu0 %v13845_v5  ;;  %v13989_v5 = vcombine.low %v2428_v56, %v2440_v57  ;;  %v2572_v56 = vld [vmem:[%s17046_s16 + $0xe70] sm:$0xff] }
 0x7ee   : > { %12615 = vmatpush1.bf16.msra.mxu1 %v13847_v6  ;;  %12452 = vmatprep.subr.bf16.mxu0 %v13870_v13  ;;  %v13991_v6 = vcombine.low %v2429_v58, %v2441_v62  ;;  %v14014_v13 = vcombine.high %v2452_v16, %v2464_v63  ;;  %v2584_v57 = vld [vmem:[%s17046_s16 + $0xed0] sm:$0xff]  ;;  %v2573_v58 = vld [vmem:[%s17046_s16 + $0xe78] sm:$0xff] }
 0x7ef   : > { %12616 = vmatprep.subr.bf16.mxu1 %v13872_v14  ;;  %v14016_v14 = vcombine.high %v2453_v2, %v2465_v3  ;;  %v2585_v62 = vld [vmem:[%s17046_s16 + $0xed8] sm:$0xff] }
 0x7f1   : > { %12453 = vmatpush1.bf16.msra.mxu0 %v13869_v23  ;;  %v14013_v23 = vcombine.low %v2452_v16, %v2464_v63  ;;  %v2596_v16 = vld [vmem:[%s17046_s16 + $0xf30] sm:$0xff] }
 0x7f2   : > { %12617 = vmatpush1.bf16.msra.mxu1 %v13871_v26  ;;  %12454 = vmatprep.subr.bf16.mxu0 %v13894_v27  ;;  %v14015_v26 = vcombine.low %v2453_v2, %v2465_v3  ;;  %v14038_v27 = vcombine.high %v2476_v19, %v2488_v20  ;;  %v2608_v63 = vld [vmem:[%s17046_s16 + $0xf90] sm:$0xff]  ;;  %v2597_v2 = vld [vmem:[%s17046_s16 + $0xf38] sm:$0xff] }
 0x7f3   : > { %12618 = vmatprep.subr.bf16.mxu1 %v13896_v53  ;;  %v14040_v53 = vcombine.high %v2477_v21, %v2489_v22  ;;  %v2609_v3 = vld [vmem:[%s17046_s16 + $0xf98] sm:$0xff] }
 0x7f5   : > { %12455 = vmatpush1.bf16.msra.mxu0 %v13893_v1  ;;  %v14037_v1 = vcombine.low %v2476_v19, %v2488_v20  ;;  %v2620_v19 = vld [vmem:[%s17046_s16 + $0xff0] sm:$0xff] }
 0x7f6   : > { %12619 = vmatpush1.bf16.msra.mxu1 %v13895_v33  ;;  %12456 = vmatprep.subr.bf16.mxu0 %v13918_v37  ;;  %v14039_v33 = vcombine.low %v2477_v21, %v2489_v22  ;;  %v14062_v37 = vcombine.high %v2500_v28, %v2512_v7  ;;  %v2632_v20 = vld [vmem:[%s17046_s16 + $0x1050] sm:$0xff]  ;;  %v2621_v21 = vld [vmem:[%s17046_s16 + $0xff8] sm:$0xff] }
 0x7f7   : > { %12620 = vmatprep.subr.bf16.mxu1 %v13920_v38  ;;  %v14064_v38 = vcombine.high %v2501_v31, %v2513_v32  ;;  %v2633_v22 = vld [vmem:[%s17046_s16 + $0x1058] sm:$0xff]  ;;  %v2644_v28 = vld [vmem:[%s17046_s16 + $0x10b0] sm:$0xff] }
 0x7f8   : > { %v2656_v7 = vld [vmem:[%s17046_s16 + $0x1110] sm:$0xff] }
 0x7f9   : > { %12457 = vmatpush1.bf16.msra.mxu0 %v13917_v44  ;;  %v2537_v44 = vld [vmem:[%s17046_s16 + $0xd58] sm:$0xff] }
 0x7fa   : > { %12621 = vmatpush1.bf16.msra.mxu1 %v13919_v45  ;;  %12458 = vmatprep.subr.bf16.mxu0 %v13942_v46  ;;  %v14063_v45 = vcombine.low %v2501_v31, %v2513_v32  ;;  %v14086_v46 = vcombine.high %v2524_v39, %v2536_v40  ;;  %v14088_v49 = vcombine.high %v2525_v42, %v2537_v44  ;;  %v2645_v31 = vld [vmem:[%s17046_s16 + $0x10b8] sm:$0xff] }
 0x7fb   : > { %12622 = vmatprep.subr.bf16.mxu1 %v13944_v47  ;;  %v2548_v47 = vld [vmem:[%s17046_s16 + $0xdb0] sm:$0xff]  ;;  %v2657_v32 = vld [vmem:[%s17046_s16 + $0x1118] sm:$0xff] }
 0x7fd   : > { %12459 = vmatpush1.bf16.msra.mxu0 %v13941_v55  ;;  %v14085_v55 = vcombine.low %v2524_v39, %v2536_v40  ;;  %v2668_v39 = vld [vmem:[%s17046_s16 + $0x1170] sm:$0xff] }
 0x7fe   : > { %12623 = vmatpush1.bf16.msra.mxu1 %v13943_v34  ;;  %12460 = vmatprep.subr.bf16.mxu0 %v13966_v9  ;;  %v14087_v34 = vcombine.low %v2525_v42, %v2537_v44  ;;  %v14110_v9 = vcombine.high %v2548_v47, %v2560_v48  ;;  %v2680_v40 = vld [vmem:[%s17046_s16 + $0x11d0] sm:$0xff]  ;;  %v2681_v42 = vld [vmem:[%s17046_s16 + $0x11d8] sm:$0xff]  ;;  %v14205_v44 = vcombine.low %v2644_v28, %v2656_v7 }
 0x7ff   : > { %12624 = vmatprep.subr.bf16.mxu1 %v13968_v54  ;;  %v14112_v54 = vcombine.high %v2549_v51, %v2561_v52 }
 0x801   : > { %12461 = vmatpush1.bf16.msra.mxu0 %v13965_v43  ;;  %v14109_v43 = vcombine.low %v2548_v47, %v2560_v48  ;;  %v2692_v48 = vld [vmem:[%s17046_s16 + $0x1230] sm:$0xff] }
 0x802   : > { %12625 = vmatpush1.bf16.msra.mxu1 %v13967_v59  ;;  %12462 = vmatprep.subr.bf16.mxu0 %v13990_v60  ;;  %v14111_v59 = vcombine.low %v2549_v51, %v2561_v52  ;;  %v14134_v60 = vcombine.high %v2572_v56, %v2584_v57  ;;  %v2693_v51 = vld [vmem:[%s17046_s16 + $0x1238] sm:$0xff] }
 0x803   : > { %12626 = vmatprep.subr.bf16.mxu1 %v13992_v61  ;;  %v14136_v61 = vcombine.high %v2573_v58, %v2585_v62  ;;  %v2705_v52 = vld [vmem:[%s17046_s16 + $0x1298] sm:$0xff] }
 0x805   : > { %12463 = vmatpush1.bf16.msra.mxu0 %v13989_v5  ;;  %v14133_v5 = vcombine.low %v2572_v56, %v2584_v57  ;;  %v2716_v56 = vld [vmem:[%s17046_s16 + $0x12f0] sm:$0xff] }
 0x806   : > { %12627 = vmatpush1.bf16.msra.mxu1 %v13991_v6  ;;  %12464 = vmatprep.subr.bf16.mxu0 %v14014_v13  ;;  %v14135_v6 = vcombine.low %v2573_v58, %v2585_v62  ;;  %v14158_v13 = vcombine.high %v2596_v16, %v2608_v63  ;;  %v2728_v57 = vld [vmem:[%s17046_s16 + $0x1350] sm:$0xff]  ;;  %v2717_v58 = vld [vmem:[%s17046_s16 + $0x12f8] sm:$0xff] }
 0x807   : > { %12628 = vmatprep.subr.bf16.mxu1 %v14016_v14  ;;  %v14160_v14 = vcombine.high %v2597_v2, %v2609_v3  ;;  %v2729_v62 = vld [vmem:[%s17046_s16 + $0x1358] sm:$0xff] }
 0x809   : > { %12465 = vmatpush1.bf16.msra.mxu0 %v14013_v23  ;;  %v14157_v23 = vcombine.low %v2596_v16, %v2608_v63  ;;  %v2740_v16 = vld [vmem:[%s17046_s16 + $0x13b0] sm:$0xff] }
 0x80a   : > { %12629 = vmatpush1.bf16.msra.mxu1 %v14015_v26  ;;  %12466 = vmatprep.subr.bf16.mxu0 %v14038_v27  ;;  %v14159_v26 = vcombine.low %v2597_v2, %v2609_v3  ;;  %v14182_v27 = vcombine.high %v2620_v19, %v2632_v20  ;;  %v2752_v63 = vld [vmem:[%s17046_s16 + $0x1410] sm:$0xff]  ;;  %v2741_v2 = vld [vmem:[%s17046_s16 + $0x13b8] sm:$0xff] }
 0x80b   : > { %12630 = vmatprep.subr.bf16.mxu1 %v14040_v53  ;;  %v14184_v53 = vcombine.high %v2621_v21, %v2633_v22  ;;  %v2753_v3 = vld [vmem:[%s17046_s16 + $0x1418] sm:$0xff] }
 0x80d   : > { %12467 = vmatpush1.bf16.msra.mxu0 %v14037_v1  ;;  %v14181_v1 = vcombine.low %v2620_v19, %v2632_v20  ;;  %v2764_v19 = vld [vmem:[%s17046_s16 + $0x1470] sm:$0xff] }
 0x80e   : > { %12631 = vmatpush1.bf16.msra.mxu1 %v14039_v33  ;;  %12477 = vmatprep.subr.bf16.mxu0 %v14062_v37  ;;  %v14183_v33 = vcombine.low %v2621_v21, %v2633_v22  ;;  %v14206_v37 = vcombine.high %v2644_v28, %v2656_v7  ;;  %v2776_v20 = vld [vmem:[%s17046_s16 + $0x14d0] sm:$0xff]  ;;  %v2765_v21 = vld [vmem:[%s17046_s16 + $0x1478] sm:$0xff] }
 0x80f   : > { %12641 = vmatprep.subr.bf16.mxu1 %v14064_v38  ;;  %v14208_v38 = vcombine.high %v2645_v31, %v2657_v32  ;;  %v2777_v22 = vld [vmem:[%s17046_s16 + $0x14d8] sm:$0xff]  ;;  %v2788_v28 = vld [vmem:[%s17046_s16 + $0x1530] sm:$0xff] }
 0x810   : > { %12469 = vmatmul.mubr.bf16.vlgmr.msra.gmra.mrb[20].mxu0 %v17191_v4  ;;  %v2800_v7 = vld [vmem:[%s17046_s16 + $0x1590] sm:$0xff] }
 0x811   : > { %12633 = vmatmul.mubr.bf16.vlgmr.msra.gmra.mrb[20].mxu1 %v17191_v4  ;;  %12478 = vmatpush1.bf16.msra.mxu0 %v14061_v41  ;;  %v2669_v41 = vld [vmem:[%s17046_s16 + $0x1178] sm:$0xff] }
 0x812   : > { %12509 = vmatprep.mubr.bf16.mxu0 %v17199_v17  ;;  %12642 = vmatpush1.bf16.msra.mxu1 %v14063_v45  ;;  %v14207_v45 = vcombine.low %v2645_v31, %v2657_v32  ;;  %v14232_v47 = vcombine.high %v2669_v41, %v2681_v42  ;;  %v2789_v31 = vld [vmem:[%s17046_s16 + $0x1538] sm:$0xff] }
 0x813   : > { %12673 = vmatprep.mubr.bf16.mxu1 %v17199_v17  ;;  %12479 = vmatprep.subr.bf16.mxu0 %v14086_v46  ;;  %v14230_v46 = vcombine.high %v2668_v39, %v2680_v40  ;;  %v2801_v32 = vld [vmem:[%s17046_s16 + $0x1598] sm:$0xff] }
 0x814   : > { %12643 = vmatprep.subr.bf16.mxu1 %v14088_v49  ;;  %v2704_v49 = vld [vmem:[%s17046_s16 + $0x1290] sm:$0xff] }
 0x815   : > { %12480 = vmatpush1.bf16.msra.mxu0 %v14085_v55  ;;  %v14229_v55 = vcombine.low %v2668_v39, %v2680_v40  ;;  %v2812_v39 = vld [vmem:[%s17046_s16 + $0x15f0] sm:$0xff] }
 0x816   : > { %12644 = vmatpush1.bf16.msra.mxu1 %v14087_v34  ;;  %12481 = vmatprep.subr.bf16.mxu0 %v14110_v9  ;;  %v14231_v34 = vcombine.low %v2669_v41, %v2681_v42  ;;  %v14254_v9 = vcombine.high %v2692_v48, %v2704_v49  ;;  %v2824_v40 = vld [vmem:[%s17046_s16 + $0x1650] sm:$0xff]  ;;  %v2813_v41 = vld [vmem:[%s17046_s16 + $0x15f8] sm:$0xff] }
 0x817   : > { %12645 = vmatprep.subr.bf16.mxu1 %v14112_v54  ;;  %v14256_v54 = vcombine.high %v2693_v51, %v2705_v52  ;;  %v2825_v42 = vld [vmem:[%s17046_s16 + $0x1658] sm:$0xff] }
 0x819   : > { %12482 = vmatpush1.bf16.msra.mxu0 %v14109_v43  ;;  %v14253_v43 = vcombine.low %v2692_v48, %v2704_v49  ;;  %v2836_v48 = vld [vmem:[%s17046_s16 + $0x16b0] sm:$0xff] }
 0x81a   : > { %12646 = vmatpush1.bf16.msra.mxu1 %v14111_v59  ;;  %12483 = vmatprep.subr.bf16.mxu0 %v14134_v60  ;;  %v14255_v59 = vcombine.low %v2693_v51, %v2705_v52  ;;  %v14278_v60 = vcombine.high %v2716_v56, %v2728_v57  ;;  %v2848_v49 = vld [vmem:[%s17046_s16 + $0x1710] sm:$0xff]  ;;  %v2837_v51 = vld [vmem:[%s17046_s16 + $0x16b8] sm:$0xff] }
 0x81b   : > { %12647 = vmatprep.subr.bf16.mxu1 %v14136_v61  ;;  %v14280_v61 = vcombine.high %v2717_v58, %v2729_v62  ;;  %v2849_v52 = vld [vmem:[%s17046_s16 + $0x1718] sm:$0xff] }
 0x81d   : > { %12484 = vmatpush1.bf16.msra.mxu0 %v14133_v5  ;;  %v14277_v5 = vcombine.low %v2716_v56, %v2728_v57  ;;  %v2860_v56 = vld [vmem:[%s17046_s16 + $0x1770] sm:$0xff] }
 0x81e   : > { %12648 = vmatpush1.bf16.msra.mxu1 %v14135_v6  ;;  %12485 = vmatprep.subr.bf16.mxu0 %v14158_v13  ;;  %v14279_v6 = vcombine.low %v2717_v58, %v2729_v62  ;;  %v14302_v13 = vcombine.high %v2740_v16, %v2752_v63  ;;  %v2872_v57 = vld [vmem:[%s17046_s16 + $0x17d0] sm:$0xff]  ;;  %v2861_v58 = vld [vmem:[%s17046_s16 + $0x1778] sm:$0xff] }
 0x81f   : > { %12649 = vmatprep.subr.bf16.mxu1 %v14160_v14  ;;  %v14304_v14 = vcombine.high %v2741_v2, %v2753_v3  ;;  %v2873_v62 = vld [vmem:[%s17046_s16 + $0x17d8] sm:$0xff] }
 0x821   : > { %12486 = vmatpush1.bf16.msra.mxu0 %v14157_v23  ;;  %v14301_v23 = vcombine.low %v2740_v16, %v2752_v63  ;;  %v2884_v16 = vld [vmem:[%s17046_s16 + $0x1830] sm:$0xff] }
 0x822   : > { %12650 = vmatpush1.bf16.msra.mxu1 %v14159_v26  ;;  %12487 = vmatprep.subr.bf16.mxu0 %v14182_v27  ;;  %v14303_v26 = vcombine.low %v2741_v2, %v2753_v3  ;;  %v14326_v27 = vcombine.high %v2764_v19, %v2776_v20  ;;  %v2896_v63 = vld [vmem:[%s17046_s16 + $0x1890] sm:$0xff]  ;;  %v2885_v2 = vld [vmem:[%s17046_s16 + $0x1838] sm:$0xff] }
 0x823   : > { %12651 = vmatprep.subr.bf16.mxu1 %v14184_v53  ;;  %v14328_v53 = vcombine.high %v2765_v21, %v2777_v22  ;;  %v2897_v3 = vld [vmem:[%s17046_s16 + $0x1898] sm:$0xff] }
 0x825   : > { %12488 = vmatpush1.bf16.msra.mxu0 %v14181_v1  ;;  %v14325_v1 = vcombine.low %v2764_v19, %v2776_v20  ;;  %v2908_v19 = vld [vmem:[%s17046_s16 + $0x18f0] sm:$0xff] }
 0x826   : > { %12652 = vmatpush1.bf16.msra.mxu1 %v14183_v33  ;;  %12489 = vmatprep.subr.bf16.mxu0 %v14206_v37  ;;  %v14327_v33 = vcombine.low %v2765_v21, %v2777_v22  ;;  %v14350_v37 = vcombine.high %v2788_v28, %v2800_v7  ;;  %v2920_v20 = vld [vmem:[%s17046_s16 + $0x1950] sm:$0xff]  ;;  %v14445_v21 = vcombine.low %v2884_v16, %v2896_v63  ;;  %v2909_v22 = vld [vmem:[%s17046_s16 + $0x18f8] sm:$0xff] }
 0x827   : > { %12653 = vmatprep.subr.bf16.mxu1 %v14208_v38  ;;  %v14352_v38 = vcombine.high %v2789_v31, %v2801_v32 }
 0x829   : > { %12490 = vmatpush1.bf16.msra.mxu0 %v14205_v44  ;;  %v14349_v44 = vcombine.low %v2788_v28, %v2800_v7  ;;  %v2944_v28 = vld [vmem:[%s17046_s16 + $0x1a10] sm:$0xff] }
 0x82a   : > { %12654 = vmatpush1.bf16.msra.mxu1 %v14207_v45  ;;  %12491 = vmatprep.subr.bf16.mxu0 %v14230_v46  ;;  %v14351_v45 = vcombine.low %v2789_v31, %v2801_v32  ;;  %v14374_v46 = vcombine.high %v2812_v39, %v2824_v40  ;;  %v2933_v31 = vld [vmem:[%s17046_s16 + $0x19b8] sm:$0xff] }
 0x82b   : > { %12655 = vmatprep.subr.bf16.mxu1 %v14232_v47  ;;  %v14376_v47 = vcombine.high %v2813_v41, %v2825_v42  ;;  %v2945_v32 = vld [vmem:[%s17046_s16 + $0x1a18] sm:$0xff] }
 0x82d   : > { %12492 = vmatpush1.bf16.msra.mxu0 %v14229_v55  ;;  %v14373_v55 = vcombine.low %v2812_v39, %v2824_v40  ;;  %v2956_v39 = vld [vmem:[%s17046_s16 + $0x1a70] sm:$0xff] }
 0x82e   : > { %12656 = vmatpush1.bf16.msra.mxu1 %v14231_v34  ;;  %12493 = vmatprep.subr.bf16.mxu0 %v14254_v9  ;;  %v14375_v34 = vcombine.low %v2813_v41, %v2825_v42  ;;  %v14398_v9 = vcombine.high %v2836_v48, %v2848_v49  ;;  %v2968_v40 = vld [vmem:[%s17046_s16 + $0x1ad0] sm:$0xff]  ;;  %v2957_v41 = vld [vmem:[%s17046_s16 + $0x1a78] sm:$0xff] }
 0x82f   : > { %12657 = vmatprep.subr.bf16.mxu1 %v14256_v54  ;;  %v14400_v54 = vcombine.high %v2837_v51, %v2849_v52  ;;  %v2969_v42 = vld [vmem:[%s17046_s16 + $0x1ad8] sm:$0xff] }
 0x831   : > { %12494 = vmatpush1.bf16.msra.mxu0 %v14253_v43  ;;  %v14397_v43 = vcombine.low %v2836_v48, %v2848_v49  ;;  %v2980_v48 = vld [vmem:[%s17046_s16 + $0x1b30] sm:$0xff] }
 0x832   : > { %12658 = vmatpush1.bf16.msra.mxu1 %v14255_v59  ;;  %12495 = vmatprep.subr.bf16.mxu0 %v14278_v60  ;;  %v14399_v59 = vcombine.low %v2837_v51, %v2849_v52  ;;  %v14422_v60 = vcombine.high %v2860_v56, %v2872_v57  ;;  %v2992_v49 = vld [vmem:[%s17046_s16 + $0x1b90] sm:$0xff]  ;;  %v2981_v51 = vld [vmem:[%s17046_s16 + $0x1b38] sm:$0xff] }
 0x833   : > { %12659 = vmatprep.subr.bf16.mxu1 %v14280_v61  ;;  %v14424_v61 = vcombine.high %v2861_v58, %v2873_v62  ;;  %v2993_v52 = vld [vmem:[%s17046_s16 + $0x1b98] sm:$0xff] }
 0x835   : > { %12496 = vmatpush1.bf16.msra.mxu0 %v14277_v5  ;;  %v14421_v5 = vcombine.low %v2860_v56, %v2872_v57  ;;  %v3004_v56 = vld [vmem:[%s17046_s16 + $0x1bf0] sm:$0xff] }
 0x836   : > { %12660 = vmatpush1.bf16.msra.mxu1 %v14279_v6  ;;  %12497 = vmatprep.subr.bf16.mxu0 %v14302_v13  ;;  %v14423_v6 = vcombine.low %v2861_v58, %v2873_v62  ;;  %v14446_v13 = vcombine.high %v2884_v16, %v2896_v63  ;;  %v3016_v57 = vld [vmem:[%s17046_s16 + $0x1c50] sm:$0xff]  ;;  %v3005_v58 = vld [vmem:[%s17046_s16 + $0x1bf8] sm:$0xff] }
 0x837   : > { %12661 = vmatprep.subr.bf16.mxu1 %v14304_v14  ;;  %v14448_v14 = vcombine.high %v2885_v2, %v2897_v3  ;;  %v3017_v62 = vld [vmem:[%s17046_s16 + $0x1c58] sm:$0xff]  ;;  %v3028_v16 = vld [vmem:[%s17046_s16 + $0x1cb0] sm:$0xff] }
 0x838   : > { %v3040_v63 = vld [vmem:[%s17046_s16 + $0x1d10] sm:$0xff] }
 0x839   : > { %12498 = vmatpush1.bf16.msra.mxu0 %v14301_v23  ;;  %v2921_v23 = vld [vmem:[%s17046_s16 + $0x1958] sm:$0xff] }
 0x83a   : > { %12662 = vmatpush1.bf16.msra.mxu1 %v14303_v26  ;;  %12499 = vmatprep.subr.bf16.mxu0 %v14326_v27  ;;  %v14447_v26 = vcombine.low %v2885_v2, %v2897_v3  ;;  %v14470_v27 = vcombine.high %v2908_v19, %v2920_v20  ;;  %v14472_v7 = vcombine.high %v2909_v22, %v2921_v23  ;;  %v3029_v2 = vld [vmem:[%s17046_s16 + $0x1cb8] sm:$0xff] }
 0x83b   : > { %12663 = vmatprep.subr.bf16.mxu1 %v14328_v53  ;;  %v2932_v53 = vld [vmem:[%s17046_s16 + $0x19b0] sm:$0xff]  ;;  %v3041_v3 = vld [vmem:[%s17046_s16 + $0x1d18] sm:$0xff] }
 0x83d   : > { %12500 = vmatpush1.bf16.msra.mxu0 %v14325_v1  ;;  %v14469_v1 = vcombine.low %v2908_v19, %v2920_v20  ;;  %v3052_v19 = vld [vmem:[%s17046_s16 + $0x1d70] sm:$0xff] }
 0x83e   : > { %12664 = vmatpush1.bf16.msra.mxu1 %v14327_v33  ;;  %12501 = vmatprep.subr.bf16.mxu0 %v14350_v37  ;;  %v14471_v33 = vcombine.low %v2909_v22, %v2921_v23  ;;  %v14494_v37 = vcombine.high %v2932_v53, %v2944_v28  ;;  %v3064_v20 = vld [vmem:[%s17046_s16 + $0x1dd0] sm:$0xff]  ;;  %v3065_v22 = vld [vmem:[%s17046_s16 + $0x1dd8] sm:$0xff]  ;;  %v14589_v23 = vcombine.low %v3028_v16, %v3040_v63 }
 0x83f   : > { %12665 = vmatprep.subr.bf16.mxu1 %v14352_v38  ;;  %v14496_v38 = vcombine.high %v2933_v31, %v2945_v32 }
 0x841   : > { %12502 = vmatpush1.bf16.msra.mxu0 %v14349_v44  ;;  %v14493_v44 = vcombine.low %v2932_v53, %v2944_v28  ;;  %v3076_v28 = vld [vmem:[%s17046_s16 + $0x1e30] sm:$0xff] }
 0x842   : > { %12666 = vmatpush1.bf16.msra.mxu1 %v14351_v45  ;;  %12503 = vmatprep.subr.bf16.mxu0 %v14374_v46  ;;  %v14495_v45 = vcombine.low %v2933_v31, %v2945_v32  ;;  %v14518_v46 = vcombine.high %v2956_v39, %v2968_v40  ;;  %v3077_v31 = vld [vmem:[%s17046_s16 + $0x1e38] sm:$0xff] }
 0x843   : > { %12667 = vmatprep.subr.bf16.mxu1 %v14376_v47  ;;  %v14520_v47 = vcombine.high %v2957_v41, %v2969_v42  ;;  %v3089_v32 = vld [vmem:[%s17046_s16 + $0x1e98] sm:$0xff] }
 0x845   : > { %12504 = vmatpush1.bf16.msra.mxu0 %v14373_v55  ;;  %v14517_v55 = vcombine.low %v2956_v39, %v2968_v40  ;;  %v3100_v39 = vld [vmem:[%s17046_s16 + $0x1ef0] sm:$0xff] }
 0x846   : > { %12668 = vmatpush1.bf16.msra.mxu1 %v14375_v34  ;;  %12505 = vmatprep.subr.bf16.mxu0 %v14398_v9  ;;  %v14519_v34 = vcombine.low %v2957_v41, %v2969_v42  ;;  %v14542_v9 = vcombine.high %v2980_v48, %v2992_v49  ;;  %v3112_v40 = vld [vmem:[%s17046_s16 + $0x1f50] sm:$0xff]  ;;  %v3101_v41 = vld [vmem:[%s17046_s16 + $0x1ef8] sm:$0xff] }
 0x847   : > { %12669 = vmatprep.subr.bf16.mxu1 %v14400_v54  ;;  %v14544_v54 = vcombine.high %v2981_v51, %v2993_v52  ;;  %v3113_v42 = vld [vmem:[%s17046_s16 + $0x1f58] sm:$0xff] }
 0x849   : > { %12506 = vmatpush1.bf16.msra.mxu0 %v14397_v43  ;;  %v14541_v43 = vcombine.low %v2980_v48, %v2992_v49  ;;  %v3124_v48 = vld [vmem:[%s17046_s16 + $0x1fb0] sm:$0xff] }
 0x84a   : > { %12670 = vmatpush1.bf16.msra.mxu1 %v14399_v59  ;;  %12507 = vmatprep.subr.bf16.mxu0 %v14422_v60  ;;  %v14543_v59 = vcombine.low %v2981_v51, %v2993_v52  ;;  %v14566_v60 = vcombine.high %v3004_v56, %v3016_v57  ;;  %v3136_v49 = vld [vmem:[%s17046_s16 + $0x2010] sm:$0xff]  ;;  %v3125_v51 = vld [vmem:[%s17046_s16 + $0x1fb8] sm:$0xff] }
 0x84b   : > { %12671 = vmatprep.subr.bf16.mxu1 %v14424_v61  ;;  %v14568_v61 = vcombine.high %v3005_v58, %v3017_v62  ;;  %v3137_v52 = vld [vmem:[%s17046_s16 + $0x2018] sm:$0xff] }
 0x84d   : > { %12508 = vmatpush1.bf16.msra.mxu0 %v14421_v5  ;;  %v14565_v5 = vcombine.low %v3004_v56, %v3016_v57  ;;  %v3148_v56 = vld [vmem:[%s17046_s16 + $0x2070] sm:$0xff] }
 0x84e   : > { %12672 = vmatpush1.bf16.msra.mxu1 %v14423_v6  ;;  %12518 = vmatprep.subr.bf16.mxu0 %v14446_v13  ;;  %v14567_v6 = vcombine.low %v3005_v58, %v3017_v62  ;;  %v14590_v13 = vcombine.high %v3028_v16, %v3040_v63  ;;  %v3160_v57 = vld [vmem:[%s17046_s16 + $0x20d0] sm:$0xff]  ;;  %v3149_v58 = vld [vmem:[%s17046_s16 + $0x2078] sm:$0xff] }
 0x84f   : > { %12682 = vmatprep.subr.bf16.mxu1 %v14448_v14  ;;  %v14592_v14 = vcombine.high %v3029_v2, %v3041_v3  ;;  %v3161_v62 = vld [vmem:[%s17046_s16 + $0x20d8] sm:$0xff]  ;;  %v3172_v16 = vld [vmem:[%s17046_s16 + $0x2130] sm:$0xff] }
 0x850   : > { %12510 = vmatmul.mubr.bf16.vlgmr.msra.gmra.mrb[20].mxu0 %v17268_v35  ;;  %v3184_v63 = vld [vmem:[%s17046_s16 + $0x2190] sm:$0xff] }
 0x851   : > { %12674 = vmatmul.mubr.bf16.vlgmr.msra.gmra.mrb[20].mxu1 %v17268_v35  ;;  %12519 = vmatpush1.bf16.msra.mxu0 %v14445_v21  ;;  %v3053_v21 = vld [vmem:[%s17046_s16 + $0x1d78] sm:$0xff] }
 0x852   : > { %12550 = vmatprep.mubr.bf16.mxu0 %v17353_v12  ;;  %12683 = vmatpush1.bf16.msra.mxu1 %v14447_v26  ;;  %v14591_v26 = vcombine.low %v3029_v2, %v3041_v3  ;;  %v14616_v53 = vcombine.high %v3053_v21, %v3065_v22  ;;  %v3173_v2 = vld [vmem:[%s17046_s16 + $0x2138] sm:$0xff] }
 0x853   : > { %12714 = vmatprep.mubr.bf16.mxu1 %v17353_v12  ;;  %12520 = vmatprep.subr.bf16.mxu0 %v14470_v27  ;;  %v14614_v27 = vcombine.high %v3052_v19, %v3064_v20  ;;  %v3185_v3 = vld [vmem:[%s17046_s16 + $0x2198] sm:$0xff] }
 0x854   : > { %12684 = vmatprep.subr.bf16.mxu1 %v14472_v7  ;;  %v3088_v7 = vld [vmem:[%s17046_s16 + $0x1e90] sm:$0xff] }
 0x855   : > { %12521 = vmatpush1.bf16.msra.mxu0 %v14469_v1  ;;  %v14613_v1 = vcombine.low %v3052_v19, %v3064_v20  ;;  %v3196_v19 = vld [vmem:[%s17046_s16 + $0x21f0] sm:$0xff] }
 0x856   : > { %12685 = vmatpush1.bf16.msra.mxu1 %v14471_v33  ;;  %12522 = vmatprep.subr.bf16.mxu0 %v14494_v37  ;;  %v14615_v33 = vcombine.low %v3053_v21, %v3065_v22  ;;  %v14638_v37 = vcombine.high %v3076_v28, %v3088_v7  ;;  %v3208_v20 = vld [vmem:[%s17046_s16 + $0x2250] sm:$0xff]  ;;  %v3197_v21 = vld [vmem:[%s17046_s16 + $0x21f8] sm:$0xff] }
 0x857   : > { %12686 = vmatprep.subr.bf16.mxu1 %v14496_v38  ;;  %v14640_v38 = vcombine.high %v3077_v31, %v3089_v32  ;;  %v3209_v22 = vld [vmem:[%s17046_s16 + $0x2258] sm:$0xff] }
 0x859   : > { %12523 = vmatpush1.bf16.msra.mxu0 %v14493_v44  ;;  %v14637_v44 = vcombine.low %v3076_v28, %v3088_v7  ;;  %v3220_v28 = vld [vmem:[%s17046_s16 + $0x22b0] sm:$0xff] }
 0x85a   : > { %12687 = vmatpush1.bf16.msra.mxu1 %v14495_v45  ;;  %12524 = vmatprep.subr.bf16.mxu0 %v14518_v46  ;;  %v14639_v45 = vcombine.low %v3077_v31, %v3089_v32  ;;  %v14662_v46 = vcombine.high %v3100_v39, %v3112_v40  ;;  %v3232_v7 = vld [vmem:[%s17046_s16 + $0x2310] sm:$0xff]  ;;  %v3221_v31 = vld [vmem:[%s17046_s16 + $0x22b8] sm:$0xff] }
 0x85b   : > { %12688 = vmatprep.subr.bf16.mxu1 %v14520_v47  ;;  %v14664_v47 = vcombine.high %v3101_v41, %v3113_v42  ;;  %v3233_v32 = vld [vmem:[%s17046_s16 + $0x2318] sm:$0xff] }
 0x85d   : > { %12525 = vmatpush1.bf16.msra.mxu0 %v14517_v55  ;;  %v14661_v55 = vcombine.low %v3100_v39, %v3112_v40  ;;  %v3244_v39 = vld [vmem:[%s17046_s16 + $0x2370] sm:$0xff] }
 0x85e   : > { %12689 = vmatpush1.bf16.msra.mxu1 %v14519_v34  ;;  %12526 = vmatprep.subr.bf16.mxu0 %v14542_v9  ;;  %v14663_v34 = vcombine.low %v3101_v41, %v3113_v42  ;;  %v14686_v9 = vcombine.high %v3124_v48, %v3136_v49  ;;  %v3256_v40 = vld [vmem:[%s17046_s16 + $0x23d0] sm:$0xff]  ;;  %v3245_v41 = vld [vmem:[%s17046_s16 + $0x2378] sm:$0xff] }
 0x85f   : > { %12690 = vmatprep.subr.bf16.mxu1 %v14544_v54  ;;  %v14688_v54 = vcombine.high %v3125_v51, %v3137_v52  ;;  %v3257_v42 = vld [vmem:[%s17046_s16 + $0x23d8] sm:$0xff] }
 0x861   : > { %12527 = vmatpush1.bf16.msra.mxu0 %v14541_v43  ;;  %v14685_v43 = vcombine.low %v3124_v48, %v3136_v49  ;;  %v3268_v48 = vld [vmem:[%s17046_s16 + $0x2430] sm:$0xff] }
 0x862   : > { %12691 = vmatpush1.bf16.msra.mxu1 %v14543_v59  ;;  %12528 = vmatprep.subr.bf16.mxu0 %v14566_v60  ;;  %v14687_v59 = vcombine.low %v3125_v51, %v3137_v52  ;;  %v14710_v60 = vcombine.high %v3148_v56, %v3160_v57  ;;  %v3280_v49 = vld [vmem:[%s17046_s16 + $0x2490] sm:$0xff]  ;;  %v3269_v51 = vld [vmem:[%s17046_s16 + $0x2438] sm:$0xff] }
 0x863   : > { %12692 = vmatprep.subr.bf16.mxu1 %v14568_v61  ;;  %v14712_v61 = vcombine.high %v3149_v58, %v3161_v62  ;;  %v3281_v52 = vld [vmem:[%s17046_s16 + $0x2498] sm:$0xff] }
 0x865   : > { %12529 = vmatpush1.bf16.msra.mxu0 %v14565_v5  ;;  %v14709_v5 = vcombine.low %v3148_v56, %v3160_v57  ;;  %v3292_v56 = vld [vmem:[%s17046_s16 + $0x24f0] sm:$0xff] }
 0x866   : > { %12693 = vmatpush1.bf16.msra.mxu1 %v14567_v6  ;;  %12530 = vmatprep.subr.bf16.mxu0 %v14590_v13  ;;  %v14711_v6 = vcombine.low %v3149_v58, %v3161_v62  ;;  %v14734_v13 = vcombine.high %v3172_v16, %v3184_v63  ;;  %v3304_v57 = vld [vmem:[%s17046_s16 + $0x2550] sm:$0xff]  ;;  %v14829_v58 = vcombine.low %v3268_v48, %v3280_v49  ;;  %v3293_v62 = vld [vmem:[%s17046_s16 + $0x24f8] sm:$0xff] }
 0x867   : > { %12694 = vmatprep.subr.bf16.mxu1 %v14592_v14  ;;  %v14736_v14 = vcombine.high %v3173_v2, %v3185_v3 }
 0x869   : > { %12531 = vmatpush1.bf16.msra.mxu0 %v14589_v23  ;;  %v14733_v23 = vcombine.low %v3172_v16, %v3184_v63  ;;  %v3328_v16 = vld [vmem:[%s17046_s16 + $0x2610] sm:$0xff] }
 0x86a   : > { %12695 = vmatpush1.bf16.msra.mxu1 %v14591_v26  ;;  %12532 = vmatprep.subr.bf16.mxu0 %v14614_v27  ;;  %v14735_v26 = vcombine.low %v3173_v2, %v3185_v3  ;;  %v14758_v27 = vcombine.high %v3196_v19, %v3208_v20  ;;  %v3317_v2 = vld [vmem:[%s17046_s16 + $0x25b8] sm:$0xff] }
 0x86b   : > { %12696 = vmatprep.subr.bf16.mxu1 %v14616_v53  ;;  %v14760_v53 = vcombine.high %v3197_v21, %v3209_v22  ;;  %v3329_v3 = vld [vmem:[%s17046_s16 + $0x2618] sm:$0xff] }
 0x86d   : > { %12533 = vmatpush1.bf16.msra.mxu0 %v14613_v1  ;;  %v14757_v1 = vcombine.low %v3196_v19, %v3208_v20  ;;  %v3340_v19 = vld [vmem:[%s17046_s16 + $0x2670] sm:$0xff] }
 0x86e   : > { %12697 = vmatpush1.bf16.msra.mxu1 %v14615_v33  ;;  %12534 = vmatprep.subr.bf16.mxu0 %v14638_v37  ;;  %v14759_v33 = vcombine.low %v3197_v21, %v3209_v22  ;;  %v14782_v37 = vcombine.high %v3220_v28, %v3232_v7  ;;  %v3352_v20 = vld [vmem:[%s17046_s16 + $0x26d0] sm:$0xff]  ;;  %v3341_v21 = vld [vmem:[%s17046_s16 + $0x2678] sm:$0xff] }
 0x86f   : > { %12698 = vmatprep.subr.bf16.mxu1 %v14640_v38  ;;  %v14784_v38 = vcombine.high %v3221_v31, %v3233_v32  ;;  %v3353_v22 = vld [vmem:[%s17046_s16 + $0x26d8] sm:$0xff] }
 0x871   : > { %12535 = vmatpush1.bf16.msra.mxu0 %v14637_v44  ;;  %v14781_v44 = vcombine.low %v3220_v28, %v3232_v7  ;;  %v3364_v28 = vld [vmem:[%s17046_s16 + $0x2730] sm:$0xff] }
 0x872   : > { %12699 = vmatpush1.bf16.msra.mxu1 %v14639_v45  ;;  %12536 = vmatprep.subr.bf16.mxu0 %v14662_v46  ;;  %v14783_v45 = vcombine.low %v3221_v31, %v3233_v32  ;;  %v14806_v46 = vcombine.high %v3244_v39, %v3256_v40  ;;  %v3376_v7 = vld [vmem:[%s17046_s16 + $0x2790] sm:$0xff]  ;;  %v3365_v31 = vld [vmem:[%s17046_s16 + $0x2738] sm:$0xff] }
 0x873   : > { %12700 = vmatprep.subr.bf16.mxu1 %v14664_v47  ;;  %v14808_v47 = vcombine.high %v3245_v41, %v3257_v42  ;;  %v3377_v32 = vld [vmem:[%s17046_s16 + $0x2798] sm:$0xff] }
 0x875   : > { %12537 = vmatpush1.bf16.msra.mxu0 %v14661_v55  ;;  %v14805_v55 = vcombine.low %v3244_v39, %v3256_v40  ;;  %v3388_v39 = vld [vmem:[%s17046_s16 + $0x27f0] sm:$0xff] }
 0x876   : > { %12701 = vmatpush1.bf16.msra.mxu1 %v14663_v34  ;;  %12538 = vmatprep.subr.bf16.mxu0 %v14686_v9  ;;  %v14807_v34 = vcombine.low %v3245_v41, %v3257_v42  ;;  %v14830_v9 = vcombine.high %v3268_v48, %v3280_v49  ;;  %v3400_v40 = vld [vmem:[%s17046_s16 + $0x2850] sm:$0xff]  ;;  %v3389_v41 = vld [vmem:[%s17046_s16 + $0x27f8] sm:$0xff] }
 0x877   : > { %12702 = vmatprep.subr.bf16.mxu1 %v14688_v54  ;;  %v14832_v54 = vcombine.high %v3269_v51, %v3281_v52  ;;  %v3401_v42 = vld [vmem:[%s17046_s16 + $0x2858] sm:$0xff]  ;;  %v3412_v49 = vld [vmem:[%s17046_s16 + $0x28b0] sm:$0xff] }
 0x878   : > { %v14952_v48 = vcombine.high %v3389_v41, %v3401_v42 }
 0x879   : > { %12539 = vmatpush1.bf16.msra.mxu0 %v14685_v43  ;;  %v3305_v43 = vld [vmem:[%s17046_s16 + $0x2558] sm:$0xff] }
 0x87a   : > { %12703 = vmatpush1.bf16.msra.mxu1 %v14687_v59  ;;  %12540 = vmatprep.subr.bf16.mxu0 %v14710_v60  ;;  %v14831_v59 = vcombine.low %v3269_v51, %v3281_v52  ;;  %v14854_v60 = vcombine.high %v3292_v56, %v3304_v57  ;;  %v14856_v63 = vcombine.high %v3293_v62, %v3305_v43  ;;  %v3424_v51 = vld [vmem:[%s17046_s16 + $0x2910] sm:$0xff] }
 0x87b   : > { %12704 = vmatprep.subr.bf16.mxu1 %v14712_v61  ;;  %v3316_v61 = vld [vmem:[%s17046_s16 + $0x25b0] sm:$0xff] }
 0x87d   : > { %12541 = vmatpush1.bf16.msra.mxu0 %v14709_v5  ;;  %v14853_v5 = vcombine.low %v3292_v56, %v3304_v57  ;;  %v14949_v56 = vcombine.low %v3388_v39, %v3400_v40 }
 0x87e   : > { %12705 = vmatpush1.bf16.msra.mxu1 %v14711_v6  ;;  %12542 = vmatprep.subr.bf16.mxu0 %v14734_v13  ;;  %v14855_v6 = vcombine.low %v3293_v62, %v3305_v43  ;;  %v14878_v13 = vcombine.high %v3316_v61, %v3328_v16  ;;  %v14974_v62 = vcombine.high %v3412_v49, %v3424_v51 }
 0x87f   : > { %12706 = vmatprep.subr.bf16.mxu1 %v14736_v14  ;;  %v14880_v14 = vcombine.high %v3317_v2, %v3329_v3 }
 0x881   : > { %12543 = vmatpush1.bf16.msra.mxu0 %v14733_v23  ;;  %v14877_v23 = vcombine.low %v3316_v61, %v3328_v16  ;;  %v3448_v61 = vld [vmem:[%s17046_s16 + $0x29d0] sm:$0xff] }
 0x882   : > { %12707 = vmatpush1.bf16.msra.mxu1 %v14735_v26  ;;  %12544 = vmatprep.subr.bf16.mxu0 %v14758_v27  ;;  %v14879_v26 = vcombine.low %v3317_v2, %v3329_v3  ;;  %v14902_v27 = vcombine.high %v3340_v19, %v3352_v20  ;;  %v3437_v3 = vld [vmem:[%s17046_s16 + $0x2978] sm:$0xff] }
 0x883   : > { %12708 = vmatprep.subr.bf16.mxu1 %v14760_v53  ;;  %v14904_v53 = vcombine.high %v3341_v21, %v3353_v22 }
 0x885   : > { %12545 = vmatpush1.bf16.msra.mxu0 %v14757_v1  ;;  %v14901_v1 = vcombine.low %v3340_v19, %v3352_v20  ;;  %v14973_v20 = vcombine.low %v3412_v49, %v3424_v51  ;;  %v3508_v49 = vld [vmem:[%s17046_s16 + $0x2bb0] sm:$0xff] }
 0x886   : > { %12709 = vmatpush1.bf16.msra.mxu1 %v14759_v33  ;;  %12546 = vmatprep.subr.bf16.mxu0 %v14782_v37  ;;  %v14903_v33 = vcombine.low %v3341_v21, %v3353_v22  ;;  %v14926_v37 = vcombine.high %v3364_v28, %v3376_v7  ;;  %v3520_v51 = vld [vmem:[%s17046_s16 + $0x2c10] sm:$0xff] }
 0x887   : > { %12710 = vmatprep.subr.bf16.mxu1 %v14784_v38  ;;  %v14928_v38 = vcombine.high %v3365_v31, %v3377_v32 }
 0x889   : > { %12547 = vmatpush1.bf16.msra.mxu0 %v14781_v44  ;;  %v14925_v44 = vcombine.low %v3364_v28, %v3376_v7  ;;  %v3460_v7 = vld [vmem:[%s17046_s16 + $0x2a30] sm:$0xff] }
 0x88a   : > { %12711 = vmatpush1.bf16.msra.mxu1 %v14783_v45  ;;  %12548 = vmatprep.subr.bf16.mxu0 %v14806_v46  ;;  %v3647_v45 = vld [vmem:[%s17661_s15 + $0x8] sm:$0xff]  ;;  %v14927_v46 = vcombine.low %v3365_v31, %v3377_v32  ;;  %v3472_v31 = vld [vmem:[%s17046_s16 + $0x2a90] sm:$0xff]  ;;  %v3461_v32 = vld [vmem:[%s17046_s16 + $0x2a38] sm:$0xff] }
 0x88b   : > { %12712 = vmatprep.subr.bf16.mxu1 %v14808_v47  ;;  %v14950_v47 = vcombine.high %v3388_v39, %v3400_v40  ;;  %v3687_v52 = vrot.slane %v3647_v45, %v17059_v8  ;;  %v3699_v57 = vrot.slane %v3647_v45, %v17067_v11  ;;  %v3484_v40 = vld [vmem:[%s17046_s16 + $0x2af0] sm:$0xff] }
 0x88d   : > { %12549 = vmatpush1.bf16.msra.mxu0 %v14805_v55  ;;  %v3413_v55 = vld [vmem:[%s17046_s16 + $0x28b8] sm:$0xff] }
 0x88e   : > { %12713 = vmatpush1.bf16.msra.mxu1 %v14807_v34  ;;  %12559 = vmatprep.subr.bf16.mxu0 %v14830_v9  ;;  %v3425_v34 = vld [vmem:[%s17046_s16 + $0x2918] sm:$0xff]  ;;  %v3695_v9 = vrot.slane %v3647_v45, %v17090_v25 }
 0x88f   : > { %12723 = vmatprep.subr.bf16.mxu1 %v14832_v54  ;;  %v3691_v54 = vrot.slane %v3647_v45, %v17064_v10  ;;  %v15021_v45 = vcombine.low %v3460_v7, %v3472_v31 }
 0x890   : > { %12551 = vmatmul.mubr.bf16.vlgmr.msra.gmra.mrb[20].mxu0 %v17355_v15 }
 0x891   : > { %12715 = vmatmul.mubr.bf16.vlgmr.msra.gmra.mrb[20].mxu1 %v17355_v15  ;;  %12560 = vmatpush1.bf16.msra.mxu0 %v14829_v58  ;;  %v14951_v58 = vcombine.low %v3389_v41, %v3401_v42  ;;  %v3496_v41 = vld [vmem:[%s17046_s16 + $0x2b50] sm:$0xff]  ;;  %v3485_v42 = vld [vmem:[%s17046_s16 + $0x2af8] sm:$0xff] }
 0x892   : > { %12591 = vmatprep.mubr.bf16.mxu0 %v17363_v24  ;;  %12724 = vmatpush1.bf16.msra.mxu1 %v14831_v59  ;;  %v14976_v59 = vcombine.high %v3413_v55, %v3425_v34 }
 0x893   : > { %12755 = vmatprep.mubr.bf16.mxu1 %v17363_v24  ;;  %12561 = vmatprep.subr.bf16.mxu0 %v14854_v60  ;;  %v3436_v60 = vld [vmem:[%s17046_s16 + $0x2970] sm:$0xff] }
 0x894   : > { %12725 = vmatprep.subr.bf16.mxu1 %v14856_v63 }
 0x895   : > { %12562 = vmatpush1.bf16.msra.mxu0 %v14853_v5  ;;  %v3449_v5 = vld [vmem:[%s17046_s16 + $0x29d8] sm:$0xff] }
 0x896   : > { %12726 = vmatpush1.bf16.msra.mxu1 %v14855_v6  ;;  %12563 = vmatprep.subr.bf16.mxu0 %v14878_v13  ;;  %v15000_v28 = vcombine.high %v3437_v3, %v3449_v5 }
 0x897   : > { %12727 = vmatprep.subr.bf16.mxu1 %v14880_v14 }
 0x899   : > { %12564 = vmatpush1.bf16.msra.mxu0 %v14877_v23 }
 0x89a   : > { %12728 = vmatpush1.bf16.msra.mxu1 %v14879_v26  ;;  %12565 = vmatprep.subr.bf16.mxu0 %v14902_v27  ;;  %v14975_v26 = vcombine.low %v3413_v55, %v3425_v34  ;;  %v14998_v27 = vcombine.high %v3436_v60, %v3448_v61  ;;  %v3521_v55 = vld [vmem:[%s17046_s16 + $0x2c18] sm:$0xff]  ;;  %v15045_v34 = vcombine.low %v3484_v40, %v3496_v41 }
 0x89b   : > { %12729 = vmatprep.subr.bf16.mxu1 %v14904_v53 }
 0x89d   : > { %12566 = vmatpush1.bf16.msra.mxu0 %v14901_v1  ;;  %v3473_v1 = vld [vmem:[%s17046_s16 + $0x2a98] sm:$0xff] }
 0x89e   : > { %12730 = vmatpush1.bf16.msra.mxu1 %v14903_v33  ;;  %12567 = vmatprep.subr.bf16.mxu0 %v14926_v37  ;;  %v14997_v33 = vcombine.low %v3436_v60, %v3448_v61  ;;  %v14999_v37 = vcombine.low %v3437_v3, %v3449_v5  ;;  %v15024_v39 = vcombine.high %v3461_v32, %v3473_v1  ;;  %v3557_v3 = vld [vmem:[%s17046_s16 + $0x2d38] sm:$0xff] }
 0x89f   : > { %12731 = vmatprep.subr.bf16.mxu1 %v14928_v38  ;;  %v15022_v38 = vcombine.high %v3460_v7, %v3472_v31  ;;  %v3569_v5 = vld [vmem:[%s17046_s16 + $0x2d98] sm:$0xff]  ;;  %v3604_v7 = vld [vmem:[%s17046_s16 + $0x2eb0] sm:$0xff] }
 0x8a0   : > { %v3616_v31 = vld [vmem:[%s17046_s16 + $0x2f10] sm:$0xff] }
 0x8a1   : > { %12568 = vmatpush1.bf16.msra.mxu0 %v14925_v44  ;;  %v3497_v44 = vld [vmem:[%s17046_s16 + $0x2b58] sm:$0xff] }
 0x8a2   : > { %12732 = vmatpush1.bf16.msra.mxu1 %v14927_v46  ;;  %12569 = vmatprep.subr.bf16.mxu0 %v14950_v47  ;;  %v15023_v46 = vcombine.low %v3461_v32, %v3473_v1  ;;  %v15046_v47 = vcombine.high %v3484_v40, %v3496_v41  ;;  %v3605_v32 = vld [vmem:[%s17046_s16 + $0x2eb8] sm:$0xff]  ;;  %v3628_v40 = vld [vmem:[%s17046_s16 + $0x2f70] sm:$0xff] }
 0x8a3   : > { %v12265_v43 = vpop.f32.mrb[16].mxu0  ;;  %12733 = vmatprep.subr.bf16.mxu1 %v14952_v48  ;;  %v15048_v48 = vcombine.high %v3485_v42, %v3497_v44  ;;  %v3617_v1 = vld [vmem:[%s17046_s16 + $0x2f18] sm:$0xff]  ;;  %v3640_v41 = vld [vmem:[%s17046_s16 + $0x2fd0] sm:$0xff] }
 0x8a4   : > { %v15860_v16 = vadd.f32 %v12265_v43, %v3687_v52  ;;  %v12429_v63 = vpop.f32.mrb[16].mxu1  ;;  %v12267_v2 = vpop.f32.mrb[17].mxu0  ;;  %v3509_v52 = vld [vmem:[%s17046_s16 + $0x2bb8] sm:$0xff] }
 0x8a5   : > { %v15862_v6 = vadd.f32 %v12429_v63, %v3695_v9  ;;  %v15861_v13 = vadd.f32 %v12267_v2, %v3691_v54  ;;  %v12431_v14 = vpop.f32.mrb[17].mxu1  ;;  %v12269_v19 = vpop.f32.mrb[18].mxu0  ;;  %12570 = vmatpush1.bf16.msra.mxu0 %v14949_v56  ;;  %v15047_v9 = vcombine.low %v3485_v42, %v3497_v44  ;;  %v15070_v54 = vcombine.high %v3508_v49, %v3520_v51  ;;  %v3545_v43 = vld [vmem:[%s17046_s16 + $0x2cd8] sm:$0xff]  ;;  %v3556_v63 = vld [vmem:[%s17046_s16 + $0x2d30] sm:$0xff] }
 0x8a6   : > { %13428 = vst [vmem:[%s17679_s27 + $0x40] sm:$0xff] %v15860_v16  ;;  %v15863_v21 = vadd.f32 %v12431_v14, %v3699_v57  ;;  %v12433_v22 = vpop.f32.mrb[18].mxu1  ;;  %12734 = vmatpush1.bf16.msra.mxu1 %v14951_v58  ;;  %v12270_v23 = vpop.f32.mrb[19].mxu0  ;;  %12571 = vmatprep.subr.bf16.mxu0 %v14974_v62  ;;  %v15072_v56 = vcombine.high %v3509_v52, %v3521_v55  ;;  %v3532_v57 = vld [vmem:[%s17046_s16 + $0x2c70] sm:$0xff]  ;;  %v3533_v62 = vld [vmem:[%s17046_s16 + $0x2c78] sm:$0xff] }
 0x8a7   : > { %13430 = vst [vmem:[%s17679_s27 + $0x50] sm:$0xff] %v15862_v6  ;;  %13429 = vst [vmem:[%s17679_s27 + $0x48] sm:$0xff] %v15861_v13  ;;  %v12434_v53 = vpop.f32.mrb[19].mxu1  ;;  %12735 = vmatprep.subr.bf16.mxu1 %v14976_v59  ;;  %v3544_v58 = vld [vmem:[%s17046_s16 + $0x2cd0] sm:$0xff]  ;;  %v15069_v59 = vcombine.low %v3508_v49, %v3520_v51  ;;  %v15071_v60 = vcombine.low %v3509_v52, %v3521_v55  ;;  %v15096_v16 = vcombine.high %v3533_v62, %v3545_v43  ;;  %v3581_v22 = vld [vmem:[%s17046_s16 + $0x2df8] sm:$0xff] }
 0x8a8   : > { %13431 = vst [vmem:[%s17679_s27 + $0x58] sm:$0xff] %v15863_v21  ;;  %v15094_v61 = vcombine.high %v3532_v57, %v3544_v58  ;;  %v3568_v2 = vld [vmem:[%s17046_s16 + $0x2d90] sm:$0xff]  ;;  %v15093_v6 = vcombine.low %v3532_v57, %v3544_v58  ;;  %v15095_v13 = vcombine.low %v3533_v62, %v3545_v43  ;;  %v15120_v19 = vcombine.high %v3557_v3, %v3569_v5  ;;  %v3593_v23 = vld [vmem:[%s17046_s16 + $0x2e58] sm:$0xff]  ;;  %v2118_v49 = vld [vmem:[%s17046_s16 + $0x40] sm:$0xff] }
 0x8a9   : > { %12572 = vmatpush1.bf16.msra.mxu0 %v14973_v20  ;;  %v15118_v14 = vcombine.high %v3556_v63, %v3568_v2  ;;  %v3580_v20 = vld [vmem:[%s17046_s16 + $0x2df0] sm:$0xff]  ;;  %v3629_v42 = vld [vmem:[%s17046_s16 + $0x2f78] sm:$0xff]  ;;  %v2130_v51 = vld [vmem:[%s17046_s16 + $0xa0] sm:$0xff] }
 0x8aa   : > { %12736 = vmatpush1.bf16.msra.mxu1 %v14975_v26  ;;  %12573 = vmatprep.subr.bf16.mxu0 %v14998_v27  ;;  %v3592_v21 = vld [vmem:[%s17046_s16 + $0x2e50] sm:$0xff]  ;;  %v15117_v26 = vcombine.low %v3556_v63, %v3568_v2  ;;  %v15119_v27 = vcombine.low %v3557_v3, %v3569_v5  ;;  %v3641_v44 = vld [vmem:[%s17046_s16 + $0x2fd8] sm:$0xff]  ;;  %v2119_v52 = vld [vmem:[%s17046_s16 + $0x48] sm:$0xff]  ;;  %v13681_v62 = vcombine.low %v2118_v49, %v2130_v51 }
 0x8ab   : > { %12737 = vmatprep.subr.bf16.mxu1 %v15000_v28  ;;  %v15142_v53 = vcombine.high %v3580_v20, %v3592_v21  ;;  %v15144_v28 = vcombine.high %v3581_v22, %v3593_v23  ;;  %v2131_v55 = vld [vmem:[%s17046_s16 + $0xa8] sm:$0xff]  ;;  %v2142_v57 = vld [vmem:[%s17046_s16 + $0x100] sm:$0xff] }
 0x8ac   : > { %v2154_v58 = vld [vmem:[%s17046_s16 + $0x160] sm:$0xff]  ;;  %v2143_v43 = vld [vmem:[%s17046_s16 + $0x108] sm:$0xff] }
 0x8ad   : > { %12574 = vmatpush1.bf16.msra.mxu0 %v14997_v33  ;;  %v15141_v33 = vcombine.low %v3580_v20, %v3592_v21  ;;  %v2178_v63 = vld [vmem:[%s17046_s16 + $0x220] sm:$0xff]  ;;  %v2167_v3 = vld [vmem:[%s17046_s16 + $0x1c8] sm:$0xff] }
 0x8ae   : > { %12738 = vmatpush1.bf16.msra.mxu1 %v14999_v37  ;;  %12575 = vmatprep.subr.bf16.mxu0 %v15022_v38  ;;  %v15143_v37 = vcombine.low %v3581_v22, %v3593_v23  ;;  %v15166_v38 = vcombine.high %v3604_v7, %v3616_v31  ;;  %v2179_v5 = vld [vmem:[%s17046_s16 + $0x228] sm:$0xff]  ;;  %v2190_v20 = vld [vmem:[%s17046_s16 + $0x280] sm:$0xff] }
 0x8af   : > { %12739 = vmatprep.subr.bf16.mxu1 %v15024_v39  ;;  %v15168_v39 = vcombine.high %v3605_v32, %v3617_v1  ;;  %v2202_v21 = vld [vmem:[%s17046_s16 + $0x2e0] sm:$0xff]  ;;  %v2191_v22 = vld [vmem:[%s17046_s16 + $0x288] sm:$0xff] }
 0x8b0   : > { %v2203_v23 = vld [vmem:[%s17046_s16 + $0x2e8] sm:$0xff] }
 0x8b1   : > { %12576 = vmatpush1.bf16.msra.mxu0 %v15021_v45  ;;  %v15165_v45 = vcombine.low %v3604_v7, %v3616_v31  ;;  %v2214_v7 = vld [vmem:[%s17046_s16 + $0x340] sm:$0xff] }
 0x8b2   : > { %12740 = vmatpush1.bf16.msra.mxu1 %v15023_v46  ;;  %12577 = vmatprep.subr.bf16.mxu0 %v15046_v47  ;;  %v15167_v46 = vcombine.low %v3605_v32, %v3617_v1  ;;  %v15190_v47 = vcombine.high %v3628_v40, %v3640_v41  ;;  %v2226_v31 = vld [vmem:[%s17046_s16 + $0x3a0] sm:$0xff]  ;;  %v2215_v32 = vld [vmem:[%s17046_s16 + $0x348] sm:$0xff] }
 0x8b3   : > { %12741 = vmatprep.subr.bf16.mxu1 %v15048_v48  ;;  %v15192_v48 = vcombine.high %v3629_v42, %v3641_v44  ;;  %v2227_v1 = vld [vmem:[%s17046_s16 + $0x3a8] sm:$0xff] }
 0x8b5   : > { %12578 = vmatpush1.bf16.msra.mxu0 %v15045_v34  ;;  %v15189_v34 = vcombine.low %v3628_v40, %v3640_v41  ;;  %v2238_v40 = vld [vmem:[%s17046_s16 + $0x400] sm:$0xff] }
 0x8b6   : > { %12742 = vmatpush1.bf16.msra.mxu1 %v15047_v9  ;;  %12579 = vmatprep.subr.bf16.mxu0 %v15070_v54  ;;  %v15191_v9 = vcombine.low %v3629_v42, %v3641_v44  ;;  %v13682_v54 = vcombine.high %v2118_v49, %v2130_v51  ;;  %v2250_v41 = vld [vmem:[%s17046_s16 + $0x460] sm:$0xff]  ;;  %v2239_v42 = vld [vmem:[%s17046_s16 + $0x408] sm:$0xff] }
 0x8b7   : > { %12743 = vmatprep.subr.bf16.mxu1 %v15072_v56  ;;  %v13684_v56 = vcombine.high %v2119_v52, %v2131_v55  ;;  %v2251_v44 = vld [vmem:[%s17046_s16 + $0x468] sm:$0xff]  ;;  %v2262_v49 = vld [vmem:[%s17046_s16 + $0x4c0] sm:$0xff] }
 0x8b8   : > { %v2274_v51 = vld [vmem:[%s17046_s16 + $0x520] sm:$0xff] }
 0x8b9   : > { %12580 = vmatpush1.bf16.msra.mxu0 %v15069_v59  ;;  %v2155_v59 = vld [vmem:[%s17046_s16 + $0x168] sm:$0xff] }
 0x8ba   : > { %12744 = vmatpush1.bf16.msra.mxu1 %v15071_v60  ;;  %12581 = vmatprep.subr.bf16.mxu0 %v15094_v61  ;;  %v13683_v60 = vcombine.low %v2119_v52, %v2131_v55  ;;  %v13706_v61 = vcombine.high %v2142_v57, %v2154_v58  ;;  %v13708_v2 = vcombine.high %v2143_v43, %v2155_v59  ;;  %v2263_v52 = vld [vmem:[%s17046_s16 + $0x4c8] sm:$0xff] }
 0x8bb   : > { %12745 = vmatprep.subr.bf16.mxu1 %v15096_v16  ;;  %v2166_v16 = vld [vmem:[%s17046_s16 + $0x1c0] sm:$0xff]  ;;  %v2275_v55 = vld [vmem:[%s17046_s16 + $0x528] sm:$0xff] }
 0x8bd   : > { %12582 = vmatpush1.bf16.msra.mxu0 %v15093_v6  ;;  %v13705_v6 = vcombine.low %v2142_v57, %v2154_v58  ;;  %v2286_v57 = vld [vmem:[%s17046_s16 + $0x580] sm:$0xff] }
 0x8be   : > { %12746 = vmatpush1.bf16.msra.mxu1 %v15095_v13  ;;  %12583 = vmatprep.subr.bf16.mxu0 %v15118_v14  ;;  %v13707_v13 = vcombine.low %v2143_v43, %v2155_v59  ;;  %v13730_v14 = vcombine.high %v2166_v16, %v2178_v63  ;;  %v2298_v58 = vld [vmem:[%s17046_s16 + $0x5e0] sm:$0xff]  ;;  %v2299_v43 = vld [vmem:[%s17046_s16 + $0x5e8] sm:$0xff]  ;;  %v13825_v59 = vcombine.low %v2262_v49, %v2274_v51 }
 0x8bf   : > { %12747 = vmatprep.subr.bf16.mxu1 %v15120_v19  ;;  %v13732_v19 = vcombine.high %v2167_v3, %v2179_v5 }
 0x8c1   : > { %12584 = vmatpush1.bf16.msra.mxu0 %v15117_v26  ;;  %v13729_v26 = vcombine.low %v2166_v16, %v2178_v63  ;;  %v2310_v63 = vld [vmem:[%s17046_s16 + $0x640] sm:$0xff] }
 0x8c2   : > { %12748 = vmatpush1.bf16.msra.mxu1 %v15119_v27  ;;  %12585 = vmatprep.subr.bf16.mxu0 %v15142_v53  ;;  %v13731_v27 = vcombine.low %v2167_v3, %v2179_v5  ;;  %v13754_v53 = vcombine.high %v2190_v20, %v2202_v21  ;;  %v2311_v3 = vld [vmem:[%s17046_s16 + $0x648] sm:$0xff] }
 0x8c3   : > { %12749 = vmatprep.subr.bf16.mxu1 %v15144_v28  ;;  %v13756_v28 = vcombine.high %v2191_v22, %v2203_v23  ;;  %v2323_v5 = vld [vmem:[%s17046_s16 + $0x6a8] sm:$0xff] }
 0x8c5   : > { %12586 = vmatpush1.bf16.msra.mxu0 %v15141_v33  ;;  %v13753_v33 = vcombine.low %v2190_v20, %v2202_v21  ;;  %v2334_v20 = vld [vmem:[%s17046_s16 + $0x700] sm:$0xff] }
 0x8c6   : > { %12750 = vmatpush1.bf16.msra.mxu1 %v15143_v37  ;;  %12587 = vmatprep.subr.bf16.mxu0 %v15166_v38  ;;  %v13755_v37 = vcombine.low %v2191_v22, %v2203_v23  ;;  %v13778_v38 = vcombine.high %v2214_v7, %v2226_v31  ;;  %v2346_v21 = vld [vmem:[%s17046_s16 + $0x760] sm:$0xff]  ;;  %v2335_v22 = vld [vmem:[%s17046_s16 + $0x708] sm:$0xff] }
 0x8c7   : > { %12751 = vmatprep.subr.bf16.mxu1 %v15168_v39  ;;  %v13780_v39 = vcombine.high %v2215_v32, %v2227_v1  ;;  %v2347_v23 = vld [vmem:[%s17046_s16 + $0x768] sm:$0xff] }
 0x8c9   : > { %12588 = vmatpush1.bf16.msra.mxu0 %v15165_v45  ;;  %v13777_v45 = vcombine.low %v2214_v7, %v2226_v31  ;;  %v2358_v7 = vld [vmem:[%s17046_s16 + $0x7c0] sm:$0xff] }
 0x8ca   : > { %12752 = vmatpush1.bf16.msra.mxu1 %v15167_v46  ;;  %12589 = vmatprep.subr.bf16.mxu0 %v15190_v47  ;;  %v13779_v46 = vcombine.low %v2215_v32, %v2227_v1  ;;  %v13802_v47 = vcombine.high %v2238_v40, %v2250_v41  ;;  %v2370_v31 = vld [vmem:[%s17046_s16 + $0x820] sm:$0xff]  ;;  %v2359_v32 = vld [vmem:[%s17046_s16 + $0x7c8] sm:$0xff] }
 0x8cb   : > { %12753 = vmatprep.subr.bf16.mxu1 %v15192_v48  ;;  %v13804_v48 = vcombine.high %v2239_v42, %v2251_v44  ;;  %v2371_v1 = vld [vmem:[%s17046_s16 + $0x828] sm:$0xff] }
 0x8cd   : > { %12590 = vmatpush1.bf16.msra.mxu0 %v15189_v34  ;;  %v13801_v34 = vcombine.low %v2238_v40, %v2250_v41  ;;  %v2382_v40 = vld [vmem:[%s17046_s16 + $0x880] sm:$0xff] }
 0x8ce   : > { %12754 = vmatpush1.bf16.msra.mxu1 %v15191_v9  ;;  %12764 = vmatprep.subr.bf16.mxu0 %v13682_v54  ;;  %v13803_v9 = vcombine.low %v2239_v42, %v2251_v44  ;;  %v13826_v54 = vcombine.high %v2262_v49, %v2274_v51  ;;  %v2394_v41 = vld [vmem:[%s17046_s16 + $0x8e0] sm:$0xff]  ;;  %v2383_v42 = vld [vmem:[%s17046_s16 + $0x888] sm:$0xff] }
 0x8cf   : > { %12928 = vmatprep.subr.bf16.mxu1 %v13684_v56  ;;  %v13828_v56 = vcombine.high %v2263_v52, %v2275_v55  ;;  %v2395_v44 = vld [vmem:[%s17046_s16 + $0x8e8] sm:$0xff]  ;;  %v2406_v49 = vld [vmem:[%s17046_s16 + $0x940] sm:$0xff] }
 0x8d0   : > { %12592 = vmatmul.mubr.bf16.vlgmr.msra.gmra.mrb[20].mxu0 %v17434_v50  ;;  %v2418_v51 = vld [vmem:[%s17046_s16 + $0x9a0] sm:$0xff] }
 0x8d1   : > { %12756 = vmatmul.mubr.bf16.vlgmr.msra.gmra.mrb[20].mxu1 %v17434_v50  ;;  %12765 = vmatpush1.bf16.msra.mxu0 %v13681_v62  ;;  %v2287_v62 = vld [vmem:[%s17046_s16 + $0x588] sm:$0xff] }
 0x8d2   : > { %12796 = vmatprep.mubr.bf16.mxu0 %v17189_v0  ;;  %12929 = vmatpush1.bf16.msra.mxu1 %v13683_v60  ;;  %v13827_v60 = vcombine.low %v2263_v52, %v2275_v55  ;;  %v13852_v16 = vcombine.high %v2287_v62, %v2299_v43  ;;  %v2407_v52 = vld [vmem:[%s17046_s16 + $0x948] sm:$0xff] }
 0x8d3   : > { %12960 = vmatprep.mubr.bf16.mxu1 %v17189_v0  ;;  %12766 = vmatprep.subr.bf16.mxu0 %v13706_v61  ;;  %v13850_v61 = vcombine.high %v2286_v57, %v2298_v58  ;;  %v2419_v55 = vld [vmem:[%s17046_s16 + $0x9a8] sm:$0xff] }
 0x8d4   : > { %12930 = vmatprep.subr.bf16.mxu1 %v13708_v2  ;;  %v2322_v2 = vld [vmem:[%s17046_s16 + $0x6a0] sm:$0xff] }
 0x8d5   : > { %12767 = vmatpush1.bf16.msra.mxu0 %v13705_v6  ;;  %v13849_v6 = vcombine.low %v2286_v57, %v2298_v58  ;;  %v2430_v57 = vld [vmem:[%s17046_s16 + $0xa00] sm:$0xff] }
 0x8d6   : > { %12931 = vmatpush1.bf16.msra.mxu1 %v13707_v13  ;;  %12768 = vmatprep.subr.bf16.mxu0 %v13730_v14  ;;  %v13851_v13 = vcombine.low %v2287_v62, %v2299_v43  ;;  %v13874_v14 = vcombine.high %v2310_v63, %v2322_v2  ;;  %v2442_v58 = vld [vmem:[%s17046_s16 + $0xa60] sm:$0xff]  ;;  %v2431_v62 = vld [vmem:[%s17046_s16 + $0xa08] sm:$0xff] }
 0x8d7   : > { %12932 = vmatprep.subr.bf16.mxu1 %v13732_v19  ;;  %v13876_v19 = vcombine.high %v2311_v3, %v2323_v5  ;;  %v2443_v43 = vld [vmem:[%s17046_s16 + $0xa68] sm:$0xff] }
 0x8d9   : > { %12769 = vmatpush1.bf16.msra.mxu0 %v13729_v26  ;;  %v13873_v26 = vcombine.low %v2310_v63, %v2322_v2  ;;  %v2454_v63 = vld [vmem:[%s17046_s16 + $0xac0] sm:$0xff] }
 0x8da   : > { %12933 = vmatpush1.bf16.msra.mxu1 %v13731_v27  ;;  %12770 = vmatprep.subr.bf16.mxu0 %v13754_v53  ;;  %v13875_v27 = vcombine.low %v2311_v3, %v2323_v5  ;;  %v13898_v53 = vcombine.high %v2334_v20, %v2346_v21  ;;  %v2466_v2 = vld [vmem:[%s17046_s16 + $0xb20] sm:$0xff]  ;;  %v2455_v3 = vld [vmem:[%s17046_s16 + $0xac8] sm:$0xff] }
 0x8db   : > { %12934 = vmatprep.subr.bf16.mxu1 %v13756_v28  ;;  %v13900_v28 = vcombine.high %v2335_v22, %v2347_v23  ;;  %v2467_v5 = vld [vmem:[%s17046_s16 + $0xb28] sm:$0xff] }
 0x8dd   : > { %12771 = vmatpush1.bf16.msra.mxu0 %v13753_v33  ;;  %v13897_v33 = vcombine.low %v2334_v20, %v2346_v21  ;;  %v2478_v20 = vld [vmem:[%s17046_s16 + $0xb80] sm:$0xff] }
 0x8de   : > { %12935 = vmatpush1.bf16.msra.mxu1 %v13755_v37  ;;  %12772 = vmatprep.subr.bf16.mxu0 %v13778_v38  ;;  %v13899_v37 = vcombine.low %v2335_v22, %v2347_v23  ;;  %v13922_v38 = vcombine.high %v2358_v7, %v2370_v31  ;;  %v2490_v21 = vld [vmem:[%s17046_s16 + $0xbe0] sm:$0xff]  ;;  %v2479_v22 = vld [vmem:[%s17046_s16 + $0xb88] sm:$0xff] }
 0x8df   : > { %12936 = vmatprep.subr.bf16.mxu1 %v13780_v39  ;;  %v13924_v39 = vcombine.high %v2359_v32, %v2371_v1  ;;  %v2491_v23 = vld [vmem:[%s17046_s16 + $0xbe8] sm:$0xff] }
 0x8e1   : > { %12773 = vmatpush1.bf16.msra.mxu0 %v13777_v45  ;;  %v13921_v45 = vcombine.low %v2358_v7, %v2370_v31  ;;  %v2502_v7 = vld [vmem:[%s17046_s16 + $0xc40] sm:$0xff] }
 0x8e2   : > { %12937 = vmatpush1.bf16.msra.mxu1 %v13779_v46  ;;  %12774 = vmatprep.subr.bf16.mxu0 %v13802_v47  ;;  %v13923_v46 = vcombine.low %v2359_v32, %v2371_v1  ;;  %v13946_v47 = vcombine.high %v2382_v40, %v2394_v41  ;;  %v2514_v31 = vld [vmem:[%s17046_s16 + $0xca0] sm:$0xff]  ;;  %v2503_v32 = vld [vmem:[%s17046_s16 + $0xc48] sm:$0xff] }
 0x8e3   : > { %12938 = vmatprep.subr.bf16.mxu1 %v13804_v48  ;;  %v13948_v48 = vcombine.high %v2383_v42, %v2395_v44  ;;  %v2515_v1 = vld [vmem:[%s17046_s16 + $0xca8] sm:$0xff] }
 0x8e5   : > { %12775 = vmatpush1.bf16.msra.mxu0 %v13801_v34  ;;  %v13945_v34 = vcombine.low %v2382_v40, %v2394_v41  ;;  %v2526_v40 = vld [vmem:[%s17046_s16 + $0xd00] sm:$0xff] }
 0x8e6   : > { %12939 = vmatpush1.bf16.msra.mxu1 %v13803_v9  ;;  %12776 = vmatprep.subr.bf16.mxu0 %v13826_v54  ;;  %v13947_v9 = vcombine.low %v2383_v42, %v2395_v44  ;;  %v13970_v54 = vcombine.high %v2406_v49, %v2418_v51  ;;  %v2538_v41 = vld [vmem:[%s17046_s16 + $0xd60] sm:$0xff]  ;;  %v14065_v42 = vcombine.low %v2502_v7, %v2514_v31  ;;  %v2527_v44 = vld [vmem:[%s17046_s16 + $0xd08] sm:$0xff] }
 0x8e7   : > { %12940 = vmatprep.subr.bf16.mxu1 %v13828_v56  ;;  %v13972_v56 = vcombine.high %v2407_v52, %v2419_v55 }
 0x8e9   : > { %12777 = vmatpush1.bf16.msra.mxu0 %v13825_v59  ;;  %v13969_v59 = vcombine.low %v2406_v49, %v2418_v51  ;;  %v2562_v49 = vld [vmem:[%s17046_s16 + $0xe20] sm:$0xff] }
 0x8ea   : > { %12941 = vmatpush1.bf16.msra.mxu1 %v13827_v60  ;;  %12778 = vmatprep.subr.bf16.mxu0 %v13850_v61  ;;  %v13971_v60 = vcombine.low %v2407_v52, %v2419_v55  ;;  %v13994_v61 = vcombine.high %v2430_v57, %v2442_v58  ;;  %v2551_v52 = vld [vmem:[%s17046_s16 + $0xdc8] sm:$0xff] }
 0x8eb   : > { %12942 = vmatprep.subr.bf16.mxu1 %v13852_v16  ;;  %v13996_v16 = vcombine.high %v2431_v62, %v2443_v43  ;;  %v2563_v55 = vld [vmem:[%s17046_s16 + $0xe28] sm:$0xff] }
 0x8ed   : > { %12779 = vmatpush1.bf16.msra.mxu0 %v13849_v6  ;;  %v13993_v6 = vcombine.low %v2430_v57, %v2442_v58  ;;  %v2574_v57 = vld [vmem:[%s17046_s16 + $0xe80] sm:$0xff] }
 0x8ee   : > { %12943 = vmatpush1.bf16.msra.mxu1 %v13851_v13  ;;  %12780 = vmatprep.subr.bf16.mxu0 %v13874_v14  ;;  %v13995_v13 = vcombine.low %v2431_v62, %v2443_v43  ;;  %v14018_v14 = vcombine.high %v2454_v63, %v2466_v2  ;;  %v2586_v58 = vld [vmem:[%s17046_s16 + $0xee0] sm:$0xff]  ;;  %v2575_v62 = vld [vmem:[%s17046_s16 + $0xe88] sm:$0xff] }
 0x8ef   : > { %12944 = vmatprep.subr.bf16.mxu1 %v13876_v19  ;;  %v14020_v19 = vcombine.high %v2455_v3, %v2467_v5  ;;  %v2587_v43 = vld [vmem:[%s17046_s16 + $0xee8] sm:$0xff] }
 0x8f1   : > { %12781 = vmatpush1.bf16.msra.mxu0 %v13873_v26  ;;  %v14017_v26 = vcombine.low %v2454_v63, %v2466_v2  ;;  %v2598_v63 = vld [vmem:[%s17046_s16 + $0xf40] sm:$0xff] }
 0x8f2   : > { %12945 = vmatpush1.bf16.msra.mxu1 %v13875_v27  ;;  %12782 = vmatprep.subr.bf16.mxu0 %v13898_v53  ;;  %v14019_v27 = vcombine.low %v2455_v3, %v2467_v5  ;;  %v14042_v53 = vcombine.high %v2478_v20, %v2490_v21  ;;  %v2610_v2 = vld [vmem:[%s17046_s16 + $0xfa0] sm:$0xff]  ;;  %v2599_v3 = vld [vmem:[%s17046_s16 + $0xf48] sm:$0xff] }
 0x8f3   : > { %12946 = vmatprep.subr.bf16.mxu1 %v13900_v28  ;;  %v14044_v28 = vcombine.high %v2479_v22, %v2491_v23  ;;  %v2611_v5 = vld [vmem:[%s17046_s16 + $0xfa8] sm:$0xff] }
 0x8f5   : > { %12783 = vmatpush1.bf16.msra.mxu0 %v13897_v33  ;;  %v14041_v33 = vcombine.low %v2478_v20, %v2490_v21  ;;  %v2622_v20 = vld [vmem:[%s17046_s16 + $0x1000] sm:$0xff] }
 0x8f6   : > { %12947 = vmatpush1.bf16.msra.mxu1 %v13899_v37  ;;  %12784 = vmatprep.subr.bf16.mxu0 %v13922_v38  ;;  %v14043_v37 = vcombine.low %v2479_v22, %v2491_v23  ;;  %v14066_v38 = vcombine.high %v2502_v7, %v2514_v31  ;;  %v2634_v21 = vld [vmem:[%s17046_s16 + $0x1060] sm:$0xff]  ;;  %v2623_v22 = vld [vmem:[%s17046_s16 + $0x1008] sm:$0xff] }
 0x8f7   : > { %12948 = vmatprep.subr.bf16.mxu1 %v13924_v39  ;;  %v14068_v39 = vcombine.high %v2503_v32, %v2515_v1  ;;  %v2635_v23 = vld [vmem:[%s17046_s16 + $0x1068] sm:$0xff]  ;;  %v2646_v7 = vld [vmem:[%s17046_s16 + $0x10c0] sm:$0xff] }
 0x8f8   : > { %v2658_v31 = vld [vmem:[%s17046_s16 + $0x1120] sm:$0xff] }
 0x8f9   : > { %12785 = vmatpush1.bf16.msra.mxu0 %v13921_v45  ;;  %v2539_v45 = vld [vmem:[%s17046_s16 + $0xd68] sm:$0xff] }
 0x8fa   : > { %12949 = vmatpush1.bf16.msra.mxu1 %v13923_v46  ;;  %12786 = vmatprep.subr.bf16.mxu0 %v13946_v47  ;;  %v14067_v46 = vcombine.low %v2503_v32, %v2515_v1  ;;  %v14090_v47 = vcombine.high %v2526_v40, %v2538_v41  ;;  %v14092_v51 = vcombine.high %v2527_v44, %v2539_v45  ;;  %v2647_v32 = vld [vmem:[%s17046_s16 + $0x10c8] sm:$0xff] }
 0x8fb   : > { %12950 = vmatprep.subr.bf16.mxu1 %v13948_v48  ;;  %v2550_v48 = vld [vmem:[%s17046_s16 + $0xdc0] sm:$0xff]  ;;  %v2659_v1 = vld [vmem:[%s17046_s16 + $0x1128] sm:$0xff] }
 0x8fd   : > { %12787 = vmatpush1.bf16.msra.mxu0 %v13945_v34  ;;  %v14089_v34 = vcombine.low %v2526_v40, %v2538_v41  ;;  %v2670_v40 = vld [vmem:[%s17046_s16 + $0x1180] sm:$0xff] }
 0x8fe   : > { %12951 = vmatpush1.bf16.msra.mxu1 %v13947_v9  ;;  %12788 = vmatprep.subr.bf16.mxu0 %v13970_v54  ;;  %v14091_v9 = vcombine.low %v2527_v44, %v2539_v45  ;;  %v14114_v54 = vcombine.high %v2550_v48, %v2562_v49  ;;  %v2682_v41 = vld [vmem:[%s17046_s16 + $0x11e0] sm:$0xff]  ;;  %v2683_v44 = vld [vmem:[%s17046_s16 + $0x11e8] sm:$0xff]  ;;  %v14209_v45 = vcombine.low %v2646_v7, %v2658_v31 }
 0x8ff   : > { %12952 = vmatprep.subr.bf16.mxu1 %v13972_v56  ;;  %v14116_v56 = vcombine.high %v2551_v52, %v2563_v55 }
 0x901   : > { %12789 = vmatpush1.bf16.msra.mxu0 %v13969_v59  ;;  %v14113_v59 = vcombine.low %v2550_v48, %v2562_v49  ;;  %v2694_v49 = vld [vmem:[%s17046_s16 + $0x1240] sm:$0xff] }
 0x902   : > { %12953 = vmatpush1.bf16.msra.mxu1 %v13971_v60  ;;  %12790 = vmatprep.subr.bf16.mxu0 %v13994_v61  ;;  %v14115_v60 = vcombine.low %v2551_v52, %v2563_v55  ;;  %v14138_v61 = vcombine.high %v2574_v57, %v2586_v58  ;;  %v2695_v52 = vld [vmem:[%s17046_s16 + $0x1248] sm:$0xff] }
 0x903   : > { %12954 = vmatprep.subr.bf16.mxu1 %v13996_v16  ;;  %v14140_v16 = vcombine.high %v2575_v62, %v2587_v43  ;;  %v2707_v55 = vld [vmem:[%s17046_s16 + $0x12a8] sm:$0xff] }
 0x905   : > { %12791 = vmatpush1.bf16.msra.mxu0 %v13993_v6  ;;  %v14137_v6 = vcombine.low %v2574_v57, %v2586_v58  ;;  %v2718_v57 = vld [vmem:[%s17046_s16 + $0x1300] sm:$0xff] }
 0x906   : > { %12955 = vmatpush1.bf16.msra.mxu1 %v13995_v13  ;;  %12792 = vmatprep.subr.bf16.mxu0 %v14018_v14  ;;  %v14139_v13 = vcombine.low %v2575_v62, %v2587_v43  ;;  %v14162_v14 = vcombine.high %v2598_v63, %v2610_v2  ;;  %v2730_v58 = vld [vmem:[%s17046_s16 + $0x1360] sm:$0xff]  ;;  %v2719_v62 = vld [vmem:[%s17046_s16 + $0x1308] sm:$0xff] }
 0x907   : > { %12956 = vmatprep.subr.bf16.mxu1 %v14020_v19  ;;  %v14164_v19 = vcombine.high %v2599_v3, %v2611_v5  ;;  %v2731_v43 = vld [vmem:[%s17046_s16 + $0x1368] sm:$0xff] }
 0x909   : > { %12793 = vmatpush1.bf16.msra.mxu0 %v14017_v26  ;;  %v14161_v26 = vcombine.low %v2598_v63, %v2610_v2  ;;  %v2742_v63 = vld [vmem:[%s17046_s16 + $0x13c0] sm:$0xff] }
 0x90a   : > { %12957 = vmatpush1.bf16.msra.mxu1 %v14019_v27  ;;  %12794 = vmatprep.subr.bf16.mxu0 %v14042_v53  ;;  %v14163_v27 = vcombine.low %v2599_v3, %v2611_v5  ;;  %v14186_v53 = vcombine.high %v2622_v20, %v2634_v21  ;;  %v2754_v2 = vld [vmem:[%s17046_s16 + $0x1420] sm:$0xff]  ;;  %v2743_v3 = vld [vmem:[%s17046_s16 + $0x13c8] sm:$0xff] }
 0x90b   : > { %12958 = vmatprep.subr.bf16.mxu1 %v14044_v28  ;;  %v14188_v28 = vcombine.high %v2623_v22, %v2635_v23  ;;  %v2755_v5 = vld [vmem:[%s17046_s16 + $0x1428] sm:$0xff] }
 0x90d   : > { %12795 = vmatpush1.bf16.msra.mxu0 %v14041_v33  ;;  %v14185_v33 = vcombine.low %v2622_v20, %v2634_v21  ;;  %v2766_v20 = vld [vmem:[%s17046_s16 + $0x1480] sm:$0xff] }
 0x90e   : > { %12959 = vmatpush1.bf16.msra.mxu1 %v14043_v37  ;;  %12805 = vmatprep.subr.bf16.mxu0 %v14066_v38  ;;  %v14187_v37 = vcombine.low %v2623_v22, %v2635_v23  ;;  %v14210_v38 = vcombine.high %v2646_v7, %v2658_v31  ;;  %v2778_v21 = vld [vmem:[%s17046_s16 + $0x14e0] sm:$0xff]  ;;  %v2767_v22 = vld [vmem:[%s17046_s16 + $0x1488] sm:$0xff] }
 0x90f   : > { %12969 = vmatprep.subr.bf16.mxu1 %v14068_v39  ;;  %v14212_v39 = vcombine.high %v2647_v32, %v2659_v1  ;;  %v2779_v23 = vld [vmem:[%s17046_s16 + $0x14e8] sm:$0xff]  ;;  %v2790_v7 = vld [vmem:[%s17046_s16 + $0x1540] sm:$0xff] }
 0x910   : > { %12797 = vmatmul.mubr.bf16.vlgmr.msra.gmra.mrb[24].mxu0 %v17191_v4  ;;  %v2802_v31 = vld [vmem:[%s17046_s16 + $0x15a0] sm:$0xff] }
 0x911   : > { %12961 = vmatmul.mubr.bf16.vlgmr.msra.gmra.mrb[24].mxu1 %v17191_v4  ;;  %12806 = vmatpush1.bf16.msra.mxu0 %v14065_v42  ;;  %v2671_v42 = vld [vmem:[%s17046_s16 + $0x1188] sm:$0xff] }
 0x912   : > { %12837 = vmatprep.mubr.bf16.mxu0 %v17199_v17  ;;  %12970 = vmatpush1.bf16.msra.mxu1 %v14067_v46  ;;  %v14211_v46 = vcombine.low %v2647_v32, %v2659_v1  ;;  %v14236_v48 = vcombine.high %v2671_v42, %v2683_v44  ;;  %v2791_v32 = vld [vmem:[%s17046_s16 + $0x1548] sm:$0xff] }
 0x913   : > { %13001 = vmatprep.mubr.bf16.mxu1 %v17199_v17  ;;  %12807 = vmatprep.subr.bf16.mxu0 %v14090_v47  ;;  %v14234_v47 = vcombine.high %v2670_v40, %v2682_v41  ;;  %v2803_v1 = vld [vmem:[%s17046_s16 + $0x15a8] sm:$0xff] }
 0x914   : > { %12971 = vmatprep.subr.bf16.mxu1 %v14092_v51  ;;  %v2706_v51 = vld [vmem:[%s17046_s16 + $0x12a0] sm:$0xff] }
 0x915   : > { %12808 = vmatpush1.bf16.msra.mxu0 %v14089_v34  ;;  %v14233_v34 = vcombine.low %v2670_v40, %v2682_v41  ;;  %v2814_v40 = vld [vmem:[%s17046_s16 + $0x1600] sm:$0xff] }
 0x916   : > { %12972 = vmatpush1.bf16.msra.mxu1 %v14091_v9  ;;  %12809 = vmatprep.subr.bf16.mxu0 %v14114_v54  ;;  %v14235_v9 = vcombine.low %v2671_v42, %v2683_v44  ;;  %v14258_v54 = vcombine.high %v2694_v49, %v2706_v51  ;;  %v2826_v41 = vld [vmem:[%s17046_s16 + $0x1660] sm:$0xff]  ;;  %v2815_v42 = vld [vmem:[%s17046_s16 + $0x1608] sm:$0xff] }
 0x917   : > { %12973 = vmatprep.subr.bf16.mxu1 %v14116_v56  ;;  %v14260_v56 = vcombine.high %v2695_v52, %v2707_v55  ;;  %v2827_v44 = vld [vmem:[%s17046_s16 + $0x1668] sm:$0xff] }
 0x919   : > { %12810 = vmatpush1.bf16.msra.mxu0 %v14113_v59  ;;  %v14257_v59 = vcombine.low %v2694_v49, %v2706_v51  ;;  %v2838_v49 = vld [vmem:[%s17046_s16 + $0x16c0] sm:$0xff] }
 0x91a   : > { %12974 = vmatpush1.bf16.msra.mxu1 %v14115_v60  ;;  %12811 = vmatprep.subr.bf16.mxu0 %v14138_v61  ;;  %v14259_v60 = vcombine.low %v2695_v52, %v2707_v55  ;;  %v14282_v61 = vcombine.high %v2718_v57, %v2730_v58  ;;  %v2850_v51 = vld [vmem:[%s17046_s16 + $0x1720] sm:$0xff]  ;;  %v2839_v52 = vld [vmem:[%s17046_s16 + $0x16c8] sm:$0xff] }
 0x91b   : > { %12975 = vmatprep.subr.bf16.mxu1 %v14140_v16  ;;  %v14284_v16 = vcombine.high %v2719_v62, %v2731_v43  ;;  %v2851_v55 = vld [vmem:[%s17046_s16 + $0x1728] sm:$0xff] }
 0x91d   : > { %12812 = vmatpush1.bf16.msra.mxu0 %v14137_v6  ;;  %v14281_v6 = vcombine.low %v2718_v57, %v2730_v58  ;;  %v2862_v57 = vld [vmem:[%s17046_s16 + $0x1780] sm:$0xff] }
 0x91e   : > { %12976 = vmatpush1.bf16.msra.mxu1 %v14139_v13  ;;  %12813 = vmatprep.subr.bf16.mxu0 %v14162_v14  ;;  %v14283_v13 = vcombine.low %v2719_v62, %v2731_v43  ;;  %v14306_v14 = vcombine.high %v2742_v63, %v2754_v2  ;;  %v2874_v58 = vld [vmem:[%s17046_s16 + $0x17e0] sm:$0xff]  ;;  %v2863_v62 = vld [vmem:[%s17046_s16 + $0x1788] sm:$0xff] }
 0x91f   : > { %12977 = vmatprep.subr.bf16.mxu1 %v14164_v19  ;;  %v14308_v19 = vcombine.high %v2743_v3, %v2755_v5  ;;  %v2875_v43 = vld [vmem:[%s17046_s16 + $0x17e8] sm:$0xff] }
 0x921   : > { %12814 = vmatpush1.bf16.msra.mxu0 %v14161_v26  ;;  %v14305_v26 = vcombine.low %v2742_v63, %v2754_v2  ;;  %v2886_v63 = vld [vmem:[%s17046_s16 + $0x1840] sm:$0xff] }
 0x922   : > { %12978 = vmatpush1.bf16.msra.mxu1 %v14163_v27  ;;  %12815 = vmatprep.subr.bf16.mxu0 %v14186_v53  ;;  %v14307_v27 = vcombine.low %v2743_v3, %v2755_v5  ;;  %v14330_v53 = vcombine.high %v2766_v20, %v2778_v21  ;;  %v2898_v2 = vld [vmem:[%s17046_s16 + $0x18a0] sm:$0xff]  ;;  %v2887_v3 = vld [vmem:[%s17046_s16 + $0x1848] sm:$0xff] }
 0x923   : > { %12979 = vmatprep.subr.bf16.mxu1 %v14188_v28  ;;  %v14332_v28 = vcombine.high %v2767_v22, %v2779_v23  ;;  %v2899_v5 = vld [vmem:[%s17046_s16 + $0x18a8] sm:$0xff] }
 0x925   : > { %12816 = vmatpush1.bf16.msra.mxu0 %v14185_v33  ;;  %v14329_v33 = vcombine.low %v2766_v20, %v2778_v21  ;;  %v2910_v20 = vld [vmem:[%s17046_s16 + $0x1900] sm:$0xff] }
 0x926   : > { %12980 = vmatpush1.bf16.msra.mxu1 %v14187_v37  ;;  %12817 = vmatprep.subr.bf16.mxu0 %v14210_v38  ;;  %v14331_v37 = vcombine.low %v2767_v22, %v2779_v23  ;;  %v14354_v38 = vcombine.high %v2790_v7, %v2802_v31  ;;  %v2922_v21 = vld [vmem:[%s17046_s16 + $0x1960] sm:$0xff]  ;;  %v14449_v22 = vcombine.low %v2886_v63, %v2898_v2  ;;  %v2911_v23 = vld [vmem:[%s17046_s16 + $0x1908] sm:$0xff] }
 0x927   : > { %12981 = vmatprep.subr.bf16.mxu1 %v14212_v39  ;;  %v14356_v39 = vcombine.high %v2791_v32, %v2803_v1 }
 0x929   : > { %12818 = vmatpush1.bf16.msra.mxu0 %v14209_v45  ;;  %v14353_v45 = vcombine.low %v2790_v7, %v2802_v31  ;;  %v2946_v7 = vld [vmem:[%s17046_s16 + $0x1a20] sm:$0xff] }
 0x92a   : > { %12982 = vmatpush1.bf16.msra.mxu1 %v14211_v46  ;;  %12819 = vmatprep.subr.bf16.mxu0 %v14234_v47  ;;  %v14355_v46 = vcombine.low %v2791_v32, %v2803_v1  ;;  %v14378_v47 = vcombine.high %v2814_v40, %v2826_v41  ;;  %v2935_v32 = vld [vmem:[%s17046_s16 + $0x19c8] sm:$0xff] }
 0x92b   : > { %12983 = vmatprep.subr.bf16.mxu1 %v14236_v48  ;;  %v14380_v48 = vcombine.high %v2815_v42, %v2827_v44  ;;  %v2947_v1 = vld [vmem:[%s17046_s16 + $0x1a28] sm:$0xff] }
 0x92d   : > { %12820 = vmatpush1.bf16.msra.mxu0 %v14233_v34  ;;  %v14377_v34 = vcombine.low %v2814_v40, %v2826_v41  ;;  %v2958_v40 = vld [vmem:[%s17046_s16 + $0x1a80] sm:$0xff] }
 0x92e   : > { %12984 = vmatpush1.bf16.msra.mxu1 %v14235_v9  ;;  %12821 = vmatprep.subr.bf16.mxu0 %v14258_v54  ;;  %v14379_v9 = vcombine.low %v2815_v42, %v2827_v44  ;;  %v14402_v54 = vcombine.high %v2838_v49, %v2850_v51  ;;  %v2970_v41 = vld [vmem:[%s17046_s16 + $0x1ae0] sm:$0xff]  ;;  %v2959_v42 = vld [vmem:[%s17046_s16 + $0x1a88] sm:$0xff] }
 0x92f   : > { %12985 = vmatprep.subr.bf16.mxu1 %v14260_v56  ;;  %v14404_v56 = vcombine.high %v2839_v52, %v2851_v55  ;;  %v2971_v44 = vld [vmem:[%s17046_s16 + $0x1ae8] sm:$0xff] }
 0x931   : > { %12822 = vmatpush1.bf16.msra.mxu0 %v14257_v59  ;;  %v14401_v59 = vcombine.low %v2838_v49, %v2850_v51  ;;  %v2982_v49 = vld [vmem:[%s17046_s16 + $0x1b40] sm:$0xff] }
 0x932   : > { %12986 = vmatpush1.bf16.msra.mxu1 %v14259_v60  ;;  %12823 = vmatprep.subr.bf16.mxu0 %v14282_v61  ;;  %v14403_v60 = vcombine.low %v2839_v52, %v2851_v55  ;;  %v14426_v61 = vcombine.high %v2862_v57, %v2874_v58  ;;  %v2994_v51 = vld [vmem:[%s17046_s16 + $0x1ba0] sm:$0xff]  ;;  %v2983_v52 = vld [vmem:[%s17046_s16 + $0x1b48] sm:$0xff] }
 0x933   : > { %12987 = vmatprep.subr.bf16.mxu1 %v14284_v16  ;;  %v14428_v16 = vcombine.high %v2863_v62, %v2875_v43  ;;  %v2995_v55 = vld [vmem:[%s17046_s16 + $0x1ba8] sm:$0xff] }
 0x935   : > { %12824 = vmatpush1.bf16.msra.mxu0 %v14281_v6  ;;  %v14425_v6 = vcombine.low %v2862_v57, %v2874_v58  ;;  %v3006_v57 = vld [vmem:[%s17046_s16 + $0x1c00] sm:$0xff] }
 0x936   : > { %12988 = vmatpush1.bf16.msra.mxu1 %v14283_v13  ;;  %12825 = vmatprep.subr.bf16.mxu0 %v14306_v14  ;;  %v14427_v13 = vcombine.low %v2863_v62, %v2875_v43  ;;  %v14450_v14 = vcombine.high %v2886_v63, %v2898_v2  ;;  %v3018_v58 = vld [vmem:[%s17046_s16 + $0x1c60] sm:$0xff]  ;;  %v3007_v62 = vld [vmem:[%s17046_s16 + $0x1c08] sm:$0xff] }
 0x937   : > { %12989 = vmatprep.subr.bf16.mxu1 %v14308_v19  ;;  %v14452_v19 = vcombine.high %v2887_v3, %v2899_v5  ;;  %v3019_v43 = vld [vmem:[%s17046_s16 + $0x1c68] sm:$0xff]  ;;  %v3030_v63 = vld [vmem:[%s17046_s16 + $0x1cc0] sm:$0xff] }
 0x938   : > { %v3042_v2 = vld [vmem:[%s17046_s16 + $0x1d20] sm:$0xff] }
 0x939   : > { %12826 = vmatpush1.bf16.msra.mxu0 %v14305_v26  ;;  %v2923_v26 = vld [vmem:[%s17046_s16 + $0x1968] sm:$0xff] }
 0x93a   : > { %12990 = vmatpush1.bf16.msra.mxu1 %v14307_v27  ;;  %12827 = vmatprep.subr.bf16.mxu0 %v14330_v53  ;;  %v14451_v27 = vcombine.low %v2887_v3, %v2899_v5  ;;  %v14474_v53 = vcombine.high %v2910_v20, %v2922_v21  ;;  %v14476_v31 = vcombine.high %v2911_v23, %v2923_v26  ;;  %v3031_v3 = vld [vmem:[%s17046_s16 + $0x1cc8] sm:$0xff] }
 0x93b   : > { %12991 = vmatprep.subr.bf16.mxu1 %v14332_v28  ;;  %v2934_v28 = vld [vmem:[%s17046_s16 + $0x19c0] sm:$0xff]  ;;  %v3043_v5 = vld [vmem:[%s17046_s16 + $0x1d28] sm:$0xff] }
 0x93d   : > { %12828 = vmatpush1.bf16.msra.mxu0 %v14329_v33  ;;  %v14473_v33 = vcombine.low %v2910_v20, %v2922_v21  ;;  %v3054_v20 = vld [vmem:[%s17046_s16 + $0x1d80] sm:$0xff] }
 0x93e   : > { %12992 = vmatpush1.bf16.msra.mxu1 %v14331_v37  ;;  %12829 = vmatprep.subr.bf16.mxu0 %v14354_v38  ;;  %v14475_v37 = vcombine.low %v2911_v23, %v2923_v26  ;;  %v14498_v38 = vcombine.high %v2934_v28, %v2946_v7  ;;  %v3066_v21 = vld [vmem:[%s17046_s16 + $0x1de0] sm:$0xff]  ;;  %v3067_v23 = vld [vmem:[%s17046_s16 + $0x1de8] sm:$0xff]  ;;  %v14593_v26 = vcombine.low %v3030_v63, %v3042_v2 }
 0x93f   : > { %12993 = vmatprep.subr.bf16.mxu1 %v14356_v39  ;;  %v14500_v39 = vcombine.high %v2935_v32, %v2947_v1 }
 0x941   : > { %12830 = vmatpush1.bf16.msra.mxu0 %v14353_v45  ;;  %v14497_v45 = vcombine.low %v2934_v28, %v2946_v7  ;;  %v3078_v7 = vld [vmem:[%s17046_s16 + $0x1e40] sm:$0xff] }
 0x942   : > { %12994 = vmatpush1.bf16.msra.mxu1 %v14355_v46  ;;  %12831 = vmatprep.subr.bf16.mxu0 %v14378_v47  ;;  %v14499_v46 = vcombine.low %v2935_v32, %v2947_v1  ;;  %v14522_v47 = vcombine.high %v2958_v40, %v2970_v41  ;;  %v3079_v32 = vld [vmem:[%s17046_s16 + $0x1e48] sm:$0xff] }
 0x943   : > { %12995 = vmatprep.subr.bf16.mxu1 %v14380_v48  ;;  %v14524_v48 = vcombine.high %v2959_v42, %v2971_v44  ;;  %v3091_v1 = vld [vmem:[%s17046_s16 + $0x1ea8] sm:$0xff] }
 0x945   : > { %12832 = vmatpush1.bf16.msra.mxu0 %v14377_v34  ;;  %v14521_v34 = vcombine.low %v2958_v40, %v2970_v41  ;;  %v3102_v40 = vld [vmem:[%s17046_s16 + $0x1f00] sm:$0xff] }
 0x946   : > { %12996 = vmatpush1.bf16.msra.mxu1 %v14379_v9  ;;  %12833 = vmatprep.subr.bf16.mxu0 %v14402_v54  ;;  %v14523_v9 = vcombine.low %v2959_v42, %v2971_v44  ;;  %v14546_v54 = vcombine.high %v2982_v49, %v2994_v51  ;;  %v3114_v41 = vld [vmem:[%s17046_s16 + $0x1f60] sm:$0xff]  ;;  %v3103_v42 = vld [vmem:[%s17046_s16 + $0x1f08] sm:$0xff] }
 0x947   : > { %12997 = vmatprep.subr.bf16.mxu1 %v14404_v56  ;;  %v14548_v56 = vcombine.high %v2983_v52, %v2995_v55  ;;  %v3115_v44 = vld [vmem:[%s17046_s16 + $0x1f68] sm:$0xff] }
 0x949   : > { %12834 = vmatpush1.bf16.msra.mxu0 %v14401_v59  ;;  %v14545_v59 = vcombine.low %v2982_v49, %v2994_v51  ;;  %v3126_v49 = vld [vmem:[%s17046_s16 + $0x1fc0] sm:$0xff] }
 0x94a   : > { %12998 = vmatpush1.bf16.msra.mxu1 %v14403_v60  ;;  %12835 = vmatprep.subr.bf16.mxu0 %v14426_v61  ;;  %v14547_v60 = vcombine.low %v2983_v52, %v2995_v55  ;;  %v14570_v61 = vcombine.high %v3006_v57, %v3018_v58  ;;  %v3138_v51 = vld [vmem:[%s17046_s16 + $0x2020] sm:$0xff]  ;;  %v3127_v52 = vld [vmem:[%s17046_s16 + $0x1fc8] sm:$0xff] }
 0x94b   : > { %12999 = vmatprep.subr.bf16.mxu1 %v14428_v16  ;;  %v14572_v16 = vcombine.high %v3007_v62, %v3019_v43  ;;  %v3139_v55 = vld [vmem:[%s17046_s16 + $0x2028] sm:$0xff] }
 0x94d   : > { %12836 = vmatpush1.bf16.msra.mxu0 %v14425_v6  ;;  %v14569_v6 = vcombine.low %v3006_v57, %v3018_v58  ;;  %v3150_v57 = vld [vmem:[%s17046_s16 + $0x2080] sm:$0xff] }
 0x94e   : > { %13000 = vmatpush1.bf16.msra.mxu1 %v14427_v13  ;;  %12846 = vmatprep.subr.bf16.mxu0 %v14450_v14  ;;  %v14571_v13 = vcombine.low %v3007_v62, %v3019_v43  ;;  %v14594_v14 = vcombine.high %v3030_v63, %v3042_v2  ;;  %v3162_v58 = vld [vmem:[%s17046_s16 + $0x20e0] sm:$0xff]  ;;  %v3151_v62 = vld [vmem:[%s17046_s16 + $0x2088] sm:$0xff] }
 0x94f   : > { %13010 = vmatprep.subr.bf16.mxu1 %v14452_v19  ;;  %v14596_v19 = vcombine.high %v3031_v3, %v3043_v5  ;;  %v3163_v43 = vld [vmem:[%s17046_s16 + $0x20e8] sm:$0xff]  ;;  %v3174_v63 = vld [vmem:[%s17046_s16 + $0x2140] sm:$0xff] }
 0x950   : > { %12838 = vmatmul.mubr.bf16.vlgmr.msra.gmra.mrb[24].mxu0 %v17268_v35  ;;  %v3186_v2 = vld [vmem:[%s17046_s16 + $0x21a0] sm:$0xff] }
 0x951   : > { %13002 = vmatmul.mubr.bf16.vlgmr.msra.gmra.mrb[24].mxu1 %v17268_v35  ;;  %12847 = vmatpush1.bf16.msra.mxu0 %v14449_v22  ;;  %v3055_v22 = vld [vmem:[%s17046_s16 + $0x1d88] sm:$0xff] }
 0x952   : > { %12878 = vmatprep.mubr.bf16.mxu0 %v17353_v12  ;;  %13011 = vmatpush1.bf16.msra.mxu1 %v14451_v27  ;;  %v14595_v27 = vcombine.low %v3031_v3, %v3043_v5  ;;  %v14620_v28 = vcombine.high %v3055_v22, %v3067_v23  ;;  %v3175_v3 = vld [vmem:[%s17046_s16 + $0x2148] sm:$0xff] }
 0x953   : > { %13042 = vmatprep.mubr.bf16.mxu1 %v17353_v12  ;;  %12848 = vmatprep.subr.bf16.mxu0 %v14474_v53  ;;  %v14618_v53 = vcombine.high %v3054_v20, %v3066_v21  ;;  %v3187_v5 = vld [vmem:[%s17046_s16 + $0x21a8] sm:$0xff] }
 0x954   : > { %13012 = vmatprep.subr.bf16.mxu1 %v14476_v31  ;;  %v3090_v31 = vld [vmem:[%s17046_s16 + $0x1ea0] sm:$0xff] }
 0x955   : > { %12849 = vmatpush1.bf16.msra.mxu0 %v14473_v33  ;;  %v14617_v33 = vcombine.low %v3054_v20, %v3066_v21  ;;  %v3198_v20 = vld [vmem:[%s17046_s16 + $0x2200] sm:$0xff] }
 0x956   : > { %13013 = vmatpush1.bf16.msra.mxu1 %v14475_v37  ;;  %12850 = vmatprep.subr.bf16.mxu0 %v14498_v38  ;;  %v14619_v37 = vcombine.low %v3055_v22, %v3067_v23  ;;  %v14642_v38 = vcombine.high %v3078_v7, %v3090_v31  ;;  %v3210_v21 = vld [vmem:[%s17046_s16 + $0x2260] sm:$0xff]  ;;  %v3199_v22 = vld [vmem:[%s17046_s16 + $0x2208] sm:$0xff] }
 0x957   : > { %13014 = vmatprep.subr.bf16.mxu1 %v14500_v39  ;;  %v14644_v39 = vcombine.high %v3079_v32, %v3091_v1  ;;  %v3211_v23 = vld [vmem:[%s17046_s16 + $0x2268] sm:$0xff] }
 0x959   : > { %12851 = vmatpush1.bf16.msra.mxu0 %v14497_v45  ;;  %v14641_v45 = vcombine.low %v3078_v7, %v3090_v31  ;;  %v3222_v7 = vld [vmem:[%s17046_s16 + $0x22c0] sm:$0xff] }
 0x95a   : > { %13015 = vmatpush1.bf16.msra.mxu1 %v14499_v46  ;;  %12852 = vmatprep.subr.bf16.mxu0 %v14522_v47  ;;  %v14643_v46 = vcombine.low %v3079_v32, %v3091_v1  ;;  %v14666_v47 = vcombine.high %v3102_v40, %v3114_v41  ;;  %v3234_v31 = vld [vmem:[%s17046_s16 + $0x2320] sm:$0xff]  ;;  %v3223_v32 = vld [vmem:[%s17046_s16 + $0x22c8] sm:$0xff] }
 0x95b   : > { %13016 = vmatprep.subr.bf16.mxu1 %v14524_v48  ;;  %v14668_v48 = vcombine.high %v3103_v42, %v3115_v44  ;;  %v3235_v1 = vld [vmem:[%s17046_s16 + $0x2328] sm:$0xff] }
 0x95d   : > { %12853 = vmatpush1.bf16.msra.mxu0 %v14521_v34  ;;  %v14665_v34 = vcombine.low %v3102_v40, %v3114_v41  ;;  %v3246_v40 = vld [vmem:[%s17046_s16 + $0x2380] sm:$0xff] }
 0x95e   : > { %13017 = vmatpush1.bf16.msra.mxu1 %v14523_v9  ;;  %12854 = vmatprep.subr.bf16.mxu0 %v14546_v54  ;;  %v14667_v9 = vcombine.low %v3103_v42, %v3115_v44  ;;  %v14690_v54 = vcombine.high %v3126_v49, %v3138_v51  ;;  %v3258_v41 = vld [vmem:[%s17046_s16 + $0x23e0] sm:$0xff]  ;;  %v3247_v42 = vld [vmem:[%s17046_s16 + $0x2388] sm:$0xff] }
 0x95f   : > { %13018 = vmatprep.subr.bf16.mxu1 %v14548_v56  ;;  %v14692_v56 = vcombine.high %v3127_v52, %v3139_v55  ;;  %v3259_v44 = vld [vmem:[%s17046_s16 + $0x23e8] sm:$0xff] }
 0x961   : > { %12855 = vmatpush1.bf16.msra.mxu0 %v14545_v59  ;;  %v14689_v59 = vcombine.low %v3126_v49, %v3138_v51  ;;  %v3270_v49 = vld [vmem:[%s17046_s16 + $0x2440] sm:$0xff] }
 0x962   : > { %13019 = vmatpush1.bf16.msra.mxu1 %v14547_v60  ;;  %12856 = vmatprep.subr.bf16.mxu0 %v14570_v61  ;;  %v14691_v60 = vcombine.low %v3127_v52, %v3139_v55  ;;  %v14714_v61 = vcombine.high %v3150_v57, %v3162_v58  ;;  %v3282_v51 = vld [vmem:[%s17046_s16 + $0x24a0] sm:$0xff]  ;;  %v3271_v52 = vld [vmem:[%s17046_s16 + $0x2448] sm:$0xff] }
 0x963   : > { %13020 = vmatprep.subr.bf16.mxu1 %v14572_v16  ;;  %v14716_v16 = vcombine.high %v3151_v62, %v3163_v43  ;;  %v3283_v55 = vld [vmem:[%s17046_s16 + $0x24a8] sm:$0xff] }
 0x965   : > { %12857 = vmatpush1.bf16.msra.mxu0 %v14569_v6  ;;  %v14713_v6 = vcombine.low %v3150_v57, %v3162_v58  ;;  %v3294_v57 = vld [vmem:[%s17046_s16 + $0x2500] sm:$0xff] }
 0x966   : > { %13021 = vmatpush1.bf16.msra.mxu1 %v14571_v13  ;;  %12858 = vmatprep.subr.bf16.mxu0 %v14594_v14  ;;  %v14715_v13 = vcombine.low %v3151_v62, %v3163_v43  ;;  %v14738_v14 = vcombine.high %v3174_v63, %v3186_v2  ;;  %v3306_v58 = vld [vmem:[%s17046_s16 + $0x2560] sm:$0xff]  ;;  %v14833_v62 = vcombine.low %v3270_v49, %v3282_v51  ;;  %v3295_v43 = vld [vmem:[%s17046_s16 + $0x2508] sm:$0xff] }
 0x967   : > { %13022 = vmatprep.subr.bf16.mxu1 %v14596_v19  ;;  %v14740_v19 = vcombine.high %v3175_v3, %v3187_v5 }
 0x969   : > { %12859 = vmatpush1.bf16.msra.mxu0 %v14593_v26  ;;  %v14737_v26 = vcombine.low %v3174_v63, %v3186_v2  ;;  %v3330_v63 = vld [vmem:[%s17046_s16 + $0x2620] sm:$0xff] }
 0x96a   : > { %13023 = vmatpush1.bf16.msra.mxu1 %v14595_v27  ;;  %12860 = vmatprep.subr.bf16.mxu0 %v14618_v53  ;;  %v14739_v27 = vcombine.low %v3175_v3, %v3187_v5  ;;  %v14762_v53 = vcombine.high %v3198_v20, %v3210_v21  ;;  %v3319_v3 = vld [vmem:[%s17046_s16 + $0x25c8] sm:$0xff] }
 0x96b   : > { %13024 = vmatprep.subr.bf16.mxu1 %v14620_v28  ;;  %v14764_v28 = vcombine.high %v3199_v22, %v3211_v23  ;;  %v3331_v5 = vld [vmem:[%s17046_s16 + $0x2628] sm:$0xff] }
 0x96d   : > { %12861 = vmatpush1.bf16.msra.mxu0 %v14617_v33  ;;  %v14761_v33 = vcombine.low %v3198_v20, %v3210_v21  ;;  %v3342_v20 = vld [vmem:[%s17046_s16 + $0x2680] sm:$0xff] }
 0x96e   : > { %13025 = vmatpush1.bf16.msra.mxu1 %v14619_v37  ;;  %12862 = vmatprep.subr.bf16.mxu0 %v14642_v38  ;;  %v14763_v37 = vcombine.low %v3199_v22, %v3211_v23  ;;  %v14786_v38 = vcombine.high %v3222_v7, %v3234_v31  ;;  %v3354_v21 = vld [vmem:[%s17046_s16 + $0x26e0] sm:$0xff]  ;;  %v3343_v22 = vld [vmem:[%s17046_s16 + $0x2688] sm:$0xff] }
 0x96f   : > { %13026 = vmatprep.subr.bf16.mxu1 %v14644_v39  ;;  %v14788_v39 = vcombine.high %v3223_v32, %v3235_v1  ;;  %v3355_v23 = vld [vmem:[%s17046_s16 + $0x26e8] sm:$0xff] }
 0x971   : > { %12863 = vmatpush1.bf16.msra.mxu0 %v14641_v45  ;;  %v14785_v45 = vcombine.low %v3222_v7, %v3234_v31  ;;  %v3366_v7 = vld [vmem:[%s17046_s16 + $0x2740] sm:$0xff] }
 0x972   : > { %13027 = vmatpush1.bf16.msra.mxu1 %v14643_v46  ;;  %12864 = vmatprep.subr.bf16.mxu0 %v14666_v47  ;;  %v14787_v46 = vcombine.low %v3223_v32, %v3235_v1  ;;  %v14810_v47 = vcombine.high %v3246_v40, %v3258_v41  ;;  %v3378_v31 = vld [vmem:[%s17046_s16 + $0x27a0] sm:$0xff]  ;;  %v3367_v32 = vld [vmem:[%s17046_s16 + $0x2748] sm:$0xff] }
 0x973   : > { %13028 = vmatprep.subr.bf16.mxu1 %v14668_v48  ;;  %v14812_v48 = vcombine.high %v3247_v42, %v3259_v44  ;;  %v3379_v1 = vld [vmem:[%s17046_s16 + $0x27a8] sm:$0xff] }
 0x975   : > { %12865 = vmatpush1.bf16.msra.mxu0 %v14665_v34  ;;  %v14809_v34 = vcombine.low %v3246_v40, %v3258_v41  ;;  %v3390_v40 = vld [vmem:[%s17046_s16 + $0x2800] sm:$0xff] }
 0x976   : > { %13029 = vmatpush1.bf16.msra.mxu1 %v14667_v9  ;;  %12866 = vmatprep.subr.bf16.mxu0 %v14690_v54  ;;  %v14811_v9 = vcombine.low %v3247_v42, %v3259_v44  ;;  %v14834_v54 = vcombine.high %v3270_v49, %v3282_v51  ;;  %v3402_v41 = vld [vmem:[%s17046_s16 + $0x2860] sm:$0xff]  ;;  %v3391_v42 = vld [vmem:[%s17046_s16 + $0x2808] sm:$0xff] }
 0x977   : > { %13030 = vmatprep.subr.bf16.mxu1 %v14692_v56  ;;  %v14836_v56 = vcombine.high %v3271_v52, %v3283_v55  ;;  %v3403_v44 = vld [vmem:[%s17046_s16 + $0x2868] sm:$0xff]  ;;  %v3414_v49 = vld [vmem:[%s17046_s16 + $0x28c0] sm:$0xff] }
 0x978   : > { %v3426_v51 = vld [vmem:[%s17046_s16 + $0x2920] sm:$0xff] }
 0x979   : > { %12867 = vmatpush1.bf16.msra.mxu0 %v14689_v59  ;;  %v3307_v59 = vld [vmem:[%s17046_s16 + $0x2568] sm:$0xff] }
 0x97a   : > { %13031 = vmatpush1.bf16.msra.mxu1 %v14691_v60  ;;  %12868 = vmatprep.subr.bf16.mxu0 %v14714_v61  ;;  %v14835_v60 = vcombine.low %v3271_v52, %v3283_v55  ;;  %v14858_v61 = vcombine.high %v3294_v57, %v3306_v58  ;;  %v14860_v2 = vcombine.high %v3295_v43, %v3307_v59  ;;  %v16189_v52 = vld [vmem:[%s17661_s15 + $0x8] sm:$0xff] }
 0x97b   : > { %13032 = vmatprep.subr.bf16.mxu1 %v14716_v16  ;;  %v3318_v16 = vld [vmem:[%s17046_s16 + $0x25c0] sm:$0xff]  ;;  %v3703_v55 = vrot.slane %v16189_v52, %v17325_v29 }
 0x97d   : > { %12869 = vmatpush1.bf16.msra.mxu0 %v14713_v6  ;;  %v14857_v6 = vcombine.low %v3294_v57, %v3306_v58  ;;  %v14953_v57 = vcombine.low %v3390_v40, %v3402_v41  ;;  %v3715_v58 = vrot.slane %v16189_v52, %v17331_v36 }
 0x97e   : > { %13033 = vmatpush1.bf16.msra.mxu1 %v14715_v13  ;;  %12870 = vmatprep.subr.bf16.mxu0 %v14738_v14  ;;  %v14859_v13 = vcombine.low %v3295_v43, %v3307_v59  ;;  %v14882_v14 = vcombine.high %v3318_v16, %v3330_v63  ;;  %v14978_v43 = vcombine.high %v3414_v49, %v3426_v51 }
 0x97f   : > { %13034 = vmatprep.subr.bf16.mxu1 %v14740_v19  ;;  %v14884_v19 = vcombine.high %v3319_v3, %v3331_v5 }
 0x981   : > { %12871 = vmatpush1.bf16.msra.mxu0 %v14737_v26  ;;  %v14881_v26 = vcombine.low %v3318_v16, %v3330_v63  ;;  %v3450_v16 = vld [vmem:[%s17046_s16 + $0x29e0] sm:$0xff] }
 0x982   : > { %13035 = vmatpush1.bf16.msra.mxu1 %v14739_v27  ;;  %12872 = vmatprep.subr.bf16.mxu0 %v14762_v53  ;;  %v14883_v27 = vcombine.low %v3319_v3, %v3331_v5  ;;  %v14906_v53 = vcombine.high %v3342_v20, %v3354_v21  ;;  %v3439_v5 = vld [vmem:[%s17046_s16 + $0x2988] sm:$0xff] }
 0x983   : > { %13036 = vmatprep.subr.bf16.mxu1 %v14764_v28  ;;  %v14908_v28 = vcombine.high %v3343_v22, %v3355_v23 }
 0x985   : > { %12873 = vmatpush1.bf16.msra.mxu0 %v14761_v33  ;;  %v14905_v33 = vcombine.low %v3342_v20, %v3354_v21  ;;  %v14977_v21 = vcombine.low %v3414_v49, %v3426_v51  ;;  %v3510_v51 = vld [vmem:[%s17046_s16 + $0x2bc0] sm:$0xff] }
 0x986   : > { %13037 = vmatpush1.bf16.msra.mxu1 %v14763_v37  ;;  %12874 = vmatprep.subr.bf16.mxu0 %v14786_v38  ;;  %v14907_v37 = vcombine.low %v3343_v22, %v3355_v23  ;;  %v14930_v38 = vcombine.high %v3366_v7, %v3378_v31 }
 0x987   : > { %13038 = vmatprep.subr.bf16.mxu1 %v14788_v39  ;;  %v14932_v39 = vcombine.high %v3367_v32, %v3379_v1 }
 0x989   : > { %12875 = vmatpush1.bf16.msra.mxu0 %v14785_v45  ;;  %v14929_v45 = vcombine.low %v3366_v7, %v3378_v31  ;;  %v3462_v31 = vld [vmem:[%s17046_s16 + $0x2a40] sm:$0xff] }
 0x98a   : > { %13039 = vmatpush1.bf16.msra.mxu1 %v14787_v46  ;;  %12876 = vmatprep.subr.bf16.mxu0 %v14810_v47  ;;  %v14931_v46 = vcombine.low %v3367_v32, %v3379_v1  ;;  %v14954_v47 = vcombine.high %v3390_v40, %v3402_v41  ;;  %v3474_v32 = vld [vmem:[%s17046_s16 + $0x2aa0] sm:$0xff]  ;;  %v3463_v1 = vld [vmem:[%s17046_s16 + $0x2a48] sm:$0xff] }
 0x98b   : > { %13040 = vmatprep.subr.bf16.mxu1 %v14812_v48  ;;  %v14956_v48 = vcombine.high %v3391_v42, %v3403_v44  ;;  %v3486_v41 = vld [vmem:[%s17046_s16 + $0x2b00] sm:$0xff] }
 0x98d   : > { %12877 = vmatpush1.bf16.msra.mxu0 %v14809_v34  ;;  %v3415_v34 = vld [vmem:[%s17046_s16 + $0x28c8] sm:$0xff] }
 0x98e   : > { %13041 = vmatpush1.bf16.msra.mxu1 %v14811_v9  ;;  %12887 = vmatprep.subr.bf16.mxu0 %v14834_v54  ;;  %v3427_v9 = vld [vmem:[%s17046_s16 + $0x2928] sm:$0xff]  ;;  %v3711_v54 = vrot.slane %v16189_v52, %v17414_v18 }
 0x98f   : > { %13051 = vmatprep.subr.bf16.mxu1 %v14836_v56  ;;  %v3707_v56 = vrot.slane %v16189_v52, %v17328_v30  ;;  %v3522_v52 = vld [vmem:[%s17046_s16 + $0x2c20] sm:$0xff] }
 0x990   : > { %12879 = vmatmul.mubr.bf16.vlgmr.msra.gmra.mrb[24].mxu0 %v17355_v15 }
 0x991   : > { %13043 = vmatmul.mubr.bf16.vlgmr.msra.gmra.mrb[24].mxu1 %v17355_v15  ;;  %12888 = vmatpush1.bf16.msra.mxu0 %v14833_v62  ;;  %v14955_v62 = vcombine.low %v3391_v42, %v3403_v44  ;;  %v3498_v42 = vld [vmem:[%s17046_s16 + $0x2b60] sm:$0xff]  ;;  %v3487_v44 = vld [vmem:[%s17046_s16 + $0x2b08] sm:$0xff] }
 0x992   : > { %12919 = vmatprep.mubr.bf16.mxu0 %v17363_v24  ;;  %13052 = vmatpush1.bf16.msra.mxu1 %v14835_v60  ;;  %v14980_v60 = vcombine.high %v3415_v34, %v3427_v9 }
 0x993   : > { %13083 = vmatprep.mubr.bf16.mxu1 %v17363_v24  ;;  %12889 = vmatprep.subr.bf16.mxu0 %v14858_v61  ;;  %v3438_v61 = vld [vmem:[%s17046_s16 + $0x2980] sm:$0xff] }
 0x994   : > { %13053 = vmatprep.subr.bf16.mxu1 %v14860_v2 }
 0x995   : > { %12890 = vmatpush1.bf16.msra.mxu0 %v14857_v6  ;;  %v3451_v6 = vld [vmem:[%s17046_s16 + $0x29e8] sm:$0xff] }
 0x996   : > { %13054 = vmatpush1.bf16.msra.mxu1 %v14859_v13  ;;  %12891 = vmatprep.subr.bf16.mxu0 %v14882_v14  ;;  %v15004_v7 = vcombine.high %v3439_v5, %v3451_v6 }
 0x997   : > { %13055 = vmatprep.subr.bf16.mxu1 %v14884_v19 }
 0x999   : > { %12892 = vmatpush1.bf16.msra.mxu0 %v14881_v26 }
 0x99a   : > { %13056 = vmatpush1.bf16.msra.mxu1 %v14883_v27  ;;  %12893 = vmatprep.subr.bf16.mxu0 %v14906_v53  ;;  %v14979_v27 = vcombine.low %v3415_v34, %v3427_v9  ;;  %v15002_v53 = vcombine.high %v3438_v61, %v3450_v16  ;;  %v3523_v34 = vld [vmem:[%s17046_s16 + $0x2c28] sm:$0xff]  ;;  %v15049_v9 = vcombine.low %v3486_v41, %v3498_v42 }
 0x99b   : > { %13057 = vmatprep.subr.bf16.mxu1 %v14908_v28 }
 0x99d   : > { %12894 = vmatpush1.bf16.msra.mxu0 %v14905_v33  ;;  %v3475_v33 = vld [vmem:[%s17046_s16 + $0x2aa8] sm:$0xff] }
 0x99e   : > { %13058 = vmatpush1.bf16.msra.mxu1 %v14907_v37  ;;  %12895 = vmatprep.subr.bf16.mxu0 %v14930_v38  ;;  %v15001_v37 = vcombine.low %v3438_v61, %v3450_v16  ;;  %v15003_v38 = vcombine.low %v3439_v5, %v3451_v6  ;;  %v15028_v40 = vcombine.high %v3463_v1, %v3475_v33  ;;  %v3559_v5 = vld [vmem:[%s17046_s16 + $0x2d48] sm:$0xff] }
 0x99f   : > { %13059 = vmatprep.subr.bf16.mxu1 %v14932_v39  ;;  %v15026_v39 = vcombine.high %v3462_v31, %v3474_v32  ;;  %v3571_v6 = vld [vmem:[%s17046_s16 + $0x2da8] sm:$0xff] }
 0x9a1   : > { %12896 = vmatpush1.bf16.msra.mxu0 %v14929_v45  ;;  %v3499_v45 = vld [vmem:[%s17046_s16 + $0x2b68] sm:$0xff] }
 0x9a2   : > { %13060 = vmatpush1.bf16.msra.mxu1 %v14931_v46  ;;  %12897 = vmatprep.subr.bf16.mxu0 %v14954_v47  ;;  %v15025_v46 = vcombine.low %v3462_v31, %v3474_v32  ;;  %v15027_v47 = vcombine.low %v3463_v1, %v3475_v33  ;;  %v15052_v49 = vcombine.high %v3487_v44, %v3499_v45  ;;  %v3606_v31 = vld [vmem:[%s17046_s16 + $0x2ec0] sm:$0xff]  ;;  %v3607_v1 = vld [vmem:[%s17046_s16 + $0x2ec8] sm:$0xff] }
 0x9a3   : > { %v12593_v59 = vpop.f32.mrb[20].mxu0  ;;  %13061 = vmatprep.subr.bf16.mxu1 %v14956_v48  ;;  %v15050_v48 = vcombine.high %v3486_v41, %v3498_v42  ;;  %v3618_v32 = vld [vmem:[%s17046_s16 + $0x2f20] sm:$0xff]  ;;  %v3619_v33 = vld [vmem:[%s17046_s16 + $0x2f28] sm:$0xff] }
 0x9a4   : > { %v15864_v63 = vadd.f32 %v12593_v59, %v3703_v55  ;;  %v12757_v2 = vpop.f32.mrb[20].mxu1  ;;  %v12595_v3 = vpop.f32.mrb[21].mxu0  ;;  %v3511_v55 = vld [vmem:[%s17046_s16 + $0x2bc8] sm:$0xff]  ;;  %v3630_v41 = vld [vmem:[%s17046_s16 + $0x2f80] sm:$0xff] }
 0x9a5   : > { %v15866_v13 = vadd.f32 %v12757_v2, %v3711_v54  ;;  %v15865_v14 = vadd.f32 %v12595_v3, %v3707_v56  ;;  %v12759_v19 = vpop.f32.mrb[21].mxu1  ;;  %v12597_v20 = vpop.f32.mrb[22].mxu0  ;;  %12898 = vmatpush1.bf16.msra.mxu0 %v14953_v57  ;;  %v15051_v54 = vcombine.low %v3487_v44, %v3499_v45  ;;  %v15074_v56 = vcombine.high %v3510_v51, %v3522_v52  ;;  %v3547_v59 = vld [vmem:[%s17046_s16 + $0x2ce8] sm:$0xff]  ;;  %v3558_v2 = vld [vmem:[%s17046_s16 + $0x2d40] sm:$0xff] }
 0x9a6   : > { %13432 = vst [vmem:[%s17679_s27 + $0x60] sm:$0xff] %v15864_v63  ;;  %v15867_v22 = vadd.f32 %v12759_v19, %v3715_v58  ;;  %v12761_v23 = vpop.f32.mrb[22].mxu1  ;;  %13062 = vmatpush1.bf16.msra.mxu1 %v14955_v62  ;;  %v12598_v26 = vpop.f32.mrb[23].mxu0  ;;  %12899 = vmatprep.subr.bf16.mxu0 %v14978_v43  ;;  %v15076_v57 = vcombine.high %v3511_v55, %v3523_v34  ;;  %v3534_v58 = vld [vmem:[%s17046_s16 + $0x2c80] sm:$0xff]  ;;  %v3535_v43 = vld [vmem:[%s17046_s16 + $0x2c88] sm:$0xff] }
 0x9a7   : > { %13434 = vst [vmem:[%s17679_s27 + $0x70] sm:$0xff] %v15866_v13  ;;  %13433 = vst [vmem:[%s17679_s27 + $0x68] sm:$0xff] %v15865_v14  ;;  %v12762_v28 = vpop.f32.mrb[23].mxu1  ;;  %13063 = vmatprep.subr.bf16.mxu1 %v14980_v60  ;;  %v3546_v62 = vld [vmem:[%s17046_s16 + $0x2ce0] sm:$0xff]  ;;  %v15073_v60 = vcombine.low %v3510_v51, %v3522_v52  ;;  %v15075_v61 = vcombine.low %v3511_v55, %v3523_v34  ;;  %v15100_v63 = vcombine.high %v3535_v43, %v3547_v59  ;;  %v3583_v23 = vld [vmem:[%s17046_s16 + $0x2e08] sm:$0xff] }
 0x9a8   : > { %13435 = vst [vmem:[%s17679_s27 + $0x78] sm:$0xff] %v15867_v22  ;;  %v15098_v16 = vcombine.high %v3534_v58, %v3546_v62  ;;  %v3570_v3 = vld [vmem:[%s17046_s16 + $0x2da0] sm:$0xff]  ;;  %v15097_v13 = vcombine.low %v3534_v58, %v3546_v62  ;;  %v15099_v14 = vcombine.low %v3535_v43, %v3547_v59  ;;  %v15124_v20 = vcombine.high %v3559_v5, %v3571_v6  ;;  %v3595_v26 = vld [vmem:[%s17046_s16 + $0x2e68] sm:$0xff]  ;;  %v2120_v51 = vld [vmem:[%s17046_s16 + $0x50] sm:$0xff] }
 0x9a9   : > { %12900 = vmatpush1.bf16.msra.mxu0 %v14977_v21  ;;  %v15122_v19 = vcombine.high %v3558_v2, %v3570_v3  ;;  %v3582_v21 = vld [vmem:[%s17046_s16 + $0x2e00] sm:$0xff]  ;;  %v3631_v44 = vld [vmem:[%s17046_s16 + $0x2f88] sm:$0xff]  ;;  %v2132_v52 = vld [vmem:[%s17046_s16 + $0xb0] sm:$0xff] }
 0x9aa   : > { %13064 = vmatpush1.bf16.msra.mxu1 %v14979_v27  ;;  %12901 = vmatprep.subr.bf16.mxu0 %v15002_v53  ;;  %v3594_v22 = vld [vmem:[%s17046_s16 + $0x2e60] sm:$0xff]  ;;  %v15121_v27 = vcombine.low %v3558_v2, %v3570_v3  ;;  %v15123_v53 = vcombine.low %v3559_v5, %v3571_v6  ;;  %v3643_v45 = vld [vmem:[%s17046_s16 + $0x2fe8] sm:$0xff]  ;;  %v2121_v55 = vld [vmem:[%s17046_s16 + $0x58] sm:$0xff]  ;;  %v13685_v43 = vcombine.low %v2120_v51, %v2132_v52 }
 0x9ab   : > { %13065 = vmatprep.subr.bf16.mxu1 %v15004_v7  ;;  %v15146_v28 = vcombine.high %v3582_v21, %v3594_v22  ;;  %v15148_v7 = vcombine.high %v3583_v23, %v3595_v26  ;;  %v3642_v42 = vld [vmem:[%s17046_s16 + $0x2fe0] sm:$0xff]  ;;  %v2133_v34 = vld [vmem:[%s17046_s16 + $0xb8] sm:$0xff]  ;;  %v2144_v58 = vld [vmem:[%s17046_s16 + $0x110] sm:$0xff] }
 0x9ac   : > { %v2156_v62 = vld [vmem:[%s17046_s16 + $0x170] sm:$0xff]  ;;  %v2145_v59 = vld [vmem:[%s17046_s16 + $0x118] sm:$0xff] }
 0x9ad   : > { %12902 = vmatpush1.bf16.msra.mxu0 %v15001_v37  ;;  %v15145_v37 = vcombine.low %v3582_v21, %v3594_v22  ;;  %v2180_v2 = vld [vmem:[%s17046_s16 + $0x230] sm:$0xff]  ;;  %v2169_v5 = vld [vmem:[%s17046_s16 + $0x1d8] sm:$0xff] }
 0x9ae   : > { %13066 = vmatpush1.bf16.msra.mxu1 %v15003_v38  ;;  %12903 = vmatprep.subr.bf16.mxu0 %v15026_v39  ;;  %v15147_v38 = vcombine.low %v3583_v23, %v3595_v26  ;;  %v15170_v39 = vcombine.high %v3606_v31, %v3618_v32  ;;  %v2181_v6 = vld [vmem:[%s17046_s16 + $0x238] sm:$0xff]  ;;  %v2192_v21 = vld [vmem:[%s17046_s16 + $0x290] sm:$0xff] }
 0x9af   : > { %13067 = vmatprep.subr.bf16.mxu1 %v15028_v40  ;;  %v15172_v40 = vcombine.high %v3607_v1, %v3619_v33  ;;  %v2204_v22 = vld [vmem:[%s17046_s16 + $0x2f0] sm:$0xff]  ;;  %v2193_v23 = vld [vmem:[%s17046_s16 + $0x298] sm:$0xff] }
 0x9b0   : > { %v2205_v26 = vld [vmem:[%s17046_s16 + $0x2f8] sm:$0xff] }
 0x9b1   : > { %12904 = vmatpush1.bf16.msra.mxu0 %v15025_v46  ;;  %v15169_v46 = vcombine.low %v3606_v31, %v3618_v32  ;;  %v2228_v31 = vld [vmem:[%s17046_s16 + $0x3b0] sm:$0xff]  ;;  %v2217_v32 = vld [vmem:[%s17046_s16 + $0x358] sm:$0xff] }
 0x9b2   : > { %13068 = vmatpush1.bf16.msra.mxu1 %v15027_v47  ;;  %12905 = vmatprep.subr.bf16.mxu0 %v15050_v48  ;;  %v15171_v47 = vcombine.low %v3607_v1, %v3619_v33  ;;  %v15194_v48 = vcombine.high %v3630_v41, %v3642_v42  ;;  %v2229_v1 = vld [vmem:[%s17046_s16 + $0x3b8] sm:$0xff]  ;;  %v13757_v33 = vcombine.low %v2192_v21, %v2204_v22 }
 0x9b3   : > { %13069 = vmatprep.subr.bf16.mxu1 %v15052_v49  ;;  %v15196_v49 = vcombine.high %v3631_v44, %v3643_v45 }
 0x9b5   : > { %12906 = vmatpush1.bf16.msra.mxu0 %v15049_v9  ;;  %v15193_v9 = vcombine.low %v3630_v41, %v3642_v42  ;;  %v2252_v41 = vld [vmem:[%s17046_s16 + $0x470] sm:$0xff]  ;;  %v2241_v42 = vld [vmem:[%s17046_s16 + $0x418] sm:$0xff] }
 0x9b6   : > { %13070 = vmatpush1.bf16.msra.mxu1 %v15051_v54  ;;  %12907 = vmatprep.subr.bf16.mxu0 %v15074_v56  ;;  %v15195_v54 = vcombine.low %v3631_v44, %v3643_v45  ;;  %v13686_v56 = vcombine.high %v2120_v51, %v2132_v52  ;;  %v2253_v44 = vld [vmem:[%s17046_s16 + $0x478] sm:$0xff]  ;;  %v2276_v51 = vld [vmem:[%s17046_s16 + $0x530] sm:$0xff] }
 0x9b7   : > { %13071 = vmatprep.subr.bf16.mxu1 %v15076_v57  ;;  %v13688_v57 = vcombine.high %v2121_v55, %v2133_v34  ;;  %v2265_v52 = vld [vmem:[%s17046_s16 + $0x4d8] sm:$0xff] }
 0x9b9   : > { %12908 = vmatpush1.bf16.msra.mxu0 %v15073_v60  ;;  %v2157_v60 = vld [vmem:[%s17046_s16 + $0x178] sm:$0xff] }
 0x9ba   : > { %13072 = vmatpush1.bf16.msra.mxu1 %v15075_v61  ;;  %12909 = vmatprep.subr.bf16.mxu0 %v15098_v16  ;;  %v13687_v61 = vcombine.low %v2121_v55, %v2133_v34  ;;  %v13710_v16 = vcombine.high %v2144_v58, %v2156_v62  ;;  %v13712_v3 = vcombine.high %v2145_v59, %v2157_v60  ;;  %v2277_v55 = vld [vmem:[%s17046_s16 + $0x538] sm:$0xff] }
 0x9bb   : > { %13073 = vmatprep.subr.bf16.mxu1 %v15100_v63  ;;  %v2168_v63 = vld [vmem:[%s17046_s16 + $0x1d0] sm:$0xff] }
 0x9bd   : > { %12910 = vmatpush1.bf16.msra.mxu0 %v15097_v13  ;;  %v13709_v13 = vcombine.low %v2144_v58, %v2156_v62  ;;  %v2300_v58 = vld [vmem:[%s17046_s16 + $0x5f0] sm:$0xff]  ;;  %v2289_v62 = vld [vmem:[%s17046_s16 + $0x598] sm:$0xff] }
 0x9be   : > { %13074 = vmatpush1.bf16.msra.mxu1 %v15099_v14  ;;  %12911 = vmatprep.subr.bf16.mxu0 %v15122_v19  ;;  %v13711_v14 = vcombine.low %v2145_v59, %v2157_v60  ;;  %v13734_v19 = vcombine.high %v2168_v63, %v2180_v2  ;;  %v13831_v60 = vcombine.low %v2265_v52, %v2277_v55 }
 0x9bf   : > { %13075 = vmatprep.subr.bf16.mxu1 %v15124_v20  ;;  %v13736_v20 = vcombine.high %v2169_v5, %v2181_v6 }
 0x9c1   : > { %12912 = vmatpush1.bf16.msra.mxu0 %v15121_v27  ;;  %v13733_v27 = vcombine.low %v2168_v63, %v2180_v2  ;;  %v2312_v63 = vld [vmem:[%s17046_s16 + $0x650] sm:$0xff] }
 0x9c2   : > { %13076 = vmatpush1.bf16.msra.mxu1 %v15123_v53  ;;  %12913 = vmatprep.subr.bf16.mxu0 %v15146_v28  ;;  %v13735_v53 = vcombine.low %v2169_v5, %v2181_v6  ;;  %v13758_v28 = vcombine.high %v2192_v21, %v2204_v22  ;;  %v2324_v2 = vld [vmem:[%s17046_s16 + $0x6b0] sm:$0xff]  ;;  %v2325_v5 = vld [vmem:[%s17046_s16 + $0x6b8] sm:$0xff] }
 0x9c3   : > { %13077 = vmatprep.subr.bf16.mxu1 %v15148_v7  ;;  %v2216_v7 = vld [vmem:[%s17046_s16 + $0x350] sm:$0xff]  ;;  %v2337_v22 = vld [vmem:[%s17046_s16 + $0x718] sm:$0xff] }
 0x9c4   : > { %v13781_v45 = vcombine.low %v2216_v7, %v2228_v31  ;;  %v2348_v21 = vld [vmem:[%s17046_s16 + $0x770] sm:$0xff] }
 0x9c5   : > { %12914 = vmatpush1.bf16.msra.mxu0 %v15145_v37  ;;  %v13759_v37 = vcombine.low %v2193_v23, %v2205_v26 }
 0x9c6   : > { %13078 = vmatpush1.bf16.msra.mxu1 %v15147_v38  ;;  %12915 = vmatprep.subr.bf16.mxu0 %v15170_v39  ;;  %v13782_v38 = vcombine.high %v2216_v7, %v2228_v31  ;;  %v13784_v39 = vcombine.high %v2217_v32, %v2229_v1  ;;  %v2372_v7 = vld [vmem:[%s17046_s16 + $0x830] sm:$0xff]  ;;  %v2361_v31 = vld [vmem:[%s17046_s16 + $0x7d8] sm:$0xff] }
 0x9c7   : > { %13079 = vmatprep.subr.bf16.mxu1 %v15172_v40  ;;  %v2240_v40 = vld [vmem:[%s17046_s16 + $0x410] sm:$0xff] }
 0x9c8   : > { %v13805_v34 = vcombine.low %v2240_v40, %v2252_v41 }
 0x9c9   : > { %12916 = vmatpush1.bf16.msra.mxu0 %v15169_v46  ;;  %v13783_v46 = vcombine.low %v2217_v32, %v2229_v1  ;;  %v2373_v32 = vld [vmem:[%s17046_s16 + $0x838] sm:$0xff] }
 0x9ca   : > { %13080 = vmatpush1.bf16.msra.mxu1 %v15171_v47  ;;  %12917 = vmatprep.subr.bf16.mxu0 %v15194_v48  ;;  %v13806_v47 = vcombine.high %v2240_v40, %v2252_v41  ;;  %v13808_v48 = vcombine.high %v2241_v42, %v2253_v44  ;;  %v2396_v40 = vld [vmem:[%s17046_s16 + $0x8f0] sm:$0xff]  ;;  %v2385_v41 = vld [vmem:[%s17046_s16 + $0x898] sm:$0xff] }
 0x9cb   : > { %13081 = vmatprep.subr.bf16.mxu1 %v15196_v49  ;;  %v2264_v49 = vld [vmem:[%s17046_s16 + $0x4d0] sm:$0xff] }
 0x9cc   : > { %v13829_v59 = vcombine.low %v2264_v49, %v2276_v51 }
 0x9cd   : > { %12918 = vmatpush1.bf16.msra.mxu0 %v15193_v9  ;;  %v13807_v9 = vcombine.low %v2241_v42, %v2253_v44  ;;  %v2397_v42 = vld [vmem:[%s17046_s16 + $0x8f8] sm:$0xff] }
 0x9ce   : > { %13082 = vmatpush1.bf16.msra.mxu1 %v15195_v54  ;;  %13092 = vmatprep.subr.bf16.mxu0 %v13686_v56  ;;  %v13830_v54 = vcombine.high %v2264_v49, %v2276_v51  ;;  %v13832_v56 = vcombine.high %v2265_v52, %v2277_v55  ;;  %v2420_v49 = vld [vmem:[%s17046_s16 + $0x9b0] sm:$0xff]  ;;  %v2409_v51 = vld [vmem:[%s17046_s16 + $0x958] sm:$0xff] }
 0x9cf   : > { %13256 = vmatprep.subr.bf16.mxu1 %v13688_v57  ;;  %v2288_v57 = vld [vmem:[%s17046_s16 + $0x590] sm:$0xff]  ;;  %v2421_v52 = vld [vmem:[%s17046_s16 + $0x9b8] sm:$0xff] }
 0x9d0   : > { %12920 = vmatmul.mubr.bf16.vlgmr.msra.gmra.mrb[24].mxu0 %v17434_v50  ;;  %v13853_v6 = vcombine.low %v2288_v57, %v2300_v58 }
 0x9d1   : > { %13084 = vmatmul.mubr.bf16.vlgmr.msra.gmra.mrb[24].mxu1 %v17434_v50  ;;  %13093 = vmatpush1.bf16.msra.mxu0 %v13685_v43  ;;  %v2301_v43 = vld [vmem:[%s17046_s16 + $0x5f8] sm:$0xff] }
 0x9d2   : > { %13124 = vmatprep.mubr.bf16.mxu0 %v17189_v0  ;;  %13257 = vmatpush1.bf16.msra.mxu1 %v13687_v61  ;;  %v13854_v61 = vcombine.high %v2288_v57, %v2300_v58  ;;  %v2444_v57 = vld [vmem:[%s17046_s16 + $0xa70] sm:$0xff]  ;;  %v2433_v58 = vld [vmem:[%s17046_s16 + $0xa18] sm:$0xff] }
 0x9d3   : > { %13288 = vmatprep.mubr.bf16.mxu1 %v17189_v0  ;;  %13094 = vmatprep.subr.bf16.mxu0 %v13710_v16  ;;  %v13760_v0 = vcombine.high %v2193_v23, %v2205_v26  ;;  %v13856_v16 = vcombine.high %v2289_v62, %v2301_v43  ;;  %v2349_v23 = vld [vmem:[%s17046_s16 + $0x778] sm:$0xff]  ;;  %v13877_v26 = vcombine.low %v2312_v63, %v2324_v2 }
 0x9d4   : > { %13258 = vmatprep.subr.bf16.mxu1 %v13712_v3  ;;  %v2313_v3 = vld [vmem:[%s17046_s16 + $0x658] sm:$0xff] }
 0x9d5   : > { %13095 = vmatpush1.bf16.msra.mxu0 %v13709_v13  ;;  %v13855_v13 = vcombine.low %v2289_v62, %v2301_v43  ;;  %v2445_v62 = vld [vmem:[%s17046_s16 + $0xa78] sm:$0xff] }
 0x9d6   : > { %13259 = vmatpush1.bf16.msra.mxu1 %v13711_v14  ;;  %13096 = vmatprep.subr.bf16.mxu0 %v13734_v19  ;;  %v13878_v14 = vcombine.high %v2312_v63, %v2324_v2  ;;  %v13880_v19 = vcombine.high %v2313_v3, %v2325_v5  ;;  %v2468_v63 = vld [vmem:[%s17046_s16 + $0xb30] sm:$0xff]  ;;  %v2457_v2 = vld [vmem:[%s17046_s16 + $0xad8] sm:$0xff] }
 0x9d7   : > { %13260 = vmatprep.subr.bf16.mxu1 %v13736_v20  ;;  %v2336_v20 = vld [vmem:[%s17046_s16 + $0x710] sm:$0xff] }
 0x9d8   : > { %v13901_v1 = vcombine.low %v2336_v20, %v2348_v21 }
 0x9d9   : > { %13097 = vmatpush1.bf16.msra.mxu0 %v13733_v27  ;;  %v13879_v27 = vcombine.low %v2313_v3, %v2325_v5  ;;  %v2469_v3 = vld [vmem:[%s17046_s16 + $0xb38] sm:$0xff] }
 0x9da   : > { %13261 = vmatpush1.bf16.msra.mxu1 %v13735_v53  ;;  %13098 = vmatprep.subr.bf16.mxu0 %v13758_v28  ;;  %v13902_v53 = vcombine.high %v2336_v20, %v2348_v21  ;;  %v13904_v28 = vcombine.high %v2337_v22, %v2349_v23  ;;  %v2492_v20 = vld [vmem:[%s17046_s16 + $0xbf0] sm:$0xff]  ;;  %v2481_v21 = vld [vmem:[%s17046_s16 + $0xb98] sm:$0xff] }
 0x9db   : > { %13262 = vmatprep.subr.bf16.mxu1 %v13760_v0  ;;  %v2360_v0 = vld [vmem:[%s17046_s16 + $0x7d0] sm:$0xff] }
 0x9dc   : > { %v13925_v44 = vcombine.low %v2360_v0, %v2372_v7 }
 0x9dd   : > { %13099 = vmatpush1.bf16.msra.mxu0 %v13757_v33  ;;  %v13903_v33 = vcombine.low %v2337_v22, %v2349_v23  ;;  %v2493_v22 = vld [vmem:[%s17046_s16 + $0xbf8] sm:$0xff] }
 0x9de   : > { %13263 = vmatpush1.bf16.msra.mxu1 %v13759_v37  ;;  %13100 = vmatprep.subr.bf16.mxu0 %v13782_v38  ;;  %v13926_v37 = vcombine.high %v2360_v0, %v2372_v7  ;;  %v13928_v38 = vcombine.high %v2361_v31, %v2373_v32  ;;  %v2516_v0 = vld [vmem:[%s17046_s16 + $0xcb0] sm:$0xff]  ;;  %v2505_v7 = vld [vmem:[%s17046_s16 + $0xc58] sm:$0xff] }
 0x9df   : > { %13264 = vmatprep.subr.bf16.mxu1 %v13784_v39  ;;  %v2384_v39 = vld [vmem:[%s17046_s16 + $0x890] sm:$0xff] }
 0x9e0   : > { %v13949_v55 = vcombine.low %v2384_v39, %v2396_v40 }
 0x9e1   : > { %13101 = vmatpush1.bf16.msra.mxu0 %v13781_v45  ;;  %v13927_v45 = vcombine.low %v2361_v31, %v2373_v32  ;;  %v2517_v31 = vld [vmem:[%s17046_s16 + $0xcb8] sm:$0xff] }
 0x9e2   : > { %13265 = vmatpush1.bf16.msra.mxu1 %v13783_v46  ;;  %13102 = vmatprep.subr.bf16.mxu0 %v13806_v47  ;;  %v13950_v46 = vcombine.high %v2384_v39, %v2396_v40  ;;  %v13952_v47 = vcombine.high %v2385_v41, %v2397_v42  ;;  %v2540_v39 = vld [vmem:[%s17046_s16 + $0xd70] sm:$0xff] }
 0x9e3   : > { %13266 = vmatprep.subr.bf16.mxu1 %v13808_v48  ;;  %v2408_v48 = vld [vmem:[%s17046_s16 + $0x950] sm:$0xff] }
 0x9e4   : > { %v13973_v43 = vcombine.low %v2408_v48, %v2420_v49 }
 0x9e5   : > { %13103 = vmatpush1.bf16.msra.mxu0 %v13805_v34  ;;  %v13951_v34 = vcombine.low %v2385_v41, %v2397_v42  ;;  %v2529_v41 = vld [vmem:[%s17046_s16 + $0xd18] sm:$0xff] }
 0x9e6   : > { %13267 = vmatpush1.bf16.msra.mxu1 %v13807_v9  ;;  %13104 = vmatprep.subr.bf16.mxu0 %v13830_v54  ;;  %v13974_v9 = vcombine.high %v2408_v48, %v2420_v49  ;;  %v13976_v54 = vcombine.high %v2409_v51, %v2421_v52  ;;  %v2541_v42 = vld [vmem:[%s17046_s16 + $0xd78] sm:$0xff] }
 0x9e7   : > { %13268 = vmatprep.subr.bf16.mxu1 %v13832_v56  ;;  %v2432_v56 = vld [vmem:[%s17046_s16 + $0xa10] sm:$0xff]  ;;  %v14096_v48 = vcombine.high %v2529_v41, %v2541_v42  ;;  %v2553_v49 = vld [vmem:[%s17046_s16 + $0xdd8] sm:$0xff] }
 0x9e8   : > { %v13997_v5 = vcombine.low %v2432_v56, %v2444_v57 }
 0x9e9   : > { %13105 = vmatpush1.bf16.msra.mxu0 %v13829_v59  ;;  %v13975_v59 = vcombine.low %v2409_v51, %v2421_v52  ;;  %v2565_v51 = vld [vmem:[%s17046_s16 + $0xe38] sm:$0xff] }
 0x9ea   : > { %13269 = vmatpush1.bf16.msra.mxu1 %v13831_v60  ;;  %13106 = vmatprep.subr.bf16.mxu0 %v13854_v61  ;;  %v13998_v60 = vcombine.high %v2432_v56, %v2444_v57  ;;  %v14000_v61 = vcombine.high %v2433_v58, %v2445_v62  ;;  %v2588_v56 = vld [vmem:[%s17046_s16 + $0xef0] sm:$0xff]  ;;  %v2577_v57 = vld [vmem:[%s17046_s16 + $0xe98] sm:$0xff] }
 0x9eb   : > { %13270 = vmatprep.subr.bf16.mxu1 %v13856_v16  ;;  %v2456_v16 = vld [vmem:[%s17046_s16 + $0xad0] sm:$0xff] }
 0x9ec   : > { %v14021_v23 = vcombine.low %v2456_v16, %v2468_v63 }
 0x9ed   : > { %13107 = vmatpush1.bf16.msra.mxu0 %v13853_v6  ;;  %v13999_v6 = vcombine.low %v2433_v58, %v2445_v62  ;;  %v14119_v62 = vcombine.low %v2553_v49, %v2565_v51 }
 0x9ee   : > { %13271 = vmatpush1.bf16.msra.mxu1 %v13855_v13  ;;  %13108 = vmatprep.subr.bf16.mxu0 %v13878_v14  ;;  %v14022_v13 = vcombine.high %v2456_v16, %v2468_v63  ;;  %v14024_v14 = vcombine.high %v2457_v2, %v2469_v3  ;;  %v2613_v16 = vld [vmem:[%s17046_s16 + $0xfb8] sm:$0xff] }
 0x9ef   : > { %13272 = vmatprep.subr.bf16.mxu1 %v13880_v19  ;;  %v2480_v19 = vld [vmem:[%s17046_s16 + $0xb90] sm:$0xff] }
 0x9f0   : > { %v14045_v32 = vcombine.low %v2480_v19, %v2492_v20 }
 0x9f1   : > { %13109 = vmatpush1.bf16.msra.mxu0 %v13877_v26  ;;  %v14023_v26 = vcombine.low %v2457_v2, %v2469_v3 }
 0x9f2   : > { %13273 = vmatpush1.bf16.msra.mxu1 %v13879_v27  ;;  %13110 = vmatprep.subr.bf16.mxu0 %v13902_v53  ;;  %v14046_v27 = vcombine.high %v2480_v19, %v2492_v20  ;;  %v14048_v53 = vcombine.high %v2481_v21, %v2493_v22  ;;  %v2637_v19 = vld [vmem:[%s17046_s16 + $0x1078] sm:$0xff] }
 0x9f3   : > { %13274 = vmatprep.subr.bf16.mxu1 %v13904_v28  ;;  %v2504_v28 = vld [vmem:[%s17046_s16 + $0xc50] sm:$0xff] }
 0x9f4   : > { %v14069_v40 = vcombine.low %v2504_v28, %v2516_v0 }
 0x9f5   : > { %13111 = vmatpush1.bf16.msra.mxu0 %v13901_v1  ;;  %v14047_v1 = vcombine.low %v2481_v21, %v2493_v22 }
 0x9f6   : > { %13275 = vmatpush1.bf16.msra.mxu1 %v13903_v33  ;;  %13112 = vmatprep.subr.bf16.mxu0 %v13926_v37  ;;  %v14070_v33 = vcombine.high %v2504_v28, %v2516_v0  ;;  %v14072_v37 = vcombine.high %v2505_v7, %v2517_v31  ;;  %v2661_v28 = vld [vmem:[%s17046_s16 + $0x1138] sm:$0xff] }
 0x9f7   : > { %13276 = vmatprep.subr.bf16.mxu1 %v13928_v38  ;;  %v2528_v38 = vld [vmem:[%s17046_s16 + $0xd10] sm:$0xff] }
 0x9f8   : > { %v14093_v52 = vcombine.low %v2528_v38, %v2540_v39 }
 0x9f9   : > { %13113 = vmatpush1.bf16.msra.mxu0 %v13925_v44  ;;  %v14071_v44 = vcombine.low %v2505_v7, %v2517_v31 }
 0x9fa   : > { %13277 = vmatpush1.bf16.msra.mxu1 %v13927_v45  ;;  %13114 = vmatprep.subr.bf16.mxu0 %v13950_v46  ;;  %v14094_v45 = vcombine.high %v2528_v38, %v2540_v39  ;;  %v2552_v46 = vld [vmem:[%s17046_s16 + $0xdd0] sm:$0xff]  ;;  %v2685_v38 = vld [vmem:[%s17046_s16 + $0x11f8] sm:$0xff] }
 0x9fb   : > { %13278 = vmatprep.subr.bf16.mxu1 %v13952_v47  ;;  %v2564_v47 = vld [vmem:[%s17046_s16 + $0xe30] sm:$0xff] }
 0x9fc   : > { %v14117_v58 = vcombine.low %v2552_v46, %v2564_v47 }
 0x9fd   : > { %13115 = vmatpush1.bf16.msra.mxu0 %v13949_v55  ;;  %v14095_v55 = vcombine.low %v2529_v41, %v2541_v42 }
 0x9fe   : > { %13279 = vmatpush1.bf16.msra.mxu1 %v13951_v34  ;;  %13116 = vmatprep.subr.bf16.mxu0 %v13974_v9  ;;  %v14118_v34 = vcombine.high %v2552_v46, %v2564_v47  ;;  %v14120_v9 = vcombine.high %v2553_v49, %v2565_v51  ;;  %v2697_v46 = vld [vmem:[%s17046_s16 + $0x1258] sm:$0xff] }
 0x9ff   : > { %13280 = vmatprep.subr.bf16.mxu1 %v13976_v54  ;;  %v2576_v54 = vld [vmem:[%s17046_s16 + $0xe90] sm:$0xff]  ;;  %v2709_v47 = vld [vmem:[%s17046_s16 + $0x12b8] sm:$0xff] }
 0xa00   : > { %v14141_v63 = vcombine.low %v2576_v54, %v2588_v56 }
 0xa01   : > { %13117 = vmatpush1.bf16.msra.mxu0 %v13973_v43  ;;  %v14142_v43 = vcombine.high %v2576_v54, %v2588_v56  ;;  %v2733_v54 = vld [vmem:[%s17046_s16 + $0x1378] sm:$0xff] }
 0xa02   : > { %13281 = vmatpush1.bf16.msra.mxu1 %v13975_v59  ;;  %13118 = vmatprep.subr.bf16.mxu0 %v13998_v60  ;;  %v2600_v59 = vld [vmem:[%s17046_s16 + $0xf50] sm:$0xff] }
 0xa03   : > { %13282 = vmatprep.subr.bf16.mxu1 %v14000_v61  ;;  %v2612_v60 = vld [vmem:[%s17046_s16 + $0xfb0] sm:$0xff]  ;;  %v2601_v61 = vld [vmem:[%s17046_s16 + $0xf58] sm:$0xff] }
 0xa04   : > { %v14166_v3 = vcombine.high %v2600_v59, %v2612_v60  ;;  %v14165_v20 = vcombine.low %v2600_v59, %v2612_v60  ;;  %v14167_v21 = vcombine.low %v2601_v61, %v2613_v16  ;;  %v2757_v59 = vld [vmem:[%s17046_s16 + $0x1438] sm:$0xff] }
 0xa05   : > { %13119 = vmatpush1.bf16.msra.mxu0 %v13997_v5  ;;  %v14168_v5 = vcombine.high %v2601_v61, %v2613_v16 }
 0xa06   : > { %13283 = vmatpush1.bf16.msra.mxu1 %v13999_v6  ;;  %13120 = vmatprep.subr.bf16.mxu0 %v14022_v13  ;;  %v2624_v6 = vld [vmem:[%s17046_s16 + $0x1010] sm:$0xff] }
 0xa07   : > { %13284 = vmatprep.subr.bf16.mxu1 %v14024_v14  ;;  %v2636_v13 = vld [vmem:[%s17046_s16 + $0x1070] sm:$0xff]  ;;  %v2625_v14 = vld [vmem:[%s17046_s16 + $0x1018] sm:$0xff] }
 0xa08   : > { %v14190_v22 = vcombine.high %v2624_v6, %v2636_v13  ;;  %v14189_v0 = vcombine.low %v2624_v6, %v2636_v13  ;;  %v14191_v7 = vcombine.low %v2625_v14, %v2637_v19  ;;  %v2781_v6 = vld [vmem:[%s17046_s16 + $0x14f8] sm:$0xff] }
 0xa09   : > { %13121 = vmatpush1.bf16.msra.mxu0 %v14021_v23  ;;  %v14192_v23 = vcombine.high %v2625_v14, %v2637_v19 }
 0xa0a   : > { %13285 = vmatpush1.bf16.msra.mxu1 %v14023_v26  ;;  %13122 = vmatprep.subr.bf16.mxu0 %v14046_v27  ;;  %v2648_v26 = vld [vmem:[%s17046_s16 + $0x10d0] sm:$0xff] }
 0xa0b   : > { %13286 = vmatprep.subr.bf16.mxu1 %v14048_v53  ;;  %v2660_v27 = vld [vmem:[%s17046_s16 + $0x1130] sm:$0xff]  ;;  %v2649_v53 = vld [vmem:[%s17046_s16 + $0x10d8] sm:$0xff] }
 0xa0c   : > { %v14214_v31 = vcombine.high %v2648_v26, %v2660_v27  ;;  %v14213_v39 = vcombine.low %v2648_v26, %v2660_v27  ;;  %v2805_v26 = vld [vmem:[%s17046_s16 + $0x15b8] sm:$0xff] }
 0xa0d   : > { %13123 = vmatpush1.bf16.msra.mxu0 %v14045_v32  ;;  %v14216_v32 = vcombine.high %v2649_v53, %v2661_v28 }
 0xa0e   : > { %13287 = vmatpush1.bf16.msra.mxu1 %v14047_v1  ;;  %13133 = vmatprep.subr.bf16.mxu0 %v14070_v33  ;;  %v2672_v1 = vld [vmem:[%s17046_s16 + $0x1190] sm:$0xff] }
 0xa0f   : > { %13297 = vmatprep.subr.bf16.mxu1 %v14072_v37  ;;  %v2684_v33 = vld [vmem:[%s17046_s16 + $0x11f0] sm:$0xff]  ;;  %v2673_v37 = vld [vmem:[%s17046_s16 + $0x1198] sm:$0xff] }
 0xa10   : > { %13125 = vmatmul.mubr.bf16.vlgmr.msra.gmra.mrb[28].mxu0 %v17191_v4  ;;  %v14238_v41 = vcombine.high %v2672_v1, %v2684_v33  ;;  %v14240_v42 = vcombine.high %v2673_v37, %v2685_v38  ;;  %v14239_v49 = vcombine.low %v2673_v37, %v2685_v38 }
 0xa11   : > { %13289 = vmatmul.mubr.bf16.vlgmr.msra.gmra.mrb[28].mxu1 %v17191_v4  ;;  %13134 = vmatpush1.bf16.msra.mxu0 %v14069_v40  ;;  %v2589_v4 = vld [vmem:[%s17046_s16 + $0xef8] sm:$0xff]  ;;  %v14215_v40 = vcombine.low %v2649_v53, %v2661_v28 }
 0xa12   : > { %13165 = vmatprep.mubr.bf16.mxu0 %v17199_v17  ;;  %13298 = vmatpush1.bf16.msra.mxu1 %v14071_v44  ;;  %v14143_v2 = vcombine.low %v2577_v57, %v2589_v4  ;;  %v2696_v44 = vld [vmem:[%s17046_s16 + $0x1250] sm:$0xff] }
 0xa13   : > { %13329 = vmatprep.mubr.bf16.mxu1 %v17199_v17  ;;  %13135 = vmatprep.subr.bf16.mxu0 %v14094_v45  ;;  %v14144_v17 = vcombine.high %v2577_v57, %v2589_v4  ;;  %v2708_v45 = vld [vmem:[%s17046_s16 + $0x12b0] sm:$0xff]  ;;  %v14263_v57 = vcombine.low %v2697_v46, %v2709_v47 }
 0xa14   : > { %13299 = vmatprep.subr.bf16.mxu1 %v14096_v48  ;;  %v14237_v48 = vcombine.low %v2672_v1, %v2684_v33  ;;  %v14262_v51 = vcombine.high %v2696_v44, %v2708_v45  ;;  %v14261_v56 = vcombine.low %v2696_v44, %v2708_v45  ;;  %v2829_v1 = vld [vmem:[%s17046_s16 + $0x1678] sm:$0xff] }
 0xa15   : > { %13136 = vmatpush1.bf16.msra.mxu0 %v14093_v52  ;;  %v14264_v52 = vcombine.high %v2697_v46, %v2709_v47  ;;  %v2853_v44 = vld [vmem:[%s17046_s16 + $0x1738] sm:$0xff] }
 0xa16   : > { %13300 = vmatpush1.bf16.msra.mxu1 %v14095_v55  ;;  %13137 = vmatprep.subr.bf16.mxu0 %v14118_v34  ;;  %v2720_v55 = vld [vmem:[%s17046_s16 + $0x1310] sm:$0xff] }
 0xa17   : > { %13301 = vmatprep.subr.bf16.mxu1 %v14120_v9  ;;  %v2732_v34 = vld [vmem:[%s17046_s16 + $0x1370] sm:$0xff]  ;;  %v2721_v9 = vld [vmem:[%s17046_s16 + $0x1318] sm:$0xff] }
 0xa18   : > { %v14286_v4 = vcombine.high %v2720_v55, %v2732_v34  ;;  %v14285_v60 = vcombine.low %v2720_v55, %v2732_v34  ;;  %v14287_v61 = vcombine.low %v2721_v9, %v2733_v54  ;;  %v2877_v55 = vld [vmem:[%s17046_s16 + $0x17f8] sm:$0xff] }
 0xa19   : > { %13138 = vmatpush1.bf16.msra.mxu0 %v14117_v58  ;;  %v14288_v58 = vcombine.high %v2721_v9, %v2733_v54 }
 0xa1a   : > { %13302 = vmatpush1.bf16.msra.mxu1 %v14119_v62  ;;  %13139 = vmatprep.subr.bf16.mxu0 %v14142_v43  ;;  %v2744_v62 = vld [vmem:[%s17046_s16 + $0x13d0] sm:$0xff] }
 0xa1b   : > { %13303 = vmatprep.subr.bf16.mxu1 %v14144_v17  ;;  %v2756_v43 = vld [vmem:[%s17046_s16 + $0x1430] sm:$0xff]  ;;  %v2745_v17 = vld [vmem:[%s17046_s16 + $0x13d8] sm:$0xff] }
 0xa1c   : > { %v14310_v16 = vcombine.high %v2744_v62, %v2756_v43  ;;  %v14309_v13 = vcombine.low %v2744_v62, %v2756_v43  ;;  %v14311_v14 = vcombine.low %v2745_v17, %v2757_v59  ;;  %v2901_v62 = vld [vmem:[%s17046_s16 + $0x18b8] sm:$0xff] }
 0xa1d   : > { %13140 = vmatpush1.bf16.msra.mxu0 %v14141_v63  ;;  %v14312_v63 = vcombine.high %v2745_v17, %v2757_v59 }
 0xa1e   : > { %13304 = vmatpush1.bf16.msra.mxu1 %v14143_v2  ;;  %13141 = vmatprep.subr.bf16.mxu0 %v14166_v3  ;;  %v2768_v2 = vld [vmem:[%s17046_s16 + $0x1490] sm:$0xff] }
 0xa1f   : > { %13305 = vmatprep.subr.bf16.mxu1 %v14168_v5  ;;  %v2780_v3 = vld [vmem:[%s17046_s16 + $0x14f0] sm:$0xff]  ;;  %v2769_v5 = vld [vmem:[%s17046_s16 + $0x1498] sm:$0xff] }
 0xa20   : > { %v14334_v19 = vcombine.high %v2768_v2, %v2780_v3  ;;  %v14333_v27 = vcombine.low %v2768_v2, %v2780_v3  ;;  %v14335_v53 = vcombine.low %v2769_v5, %v2781_v6  ;;  %v2913_v2 = vld [vmem:[%s17046_s16 + $0x1918] sm:$0xff] }
 0xa21   : > { %13142 = vmatpush1.bf16.msra.mxu0 %v14165_v20  ;;  %v14336_v20 = vcombine.high %v2769_v5, %v2781_v6  ;;  %v2925_v3 = vld [vmem:[%s17046_s16 + $0x1978] sm:$0xff] }
 0xa22   : > { %13306 = vmatpush1.bf16.msra.mxu1 %v14167_v21  ;;  %13143 = vmatprep.subr.bf16.mxu0 %v14190_v22  ;;  %v2792_v21 = vld [vmem:[%s17046_s16 + $0x1550] sm:$0xff] }
 0xa23   : > { %13307 = vmatprep.subr.bf16.mxu1 %v14192_v23  ;;  %v2804_v22 = vld [vmem:[%s17046_s16 + $0x15b0] sm:$0xff]  ;;  %v2793_v23 = vld [vmem:[%s17046_s16 + $0x1558] sm:$0xff] }
 0xa24   : > { %v14358_v28 = vcombine.high %v2792_v21, %v2804_v22  ;;  %v14357_v33 = vcombine.low %v2792_v21, %v2804_v22  ;;  %v14359_v37 = vcombine.low %v2793_v23, %v2805_v26  ;;  %v2949_v21 = vld [vmem:[%s17046_s16 + $0x1a38] sm:$0xff] }
 0xa25   : > { %13144 = vmatpush1.bf16.msra.mxu0 %v14189_v0  ;;  %v14360_v0 = vcombine.high %v2793_v23, %v2805_v26  ;;  %v14479_v23 = vcombine.low %v2913_v2, %v2925_v3 }
 0xa26   : > { %13308 = vmatpush1.bf16.msra.mxu1 %v14191_v7  ;;  %13145 = vmatprep.subr.bf16.mxu0 %v14214_v31  ;;  %v2816_v7 = vld [vmem:[%s17046_s16 + $0x1610] sm:$0xff] }
 0xa27   : > { %13309 = vmatprep.subr.bf16.mxu1 %v14216_v32  ;;  %v2828_v31 = vld [vmem:[%s17046_s16 + $0x1670] sm:$0xff]  ;;  %v2817_v32 = vld [vmem:[%s17046_s16 + $0x1618] sm:$0xff] }
 0xa28   : > { %v14382_v38 = vcombine.high %v2816_v7, %v2828_v31  ;;  %v14381_v45 = vcombine.low %v2816_v7, %v2828_v31  ;;  %v14383_v46 = vcombine.low %v2817_v32, %v2829_v1 }
 0xa29   : > { %13146 = vmatpush1.bf16.msra.mxu0 %v14213_v39  ;;  %v14384_v39 = vcombine.high %v2817_v32, %v2829_v1  ;;  %v2984_v1 = vld [vmem:[%s17046_s16 + $0x1b50] sm:$0xff] }
 0xa2a   : > { %13310 = vmatpush1.bf16.msra.mxu1 %v14215_v40  ;;  %13147 = vmatprep.subr.bf16.mxu0 %v14238_v41  ;;  %v2840_v40 = vld [vmem:[%s17046_s16 + $0x16d0] sm:$0xff] }
 0xa2b   : > { %13311 = vmatprep.subr.bf16.mxu1 %v14240_v42  ;;  %v2852_v41 = vld [vmem:[%s17046_s16 + $0x1730] sm:$0xff]  ;;  %v2841_v42 = vld [vmem:[%s17046_s16 + $0x16d8] sm:$0xff] }
 0xa2c   : > { %v14406_v47 = vcombine.high %v2840_v40, %v2852_v41  ;;  %v14405_v34 = vcombine.low %v2840_v40, %v2852_v41  ;;  %v14407_v9 = vcombine.low %v2841_v42, %v2853_v44 }
 0xa2d   : > { %13148 = vmatpush1.bf16.msra.mxu0 %v14237_v48  ;;  %v14408_v48 = vcombine.high %v2841_v42, %v2853_v44  ;;  %v3008_v44 = vld [vmem:[%s17046_s16 + $0x1c10] sm:$0xff] }
 0xa2e   : > { %13312 = vmatpush1.bf16.msra.mxu1 %v14239_v49  ;;  %13149 = vmatprep.subr.bf16.mxu0 %v14262_v51  ;;  %v2864_v49 = vld [vmem:[%s17046_s16 + $0x1790] sm:$0xff] }
 0xa2f   : > { %13313 = vmatprep.subr.bf16.mxu1 %v14264_v52  ;;  %v2876_v51 = vld [vmem:[%s17046_s16 + $0x17f0] sm:$0xff]  ;;  %v2865_v52 = vld [vmem:[%s17046_s16 + $0x1798] sm:$0xff] }
 0xa30   : > { %v14430_v54 = vcombine.high %v2864_v49, %v2876_v51  ;;  %v14429_v43 = vcombine.low %v2864_v49, %v2876_v51  ;;  %v14431_v17 = vcombine.low %v2865_v52, %v2877_v55 }
 0xa31   : > { %13150 = vmatpush1.bf16.msra.mxu0 %v14261_v56  ;;  %v14432_v56 = vcombine.high %v2865_v52, %v2877_v55  ;;  %v3032_v55 = vld [vmem:[%s17046_s16 + $0x1cd0] sm:$0xff] }
 0xa32   : > { %13314 = vmatpush1.bf16.msra.mxu1 %v14263_v57  ;;  %13151 = vmatprep.subr.bf16.mxu0 %v14286_v4  ;;  %v2888_v57 = vld [vmem:[%s17046_s16 + $0x1850] sm:$0xff] }
 0xa33   : > { %13315 = vmatprep.subr.bf16.mxu1 %v14288_v58  ;;  %v2900_v4 = vld [vmem:[%s17046_s16 + $0x18b0] sm:$0xff]  ;;  %v2889_v58 = vld [vmem:[%s17046_s16 + $0x1858] sm:$0xff] }
 0xa34   : > { %v14454_v59 = vcombine.high %v2888_v57, %v2900_v4  ;;  %v14455_v5 = vcombine.low %v2889_v58, %v2901_v62 }
 0xa35   : > { %13152 = vmatpush1.bf16.msra.mxu0 %v14285_v60  ;;  %v14456_v60 = vcombine.high %v2889_v58, %v2901_v62  ;;  %v3056_v62 = vld [vmem:[%s17046_s16 + $0x1d90] sm:$0xff] }
 0xa36   : > { %13316 = vmatpush1.bf16.msra.mxu1 %v14287_v61  ;;  %13153 = vmatprep.subr.bf16.mxu0 %v14310_v16  ;;  %v2912_v61 = vld [vmem:[%s17046_s16 + $0x1910] sm:$0xff] }
 0xa37   : > { %13317 = vmatprep.subr.bf16.mxu1 %v14312_v63  ;;  %v2924_v16 = vld [vmem:[%s17046_s16 + $0x1970] sm:$0xff]  ;;  %v14453_v63 = vcombine.low %v2888_v57, %v2900_v4 }
 0xa38   : > { %v14478_v6 = vcombine.high %v2912_v61, %v2924_v16  ;;  %v14477_v22 = vcombine.low %v2912_v61, %v2924_v16 }
 0xa39   : > { %13154 = vmatpush1.bf16.msra.mxu0 %v14309_v13  ;;  %v2936_v13 = vld [vmem:[%s17046_s16 + $0x19d0] sm:$0xff] }
 0xa3a   : > { %13318 = vmatpush1.bf16.msra.mxu1 %v14311_v14  ;;  %13155 = vmatprep.subr.bf16.mxu0 %v14334_v19  ;;  %v2948_v14 = vld [vmem:[%s17046_s16 + $0x1a30] sm:$0xff]  ;;  %v14480_v19 = vcombine.high %v2913_v2, %v2925_v3 }
 0xa3b   : > { %13319 = vmatprep.subr.bf16.mxu1 %v14336_v20  ;;  %v2937_v20 = vld [vmem:[%s17046_s16 + $0x19d8] sm:$0xff]  ;;  %v14502_v26 = vcombine.high %v2936_v13, %v2948_v14  ;;  %v14501_v7 = vcombine.low %v2936_v13, %v2948_v14  ;;  %v3080_v2 = vld [vmem:[%s17046_s16 + $0x1e50] sm:$0xff] }
 0xa3c   : > { %v14503_v31 = vcombine.low %v2937_v20, %v2949_v21  ;;  %v3092_v3 = vld [vmem:[%s17046_s16 + $0x1eb0] sm:$0xff] }
 0xa3d   : > { %13156 = vmatpush1.bf16.msra.mxu0 %v14333_v27  ;;  %v14504_v27 = vcombine.high %v2937_v20, %v2949_v21  ;;  %v3104_v21 = vld [vmem:[%s17046_s16 + $0x1f10] sm:$0xff] }
 0xa3e   : > { %13320 = vmatpush1.bf16.msra.mxu1 %v14335_v53  ;;  %13157 = vmatprep.subr.bf16.mxu0 %v14358_v28  ;;  %v2960_v53 = vld [vmem:[%s17046_s16 + $0x1a90] sm:$0xff] }
 0xa3f   : > { %13321 = vmatprep.subr.bf16.mxu1 %v14360_v0  ;;  %v2972_v28 = vld [vmem:[%s17046_s16 + $0x1af0] sm:$0xff]  ;;  %v2961_v0 = vld [vmem:[%s17046_s16 + $0x1a98] sm:$0xff] }
 0xa40   : > { %v14526_v32 = vcombine.high %v2960_v53, %v2972_v28 }
 0xa41   : > { %13158 = vmatpush1.bf16.msra.mxu0 %v14357_v33  ;;  %v2996_v33 = vld [vmem:[%s17046_s16 + $0x1bb0] sm:$0xff] }
 0xa42   : > { %13322 = vmatpush1.bf16.msra.mxu1 %v14359_v37  ;;  %13159 = vmatprep.subr.bf16.mxu0 %v14382_v38  ;;  %v2985_v37 = vld [vmem:[%s17046_s16 + $0x1b58] sm:$0xff]  ;;  %v14550_v41 = vcombine.high %v2984_v1, %v2996_v33 }
 0xa43   : > { %13323 = vmatprep.subr.bf16.mxu1 %v14384_v39  ;;  %v2997_v38 = vld [vmem:[%s17046_s16 + $0x1bb8] sm:$0xff]  ;;  %v14525_v39 = vcombine.low %v2960_v53, %v2972_v28 }
 0xa44   : > { %v14552_v42 = vcombine.high %v2985_v37, %v2997_v38  ;;  %v14551_v49 = vcombine.low %v2985_v37, %v2997_v38  ;;  %v3152_v38 = vld [vmem:[%s17046_s16 + $0x2090] sm:$0xff] }
 0xa45   : > { %13160 = vmatpush1.bf16.msra.mxu0 %v14381_v45  ;;  %v3020_v45 = vld [vmem:[%s17046_s16 + $0x1c70] sm:$0xff] }
 0xa46   : > { %13324 = vmatpush1.bf16.msra.mxu1 %v14383_v46  ;;  %13161 = vmatprep.subr.bf16.mxu0 %v14406_v47  ;;  %v3009_v46 = vld [vmem:[%s17046_s16 + $0x1c18] sm:$0xff]  ;;  %v14574_v51 = vcombine.high %v3008_v44, %v3020_v45 }
 0xa47   : > { %13325 = vmatprep.subr.bf16.mxu1 %v14408_v48  ;;  %v3021_v47 = vld [vmem:[%s17046_s16 + $0x1c78] sm:$0xff]  ;;  %v14549_v48 = vcombine.low %v2984_v1, %v2996_v33 }
 0xa48   : > { %v14576_v52 = vcombine.high %v3009_v46, %v3021_v47  ;;  %v14575_v57 = vcombine.low %v3009_v46, %v3021_v47  ;;  %v3176_v47 = vld [vmem:[%s17046_s16 + $0x2150] sm:$0xff] }
 0xa49   : > { %13162 = vmatpush1.bf16.msra.mxu0 %v14405_v34  ;;  %v3044_v34 = vld [vmem:[%s17046_s16 + $0x1d30] sm:$0xff] }
 0xa4a   : > { %13326 = vmatpush1.bf16.msra.mxu1 %v14407_v9  ;;  %13163 = vmatprep.subr.bf16.mxu0 %v14430_v54  ;;  %v3033_v9 = vld [vmem:[%s17046_s16 + $0x1cd8] sm:$0xff]  ;;  %v14598_v4 = vcombine.high %v3032_v55, %v3044_v34 }
 0xa4b   : > { %13327 = vmatprep.subr.bf16.mxu1 %v14432_v56  ;;  %v3045_v54 = vld [vmem:[%s17046_s16 + $0x1d38] sm:$0xff]  ;;  %v14573_v56 = vcombine.low %v3008_v44, %v3020_v45 }
 0xa4c   : > { %v14600_v58 = vcombine.high %v3033_v9, %v3045_v54  ;;  %v14599_v61 = vcombine.low %v3033_v9, %v3045_v54  ;;  %v3200_v54 = vld [vmem:[%s17046_s16 + $0x2210] sm:$0xff] }
 0xa4d   : > { %13164 = vmatpush1.bf16.msra.mxu0 %v14429_v43  ;;  %v3068_v43 = vld [vmem:[%s17046_s16 + $0x1df0] sm:$0xff] }
 0xa4e   : > { %13328 = vmatpush1.bf16.msra.mxu1 %v14431_v17  ;;  %13174 = vmatprep.subr.bf16.mxu0 %v14454_v59  ;;  %v3057_v17 = vld [vmem:[%s17046_s16 + $0x1d98] sm:$0xff]  ;;  %v14622_v16 = vcombine.high %v3056_v62, %v3068_v43  ;;  %v14621_v13 = vcombine.low %v3056_v62, %v3068_v43 }
 0xa4f   : > { %13338 = vmatprep.subr.bf16.mxu1 %v14456_v60  ;;  %v3069_v59 = vld [vmem:[%s17046_s16 + $0x1df8] sm:$0xff]  ;;  %v14597_v60 = vcombine.low %v3032_v55, %v3044_v34 }
 0xa50   : > { %13166 = vmatmul.mubr.bf16.vlgmr.msra.gmra.mrb[28].mxu0 %v17268_v35  ;;  %v14623_v14 = vcombine.low %v3057_v17, %v3069_v59 }
 0xa51   : > { %13330 = vmatmul.mubr.bf16.vlgmr.msra.gmra.mrb[28].mxu1 %v17268_v35  ;;  %13175 = vmatpush1.bf16.msra.mxu0 %v14453_v63  ;;  %v2973_v35 = vld [vmem:[%s17046_s16 + $0x1af8] sm:$0xff]  ;;  %v14624_v63 = vcombine.high %v3057_v17, %v3069_v59  ;;  %v3224_v59 = vld [vmem:[%s17046_s16 + $0x22d0] sm:$0xff] }
 0xa52   : > { %13206 = vmatprep.mubr.bf16.mxu0 %v17353_v12  ;;  %13339 = vmatpush1.bf16.msra.mxu1 %v14455_v5  ;;  %v14527_v40 = vcombine.low %v2961_v0, %v2973_v35  ;;  %v3081_v5 = vld [vmem:[%s17046_s16 + $0x1e58] sm:$0xff] }
 0xa53   : > { %13370 = vmatprep.mubr.bf16.mxu1 %v17353_v12  ;;  %13176 = vmatprep.subr.bf16.mxu0 %v14478_v6  ;;  %v14528_v12 = vcombine.high %v2961_v0, %v2973_v35  ;;  %v3093_v6 = vld [vmem:[%s17046_s16 + $0x1eb8] sm:$0xff]  ;;  %v3128_v35 = vld [vmem:[%s17046_s16 + $0x1fd0] sm:$0xff] }
 0xa54   : > { %13340 = vmatprep.subr.bf16.mxu1 %v14480_v19  ;;  %v14646_v19 = vcombine.high %v3080_v2, %v3092_v3  ;;  %v14648_v20 = vcombine.high %v3081_v5, %v3093_v6  ;;  %v14647_v53 = vcombine.low %v3081_v5, %v3093_v6  ;;  %v3248_v6 = vld [vmem:[%s17046_s16 + $0x2390] sm:$0xff] }
 0xa55   : > { %13177 = vmatpush1.bf16.msra.mxu0 %v14477_v22  ;;  %v3116_v22 = vld [vmem:[%s17046_s16 + $0x1f70] sm:$0xff] }
 0xa56   : > { %13341 = vmatpush1.bf16.msra.mxu1 %v14479_v23  ;;  %13178 = vmatprep.subr.bf16.mxu0 %v14502_v26  ;;  %v3105_v23 = vld [vmem:[%s17046_s16 + $0x1f18] sm:$0xff]  ;;  %v14670_v28 = vcombine.high %v3104_v21, %v3116_v22 }
 0xa57   : > { %13342 = vmatprep.subr.bf16.mxu1 %v14504_v27  ;;  %v3117_v26 = vld [vmem:[%s17046_s16 + $0x1f78] sm:$0xff]  ;;  %v14645_v27 = vcombine.low %v3080_v2, %v3092_v3 }
 0xa58   : > { %v14672_v0 = vcombine.high %v3105_v23, %v3117_v26  ;;  %v14671_v1 = vcombine.low %v3105_v23, %v3117_v26  ;;  %v3272_v26 = vld [vmem:[%s17046_s16 + $0x2450] sm:$0xff] }
 0xa59   : > { %13179 = vmatpush1.bf16.msra.mxu0 %v14501_v7  ;;  %v3140_v7 = vld [vmem:[%s17046_s16 + $0x2030] sm:$0xff] }
 0xa5a   : > { %13343 = vmatpush1.bf16.msra.mxu1 %v14503_v31  ;;  %13180 = vmatprep.subr.bf16.mxu0 %v14526_v32  ;;  %v3129_v31 = vld [vmem:[%s17046_s16 + $0x1fd8] sm:$0xff]  ;;  %v14694_v33 = vcombine.high %v3128_v35, %v3140_v7 }
 0xa5b   : > { %13344 = vmatprep.subr.bf16.mxu1 %v14528_v12  ;;  %v3141_v32 = vld [vmem:[%s17046_s16 + $0x2038] sm:$0xff]  ;;  %v14669_v12 = vcombine.low %v3104_v21, %v3116_v22 }
 0xa5c   : > { %v14696_v37 = vcombine.high %v3129_v31, %v3141_v32  ;;  %v14695_v44 = vcombine.low %v3129_v31, %v3141_v32  ;;  %v3296_v32 = vld [vmem:[%s17046_s16 + $0x2510] sm:$0xff] }
 0xa5d   : > { %13181 = vmatpush1.bf16.msra.mxu0 %v14525_v39  ;;  %v3164_v39 = vld [vmem:[%s17046_s16 + $0x20f0] sm:$0xff] }
 0xa5e   : > { %13345 = vmatpush1.bf16.msra.mxu1 %v14527_v40  ;;  %13182 = vmatprep.subr.bf16.mxu0 %v14550_v41  ;;  %v3153_v40 = vld [vmem:[%s17046_s16 + $0x2098] sm:$0xff]  ;;  %v14718_v45 = vcombine.high %v3152_v38, %v3164_v39 }
 0xa5f   : > { %13346 = vmatprep.subr.bf16.mxu1 %v14552_v42  ;;  %v3165_v41 = vld [vmem:[%s17046_s16 + $0x20f8] sm:$0xff]  ;;  %v14693_v42 = vcombine.low %v3128_v35, %v3140_v7 }
 0xa60   : > { %v14720_v46 = vcombine.high %v3153_v40, %v3165_v41  ;;  %v14719_v55 = vcombine.low %v3153_v40, %v3165_v41  ;;  %v3320_v40 = vld [vmem:[%s17046_s16 + $0x25d0] sm:$0xff] }
 0xa61   : > { %13183 = vmatpush1.bf16.msra.mxu0 %v14549_v48  ;;  %v3188_v48 = vld [vmem:[%s17046_s16 + $0x21b0] sm:$0xff] }
 0xa62   : > { %13347 = vmatpush1.bf16.msra.mxu1 %v14551_v49  ;;  %13184 = vmatprep.subr.bf16.mxu0 %v14574_v51  ;;  %v3177_v49 = vld [vmem:[%s17046_s16 + $0x2158] sm:$0xff]  ;;  %v14742_v34 = vcombine.high %v3176_v47, %v3188_v48  ;;  %v3332_v41 = vld [vmem:[%s17046_s16 + $0x2630] sm:$0xff] }
 0xa63   : > { %13348 = vmatprep.subr.bf16.mxu1 %v14576_v52  ;;  %v3189_v51 = vld [vmem:[%s17046_s16 + $0x21b8] sm:$0xff]  ;;  %v14717_v52 = vcombine.low %v3152_v38, %v3164_v39 }
 0xa64   : > { %v14744_v9 = vcombine.high %v3177_v49, %v3189_v51  ;;  %v14743_v62 = vcombine.low %v3177_v49, %v3189_v51  ;;  %v3344_v51 = vld [vmem:[%s17046_s16 + $0x2690] sm:$0xff] }
 0xa65   : > { %13185 = vmatpush1.bf16.msra.mxu0 %v14573_v56  ;;  %v3212_v56 = vld [vmem:[%s17046_s16 + $0x2270] sm:$0xff] }
 0xa66   : > { %13349 = vmatpush1.bf16.msra.mxu1 %v14575_v57  ;;  %13186 = vmatprep.subr.bf16.mxu0 %v14598_v4  ;;  %v3201_v57 = vld [vmem:[%s17046_s16 + $0x2218] sm:$0xff]  ;;  %v14766_v43 = vcombine.high %v3200_v54, %v3212_v56 }
 0xa67   : > { %13350 = vmatprep.subr.bf16.mxu1 %v14600_v58  ;;  %v3213_v4 = vld [vmem:[%s17046_s16 + $0x2278] sm:$0xff]  ;;  %v14741_v58 = vcombine.low %v3176_v47, %v3188_v48  ;;  %v14886_v48 = vcombine.high %v3320_v40, %v3332_v41 }
 0xa68   : > { %v14768_v17 = vcombine.high %v3201_v57, %v3213_v4  ;;  %v14767_v2 = vcombine.low %v3201_v57, %v3213_v4  ;;  %v3380_v57 = vld [vmem:[%s17046_s16 + $0x27b0] sm:$0xff]  ;;  %v3369_v4 = vld [vmem:[%s17046_s16 + $0x2758] sm:$0xff] }
 0xa69   : > { %13187 = vmatpush1.bf16.msra.mxu0 %v14597_v60  ;;  %v3236_v60 = vld [vmem:[%s17046_s16 + $0x2330] sm:$0xff] }
 0xa6a   : > { %13351 = vmatpush1.bf16.msra.mxu1 %v14599_v61  ;;  %13188 = vmatprep.subr.bf16.mxu0 %v14622_v16  ;;  %v3225_v61 = vld [vmem:[%s17046_s16 + $0x22d8] sm:$0xff]  ;;  %v14790_v3 = vcombine.high %v3224_v59, %v3236_v60 }
 0xa6b   : > { %13352 = vmatprep.subr.bf16.mxu1 %v14624_v63  ;;  %v3237_v16 = vld [vmem:[%s17046_s16 + $0x2338] sm:$0xff]  ;;  %v14765_v63 = vcombine.low %v3200_v54, %v3212_v56  ;;  %v3368_v56 = vld [vmem:[%s17046_s16 + $0x2750] sm:$0xff] }
 0xa6c   : > { %v14792_v5 = vcombine.high %v3225_v61, %v3237_v16  ;;  %v14791_v21 = vcombine.low %v3225_v61, %v3237_v16  ;;  %v3404_v61 = vld [vmem:[%s17046_s16 + $0x2870] sm:$0xff]  ;;  %v3393_v16 = vld [vmem:[%s17046_s16 + $0x2818] sm:$0xff] }
 0xa6d   : > { %13189 = vmatpush1.bf16.msra.mxu0 %v14621_v13  ;;  %v3260_v13 = vld [vmem:[%s17046_s16 + $0x23f0] sm:$0xff] }
 0xa6e   : > { %13353 = vmatpush1.bf16.msra.mxu1 %v14623_v14  ;;  %13190 = vmatprep.subr.bf16.mxu0 %v14646_v19  ;;  %v3249_v14 = vld [vmem:[%s17046_s16 + $0x2398] sm:$0xff]  ;;  %v14814_v22 = vcombine.high %v3248_v6, %v3260_v13 }
 0xa6f   : > { %13354 = vmatprep.subr.bf16.mxu1 %v14648_v20  ;;  %v3261_v19 = vld [vmem:[%s17046_s16 + $0x23f8] sm:$0xff]  ;;  %v14789_v20 = vcombine.low %v3224_v59, %v3236_v60  ;;  %v3392_v60 = vld [vmem:[%s17046_s16 + $0x2810] sm:$0xff] }
 0xa70   : > { %v14816_v23 = vcombine.high %v3249_v14, %v3261_v19  ;;  %v14815_v35 = vcombine.low %v3249_v14, %v3261_v19  ;;  %v3416_v14 = vld [vmem:[%s17046_s16 + $0x28d0] sm:$0xff] }
 0xa71   : > { %13191 = vmatpush1.bf16.msra.mxu0 %v14645_v27  ;;  %v3284_v27 = vld [vmem:[%s17046_s16 + $0x24b0] sm:$0xff] }
 0xa72   : > { %13355 = vmatpush1.bf16.msra.mxu1 %v14647_v53  ;;  %13192 = vmatprep.subr.bf16.mxu0 %v14670_v28  ;;  %v3273_v53 = vld [vmem:[%s17046_s16 + $0x2458] sm:$0xff]  ;;  %v14838_v7 = vcombine.high %v3272_v26, %v3284_v27  ;;  %v3428_v19 = vld [vmem:[%s17046_s16 + $0x2930] sm:$0xff] }
 0xa73   : > { %13356 = vmatprep.subr.bf16.mxu1 %v14672_v0  ;;  %v3285_v28 = vld [vmem:[%s17046_s16 + $0x24b8] sm:$0xff]  ;;  %v14813_v0 = vcombine.low %v3248_v6, %v3260_v13  ;;  %v14958_v6 = vcombine.high %v3392_v60, %v3404_v61 }
 0xa74   : > { %v14840_v31 = vcombine.high %v3273_v53, %v3285_v28  ;;  %v14839_v38 = vcombine.low %v3273_v53, %v3285_v28 }
 0xa75   : > { %13193 = vmatpush1.bf16.msra.mxu0 %v14669_v12  ;;  %v3308_v12 = vld [vmem:[%s17046_s16 + $0x2570] sm:$0xff] }
 0xa76   : > { %13357 = vmatpush1.bf16.msra.mxu1 %v14671_v1  ;;  %13194 = vmatprep.subr.bf16.mxu0 %v14694_v33  ;;  %v14837_v1 = vcombine.low %v3272_v26, %v3284_v27  ;;  %v3297_v33 = vld [vmem:[%s17046_s16 + $0x2518] sm:$0xff]  ;;  %v14862_v39 = vcombine.high %v3296_v32, %v3308_v12  ;;  %v14957_v27 = vcombine.low %v3392_v60, %v3404_v61 }
 0xa77   : > { %13358 = vmatprep.subr.bf16.mxu1 %v14696_v37  ;;  %v3309_v37 = vld [vmem:[%s17046_s16 + $0x2578] sm:$0xff] }
 0xa78   : > { %v14863_v47 = vcombine.low %v3297_v33, %v3309_v37  ;;  %v3513_v60 = vld [vmem:[%s17046_s16 + $0x2bd8] sm:$0xff] }
 0xa79   : > { %13195 = vmatpush1.bf16.msra.mxu0 %v14693_v42  ;;  %v14864_v42 = vcombine.high %v3297_v33, %v3309_v37  ;;  %v3525_v61 = vld [vmem:[%s17046_s16 + $0x2c38] sm:$0xff] }
 0xa7a   : > { %13359 = vmatpush1.bf16.msra.mxu1 %v14695_v44  ;;  %13196 = vmatprep.subr.bf16.mxu0 %v14718_v45  ;;  %v3321_v44 = vld [vmem:[%s17046_s16 + $0x25d8] sm:$0xff] }
 0xa7b   : > { %13360 = vmatprep.subr.bf16.mxu1 %v14720_v46  ;;  %v3333_v45 = vld [vmem:[%s17046_s16 + $0x2638] sm:$0xff]  ;;  %v14861_v46 = vcombine.low %v3296_v32, %v3308_v12 }
 0xa7c   : > { %v14888_v49 = vcombine.high %v3321_v44, %v3333_v45 }
 0xa7d   : > { %13197 = vmatpush1.bf16.msra.mxu0 %v14717_v52  ;;  %v3356_v52 = vld [vmem:[%s17046_s16 + $0x26f0] sm:$0xff] }
 0xa7e   : > { %13361 = vmatpush1.bf16.msra.mxu1 %v14719_v55  ;;  %13198 = vmatprep.subr.bf16.mxu0 %v14742_v34  ;;  %v3345_v55 = vld [vmem:[%s17046_s16 + $0x2698] sm:$0xff]  ;;  %v14885_v34 = vcombine.low %v3320_v40, %v3332_v41  ;;  %v14910_v54 = vcombine.high %v3344_v51, %v3356_v52 }
 0xa7f   : > { %13362 = vmatprep.subr.bf16.mxu1 %v14744_v9  ;;  %v14887_v9 = vcombine.low %v3321_v44, %v3333_v45 }
 0xa81   : > { %13199 = vmatpush1.bf16.msra.mxu0 %v14741_v58  ;;  %v3381_v58 = vld [vmem:[%s17046_s16 + $0x27b8] sm:$0xff] }
 0xa82   : > { %13363 = vmatpush1.bf16.msra.mxu1 %v14743_v62  ;;  %13200 = vmatprep.subr.bf16.mxu0 %v14766_v43  ;;  %v14909_v62 = vcombine.low %v3344_v51, %v3356_v52  ;;  %v14936_v59 = vcombine.high %v3369_v4, %v3381_v58  ;;  %v3465_v51 = vld [vmem:[%s17046_s16 + $0x2a58] sm:$0xff] }
 0xa83   : > { %13364 = vmatprep.subr.bf16.mxu1 %v14768_v17  ;;  %v14934_v17 = vcombine.high %v3368_v56, %v3380_v57  ;;  %v3477_v52 = vld [vmem:[%s17046_s16 + $0x2ab8] sm:$0xff] }
 0xa85   : > { %13201 = vmatpush1.bf16.msra.mxu0 %v14765_v63  ;;  %v3405_v63 = vld [vmem:[%s17046_s16 + $0x2878] sm:$0xff] }
 0xa86   : > { %13365 = vmatpush1.bf16.msra.mxu1 %v14767_v2  ;;  %13202 = vmatprep.subr.bf16.mxu0 %v14790_v3  ;;  %v14933_v2 = vcombine.low %v3368_v56, %v3380_v57  ;;  %v18793_v3 = vld [vmem:[%s17661_s15 + $0x10] sm:$0xff]  ;;  %v14960_v13 = vcombine.high %v3393_v16, %v3405_v63  ;;  %v14959_v28 = vcombine.low %v3393_v16, %v3405_v63  ;;  %v3489_v56 = vld [vmem:[%s17046_s16 + $0x2b18] sm:$0xff] }
 0xa87   : > { %13366 = vmatprep.subr.bf16.mxu1 %v14792_v5  ;;  %v14935_v5 = vcombine.low %v3369_v4, %v3381_v58  ;;  %v3723_v26 = vrot.slane %v18793_v3, %v17064_v10  ;;  %v3731_v53 = vrot.slane %v18793_v3, %v17067_v11  ;;  %v3453_v10 = vld [vmem:[%s17046_s16 + $0x29f8] sm:$0xff]  ;;  %v15031_v58 = vcombine.low %v3465_v51, %v3477_v52 }
 0xa88   : > { %v3501_v57 = vld [vmem:[%s17046_s16 + $0x2b78] sm:$0xff] }
 0xa89   : > { %13203 = vmatpush1.bf16.msra.mxu0 %v14789_v20  ;;  %v3719_v20 = vrot.slane %v18793_v3, %v17059_v8  ;;  %v14982_v8 = vcombine.high %v3416_v14, %v3428_v19  ;;  %v15055_v63 = vcombine.low %v3489_v56, %v3501_v57 }
 0xa8a   : > { %13367 = vmatpush1.bf16.msra.mxu1 %v14791_v21  ;;  %13204 = vmatprep.subr.bf16.mxu0 %v14814_v22  ;;  %v3417_v21 = vld [vmem:[%s17046_s16 + $0x28d8] sm:$0xff] }
 0xa8b   : > { %13368 = vmatprep.subr.bf16.mxu1 %v14816_v23  ;;  %v3429_v22 = vld [vmem:[%s17046_s16 + $0x2938] sm:$0xff]  ;;  %v3727_v23 = vrot.slane %v18793_v3, %v17090_v25 }
 0xa8c   : > { %v14983_v44 = vcombine.low %v3417_v21, %v3429_v22 }
 0xa8d   : > { %13205 = vmatpush1.bf16.msra.mxu0 %v14813_v0 }
 0xa8e   : > { %13369 = vmatpush1.bf16.msra.mxu1 %v14815_v35  ;;  %13215 = vmatprep.subr.bf16.mxu0 %v14838_v7  ;;  %v14984_v35 = vcombine.high %v3417_v21, %v3429_v22  ;;  %v3440_v7 = vld [vmem:[%s17046_s16 + $0x2990] sm:$0xff]  ;;  %v15079_v21 = vcombine.low %v3513_v60, %v3525_v61 }
 0xa8f   : > { %13379 = vmatprep.subr.bf16.mxu1 %v14840_v31  ;;  %v3452_v31 = vld [vmem:[%s17046_s16 + $0x29f0] sm:$0xff] }
 0xa90   : > { %13207 = vmatmul.mubr.bf16.vlgmr.msra.gmra.mrb[28].mxu0 %v17355_v15  ;;  %v15006_v45 = vcombine.high %v3440_v7, %v3452_v31 }
 0xa91   : > { %13371 = vmatmul.mubr.bf16.vlgmr.msra.gmra.mrb[28].mxu1 %v17355_v15  ;;  %13216 = vmatpush1.bf16.msra.mxu0 %v14837_v1  ;;  %v3357_v15 = vld [vmem:[%s17046_s16 + $0x26f8] sm:$0xff] }
 0xa92   : > { %13247 = vmatprep.mubr.bf16.mxu0 %v17363_v24  ;;  %13380 = vmatpush1.bf16.msra.mxu1 %v14839_v38  ;;  %v14911_v43 = vcombine.low %v3345_v55, %v3357_v15  ;;  %v3441_v1 = vld [vmem:[%s17046_s16 + $0x2998] sm:$0xff] }
 0xa93   : > { %13411 = vmatprep.mubr.bf16.mxu1 %v17363_v24  ;;  %13217 = vmatprep.subr.bf16.mxu0 %v14862_v39  ;;  %v14912_v24 = vcombine.high %v3345_v55, %v3357_v15  ;;  %v14981_v39 = vcombine.low %v3416_v14, %v3428_v19  ;;  %v15005_v55 = vcombine.low %v3440_v7, %v3452_v31  ;;  %v3537_v14 = vld [vmem:[%s17046_s16 + $0x2c98] sm:$0xff]  ;;  %v3584_v31 = vld [vmem:[%s17046_s16 + $0x2e10] sm:$0xff] }
 0xa94   : > { %13381 = vmatprep.subr.bf16.mxu1 %v14864_v42  ;;  %v15007_v15 = vcombine.low %v3441_v1, %v3453_v10  ;;  %v3549_v19 = vld [vmem:[%s17046_s16 + $0x2cf8] sm:$0xff] }
 0xa95   : > { %13218 = vmatpush1.bf16.msra.mxu0 %v14861_v46 }
 0xa96   : > { %13382 = vmatpush1.bf16.msra.mxu1 %v14863_v47  ;;  %13219 = vmatprep.subr.bf16.mxu0 %v14886_v48  ;;  %v15008_v47 = vcombine.high %v3441_v1, %v3453_v10  ;;  %v3464_v48 = vld [vmem:[%s17046_s16 + $0x2a50] sm:$0xff] }
 0xa97   : > { %13383 = vmatprep.subr.bf16.mxu1 %v14888_v49  ;;  %v3476_v49 = vld [vmem:[%s17046_s16 + $0x2ab0] sm:$0xff] }
 0xa98   : > { %v15029_v4 = vcombine.low %v3464_v48, %v3476_v49 }
 0xa99   : > { %13220 = vmatpush1.bf16.msra.mxu0 %v14885_v34  ;;  %v15030_v34 = vcombine.high %v3464_v48, %v3476_v49  ;;  %v3633_v48 = vld [vmem:[%s17046_s16 + $0x2f98] sm:$0xff] }
 0xa9a   : > { %13384 = vmatpush1.bf16.msra.mxu1 %v14887_v9  ;;  %13221 = vmatprep.subr.bf16.mxu0 %v14910_v54  ;;  %v15032_v9 = vcombine.high %v3465_v51, %v3477_v52  ;;  %v3488_v54 = vld [vmem:[%s17046_s16 + $0x2b10] sm:$0xff]  ;;  %v3645_v49 = vld [vmem:[%s17046_s16 + $0x2ff8] sm:$0xff] }
 0xa9b   : > { %13385 = vmatprep.subr.bf16.mxu1 %v14912_v24  ;;  %v3500_v24 = vld [vmem:[%s17046_s16 + $0x2b70] sm:$0xff] }
 0xa9c   : > { %v15053_v16 = vcombine.low %v3488_v54, %v3500_v24 }
 0xa9d   : > { %13222 = vmatpush1.bf16.msra.mxu0 %v14909_v62  ;;  %v15054_v62 = vcombine.high %v3488_v54, %v3500_v24  ;;  %v3735_v54 = vrot.slane %v18793_v3, %v17325_v29  ;;  %v3743_v24 = vrot.slane %v18793_v3, %v17414_v18 }
 0xa9e   : > { %13386 = vmatpush1.bf16.msra.mxu1 %v14911_v43  ;;  %13223 = vmatprep.subr.bf16.mxu0 %v14934_v17  ;;  %v15056_v43 = vcombine.high %v3489_v56, %v3501_v57  ;;  %v3512_v17 = vld [vmem:[%s17046_s16 + $0x2bd0] sm:$0xff]  ;;  %v3739_v56 = vrot.slane %v18793_v3, %v17328_v30  ;;  %v3747_v57 = vrot.slane %v18793_v3, %v17331_v36 }
 0xa9f   : > { %13387 = vmatprep.subr.bf16.mxu1 %v14936_v59  ;;  %v3524_v59 = vld [vmem:[%s17046_s16 + $0x2c30] sm:$0xff] }
 0xaa1   : > { %13224 = vmatpush1.bf16.msra.mxu0 %v14933_v2  ;;  %v15078_v2 = vcombine.high %v3512_v17, %v3524_v59 }
 0xaa2   : > { %13388 = vmatpush1.bf16.msra.mxu1 %v14935_v5  ;;  %13225 = vmatprep.subr.bf16.mxu0 %v14958_v6  ;;  %v15080_v5 = vcombine.high %v3513_v60, %v3525_v61  ;;  %v3536_v6 = vld [vmem:[%s17046_s16 + $0x2c90] sm:$0xff] }
 0xaa3   : > { %v12921_v0 = vpop.f32.mrb[24].mxu0  ;;  %13389 = vmatprep.subr.bf16.mxu1 %v14960_v13  ;;  %v3548_v13 = vld [vmem:[%s17046_s16 + $0x2cf0] sm:$0xff] }
 0xaa4   : > { %v15868_v25 = vadd.f32 %v12921_v0, %v3719_v20  ;;  %v13085_v32 = vpop.f32.mrb[24].mxu1  ;;  %v12923_v12 = vpop.f32.mrb[25].mxu0  ;;  %v15077_v20 = vcombine.low %v3512_v17, %v3524_v59  ;;  %v15102_v22 = vcombine.high %v3536_v6, %v3548_v13  ;;  %v15103_v0 = vcombine.low %v3537_v14, %v3549_v19 }
 0xaa5   : > { %v15870_v33 = vadd.f32 %v13085_v32, %v3727_v23  ;;  %v15869_v37 = vadd.f32 %v12923_v12, %v3723_v26  ;;  %v13087_v38 = vpop.f32.mrb[25].mxu1  ;;  %v12925_v11 = vpop.f32.mrb[26].mxu0  ;;  %13226 = vmatpush1.bf16.msra.mxu0 %v14957_v27  ;;  %v15104_v23 = vcombine.high %v3537_v14, %v3549_v19  ;;  %v3560_v26 = vld [vmem:[%s17046_s16 + $0x2d50] sm:$0xff]  ;;  %v3585_v32 = vld [vmem:[%s17046_s16 + $0x2e18] sm:$0xff] }
 0xaa6   : > { %13436 = vst [vmem:[%s17679_s27 + $0x80] sm:$0xff] %v15868_v25  ;;  %v15871_v40 = vadd.f32 %v13087_v38, %v3731_v53  ;;  %v13089_v41 = vpop.f32.mrb[26].mxu1  ;;  %13390 = vmatpush1.bf16.msra.mxu1 %v14959_v28  ;;  %v12926_v42 = vpop.f32.mrb[27].mxu0  ;;  %13227 = vmatprep.subr.bf16.mxu0 %v14982_v8  ;;  %v3572_v27 = vld [vmem:[%s17046_s16 + $0x2db0] sm:$0xff]  ;;  %v3561_v53 = vld [vmem:[%s17046_s16 + $0x2d58] sm:$0xff]  ;;  %v15101_v8 = vcombine.low %v3536_v6, %v3548_v13 }
 0xaa7   : > { %13438 = vst [vmem:[%s17679_s27 + $0x90] sm:$0xff] %v15870_v33  ;;  %13437 = vst [vmem:[%s17679_s27 + $0x88] sm:$0xff] %v15869_v37  ;;  %v13090_v46 = vpop.f32.mrb[27].mxu1  ;;  %13391 = vmatprep.subr.bf16.mxu1 %v14984_v35  ;;  %v3573_v28 = vld [vmem:[%s17046_s16 + $0x2db8] sm:$0xff]  ;;  %v15126_v35 = vcombine.high %v3560_v26, %v3572_v27  ;;  %v3596_v25 = vld [vmem:[%s17046_s16 + $0x2e70] sm:$0xff]  ;;  %v15125_v1 = vcombine.low %v3560_v26, %v3572_v27 }
 0xaa8   : > { %13439 = vst [vmem:[%s17679_s27 + $0x98] sm:$0xff] %v15871_v40  ;;  %v15128_v7 = vcombine.high %v3561_v53, %v3573_v28  ;;  %v3597_v12 = vld [vmem:[%s17046_s16 + $0x2e78] sm:$0xff]  ;;  %v15127_v10 = vcombine.low %v3561_v53, %v3573_v28  ;;  %v15150_v33 = vcombine.high %v3584_v31, %v3596_v25  ;;  %v3608_v38 = vld [vmem:[%s17046_s16 + $0x2ed0] sm:$0xff]  ;;  %v15149_v41 = vcombine.low %v3584_v31, %v3596_v25 }
 0xaa9   : > { %13228 = vmatpush1.bf16.msra.mxu0 %v14981_v39  ;;  %v15152_v37 = vcombine.high %v3585_v32, %v3597_v12  ;;  %v3620_v11 = vld [vmem:[%s17046_s16 + $0x2f30] sm:$0xff]  ;;  %v3609_v39 = vld [vmem:[%s17046_s16 + $0x2ed8] sm:$0xff]  ;;  %v15151_v42 = vcombine.low %v3585_v32, %v3597_v12 }
 0xaaa   : > { %13392 = vmatpush1.bf16.msra.mxu1 %v14983_v44  ;;  %13229 = vmatprep.subr.bf16.mxu0 %v15006_v45  ;;  %v3621_v40 = vld [vmem:[%s17046_s16 + $0x2f38] sm:$0xff]  ;;  %v15174_v44 = vcombine.high %v3608_v38, %v3620_v11  ;;  %v3632_v46 = vld [vmem:[%s17046_s16 + $0x2f90] sm:$0xff]  ;;  %v15173_v51 = vcombine.low %v3608_v38, %v3620_v11 }
 0xaab   : > { %13393 = vmatprep.subr.bf16.mxu1 %v15008_v47  ;;  %v15176_v45 = vcombine.high %v3609_v39, %v3621_v40  ;;  %v3644_v47 = vld [vmem:[%s17046_s16 + $0x2ff0] sm:$0xff]  ;;  %v15175_v52 = vcombine.low %v3609_v39, %v3621_v40 }
 0xaad   : > { %13230 = vmatpush1.bf16.msra.mxu0 %v15005_v55  ;;  %v15198_v55 = vcombine.high %v3632_v46, %v3644_v47 }
 0xaae   : > { %13394 = vmatpush1.bf16.msra.mxu1 %v15007_v15  ;;  %13231 = vmatprep.subr.bf16.mxu0 %v15030_v34  ;;  %v15200_v15 = vcombine.high %v3633_v48, %v3645_v49  ;;  %v15197_v34 = vcombine.low %v3632_v46, %v3644_v47 }
 0xaaf   : > { %13395 = vmatprep.subr.bf16.mxu1 %v15032_v9  ;;  %v15199_v9 = vcombine.low %v3633_v48, %v3645_v49 }
 0xab1   : > { %13232 = vmatpush1.bf16.msra.mxu0 %v15029_v4 }
 0xab2   : > { %13396 = vmatpush1.bf16.msra.mxu1 %v15031_v58  ;;  %13233 = vmatprep.subr.bf16.mxu0 %v15054_v62 }
 0xab3   : > { %13397 = vmatprep.subr.bf16.mxu1 %v15056_v43 }
 0xab5   : > { %13234 = vmatpush1.bf16.msra.mxu0 %v15053_v16 }
 0xab6   : > { %13398 = vmatpush1.bf16.msra.mxu1 %v15055_v63  ;;  %13235 = vmatprep.subr.bf16.mxu0 %v15078_v2 }
 0xab7   : > { %13399 = vmatprep.subr.bf16.mxu1 %v15080_v5 }
 0xab9   : > { %13236 = vmatpush1.bf16.msra.mxu0 %v15077_v20 }
 0xaba   : > { %13400 = vmatpush1.bf16.msra.mxu1 %v15079_v21  ;;  %13237 = vmatprep.subr.bf16.mxu0 %v15102_v22 }
 0xabb   : > { %13401 = vmatprep.subr.bf16.mxu1 %v15104_v23 }
 0xabd   : > { %13238 = vmatpush1.bf16.msra.mxu0 %v15101_v8 }
 0xabe   : > { %13402 = vmatpush1.bf16.msra.mxu1 %v15103_v0  ;;  %13239 = vmatprep.subr.bf16.mxu0 %v15126_v35 }
 0xabf   : > { %13403 = vmatprep.subr.bf16.mxu1 %v15128_v7 }
 0xac1   : > { %13240 = vmatpush1.bf16.msra.mxu0 %v15125_v1 }
 0xac2   : > { %13404 = vmatpush1.bf16.msra.mxu1 %v15127_v10  ;;  %13241 = vmatprep.subr.bf16.mxu0 %v15150_v33 }
 0xac3   : > { %13405 = vmatprep.subr.bf16.mxu1 %v15152_v37 }
 0xac5   : > { %13242 = vmatpush1.bf16.msra.mxu0 %v15149_v41 }
 0xac6   : > { %13406 = vmatpush1.bf16.msra.mxu1 %v15151_v42  ;;  %13243 = vmatprep.subr.bf16.mxu0 %v15174_v44 }
 0xac7   : > { %13407 = vmatprep.subr.bf16.mxu1 %v15176_v45 }
 0xac9   : > { %13244 = vmatpush1.bf16.msra.mxu0 %v15173_v51 }
 0xaca   : > { %13408 = vmatpush1.bf16.msra.mxu1 %v15175_v52  ;;  %13245 = vmatprep.subr.bf16.mxu0 %v15198_v55 }
 0xacb   : > { %13409 = vmatprep.subr.bf16.mxu1 %v15200_v15 }
 0xacd   : > { %13246 = vmatpush1.bf16.msra.mxu0 %v15197_v34 }
 0xace   : > { %13410 = vmatpush1.bf16.msra.mxu1 %v15199_v9 }
 0xad0   : > { %13248 = vmatmul.mubr.bf16.vlgmr.msra.gmra.mrb[28].mxu0 %v17434_v50 }
 0xad1   : > { %13412 = vmatmul.mubr.bf16.vlgmr.msra.gmra.mrb[28].mxu1 %v17434_v50 }
 0xba3   : > { %v13249_v4 = vpop.f32.mrb[28].mxu0 }
 0xba4   : > { %v15872_v58 = vadd.f32 %v13249_v4, %v3735_v54  ;;  %v13413_v50 = vpop.f32.mrb[28].mxu1  ;;  %v13251_v62 = vpop.f32.mrb[29].mxu0 }
 0xba5   : > { %v15874_v29 = vadd.f32 %v13413_v50, %v3743_v24  ;;  %v15873_v43 = vadd.f32 %v13251_v62, %v3739_v56  ;;  %v13415_v18 = vpop.f32.mrb[29].mxu1  ;;  %v13253_v17 = vpop.f32.mrb[30].mxu0 }
 0xba6   : > { %13440 = vst [vmem:[%s17679_s27 + $0xa0] sm:$0xff] %v15872_v58  ;;  %v15875_v30 = vadd.f32 %v13415_v18, %v3747_v57  ;;  %v13417_v59 = vpop.f32.mrb[30].mxu1  ;;  %v13254_v60 = vpop.f32.mrb[31].mxu0 }
 0xba7   : > { %13442 = vst [vmem:[%s17679_s27 + $0xb0] sm:$0xff] %v15874_v29  ;;  %13441 = vst [vmem:[%s17679_s27 + $0xa8] sm:$0xff] %v15873_v43  ;;  %v13418_v36 = vpop.f32.mrb[31].mxu1 }
 0xba8   : > { %13443 = vst [vmem:[%s17679_s27 + $0xb8] sm:$0xff] %v15875_v30 }
 0xba9   : > { %16515 = shalt.err (!%p16512_p9)
}
 0xbaa   : > { %s16516_s12 = scalar_lea.hbm %s18863_s14, 3072  ;;  %s16520_s16 = scalar_lea.hbm %s18979_s7, 6144 }
 0xbab   : > { %p16517_p11 = scmp.ne.s32.totalorder %s18863_s14, %s16516_s12  ;;  %p16521_p8 = scmp.lt.u32.totalorder %s18863_s14, %s18979_s7 }
 0xbac   : > { %p16522_p12 = scmp.lt.u32.totalorder %s16520_s16, %s16516_s12  ;;  %p16524_p2 = scmp.lt.u32.totalorder %s16516_s12, %s18863_s14 }
 0xbad   : > { %p16518_p4 = pnand %p16517_p11, %p18980_p6 }
 0xbae   : > { %p16523_p13 = por %p16522_p12, %p16521_p8 }
 0xbaf   : > { %p16519_p7 = pneg %p16518_p4 }
 0xbb0   : > { %p16525_p1 = por %p16524_p2, %p16523_p13 }
 0xbb2   : > { %p16526_p10 = pnand %p16525_p1, %p16519_p7 }
 0xbb4   : > { %16529 = shalt.err (!%p16526_p10)
}
 0xbb5   : > { %16074 = dma.vmem_to_hbm [thread:$0]  (%p18980_p6), %s18865_s21, 3072, %s18863_s14, %s13445_s3  }
 0xbb6 PF: > { %s13471_s10 = sand.u32 1, %s16576_s17   ;;  %p18981_p3 = scmp.ne.s32.totalorder %s18957_s26, 0 }
 0xbb7   : > { %p18982_p0 = scmp.ge.s32.totalorder %s16588_s20, 2  ;;  %s13472_s27 = scalar_lea.sflag [#allocation4], %s13471_s10 }
 0xbb9   : > { %p16112_p5 = pnand %p18982_p0, %p18981_p3 }
 0xbbb   : > { %16571 = dma.done.wait (!%p16112_p5), %s13472_s27, 3072  }
 0xbbc   : > { %16573 = vsyncadd (!%p16112_p5), %s13472_s27, 4294964224  ;;  %s18983_s20 = sld [smem:[#allocation29_spill]]  ;;  %s18984_s13 = sld [smem:[#allocation30_spill]] }
 0xbbd   : > { %s18985_s17 = smov %s16580_s18  ;;  %s18986_s18 = smov %s16584_s19 }
 0xbc2   : > { %p29_p9 = scmp.ge.s32.totalorder %s18983_s20, 4   ;;  %s18987_s19 = smov %s18984_s13 }
 0xbc4   :  { %31 = sbr.rel (!%p29_p9) target bundleno = 18 (0x12), region = 157 }
 0xbcb   :  { %13477 = vsyncpa [#allocation3], 1 }
 0xbcc   :  { %13479 = vsyncpa [#allocation3 + $0x1], 1 }
 0xbcd   :  { %13480 = vsyncpa [#allocation6], 1 }
 0xbce   :  { %13481 = vsyncpa [#allocation9], 1 }
 0xbcf   :  { %13482 = vsyncpa [#allocation12], 1 }
 0xbd0   :  { %13483 = vsyncpa [#allocation15], 1 }
 0xbd1   :  { %13484 = vsyncpa [#allocation18], 1 }
 0xbd2   :  { %13486 = vsyncpa [#allocation18 + $0x1], 1 }
 0xbd3   :  { %13487 = vsyncpa [#allocation4], 1 }
 0xbd4   :  { %13489 = vsyncpa [#allocation4 + $0x1], 1 }

</bundles_post_ra>
